<compile_context>
chip_gen: v6e
topology: v6e:2x2x1
jax: 0.10.0
libtpu: 0.0.40
codegen_flags: <defaults>
</compile_context>

<pallas_src>
import math

import jax
import jax.numpy as jnp
from jax import lax
from jax.experimental import pallas as pl
from jax.experimental.pallas import tpu as pltpu

RADIUS = 5                      # BTMLoss radius
DIAM = 2 * RADIUS + 1           # 11
ALPHA = 200.0
POOL_PAD = 2                    # max_pool2d(kernel_size=5, stride=1, padding=2)
POOL_K = 2 * POOL_PAD + 1       # 5


def _round_up(x, m):
    return ((x + m - 1) // m) * m


def _vmem_capacity_bytes():
    """Physical VMEM per TensorCore; conservative (v7x) fallback if unknown."""
    try:
        info = pltpu.get_tpu_info()
        cap = getattr(info, "vmem_capacity_bytes", None)
        if cap:
            return int(cap)
    except Exception:
        pass
    return 64 * 2 ** 20


def _make_btm_kernel(H, W, TH, Wpp):
    """Per-(image, row-tile) kernel; all shape parameters are static."""
    R = RADIUS

    def kernel(feat_ref, num_ref, den_ref):
        # feat_ref : (4, Hp, Wpp) zero-padded [sqrt(a)*r, sqrt(a)*g,
        #            sqrt(a)*b, sal] for one image (resident across row tiles).
        # num_ref, den_ref : (1, 128) lane-dense per-tile partial sums.
        t = pl.program_id(1)                    # row-tile index inside image
        rb = pl.multiple_of(t * TH, 8)          # local row of first halo row
        row0 = t * TH                           # image row of local center row 0

        # ---- centers, loaded once at full 128-aligned lane width -----------
        c0 = feat_ref[0, pl.ds(rb + R, TH), :]
        c1 = feat_ref[1, pl.ds(rb + R, TH), :]
        c2 = feat_ref[2, pl.ds(rb + R, TH), :]
        cs = feat_ref[3, pl.ds(rb + R, TH), :]

        # ---- 11x11 bilateral distance sum (fully unrolled) -----------------
        acc = jnp.zeros((TH, Wpp), jnp.float32)
        for dy in range(DIAM):
            # one aligned full-width band load per (dy, channel); dx shifts go
            # through pltpu.roll on the XLU instead of 44 misaligned ref slices
            b0 = feat_ref[0, pl.ds(rb + dy, TH), :]
            b1 = feat_ref[1, pl.ds(rb + dy, TH), :]
            b2 = feat_ref[2, pl.ds(rb + dy, TH), :]
            bs = feat_ref[3, pl.ds(rb + dy, TH), :]
            for dx in range(DIAM):
                if dy == R and dx == R:
                    continue                    # center offset contributes 0
                sh = (R - dx) % Wpp
                if sh == 0:
                    n0, n1, n2, ns = b0, b1, b2, bs
                else:
                    n0 = pltpu.roll(b0, shift=sh, axis=1)
                    n1 = pltpu.roll(b1, shift=sh, axis=1)
                    n2 = pltpu.roll(b2, shift=sh, axis=1)
                    ns = pltpu.roll(bs, shift=sh, axis=1)
                d0 = n0 - c0
                d1 = n1 - c1
                d2 = n2 - c2
                w = jnp.exp(-(d0 * d0 + d1 * d1 + d2 * d2))  # alpha pre-folded
                acc = acc + w * jnp.abs(ns - cs)

        # ---- 5x5 contour mask (separable dilation / erosion) ---------------
        Hm = TH + 2 * POOL_PAD
        off = R - POOL_PAD                       # 3
        sal_w = feat_ref[3, pl.ds(rb + off, Hm), :]            # (Hm, Wpp)
        lbl0 = (sal_w > 0.5).astype(jnp.float32)               # dilation source
        rr = lax.broadcasted_iota(jnp.int32, (Hm, Wpp), 0)
        ll = lax.broadcasted_iota(jnp.int32, (Hm, Wpp), 1)
        g_row = row0 + rr - POOL_PAD                           # global image row
        g_col = ll - R                                         # global image col
        inside = (g_row >= 0) & (g_row < H) & (g_col >= 0) & (g_col < W)
        # -inf-padded max_pool2d <=> ignore out-of-image positions:
        # pad the dilation source with 0, the erosion source with 1.
        lbl1 = jnp.where(inside, lbl0, 1.0)

        dil_r = lbl0[0:TH, :]
        ero_r = lbl1[0:TH, :]
        for k in range(1, POOL_K):               # rows: sublane slices
            dil_r = jnp.maximum(dil_r, lbl0[k:k + TH, :])
            ero_r = jnp.minimum(ero_r, lbl1[k:k + TH, :])
        dil = dil_r
        ero = ero_r
        for k in range(1, POOL_PAD + 1):         # cols: lane rolls on the XLU
            dil = jnp.maximum(dil, pltpu.roll(dil_r, shift=k, axis=1))
            dil = jnp.maximum(dil, pltpu.roll(dil_r, shift=Wpp - k, axis=1))
            ero = jnp.minimum(ero, pltpu.roll(ero_r, shift=k, axis=1))
            ero = jnp.minimum(ero, pltpu.roll(ero_r, shift=Wpp - k, axis=1))
        mask = dil - ero

        # exclude lane-pad columns and row-tile pad rows from the sums
        ri = lax.broadcasted_iota(jnp.int32, (TH, Wpp), 0)
        ci = lax.broadcasted_iota(jnp.int32, (TH, Wpp), 1)
        valid = ((row0 + ri) < H) & (ci >= R) & (ci < R + W)
        mask = jnp.where(valid, mask, 0.0)

        num_ref[...] = jnp.broadcast_to(jnp.sum(acc * mask), (1, 128))
        den_ref[...] = jnp.broadcast_to(jnp.sum(mask), (1, 128))

    return kernel


def btm_loss(pred, image, radius=RADIUS, row_tile=None):
    """Pallas implementation of BTM.forward(pred, feat)."""
    assert radius == RADIUS
    N, Cp, H, W = pred.shape
    assert Cp == 1 and image.shape == (N, 3, H, W), \
        "expect pred (N,1,H,W), image (N,3,H,W)"
    R = radius

    # TODO(synk): a general bilinear resize of `image` to pred's spatial size
    # is omitted; with matching sizes (scale_factor=1, align_corners=True) the
    # PyTorch F.interpolate calls are exact identities.
    sal = pred.astype(jnp.float32)
    img = image.astype(jnp.float32) * jnp.float32(math.sqrt(ALPHA))  # fold -alpha
    feat = jnp.concatenate([img, sal], axis=1)                       # (N,4,H,W)

    # lane-dense padded width (multiple of 128); pad columns are zero and are
    # excluded from the reductions inside the kernel.
    Wpp = _round_up(W + 2 * R, 128)

    # Row tiling: >= 2 tiles per image keeps both v7x TensorCores busy even
    # for N == 1; TH <= 128 bounds the per-tile VALU temporaries.  TH does not
    # affect DMA traffic (the image block is resident across tiles).
    if row_tile is None:
        tiles_per_img = max(2, -(-8 // N))
        TH = _round_up(-(-H // tiles_per_img), 8)
    else:
        TH = _round_up(max(1, int(row_tile)), 8)
    TH = max(8, min(128, TH))
    TH = min(TH, _round_up(H, 8))
    n_tiles = -(-H // TH)
    H_rows = n_tiles * TH
    Hp = _round_up(H_rows + 2 * R, 8)

    # single zero-padded copy (matches F.unfold zero padding); no slab stack.
    featp = jnp.pad(feat, ((0, 0), (0, 0),
                           (R, Hp - H - R),
                           (R, Wpp - W - R)))

    block_bytes = 4 * Hp * Wpp * 4
    cap = (_vmem_capacity_bytes() * 3) // 4          # <= 48 MiB on v7x
    vmem_limit = int(min(cap, max(32 * 2 ** 20, 2 * block_bytes + 16 * 2 ** 20)))
    # TODO(synk): for images too large for a resident (4, Hp, Wpp) block,
    # switch to manually DMA'd row slabs (memory_space=pl.ANY).

    kernel = _make_btm_kernel(H, W, TH, Wpp)

    num, den = pl.pallas_call(
        kernel,
        out_shape=(jax.ShapeDtypeStruct((N, n_tiles, 1, 128), jnp.float32),
                   jax.ShapeDtypeStruct((N, n_tiles, 1, 128), jnp.float32)),
        grid_spec=pltpu.PrefetchScalarGridSpec(
            num_scalar_prefetch=0,
            grid=(N, n_tiles),
            in_specs=[
                # whole padded image resident in VMEM; the block index does not
                # depend on the row-tile axis, so it is fetched once per image.
                pl.BlockSpec((None, 4, Hp, Wpp), lambda n, t: (n, 0, 0, 0)),
            ],
            out_specs=(
                pl.BlockSpec((None, None, 1, 128), lambda n, t: (n, t, 0, 0)),
                pl.BlockSpec((None, None, 1, 128), lambda n, t: (n, t, 0, 0)),
            ),
        ),
        compiler_params=pltpu.CompilerParams(
            dimension_semantics=("parallel", "parallel"),
            vmem_limit_bytes=vmem_limit),
    )(featp)

    return jnp.sum(num[:, :, 0, 0]) / (jnp.sum(den[:, :, 0, 0]) + 1e-6)


def btm_loss_ref(pred, image, radius=RADIUS):
    """Pure-JAX reference replicating the PyTorch semantics."""
    alpha = 200.0
    N, _, H, W = pred.shape
    sal = pred.astype(jnp.float32)
    img = image.astype(jnp.float32)

    lbl = (sal > 0.5).astype(jnp.float32)

    def maxpool5(x):  # PyTorch max_pool2d pads with -inf
        return jax.lax.reduce_window(
            x, -jnp.inf, jax.lax.max, (1, 1, 5, 5), (1, 1, 1, 1),
            [(0, 0), (0, 0), (2, 2), (2, 2)])

    ero = 1.0 - maxpool5(1.0 - lbl)
    dil = maxpool5(lbl)
    mask = dil - ero

    feat = jnp.concatenate([img, sal], axis=1)                  # (N, 4, H, W)
    featp = jnp.pad(feat, ((0, 0), (0, 0), (radius, radius), (radius, radius)))
    loss_map = jnp.zeros((N, 1, H, W), jnp.float32)
    D = 2 * radius + 1
    for dy in range(D):
        for dx in range(D):
            nb = featp[:, :, dy:dy + H, dx:dx + W]
            d = nb - feat
            dis_sal = jnp.abs(d[:, 3:4])
            dis_map = jnp.exp(-alpha * jnp.sum(d[:, 0:3] ** 2, axis=1, keepdims=True))
            loss_map = loss_map + dis_map * dis_sal
    return jnp.sum(loss_map * mask) / (jnp.sum(mask) + 1e-6)


if __name__ == "__main__":
    key = jax.random.PRNGKey(0)
    k1, k2, k3, k4 = jax.random.split(key, 4)

    # Test 1: small square map, two row tiles per image (default tiling).
    N, H, W = 2, 16, 16
    pred = jax.random.uniform(k1, (N, 1, H, W), dtype=jnp.float32)   # saliency in [0,1]
    feat = jax.random.normal(k2, (N, 3, H, W), dtype=jnp.float32)    # image features
    loss = jax.block_until_ready(jax.jit(btm_loss)(pred, feat))
    ref = jax.block_until_ready(btm_loss_ref(pred, feat))
    assert jnp.allclose(loss, ref, rtol=1e-4, atol=1e-5), (loss, ref)

    # Test 2: ragged H/W with explicit row tiling (exercises the multi-tile
    # path, row/column validity masking and the in-block halo handling).
    N2, H2, W2 = 1, 23, 20
    pred2 = jax.random.uniform(k3, (N2, 1, H2, W2), dtype=jnp.float32)
    feat2 = jax.random.normal(k4, (N2, 3, H2, W2), dtype=jnp.float32)
    loss2 = jax.block_until_ready(
        jax.jit(lambda p, f: btm_loss(p, f, row_tile=8))(pred2, feat2))
    ref2 = jax.block_until_ready(btm_loss_ref(pred2, feat2))
    assert jnp.allclose(loss2, ref2, rtol=1e-4, atol=1e-5), (loss2, ref2)

    print("KERNEL_OK")
</pallas_src>

<mosaic_0001>
module attributes {stable_mosaic.version = 11 : i64} {
  func.func @kernel(%arg0: i32, %arg1: i32, %arg2: memref<1x4x32x128xf32, #tpu.memory_space<vmem>>, %arg3: memref<1x1x1x128xf32, #tpu.memory_space<vmem>>, %arg4: memref<1x1x1x128xf32, #tpu.memory_space<vmem>>) attributes {dimension_semantics = [#tpu.dimension_semantics<parallel>, #tpu.dimension_semantics<parallel>], iteration_bounds = array<i64: 2, 2>, scalar_prefetch = 0 : i64, scratch_operands = 0 : i64, tpu.core_type = #tpu.core_type<tc>, window_params = [{transform_indices = @transform_0, window_bounds = array<i64: 1, 4, 32, 128>}, {transform_indices = @transform_1, window_bounds = array<i64: 1, 1, 1, 128>}, {transform_indices = @transform_2, window_bounds = array<i64: 1, 1, 1, 128>}]} {
    %c8_i32 = arith.constant 8 : i32
    %0 = arith.muli %arg1, %c8_i32 : i32
    %1 = tpu.assume_multiple %0, 8 : i32
    %c8_i32_0 = arith.constant 8 : i32
    %2 = arith.muli %arg1, %c8_i32_0 : i32
    %c5_i32 = arith.constant 5 : i32
    %3 = arith.addi %1, %c5_i32 : i32
    %c0 = arith.constant 0 : index
    %c0_1 = arith.constant 0 : index
    %4 = arith.index_cast %3 : i32 to index
    %c0_2 = arith.constant 0 : index
    %5 = vector.load %arg2[%c0, %c0_1, %4, %c0_2] : memref<1x4x32x128xf32, #tpu.memory_space<vmem>>, vector<1x1x8x128xf32>
    %6 = vector.shape_cast %5 : vector<1x1x8x128xf32> to vector<8x128xf32>
    %c5_i32_3 = arith.constant 5 : i32
    %7 = arith.addi %1, %c5_i32_3 : i32
    %c0_4 = arith.constant 0 : index
    %c1 = arith.constant 1 : index
    %8 = arith.index_cast %7 : i32 to index
    %c0_5 = arith.constant 0 : index
    %9 = vector.load %arg2[%c0_4, %c1, %8, %c0_5] : memref<1x4x32x128xf32, #tpu.memory_space<vmem>>, vector<1x1x8x128xf32>
    %10 = vector.shape_cast %9 : vector<1x1x8x128xf32> to vector<8x128xf32>
    %c5_i32_6 = arith.constant 5 : i32
    %11 = arith.addi %1, %c5_i32_6 : i32
    %c0_7 = arith.constant 0 : index
    %c2 = arith.constant 2 : index
    %12 = arith.index_cast %11 : i32 to index
    %c0_8 = arith.constant 0 : index
    %13 = vector.load %arg2[%c0_7, %c2, %12, %c0_8] : memref<1x4x32x128xf32, #tpu.memory_space<vmem>>, vector<1x1x8x128xf32>
    %14 = vector.shape_cast %13 : vector<1x1x8x128xf32> to vector<8x128xf32>
    %c5_i32_9 = arith.constant 5 : i32
    %15 = arith.addi %1, %c5_i32_9 : i32
    %c0_10 = arith.constant 0 : index
    %c3 = arith.constant 3 : index
    %16 = arith.index_cast %15 : i32 to index
    %c0_11 = arith.constant 0 : index
    %17 = vector.load %arg2[%c0_10, %c3, %16, %c0_11] : memref<1x4x32x128xf32, #tpu.memory_space<vmem>>, vector<1x1x8x128xf32>
    %18 = vector.shape_cast %17 : vector<1x1x8x128xf32> to vector<8x128xf32>
    %cst = arith.constant 0.000000e+00 : f32
    %19 = vector.broadcast %cst : f32 to vector<8x128xf32>
    %c0_i32 = arith.constant 0 : i32
    %20 = arith.addi %1, %c0_i32 : i32
    %c0_12 = arith.constant 0 : index
    %c0_13 = arith.constant 0 : index
    %21 = arith.index_cast %20 : i32 to index
    %c0_14 = arith.constant 0 : index
    %22 = vector.load %arg2[%c0_12, %c0_13, %21, %c0_14] : memref<1x4x32x128xf32, #tpu.memory_space<vmem>>, vector<1x1x8x128xf32>
    %23 = vector.shape_cast %22 : vector<1x1x8x128xf32> to vector<8x128xf32>
    %c0_i32_15 = arith.constant 0 : i32
    %24 = arith.addi %1, %c0_i32_15 : i32
    %c0_16 = arith.constant 0 : index
    %c1_17 = arith.constant 1 : index
    %25 = arith.index_cast %24 : i32 to index
    %c0_18 = arith.constant 0 : index
    %26 = vector.load %arg2[%c0_16, %c1_17, %25, %c0_18] : memref<1x4x32x128xf32, #tpu.memory_space<vmem>>, vector<1x1x8x128xf32>
    %27 = vector.shape_cast %26 : vector<1x1x8x128xf32> to vector<8x128xf32>
    %c0_i32_19 = arith.constant 0 : i32
    %28 = arith.addi %1, %c0_i32_19 : i32
    %c0_20 = arith.constant 0 : index
    %c2_21 = arith.constant 2 : index
    %29 = arith.index_cast %28 : i32 to index
    %c0_22 = arith.constant 0 : index
    %30 = vector.load %arg2[%c0_20, %c2_21, %29, %c0_22] : memref<1x4x32x128xf32, #tpu.memory_space<vmem>>, vector<1x1x8x128xf32>
    %31 = vector.shape_cast %30 : vector<1x1x8x128xf32> to vector<8x128xf32>
    %c0_i32_23 = arith.constant 0 : i32
    %32 = arith.addi %1, %c0_i32_23 : i32
    %c0_24 = arith.constant 0 : index
    %c3_25 = arith.constant 3 : index
    %33 = arith.index_cast %32 : i32 to index
    %c0_26 = arith.constant 0 : index
    %34 = vector.load %arg2[%c0_24, %c3_25, %33, %c0_26] : memref<1x4x32x128xf32, #tpu.memory_space<vmem>>, vector<1x1x8x128xf32>
    %35 = vector.shape_cast %34 : vector<1x1x8x128xf32> to vector<8x128xf32>
    %c5_i32_27 = arith.constant 5 : i32
    %36 = tpu.dynamic_rotate %23 by %c5_i32_27 dim 1 : vector<8x128xf32>, i32 -> vector<8x128xf32>
    %c5_i32_28 = arith.constant 5 : i32
    %37 = tpu.dynamic_rotate %27 by %c5_i32_28 dim 1 : vector<8x128xf32>, i32 -> vector<8x128xf32>
    %c5_i32_29 = arith.constant 5 : i32
    %38 = tpu.dynamic_rotate %31 by %c5_i32_29 dim 1 : vector<8x128xf32>, i32 -> vector<8x128xf32>
    %c5_i32_30 = arith.constant 5 : i32
    %39 = tpu.dynamic_rotate %35 by %c5_i32_30 dim 1 : vector<8x128xf32>, i32 -> vector<8x128xf32>
    %40 = arith.subf %36, %6 : vector<8x128xf32>
    %41 = arith.subf %37, %10 : vector<8x128xf32>
    %42 = arith.subf %38, %14 : vector<8x128xf32>
    %43 = arith.mulf %40, %40 : vector<8x128xf32>
    %44 = arith.mulf %41, %41 : vector<8x128xf32>
    %45 = arith.addf %43, %44 : vector<8x128xf32>
    %46 = arith.mulf %42, %42 : vector<8x128xf32>
    %47 = arith.addf %45, %46 : vector<8x128xf32>
    %cst_31 = arith.constant 0.000000e+00 : f32
    %48 = vector.broadcast %cst_31 : f32 to vector<8x128xf32>
    %49 = arith.subf %48, %47 : vector<8x128xf32>
    %50 = math.exp %49 : vector<8x128xf32>
    %51 = arith.subf %39, %18 : vector<8x128xf32>
    %52 = math.absf %51 : vector<8x128xf32>
    %53 = arith.mulf %50, %52 : vector<8x128xf32>
    %54 = arith.addf %19, %53 : vector<8x128xf32>
    %c4_i32 = arith.constant 4 : i32
    %55 = tpu.dynamic_rotate %23 by %c4_i32 dim 1 : vector<8x128xf32>, i32 -> vector<8x128xf32>
    %c4_i32_32 = arith.constant 4 : i32
    %56 = tpu.dynamic_rotate %27 by %c4_i32_32 dim 1 : vector<8x128xf32>, i32 -> vector<8x128xf32>
    %c4_i32_33 = arith.constant 4 : i32
    %57 = tpu.dynamic_rotate %31 by %c4_i32_33 dim 1 : vector<8x128xf32>, i32 -> vector<8x128xf32>
    %c4_i32_34 = arith.constant 4 : i32
    %58 = tpu.dynamic_rotate %35 by %c4_i32_34 dim 1 : vector<8x128xf32>, i32 -> vector<8x128xf32>
    %59 = arith.subf %55, %6 : vector<8x128xf32>
    %60 = arith.subf %56, %10 : vector<8x128xf32>
    %61 = arith.subf %57, %14 : vector<8x128xf32>
    %62 = arith.mulf %59, %59 : vector<8x128xf32>
    %63 = arith.mulf %60, %60 : vector<8x128xf32>
    %64 = arith.addf %62, %63 : vector<8x128xf32>
    %65 = arith.mulf %61, %61 : vector<8x128xf32>
    %66 = arith.addf %64, %65 : vector<8x128xf32>
    %cst_35 = arith.constant 0.000000e+00 : f32
    %67 = vector.broadcast %cst_35 : f32 to vector<8x128xf32>
    %68 = arith.subf %67, %66 : vector<8x128xf32>
    %69 = math.exp %68 : vector<8x128xf32>
    %70 = arith.subf %58, %18 : vector<8x128xf32>
    %71 = math.absf %70 : vector<8x128xf32>
    %72 = arith.mulf %69, %71 : vector<8x128xf32>
    %73 = arith.addf %54, %72 : vector<8x128xf32>
    %c3_i32 = arith.constant 3 : i32
    %74 = tpu.dynamic_rotate %23 by %c3_i32 dim 1 : vector<8x128xf32>, i32 -> vector<8x128xf32>
    %c3_i32_36 = arith.constant 3 : i32
    %75 = tpu.dynamic_rotate %27 by %c3_i32_36 dim 1 : vector<8x128xf32>, i32 -> vector<8x128xf32>
    %c3_i32_37 = arith.constant 3 : i32
    %76 = tpu.dynamic_rotate %31 by %c3_i32_37 dim 1 : vector<8x128xf32>, i32 -> vector<8x128xf32>
    %c3_i32_38 = arith.constant 3 : i32
    %77 = tpu.dynamic_rotate %35 by %c3_i32_38 dim 1 : vector<8x128xf32>, i32 -> vector<8x128xf32>
    %78 = arith.subf %74, %6 : vector<8x128xf32>
    %79 = arith.subf %75, %10 : vector<8x128xf32>
    %80 = arith.subf %76, %14 : vector<8x128xf32>
    %81 = arith.mulf %78, %78 : vector<8x128xf32>
    %82 = arith.mulf %79, %79 : vector<8x128xf32>
    %83 = arith.addf %81, %82 : vector<8x128xf32>
    %84 = arith.mulf %80, %80 : vector<8x128xf32>
    %85 = arith.addf %83, %84 : vector<8x128xf32>
    %cst_39 = arith.constant 0.000000e+00 : f32
    %86 = vector.broadcast %cst_39 : f32 to vector<8x128xf32>
    %87 = arith.subf %86, %85 : vector<8x128xf32>
    %88 = math.exp %87 : vector<8x128xf32>
    %89 = arith.subf %77, %18 : vector<8x128xf32>
    %90 = math.absf %89 : vector<8x128xf32>
    %91 = arith.mulf %88, %90 : vector<8x128xf32>
    %92 = arith.addf %73, %91 : vector<8x128xf32>
    %c2_i32 = arith.constant 2 : i32
    %93 = tpu.dynamic_rotate %23 by %c2_i32 dim 1 : vector<8x128xf32>, i32 -> vector<8x128xf32>
    %c2_i32_40 = arith.constant 2 : i32
    %94 = tpu.dynamic_rotate %27 by %c2_i32_40 dim 1 : vector<8x128xf32>, i32 -> vector<8x128xf32>
    %c2_i32_41 = arith.constant 2 : i32
    %95 = tpu.dynamic_rotate %31 by %c2_i32_41 dim 1 : vector<8x128xf32>, i32 -> vector<8x128xf32>
    %c2_i32_42 = arith.constant 2 : i32
    %96 = tpu.dynamic_rotate %35 by %c2_i32_42 dim 1 : vector<8x128xf32>, i32 -> vector<8x128xf32>
    %97 = arith.subf %93, %6 : vector<8x128xf32>
    %98 = arith.subf %94, %10 : vector<8x128xf32>
    %99 = arith.subf %95, %14 : vector<8x128xf32>
    %100 = arith.mulf %97, %97 : vector<8x128xf32>
    %101 = arith.mulf %98, %98 : vector<8x128xf32>
    %102 = arith.addf %100, %101 : vector<8x128xf32>
    %103 = arith.mulf %99, %99 : vector<8x128xf32>
    %104 = arith.addf %102, %103 : vector<8x128xf32>
    %cst_43 = arith.constant 0.000000e+00 : f32
    %105 = vector.broadcast %cst_43 : f32 to vector<8x128xf32>
    %106 = arith.subf %105, %104 : vector<8x128xf32>
    %107 = math.exp %106 : vector<8x128xf32>
    %108 = arith.subf %96, %18 : vector<8x128xf32>
    %109 = math.absf %108 : vector<8x128xf32>
    %110 = arith.mulf %107, %109 : vector<8x128xf32>
    %111 = arith.addf %92, %110 : vector<8x128xf32>
    %c1_i32 = arith.constant 1 : i32
    %112 = tpu.dynamic_rotate %23 by %c1_i32 dim 1 : vector<8x128xf32>, i32 -> vector<8x128xf32>
    %c1_i32_44 = arith.constant 1 : i32
    %113 = tpu.dynamic_rotate %27 by %c1_i32_44 dim 1 : vector<8x128xf32>, i32 -> vector<8x128xf32>
    %c1_i32_45 = arith.constant 1 : i32
    %114 = tpu.dynamic_rotate %31 by %c1_i32_45 dim 1 : vector<8x128xf32>, i32 -> vector<8x128xf32>
    %c1_i32_46 = arith.constant 1 : i32
    %115 = tpu.dynamic_rotate %35 by %c1_i32_46 dim 1 : vector<8x128xf32>, i32 -> vector<8x128xf32>
    %116 = arith.subf %112, %6 : vector<8x128xf32>
    %117 = arith.subf %113, %10 : vector<8x128xf32>
    %118 = arith.subf %114, %14 : vector<8x128xf32>
    %119 = arith.mulf %116, %116 : vector<8x128xf32>
    %120 = arith.mulf %117, %117 : vector<8x128xf32>
    %121 = arith.addf %119, %120 : vector<8x128xf32>
    %122 = arith.mulf %118, %118 : vector<8x128xf32>
    %123 = arith.addf %121, %122 : vector<8x128xf32>
    %cst_47 = arith.constant 0.000000e+00 : f32
    %124 = vector.broadcast %cst_47 : f32 to vector<8x128xf32>
    %125 = arith.subf %124, %123 : vector<8x128xf32>
    %126 = math.exp %125 : vector<8x128xf32>
    %127 = arith.subf %115, %18 : vector<8x128xf32>
    %128 = math.absf %127 : vector<8x128xf32>
    %129 = arith.mulf %126, %128 : vector<8x128xf32>
    %130 = arith.addf %111, %129 : vector<8x128xf32>
    %131 = arith.subf %23, %6 : vector<8x128xf32>
    %132 = arith.subf %27, %10 : vector<8x128xf32>
    %133 = arith.subf %31, %14 : vector<8x128xf32>
    %134 = arith.mulf %131, %131 : vector<8x128xf32>
    %135 = arith.mulf %132, %132 : vector<8x128xf32>
    %136 = arith.addf %134, %135 : vector<8x128xf32>
    %137 = arith.mulf %133, %133 : vector<8x128xf32>
    %138 = arith.addf %136, %137 : vector<8x128xf32>
    %cst_48 = arith.constant 0.000000e+00 : f32
    %139 = vector.broadcast %cst_48 : f32 to vector<8x128xf32>
    %140 = arith.subf %139, %138 : vector<8x128xf32>
    %141 = math.exp %140 : vector<8x128xf32>
    %142 = arith.subf %35, %18 : vector<8x128xf32>
    %143 = math.absf %142 : vector<8x128xf32>
    %144 = arith.mulf %141, %143 : vector<8x128xf32>
    %145 = arith.addf %130, %144 : vector<8x128xf32>
    %c127_i32 = arith.constant 127 : i32
    %146 = tpu.dynamic_rotate %23 by %c127_i32 dim 1 : vector<8x128xf32>, i32 -> vector<8x128xf32>
    %c127_i32_49 = arith.constant 127 : i32
    %147 = tpu.dynamic_rotate %27 by %c127_i32_49 dim 1 : vector<8x128xf32>, i32 -> vector<8x128xf32>
    %c127_i32_50 = arith.constant 127 : i32
    %148 = tpu.dynamic_rotate %31 by %c127_i32_50 dim 1 : vector<8x128xf32>, i32 -> vector<8x128xf32>
    %c127_i32_51 = arith.constant 127 : i32
    %149 = tpu.dynamic_rotate %35 by %c127_i32_51 dim 1 : vector<8x128xf32>, i32 -> vector<8x128xf32>
    %150 = arith.subf %146, %6 : vector<8x128xf32>
    %151 = arith.subf %147, %10 : vector<8x128xf32>
    %152 = arith.subf %148, %14 : vector<8x128xf32>
    %153 = arith.mulf %150, %150 : vector<8x128xf32>
    %154 = arith.mulf %151, %151 : vector<8x128xf32>
    %155 = arith.addf %153, %154 : vector<8x128xf32>
    %156 = arith.mulf %152, %152 : vector<8x128xf32>
    %157 = arith.addf %155, %156 : vector<8x128xf32>
    %cst_52 = arith.constant 0.000000e+00 : f32
    %158 = vector.broadcast %cst_52 : f32 to vector<8x128xf32>
    %159 = arith.subf %158, %157 : vector<8x128xf32>
    %160 = math.exp %159 : vector<8x128xf32>
    %161 = arith.subf %149, %18 : vector<8x128xf32>
    %162 = math.absf %161 : vector<8x128xf32>
    %163 = arith.mulf %160, %162 : vector<8x128xf32>
    %164 = arith.addf %145, %163 : vector<8x128xf32>
    %c126_i32 = arith.constant 126 : i32
    %165 = tpu.dynamic_rotate %23 by %c126_i32 dim 1 : vector<8x128xf32>, i32 -> vector<8x128xf32>
    %c126_i32_53 = arith.constant 126 : i32
    %166 = tpu.dynamic_rotate %27 by %c126_i32_53 dim 1 : vector<8x128xf32>, i32 -> vector<8x128xf32>
    %c126_i32_54 = arith.constant 126 : i32
    %167 = tpu.dynamic_rotate %31 by %c126_i32_54 dim 1 : vector<8x128xf32>, i32 -> vector<8x128xf32>
    %c126_i32_55 = arith.constant 126 : i32
    %168 = tpu.dynamic_rotate %35 by %c126_i32_55 dim 1 : vector<8x128xf32>, i32 -> vector<8x128xf32>
    %169 = arith.subf %165, %6 : vector<8x128xf32>
    %170 = arith.subf %166, %10 : vector<8x128xf32>
    %171 = arith.subf %167, %14 : vector<8x128xf32>
    %172 = arith.mulf %169, %169 : vector<8x128xf32>
    %173 = arith.mulf %170, %170 : vector<8x128xf32>
    %174 = arith.addf %172, %173 : vector<8x128xf32>
    %175 = arith.mulf %171, %171 : vector<8x128xf32>
    %176 = arith.addf %174, %175 : vector<8x128xf32>
    %cst_56 = arith.constant 0.000000e+00 : f32
    %177 = vector.broadcast %cst_56 : f32 to vector<8x128xf32>
    %178 = arith.subf %177, %176 : vector<8x128xf32>
    %179 = math.exp %178 : vector<8x128xf32>
    %180 = arith.subf %168, %18 : vector<8x128xf32>
    %181 = math.absf %180 : vector<8x128xf32>
    %182 = arith.mulf %179, %181 : vector<8x128xf32>
    %183 = arith.addf %164, %182 : vector<8x128xf32>
    %c125_i32 = arith.constant 125 : i32
    %184 = tpu.dynamic_rotate %23 by %c125_i32 dim 1 : vector<8x128xf32>, i32 -> vector<8x128xf32>
    %c125_i32_57 = arith.constant 125 : i32
    %185 = tpu.dynamic_rotate %27 by %c125_i32_57 dim 1 : vector<8x128xf32>, i32 -> vector<8x128xf32>
    %c125_i32_58 = arith.constant 125 : i32
    %186 = tpu.dynamic_rotate %31 by %c125_i32_58 dim 1 : vector<8x128xf32>, i32 -> vector<8x128xf32>
    %c125_i32_59 = arith.constant 125 : i32
    %187 = tpu.dynamic_rotate %35 by %c125_i32_59 dim 1 : vector<8x128xf32>, i32 -> vector<8x128xf32>
    %188 = arith.subf %184, %6 : vector<8x128xf32>
    %189 = arith.subf %185, %10 : vector<8x128xf32>
    %190 = arith.subf %186, %14 : vector<8x128xf32>
    %191 = arith.mulf %188, %188 : vector<8x128xf32>
    %192 = arith.mulf %189, %189 : vector<8x128xf32>
    %193 = arith.addf %191, %192 : vector<8x128xf32>
    %194 = arith.mulf %190, %190 : vector<8x128xf32>
    %195 = arith.addf %193, %194 : vector<8x128xf32>
    %cst_60 = arith.constant 0.000000e+00 : f32
    %196 = vector.broadcast %cst_60 : f32 to vector<8x128xf32>
    %197 = arith.subf %196, %195 : vector<8x128xf32>
    %198 = math.exp %197 : vector<8x128xf32>
    %199 = arith.subf %187, %18 : vector<8x128xf32>
    %200 = math.absf %199 : vector<8x128xf32>
    %201 = arith.mulf %198, %200 : vector<8x128xf32>
    %202 = arith.addf %183, %201 : vector<8x128xf32>
    %c124_i32 = arith.constant 124 : i32
    %203 = tpu.dynamic_rotate %23 by %c124_i32 dim 1 : vector<8x128xf32>, i32 -> vector<8x128xf32>
    %c124_i32_61 = arith.constant 124 : i32
    %204 = tpu.dynamic_rotate %27 by %c124_i32_61 dim 1 : vector<8x128xf32>, i32 -> vector<8x128xf32>
    %c124_i32_62 = arith.constant 124 : i32
    %205 = tpu.dynamic_rotate %31 by %c124_i32_62 dim 1 : vector<8x128xf32>, i32 -> vector<8x128xf32>
    %c124_i32_63 = arith.constant 124 : i32
    %206 = tpu.dynamic_rotate %35 by %c124_i32_63 dim 1 : vector<8x128xf32>, i32 -> vector<8x128xf32>
    %207 = arith.subf %203, %6 : vector<8x128xf32>
    %208 = arith.subf %204, %10 : vector<8x128xf32>
    %209 = arith.subf %205, %14 : vector<8x128xf32>
    %210 = arith.mulf %207, %207 : vector<8x128xf32>
    %211 = arith.mulf %208, %208 : vector<8x128xf32>
    %212 = arith.addf %210, %211 : vector<8x128xf32>
    %213 = arith.mulf %209, %209 : vector<8x128xf32>
    %214 = arith.addf %212, %213 : vector<8x128xf32>
    %cst_64 = arith.constant 0.000000e+00 : f32
    %215 = vector.broadcast %cst_64 : f32 to vector<8x128xf32>
    %216 = arith.subf %215, %214 : vector<8x128xf32>
    %217 = math.exp %216 : vector<8x128xf32>
    %218 = arith.subf %206, %18 : vector<8x128xf32>
    %219 = math.absf %218 : vector<8x128xf32>
    %220 = arith.mulf %217, %219 : vector<8x128xf32>
    %221 = arith.addf %202, %220 : vector<8x128xf32>
    %c123_i32 = arith.constant 123 : i32
    %222 = tpu.dynamic_rotate %23 by %c123_i32 dim 1 : vector<8x128xf32>, i32 -> vector<8x128xf32>
    %c123_i32_65 = arith.constant 123 : i32
    %223 = tpu.dynamic_rotate %27 by %c123_i32_65 dim 1 : vector<8x128xf32>, i32 -> vector<8x128xf32>
    %c123_i32_66 = arith.constant 123 : i32
    %224 = tpu.dynamic_rotate %31 by %c123_i32_66 dim 1 : vector<8x128xf32>, i32 -> vector<8x128xf32>
    %c123_i32_67 = arith.constant 123 : i32
    %225 = tpu.dynamic_rotate %35 by %c123_i32_67 dim 1 : vector<8x128xf32>, i32 -> vector<8x128xf32>
    %226 = arith.subf %222, %6 : vector<8x128xf32>
    %227 = arith.subf %223, %10 : vector<8x128xf32>
    %228 = arith.subf %224, %14 : vector<8x128xf32>
    %229 = arith.mulf %226, %226 : vector<8x128xf32>
    %230 = arith.mulf %227, %227 : vector<8x128xf32>
    %231 = arith.addf %229, %230 : vector<8x128xf32>
    %232 = arith.mulf %228, %228 : vector<8x128xf32>
    %233 = arith.addf %231, %232 : vector<8x128xf32>
    %cst_68 = arith.constant 0.000000e+00 : f32
    %234 = vector.broadcast %cst_68 : f32 to vector<8x128xf32>
    %235 = arith.subf %234, %233 : vector<8x128xf32>
    %236 = math.exp %235 : vector<8x128xf32>
    %237 = arith.subf %225, %18 : vector<8x128xf32>
    %238 = math.absf %237 : vector<8x128xf32>
    %239 = arith.mulf %236, %238 : vector<8x128xf32>
    %240 = arith.addf %221, %239 : vector<8x128xf32>
    %c1_i32_69 = arith.constant 1 : i32
    %241 = arith.addi %1, %c1_i32_69 : i32
    %c0_70 = arith.constant 0 : index
    %c0_71 = arith.constant 0 : index
    %242 = arith.index_cast %241 : i32 to index
    %c0_72 = arith.constant 0 : index
    %243 = vector.load %arg2[%c0_70, %c0_71, %242, %c0_72] : memref<1x4x32x128xf32, #tpu.memory_space<vmem>>, vector<1x1x8x128xf32>
    %244 = vector.shape_cast %243 : vector<1x1x8x128xf32> to vector<8x128xf32>
    %c1_i32_73 = arith.constant 1 : i32
    %245 = arith.addi %1, %c1_i32_73 : i32
    %c0_74 = arith.constant 0 : index
    %c1_75 = arith.constant 1 : index
    %246 = arith.index_cast %245 : i32 to index
    %c0_76 = arith.constant 0 : index
    %247 = vector.load %arg2[%c0_74, %c1_75, %246, %c0_76] : memref<1x4x32x128xf32, #tpu.memory_space<vmem>>, vector<1x1x8x128xf32>
    %248 = vector.shape_cast %247 : vector<1x1x8x128xf32> to vector<8x128xf32>
    %c1_i32_77 = arith.constant 1 : i32
    %249 = arith.addi %1, %c1_i32_77 : i32
    %c0_78 = arith.constant 0 : index
    %c2_79 = arith.constant 2 : index
    %250 = arith.index_cast %249 : i32 to index
    %c0_80 = arith.constant 0 : index
    %251 = vector.load %arg2[%c0_78, %c2_79, %250, %c0_80] : memref<1x4x32x128xf32, #tpu.memory_space<vmem>>, vector<1x1x8x128xf32>
    %252 = vector.shape_cast %251 : vector<1x1x8x128xf32> to vector<8x128xf32>
    %c1_i32_81 = arith.constant 1 : i32
    %253 = arith.addi %1, %c1_i32_81 : i32
    %c0_82 = arith.constant 0 : index
    %c3_83 = arith.constant 3 : index
    %254 = arith.index_cast %253 : i32 to index
    %c0_84 = arith.constant 0 : index
    %255 = vector.load %arg2[%c0_82, %c3_83, %254, %c0_84] : memref<1x4x32x128xf32, #tpu.memory_space<vmem>>, vector<1x1x8x128xf32>
    %256 = vector.shape_cast %255 : vector<1x1x8x128xf32> to vector<8x128xf32>
    %c5_i32_85 = arith.constant 5 : i32
    %257 = tpu.dynamic_rotate %244 by %c5_i32_85 dim 1 : vector<8x128xf32>, i32 -> vector<8x128xf32>
    %c5_i32_86 = arith.constant 5 : i32
    %258 = tpu.dynamic_rotate %248 by %c5_i32_86 dim 1 : vector<8x128xf32>, i32 -> vector<8x128xf32>
    %c5_i32_87 = arith.constant 5 : i32
    %259 = tpu.dynamic_rotate %252 by %c5_i32_87 dim 1 : vector<8x128xf32>, i32 -> vector<8x128xf32>
    %c5_i32_88 = arith.constant 5 : i32
    %260 = tpu.dynamic_rotate %256 by %c5_i32_88 dim 1 : vector<8x128xf32>, i32 -> vector<8x128xf32>
    %261 = arith.subf %257, %6 : vector<8x128xf32>
    %262 = arith.subf %258, %10 : vector<8x128xf32>
    %263 = arith.subf %259, %14 : vector<8x128xf32>
    %264 = arith.mulf %261, %261 : vector<8x128xf32>
    %265 = arith.mulf %262, %262 : vector<8x128xf32>
    %266 = arith.addf %264, %265 : vector<8x128xf32>
    %267 = arith.mulf %263, %263 : vector<8x128xf32>
    %268 = arith.addf %266, %267 : vector<8x128xf32>
    %cst_89 = arith.constant 0.000000e+00 : f32
    %269 = vector.broadcast %cst_89 : f32 to vector<8x128xf32>
    %270 = arith.subf %269, %268 : vector<8x128xf32>
    %271 = math.exp %270 : vector<8x128xf32>
    %272 = arith.subf %260, %18 : vector<8x128xf32>
    %273 = math.absf %272 : vector<8x128xf32>
    %274 = arith.mulf %271, %273 : vector<8x128xf32>
    %275 = arith.addf %240, %274 : vector<8x128xf32>
    %c4_i32_90 = arith.constant 4 : i32
    %276 = tpu.dynamic_rotate %244 by %c4_i32_90 dim 1 : vector<8x128xf32>, i32 -> vector<8x128xf32>
    %c4_i32_91 = arith.constant 4 : i32
    %277 = tpu.dynamic_rotate %248 by %c4_i32_91 dim 1 : vector<8x128xf32>, i32 -> vector<8x128xf32>
    %c4_i32_92 = arith.constant 4 : i32
    %278 = tpu.dynamic_rotate %252 by %c4_i32_92 dim 1 : vector<8x128xf32>, i32 -> vector<8x128xf32>
    %c4_i32_93 = arith.constant 4 : i32
    %279 = tpu.dynamic_rotate %256 by %c4_i32_93 dim 1 : vector<8x128xf32>, i32 -> vector<8x128xf32>
    %280 = arith.subf %276, %6 : vector<8x128xf32>
    %281 = arith.subf %277, %10 : vector<8x128xf32>
    %282 = arith.subf %278, %14 : vector<8x128xf32>
    %283 = arith.mulf %280, %280 : vector<8x128xf32>
    %284 = arith.mulf %281, %281 : vector<8x128xf32>
    %285 = arith.addf %283, %284 : vector<8x128xf32>
    %286 = arith.mulf %282, %282 : vector<8x128xf32>
    %287 = arith.addf %285, %286 : vector<8x128xf32>
    %cst_94 = arith.constant 0.000000e+00 : f32
    %288 = vector.broadcast %cst_94 : f32 to vector<8x128xf32>
    %289 = arith.subf %288, %287 : vector<8x128xf32>
    %290 = math.exp %289 : vector<8x128xf32>
    %291 = arith.subf %279, %18 : vector<8x128xf32>
    %292 = math.absf %291 : vector<8x128xf32>
    %293 = arith.mulf %290, %292 : vector<8x128xf32>
    %294 = arith.addf %275, %293 : vector<8x128xf32>
    %c3_i32_95 = arith.constant 3 : i32
    %295 = tpu.dynamic_rotate %244 by %c3_i32_95 dim 1 : vector<8x128xf32>, i32 -> vector<8x128xf32>
    %c3_i32_96 = arith.constant 3 : i32
    %296 = tpu.dynamic_rotate %248 by %c3_i32_96 dim 1 : vector<8x128xf32>, i32 -> vector<8x128xf32>
    %c3_i32_97 = arith.constant 3 : i32
    %297 = tpu.dynamic_rotate %252 by %c3_i32_97 dim 1 : vector<8x128xf32>, i32 -> vector<8x128xf32>
    %c3_i32_98 = arith.constant 3 : i32
    %298 = tpu.dynamic_rotate %256 by %c3_i32_98 dim 1 : vector<8x128xf32>, i32 -> vector<8x128xf32>
    %299 = arith.subf %295, %6 : vector<8x128xf32>
    %300 = arith.subf %296, %10 : vector<8x128xf32>
    %301 = arith.subf %297, %14 : vector<8x128xf32>
    %302 = arith.mulf %299, %299 : vector<8x128xf32>
    %303 = arith.mulf %300, %300 : vector<8x128xf32>
    %304 = arith.addf %302, %303 : vector<8x128xf32>
    %305 = arith.mulf %301, %301 : vector<8x128xf32>
    %306 = arith.addf %304, %305 : vector<8x128xf32>
    %cst_99 = arith.constant 0.000000e+00 : f32
    %307 = vector.broadcast %cst_99 : f32 to vector<8x128xf32>
    %308 = arith.subf %307, %306 : vector<8x128xf32>
    %309 = math.exp %308 : vector<8x128xf32>
    %310 = arith.subf %298, %18 : vector<8x128xf32>
    %311 = math.absf %310 : vector<8x128xf32>
    %312 = arith.mulf %309, %311 : vector<8x128xf32>
    %313 = arith.addf %294, %312 : vector<8x128xf32>
    %c2_i32_100 = arith.constant 2 : i32
    %314 = tpu.dynamic_rotate %244 by %c2_i32_100 dim 1 : vector<8x128xf32>, i32 -> vector<8x128xf32>
    %c2_i32_101 = arith.constant 2 : i32
    %315 = tpu.dynamic_rotate %248 by %c2_i32_101 dim 1 : vector<8x128xf32>, i32 -> vector<8x128xf32>
    %c2_i32_102 = arith.constant 2 : i32
    %316 = tpu.dynamic_rotate %252 by %c2_i32_102 dim 1 : vector<8x128xf32>, i32 -> vector<8x128xf32>
    %c2_i32_103 = arith.constant 2 : i32
    %317 = tpu.dynamic_rotate %256 by %c2_i32_103 dim 1 : vector<8x128xf32>, i32 -> vector<8x128xf32>
    %318 = arith.subf %314, %6 : vector<8x128xf32>
    %319 = arith.subf %315, %10 : vector<8x128xf32>
    %320 = arith.subf %316, %14 : vector<8x128xf32>
    %321 = arith.mulf %318, %318 : vector<8x128xf32>
    %322 = arith.mulf %319, %319 : vector<8x128xf32>
    %323 = arith.addf %321, %322 : vector<8x128xf32>
    %324 = arith.mulf %320, %320 : vector<8x128xf32>
    %325 = arith.addf %323, %324 : vector<8x128xf32>
    %cst_104 = arith.constant 0.000000e+00 : f32
    %326 = vector.broadcast %cst_104 : f32 to vector<8x128xf32>
    %327 = arith.subf %326, %325 : vector<8x128xf32>
    %328 = math.exp %327 : vector<8x128xf32>
    %329 = arith.subf %317, %18 : vector<8x128xf32>
    %330 = math.absf %329 : vector<8x128xf32>
    %331 = arith.mulf %328, %330 : vector<8x128xf32>
    %332 = arith.addf %313, %331 : vector<8x128xf32>
    %c1_i32_105 = arith.constant 1 : i32
    %333 = tpu.dynamic_rotate %244 by %c1_i32_105 dim 1 : vector<8x128xf32>, i32 -> vector<8x128xf32>
    %c1_i32_106 = arith.constant 1 : i32
    %334 = tpu.dynamic_rotate %248 by %c1_i32_106 dim 1 : vector<8x128xf32>, i32 -> vector<8x128xf32>
    %c1_i32_107 = arith.constant 1 : i32
    %335 = tpu.dynamic_rotate %252 by %c1_i32_107 dim 1 : vector<8x128xf32>, i32 -> vector<8x128xf32>
    %c1_i32_108 = arith.constant 1 : i32
    %336 = tpu.dynamic_rotate %256 by %c1_i32_108 dim 1 : vector<8x128xf32>, i32 -> vector<8x128xf32>
    %337 = arith.subf %333, %6 : vector<8x128xf32>
    %338 = arith.subf %334, %10 : vector<8x128xf32>
    %339 = arith.subf %335, %14 : vector<8x128xf32>
    %340 = arith.mulf %337, %337 : vector<8x128xf32>
    %341 = arith.mulf %338, %338 : vector<8x128xf32>
    %342 = arith.addf %340, %341 : vector<8x128xf32>
    %343 = arith.mulf %339, %339 : vector<8x128xf32>
    %344 = arith.addf %342, %343 : vector<8x128xf32>
    %cst_109 = arith.constant 0.000000e+00 : f32
    %345 = vector.broadcast %cst_109 : f32 to vector<8x128xf32>
    %346 = arith.subf %345, %344 : vector<8x128xf32>
    %347 = math.exp %346 : vector<8x128xf32>
    %348 = arith.subf %336, %18 : vector<8x128xf32>
    %349 = math.absf %348 : vector<8x128xf32>
    %350 = arith.mulf %347, %349 : vector<8x128xf32>
    %351 = arith.addf %332, %350 : vector<8x128xf32>
    %352 = arith.subf %244, %6 : vector<8x128xf32>
    %353 = arith.subf %248, %10 : vector<8x128xf32>
    %354 = arith.subf %252, %14 : vector<8x128xf32>
    %355 = arith.mulf %352, %352 : vector<8x128xf32>
    %356 = arith.mulf %353, %353 : vector<8x128xf32>
    %357 = arith.addf %355, %356 : vector<8x128xf32>
    %358 = arith.mulf %354, %354 : vector<8x128xf32>
    %359 = arith.addf %357, %358 : vector<8x128xf32>
    %cst_110 = arith.constant 0.000000e+00 : f32
    %360 = vector.broadcast %cst_110 : f32 to vector<8x128xf32>
    %361 = arith.subf %360, %359 : vector<8x128xf32>
    %362 = math.exp %361 : vector<8x128xf32>
    %363 = arith.subf %256, %18 : vector<8x128xf32>
    %364 = math.absf %363 : vector<8x128xf32>
    %365 = arith.mulf %362, %364 : vector<8x128xf32>
    %366 = arith.addf %351, %365 : vector<8x128xf32>
    %c127_i32_111 = arith.constant 127 : i32
    %367 = tpu.dynamic_rotate %244 by %c127_i32_111 dim 1 : vector<8x128xf32>, i32 -> vector<8x128xf32>
    %c127_i32_112 = arith.constant 127 : i32
    %368 = tpu.dynamic_rotate %248 by %c127_i32_112 dim 1 : vector<8x128xf32>, i32 -> vector<8x128xf32>
    %c127_i32_113 = arith.constant 127 : i32
    %369 = tpu.dynamic_rotate %252 by %c127_i32_113 dim 1 : vector<8x128xf32>, i32 -> vector<8x128xf32>
    %c127_i32_114 = arith.constant 127 : i32
    %370 = tpu.dynamic_rotate %256 by %c127_i32_114 dim 1 : vector<8x128xf32>, i32 -> vector<8x128xf32>
    %371 = arith.subf %367, %6 : vector<8x128xf32>
    %372 = arith.subf %368, %10 : vector<8x128xf32>
    %373 = arith.subf %369, %14 : vector<8x128xf32>
    %374 = arith.mulf %371, %371 : vector<8x128xf32>
    %375 = arith.mulf %372, %372 : vector<8x128xf32>
    %376 = arith.addf %374, %375 : vector<8x128xf32>
    %377 = arith.mulf %373, %373 : vector<8x128xf32>
    %378 = arith.addf %376, %377 : vector<8x128xf32>
    %cst_115 = arith.constant 0.000000e+00 : f32
    %379 = vector.broadcast %cst_115 : f32 to vector<8x128xf32>
    %380 = arith.subf %379, %378 : vector<8x128xf32>
    %381 = math.exp %380 : vector<8x128xf32>
    %382 = arith.subf %370, %18 : vector<8x128xf32>
    %383 = math.absf %382 : vector<8x128xf32>
    %384 = arith.mulf %381, %383 : vector<8x128xf32>
    %385 = arith.addf %366, %384 : vector<8x128xf32>
    %c126_i32_116 = arith.constant 126 : i32
    %386 = tpu.dynamic_rotate %244 by %c126_i32_116 dim 1 : vector<8x128xf32>, i32 -> vector<8x128xf32>
    %c126_i32_117 = arith.constant 126 : i32
    %387 = tpu.dynamic_rotate %248 by %c126_i32_117 dim 1 : vector<8x128xf32>, i32 -> vector<8x128xf32>
    %c126_i32_118 = arith.constant 126 : i32
    %388 = tpu.dynamic_rotate %252 by %c126_i32_118 dim 1 : vector<8x128xf32>, i32 -> vector<8x128xf32>
    %c126_i32_119 = arith.constant 126 : i32
    %389 = tpu.dynamic_rotate %256 by %c126_i32_119 dim 1 : vector<8x128xf32>, i32 -> vector<8x128xf32>
    %390 = arith.subf %386, %6 : vector<8x128xf32>
    %391 = arith.subf %387, %10 : vector<8x128xf32>
    %392 = arith.subf %388, %14 : vector<8x128xf32>
    %393 = arith.mulf %390, %390 : vector<8x128xf32>
    %394 = arith.mulf %391, %391 : vector<8x128xf32>
    %395 = arith.addf %393, %394 : vector<8x128xf32>
    %396 = arith.mulf %392, %392 : vector<8x128xf32>
    %397 = arith.addf %395, %396 : vector<8x128xf32>
    %cst_120 = arith.constant 0.000000e+00 : f32
    %398 = vector.broadcast %cst_120 : f32 to vector<8x128xf32>
    %399 = arith.subf %398, %397 : vector<8x128xf32>
    %400 = math.exp %399 : vector<8x128xf32>
    %401 = arith.subf %389, %18 : vector<8x128xf32>
    %402 = math.absf %401 : vector<8x128xf32>
    %403 = arith.mulf %400, %402 : vector<8x128xf32>
    %404 = arith.addf %385, %403 : vector<8x128xf32>
    %c125_i32_121 = arith.constant 125 : i32
    %405 = tpu.dynamic_rotate %244 by %c125_i32_121 dim 1 : vector<8x128xf32>, i32 -> vector<8x128xf32>
    %c125_i32_122 = arith.constant 125 : i32
    %406 = tpu.dynamic_rotate %248 by %c125_i32_122 dim 1 : vector<8x128xf32>, i32 -> vector<8x128xf32>
    %c125_i32_123 = arith.constant 125 : i32
    %407 = tpu.dynamic_rotate %252 by %c125_i32_123 dim 1 : vector<8x128xf32>, i32 -> vector<8x128xf32>
    %c125_i32_124 = arith.constant 125 : i32
    %408 = tpu.dynamic_rotate %256 by %c125_i32_124 dim 1 : vector<8x128xf32>, i32 -> vector<8x128xf32>
    %409 = arith.subf %405, %6 : vector<8x128xf32>
    %410 = arith.subf %406, %10 : vector<8x128xf32>
    %411 = arith.subf %407, %14 : vector<8x128xf32>
    %412 = arith.mulf %409, %409 : vector<8x128xf32>
    %413 = arith.mulf %410, %410 : vector<8x128xf32>
    %414 = arith.addf %412, %413 : vector<8x128xf32>
    %415 = arith.mulf %411, %411 : vector<8x128xf32>
    %416 = arith.addf %414, %415 : vector<8x128xf32>
    %cst_125 = arith.constant 0.000000e+00 : f32
    %417 = vector.broadcast %cst_125 : f32 to vector<8x128xf32>
    %418 = arith.subf %417, %416 : vector<8x128xf32>
    %419 = math.exp %418 : vector<8x128xf32>
    %420 = arith.subf %408, %18 : vector<8x128xf32>
    %421 = math.absf %420 : vector<8x128xf32>
    %422 = arith.mulf %419, %421 : vector<8x128xf32>
    %423 = arith.addf %404, %422 : vector<8x128xf32>
    %c124_i32_126 = arith.constant 124 : i32
    %424 = tpu.dynamic_rotate %244 by %c124_i32_126 dim 1 : vector<8x128xf32>, i32 -> vector<8x128xf32>
    %c124_i32_127 = arith.constant 124 : i32
    %425 = tpu.dynamic_rotate %248 by %c124_i32_127 dim 1 : vector<8x128xf32>, i32 -> vector<8x128xf32>
    %c124_i32_128 = arith.constant 124 : i32
    %426 = tpu.dynamic_rotate %252 by %c124_i32_128 dim 1 : vector<8x128xf32>, i32 -> vector<8x128xf32>
    %c124_i32_129 = arith.constant 124 : i32
    %427 = tpu.dynamic_rotate %256 by %c124_i32_129 dim 1 : vector<8x128xf32>, i32 -> vector<8x128xf32>
    %428 = arith.subf %424, %6 : vector<8x128xf32>
    %429 = arith.subf %425, %10 : vector<8x128xf32>
    %430 = arith.subf %426, %14 : vector<8x128xf32>
    %431 = arith.mulf %428, %428 : vector<8x128xf32>
    %432 = arith.mulf %429, %429 : vector<8x128xf32>
    %433 = arith.addf %431, %432 : vector<8x128xf32>
    %434 = arith.mulf %430, %430 : vector<8x128xf32>
    %435 = arith.addf %433, %434 : vector<8x128xf32>
    %cst_130 = arith.constant 0.000000e+00 : f32
    %436 = vector.broadcast %cst_130 : f32 to vector<8x128xf32>
    %437 = arith.subf %436, %435 : vector<8x128xf32>
    %438 = math.exp %437 : vector<8x128xf32>
    %439 = arith.subf %427, %18 : vector<8x128xf32>
    %440 = math.absf %439 : vector<8x128xf32>
    %441 = arith.mulf %438, %440 : vector<8x128xf32>
    %442 = arith.addf %423, %441 : vector<8x128xf32>
    %c123_i32_131 = arith.constant 123 : i32
    %443 = tpu.dynamic_rotate %244 by %c123_i32_131 dim 1 : vector<8x128xf32>, i32 -> vector<8x128xf32>
    %c123_i32_132 = arith.constant 123 : i32
    %444 = tpu.dynamic_rotate %248 by %c123_i32_132 dim 1 : vector<8x128xf32>, i32 -> vector<8x128xf32>
    %c123_i32_133 = arith.constant 123 : i32
    %445 = tpu.dynamic_rotate %252 by %c123_i32_133 dim 1 : vector<8x128xf32>, i32 -> vector<8x128xf32>
    %c123_i32_134 = arith.constant 123 : i32
    %446 = tpu.dynamic_rotate %256 by %c123_i32_134 dim 1 : vector<8x128xf32>, i32 -> vector<8x128xf32>
    %447 = arith.subf %443, %6 : vector<8x128xf32>
    %448 = arith.subf %444, %10 : vector<8x128xf32>
    %449 = arith.subf %445, %14 : vector<8x128xf32>
    %450 = arith.mulf %447, %447 : vector<8x128xf32>
    %451 = arith.mulf %448, %448 : vector<8x128xf32>
    %452 = arith.addf %450, %451 : vector<8x128xf32>
    %453 = arith.mulf %449, %449 : vector<8x128xf32>
    %454 = arith.addf %452, %453 : vector<8x128xf32>
    %cst_135 = arith.constant 0.000000e+00 : f32
    %455 = vector.broadcast %cst_135 : f32 to vector<8x128xf32>
    %456 = arith.subf %455, %454 : vector<8x128xf32>
    %457 = math.exp %456 : vector<8x128xf32>
    %458 = arith.subf %446, %18 : vector<8x128xf32>
    %459 = math.absf %458 : vector<8x128xf32>
    %460 = arith.mulf %457, %459 : vector<8x128xf32>
    %461 = arith.addf %442, %460 : vector<8x128xf32>
    %c2_i32_136 = arith.constant 2 : i32
    %462 = arith.addi %1, %c2_i32_136 : i32
    %c0_137 = arith.constant 0 : index
    %c0_138 = arith.constant 0 : index
    %463 = arith.index_cast %462 : i32 to index
    %c0_139 = arith.constant 0 : index
    %464 = vector.load %arg2[%c0_137, %c0_138, %463, %c0_139] : memref<1x4x32x128xf32, #tpu.memory_space<vmem>>, vector<1x1x8x128xf32>
    %465 = vector.shape_cast %464 : vector<1x1x8x128xf32> to vector<8x128xf32>
    %c2_i32_140 = arith.constant 2 : i32
    %466 = arith.addi %1, %c2_i32_140 : i32
    %c0_141 = arith.constant 0 : index
    %c1_142 = arith.constant 1 : index
    %467 = arith.index_cast %466 : i32 to index
    %c0_143 = arith.constant 0 : index
    %468 = vector.load %arg2[%c0_141, %c1_142, %467, %c0_143] : memref<1x4x32x128xf32, #tpu.memory_space<vmem>>, vector<1x1x8x128xf32>
    %469 = vector.shape_cast %468 : vector<1x1x8x128xf32> to vector<8x128xf32>
    %c2_i32_144 = arith.constant 2 : i32
    %470 = arith.addi %1, %c2_i32_144 : i32
    %c0_145 = arith.constant 0 : index
    %c2_146 = arith.constant 2 : index
    %471 = arith.index_cast %470 : i32 to index
    %c0_147 = arith.constant 0 : index
    %472 = vector.load %arg2[%c0_145, %c2_146, %471, %c0_147] : memref<1x4x32x128xf32, #tpu.memory_space<vmem>>, vector<1x1x8x128xf32>
    %473 = vector.shape_cast %472 : vector<1x1x8x128xf32> to vector<8x128xf32>
    %c2_i32_148 = arith.constant 2 : i32
    %474 = arith.addi %1, %c2_i32_148 : i32
    %c0_149 = arith.constant 0 : index
    %c3_150 = arith.constant 3 : index
    %475 = arith.index_cast %474 : i32 to index
    %c0_151 = arith.constant 0 : index
    %476 = vector.load %arg2[%c0_149, %c3_150, %475, %c0_151] : memref<1x4x32x128xf32, #tpu.memory_space<vmem>>, vector<1x1x8x128xf32>
    %477 = vector.shape_cast %476 : vector<1x1x8x128xf32> to vector<8x128xf32>
    %c5_i32_152 = arith.constant 5 : i32
    %478 = tpu.dynamic_rotate %465 by %c5_i32_152 dim 1 : vector<8x128xf32>, i32 -> vector<8x128xf32>
    %c5_i32_153 = arith.constant 5 : i32
    %479 = tpu.dynamic_rotate %469 by %c5_i32_153 dim 1 : vector<8x128xf32>, i32 -> vector<8x128xf32>
    %c5_i32_154 = arith.constant 5 : i32
    %480 = tpu.dynamic_rotate %473 by %c5_i32_154 dim 1 : vector<8x128xf32>, i32 -> vector<8x128xf32>
    %c5_i32_155 = arith.constant 5 : i32
    %481 = tpu.dynamic_rotate %477 by %c5_i32_155 dim 1 : vector<8x128xf32>, i32 -> vector<8x128xf32>
    %482 = arith.subf %478, %6 : vector<8x128xf32>
    %483 = arith.subf %479, %10 : vector<8x128xf32>
    %484 = arith.subf %480, %14 : vector<8x128xf32>
    %485 = arith.mulf %482, %482 : vector<8x128xf32>
    %486 = arith.mulf %483, %483 : vector<8x128xf32>
    %487 = arith.addf %485, %486 : vector<8x128xf32>
    %488 = arith.mulf %484, %484 : vector<8x128xf32>
    %489 = arith.addf %487, %488 : vector<8x128xf32>
    %cst_156 = arith.constant 0.000000e+00 : f32
    %490 = vector.broadcast %cst_156 : f32 to vector<8x128xf32>
    %491 = arith.subf %490, %489 : vector<8x128xf32>
    %492 = math.exp %491 : vector<8x128xf32>
    %493 = arith.subf %481, %18 : vector<8x128xf32>
    %494 = math.absf %493 : vector<8x128xf32>
    %495 = arith.mulf %492, %494 : vector<8x128xf32>
    %496 = arith.addf %461, %495 : vector<8x128xf32>
    %c4_i32_157 = arith.constant 4 : i32
    %497 = tpu.dynamic_rotate %465 by %c4_i32_157 dim 1 : vector<8x128xf32>, i32 -> vector<8x128xf32>
    %c4_i32_158 = arith.constant 4 : i32
    %498 = tpu.dynamic_rotate %469 by %c4_i32_158 dim 1 : vector<8x128xf32>, i32 -> vector<8x128xf32>
    %c4_i32_159 = arith.constant 4 : i32
    %499 = tpu.dynamic_rotate %473 by %c4_i32_159 dim 1 : vector<8x128xf32>, i32 -> vector<8x128xf32>
    %c4_i32_160 = arith.constant 4 : i32
    %500 = tpu.dynamic_rotate %477 by %c4_i32_160 dim 1 : vector<8x128xf32>, i32 -> vector<8x128xf32>
    %501 = arith.subf %497, %6 : vector<8x128xf32>
    %502 = arith.subf %498, %10 : vector<8x128xf32>
    %503 = arith.subf %499, %14 : vector<8x128xf32>
    %504 = arith.mulf %501, %501 : vector<8x128xf32>
    %505 = arith.mulf %502, %502 : vector<8x128xf32>
    %506 = arith.addf %504, %505 : vector<8x128xf32>
    %507 = arith.mulf %503, %503 : vector<8x128xf32>
    %508 = arith.addf %506, %507 : vector<8x128xf32>
    %cst_161 = arith.constant 0.000000e+00 : f32
    %509 = vector.broadcast %cst_161 : f32 to vector<8x128xf32>
    %510 = arith.subf %509, %508 : vector<8x128xf32>
    %511 = math.exp %510 : vector<8x128xf32>
    %512 = arith.subf %500, %18 : vector<8x128xf32>
    %513 = math.absf %512 : vector<8x128xf32>
    %514 = arith.mulf %511, %513 : vector<8x128xf32>
    %515 = arith.addf %496, %514 : vector<8x128xf32>
    %c3_i32_162 = arith.constant 3 : i32
    %516 = tpu.dynamic_rotate %465 by %c3_i32_162 dim 1 : vector<8x128xf32>, i32 -> vector<8x128xf32>
    %c3_i32_163 = arith.constant 3 : i32
    %517 = tpu.dynamic_rotate %469 by %c3_i32_163 dim 1 : vector<8x128xf32>, i32 -> vector<8x128xf32>
    %c3_i32_164 = arith.constant 3 : i32
    %518 = tpu.dynamic_rotate %473 by %c3_i32_164 dim 1 : vector<8x128xf32>, i32 -> vector<8x128xf32>
    %c3_i32_165 = arith.constant 3 : i32
    %519 = tpu.dynamic_rotate %477 by %c3_i32_165 dim 1 : vector<8x128xf32>, i32 -> vector<8x128xf32>
    %520 = arith.subf %516, %6 : vector<8x128xf32>
    %521 = arith.subf %517, %10 : vector<8x128xf32>
    %522 = arith.subf %518, %14 : vector<8x128xf32>
    %523 = arith.mulf %520, %520 : vector<8x128xf32>
    %524 = arith.mulf %521, %521 : vector<8x128xf32>
    %525 = arith.addf %523, %524 : vector<8x128xf32>
    %526 = arith.mulf %522, %522 : vector<8x128xf32>
    %527 = arith.addf %525, %526 : vector<8x128xf32>
    %cst_166 = arith.constant 0.000000e+00 : f32
    %528 = vector.broadcast %cst_166 : f32 to vector<8x128xf32>
    %529 = arith.subf %528, %527 : vector<8x128xf32>
    %530 = math.exp %529 : vector<8x128xf32>
    %531 = arith.subf %519, %18 : vector<8x128xf32>
    %532 = math.absf %531 : vector<8x128xf32>
    %533 = arith.mulf %530, %532 : vector<8x128xf32>
    %534 = arith.addf %515, %533 : vector<8x128xf32>
    %c2_i32_167 = arith.constant 2 : i32
    %535 = tpu.dynamic_rotate %465 by %c2_i32_167 dim 1 : vector<8x128xf32>, i32 -> vector<8x128xf32>
    %c2_i32_168 = arith.constant 2 : i32
    %536 = tpu.dynamic_rotate %469 by %c2_i32_168 dim 1 : vector<8x128xf32>, i32 -> vector<8x128xf32>
    %c2_i32_169 = arith.constant 2 : i32
    %537 = tpu.dynamic_rotate %473 by %c2_i32_169 dim 1 : vector<8x128xf32>, i32 -> vector<8x128xf32>
    %c2_i32_170 = arith.constant 2 : i32
    %538 = tpu.dynamic_rotate %477 by %c2_i32_170 dim 1 : vector<8x128xf32>, i32 -> vector<8x128xf32>
    %539 = arith.subf %535, %6 : vector<8x128xf32>
    %540 = arith.subf %536, %10 : vector<8x128xf32>
    %541 = arith.subf %537, %14 : vector<8x128xf32>
    %542 = arith.mulf %539, %539 : vector<8x128xf32>
    %543 = arith.mulf %540, %540 : vector<8x128xf32>
    %544 = arith.addf %542, %543 : vector<8x128xf32>
    %545 = arith.mulf %541, %541 : vector<8x128xf32>
    %546 = arith.addf %544, %545 : vector<8x128xf32>
    %cst_171 = arith.constant 0.000000e+00 : f32
    %547 = vector.broadcast %cst_171 : f32 to vector<8x128xf32>
    %548 = arith.subf %547, %546 : vector<8x128xf32>
    %549 = math.exp %548 : vector<8x128xf32>
    %550 = arith.subf %538, %18 : vector<8x128xf32>
    %551 = math.absf %550 : vector<8x128xf32>
    %552 = arith.mulf %549, %551 : vector<8x128xf32>
    %553 = arith.addf %534, %552 : vector<8x128xf32>
    %c1_i32_172 = arith.constant 1 : i32
    %554 = tpu.dynamic_rotate %465 by %c1_i32_172 dim 1 : vector<8x128xf32>, i32 -> vector<8x128xf32>
    %c1_i32_173 = arith.constant 1 : i32
    %555 = tpu.dynamic_rotate %469 by %c1_i32_173 dim 1 : vector<8x128xf32>, i32 -> vector<8x128xf32>
    %c1_i32_174 = arith.constant 1 : i32
    %556 = tpu.dynamic_rotate %473 by %c1_i32_174 dim 1 : vector<8x128xf32>, i32 -> vector<8x128xf32>
    %c1_i32_175 = arith.constant 1 : i32
    %557 = tpu.dynamic_rotate %477 by %c1_i32_175 dim 1 : vector<8x128xf32>, i32 -> vector<8x128xf32>
    %558 = arith.subf %554, %6 : vector<8x128xf32>
    %559 = arith.subf %555, %10 : vector<8x128xf32>
    %560 = arith.subf %556, %14 : vector<8x128xf32>
    %561 = arith.mulf %558, %558 : vector<8x128xf32>
    %562 = arith.mulf %559, %559 : vector<8x128xf32>
    %563 = arith.addf %561, %562 : vector<8x128xf32>
    %564 = arith.mulf %560, %560 : vector<8x128xf32>
    %565 = arith.addf %563, %564 : vector<8x128xf32>
    %cst_176 = arith.constant 0.000000e+00 : f32
    %566 = vector.broadcast %cst_176 : f32 to vector<8x128xf32>
    %567 = arith.subf %566, %565 : vector<8x128xf32>
    %568 = math.exp %567 : vector<8x128xf32>
    %569 = arith.subf %557, %18 : vector<8x128xf32>
    %570 = math.absf %569 : vector<8x128xf32>
    %571 = arith.mulf %568, %570 : vector<8x128xf32>
    %572 = arith.addf %553, %571 : vector<8x128xf32>
    %573 = arith.subf %465, %6 : vector<8x128xf32>
    %574 = arith.subf %469, %10 : vector<8x128xf32>
    %575 = arith.subf %473, %14 : vector<8x128xf32>
    %576 = arith.mulf %573, %573 : vector<8x128xf32>
    %577 = arith.mulf %574, %574 : vector<8x128xf32>
    %578 = arith.addf %576, %577 : vector<8x128xf32>
    %579 = arith.mulf %575, %575 : vector<8x128xf32>
    %580 = arith.addf %578, %579 : vector<8x128xf32>
    %cst_177 = arith.constant 0.000000e+00 : f32
    %581 = vector.broadcast %cst_177 : f32 to vector<8x128xf32>
    %582 = arith.subf %581, %580 : vector<8x128xf32>
    %583 = math.exp %582 : vector<8x128xf32>
    %584 = arith.subf %477, %18 : vector<8x128xf32>
    %585 = math.absf %584 : vector<8x128xf32>
    %586 = arith.mulf %583, %585 : vector<8x128xf32>
    %587 = arith.addf %572, %586 : vector<8x128xf32>
    %c127_i32_178 = arith.constant 127 : i32
    %588 = tpu.dynamic_rotate %465 by %c127_i32_178 dim 1 : vector<8x128xf32>, i32 -> vector<8x128xf32>
    %c127_i32_179 = arith.constant 127 : i32
    %589 = tpu.dynamic_rotate %469 by %c127_i32_179 dim 1 : vector<8x128xf32>, i32 -> vector<8x128xf32>
    %c127_i32_180 = arith.constant 127 : i32
    %590 = tpu.dynamic_rotate %473 by %c127_i32_180 dim 1 : vector<8x128xf32>, i32 -> vector<8x128xf32>
    %c127_i32_181 = arith.constant 127 : i32
    %591 = tpu.dynamic_rotate %477 by %c127_i32_181 dim 1 : vector<8x128xf32>, i32 -> vector<8x128xf32>
    %592 = arith.subf %588, %6 : vector<8x128xf32>
    %593 = arith.subf %589, %10 : vector<8x128xf32>
    %594 = arith.subf %590, %14 : vector<8x128xf32>
    %595 = arith.mulf %592, %592 : vector<8x128xf32>
    %596 = arith.mulf %593, %593 : vector<8x128xf32>
    %597 = arith.addf %595, %596 : vector<8x128xf32>
    %598 = arith.mulf %594, %594 : vector<8x128xf32>
    %599 = arith.addf %597, %598 : vector<8x128xf32>
    %cst_182 = arith.constant 0.000000e+00 : f32
    %600 = vector.broadcast %cst_182 : f32 to vector<8x128xf32>
    %601 = arith.subf %600, %599 : vector<8x128xf32>
    %602 = math.exp %601 : vector<8x128xf32>
    %603 = arith.subf %591, %18 : vector<8x128xf32>
    %604 = math.absf %603 : vector<8x128xf32>
    %605 = arith.mulf %602, %604 : vector<8x128xf32>
    %606 = arith.addf %587, %605 : vector<8x128xf32>
    %c126_i32_183 = arith.constant 126 : i32
    %607 = tpu.dynamic_rotate %465 by %c126_i32_183 dim 1 : vector<8x128xf32>, i32 -> vector<8x128xf32>
    %c126_i32_184 = arith.constant 126 : i32
    %608 = tpu.dynamic_rotate %469 by %c126_i32_184 dim 1 : vector<8x128xf32>, i32 -> vector<8x128xf32>
    %c126_i32_185 = arith.constant 126 : i32
    %609 = tpu.dynamic_rotate %473 by %c126_i32_185 dim 1 : vector<8x128xf32>, i32 -> vector<8x128xf32>
    %c126_i32_186 = arith.constant 126 : i32
    %610 = tpu.dynamic_rotate %477 by %c126_i32_186 dim 1 : vector<8x128xf32>, i32 -> vector<8x128xf32>
    %611 = arith.subf %607, %6 : vector<8x128xf32>
    %612 = arith.subf %608, %10 : vector<8x128xf32>
    %613 = arith.subf %609, %14 : vector<8x128xf32>
    %614 = arith.mulf %611, %611 : vector<8x128xf32>
    %615 = arith.mulf %612, %612 : vector<8x128xf32>
    %616 = arith.addf %614, %615 : vector<8x128xf32>
    %617 = arith.mulf %613, %613 : vector<8x128xf32>
    %618 = arith.addf %616, %617 : vector<8x128xf32>
    %cst_187 = arith.constant 0.000000e+00 : f32
    %619 = vector.broadcast %cst_187 : f32 to vector<8x128xf32>
    %620 = arith.subf %619, %618 : vector<8x128xf32>
    %621 = math.exp %620 : vector<8x128xf32>
    %622 = arith.subf %610, %18 : vector<8x128xf32>
    %623 = math.absf %622 : vector<8x128xf32>
    %624 = arith.mulf %621, %623 : vector<8x128xf32>
    %625 = arith.addf %606, %624 : vector<8x128xf32>
    %c125_i32_188 = arith.constant 125 : i32
    %626 = tpu.dynamic_rotate %465 by %c125_i32_188 dim 1 : vector<8x128xf32>, i32 -> vector<8x128xf32>
    %c125_i32_189 = arith.constant 125 : i32
    %627 = tpu.dynamic_rotate %469 by %c125_i32_189 dim 1 : vector<8x128xf32>, i32 -> vector<8x128xf32>
    %c125_i32_190 = arith.constant 125 : i32
    %628 = tpu.dynamic_rotate %473 by %c125_i32_190 dim 1 : vector<8x128xf32>, i32 -> vector<8x128xf32>
    %c125_i32_191 = arith.constant 125 : i32
    %629 = tpu.dynamic_rotate %477 by %c125_i32_191 dim 1 : vector<8x128xf32>, i32 -> vector<8x128xf32>
    %630 = arith.subf %626, %6 : vector<8x128xf32>
    %631 = arith.subf %627, %10 : vector<8x128xf32>
    %632 = arith.subf %628, %14 : vector<8x128xf32>
    %633 = arith.mulf %630, %630 : vector<8x128xf32>
    %634 = arith.mulf %631, %631 : vector<8x128xf32>
    %635 = arith.addf %633, %634 : vector<8x128xf32>
    %636 = arith.mulf %632, %632 : vector<8x128xf32>
    %637 = arith.addf %635, %636 : vector<8x128xf32>
    %cst_192 = arith.constant 0.000000e+00 : f32
    %638 = vector.broadcast %cst_192 : f32 to vector<8x128xf32>
    %639 = arith.subf %638, %637 : vector<8x128xf32>
    %640 = math.exp %639 : vector<8x128xf32>
    %641 = arith.subf %629, %18 : vector<8x128xf32>
    %642 = math.absf %641 : vector<8x128xf32>
    %643 = arith.mulf %640, %642 : vector<8x128xf32>
    %644 = arith.addf %625, %643 : vector<8x128xf32>
    %c124_i32_193 = arith.constant 124 : i32
    %645 = tpu.dynamic_rotate %465 by %c124_i32_193 dim 1 : vector<8x128xf32>, i32 -> vector<8x128xf32>
    %c124_i32_194 = arith.constant 124 : i32
    %646 = tpu.dynamic_rotate %469 by %c124_i32_194 dim 1 : vector<8x128xf32>, i32 -> vector<8x128xf32>
    %c124_i32_195 = arith.constant 124 : i32
    %647 = tpu.dynamic_rotate %473 by %c124_i32_195 dim 1 : vector<8x128xf32>, i32 -> vector<8x128xf32>
    %c124_i32_196 = arith.constant 124 : i32
    %648 = tpu.dynamic_rotate %477 by %c124_i32_196 dim 1 : vector<8x128xf32>, i32 -> vector<8x128xf32>
    %649 = arith.subf %645, %6 : vector<8x128xf32>
    %650 = arith.subf %646, %10 : vector<8x128xf32>
    %651 = arith.subf %647, %14 : vector<8x128xf32>
    %652 = arith.mulf %649, %649 : vector<8x128xf32>
    %653 = arith.mulf %650, %650 : vector<8x128xf32>
    %654 = arith.addf %652, %653 : vector<8x128xf32>
    %655 = arith.mulf %651, %651 : vector<8x128xf32>
    %656 = arith.addf %654, %655 : vector<8x128xf32>
    %cst_197 = arith.constant 0.000000e+00 : f32
    %657 = vector.broadcast %cst_197 : f32 to vector<8x128xf32>
    %658 = arith.subf %657, %656 : vector<8x128xf32>
    %659 = math.exp %658 : vector<8x128xf32>
    %660 = arith.subf %648, %18 : vector<8x128xf32>
    %661 = math.absf %660 : vector<8x128xf32>
    %662 = arith.mulf %659, %661 : vector<8x128xf32>
    %663 = arith.addf %644, %662 : vector<8x128xf32>
    %c123_i32_198 = arith.constant 123 : i32
    %664 = tpu.dynamic_rotate %465 by %c123_i32_198 dim 1 : vector<8x128xf32>, i32 -> vector<8x128xf32>
    %c123_i32_199 = arith.constant 123 : i32
    %665 = tpu.dynamic_rotate %469 by %c123_i32_199 dim 1 : vector<8x128xf32>, i32 -> vector<8x128xf32>
    %c123_i32_200 = arith.constant 123 : i32
    %666 = tpu.dynamic_rotate %473 by %c123_i32_200 dim 1 : vector<8x128xf32>, i32 -> vector<8x128xf32>
    %c123_i32_201 = arith.constant 123 : i32
    %667 = tpu.dynamic_rotate %477 by %c123_i32_201 dim 1 : vector<8x128xf32>, i32 -> vector<8x128xf32>
    %668 = arith.subf %664, %6 : vector<8x128xf32>
    %669 = arith.subf %665, %10 : vector<8x128xf32>
    %670 = arith.subf %666, %14 : vector<8x128xf32>
    %671 = arith.mulf %668, %668 : vector<8x128xf32>
    %672 = arith.mulf %669, %669 : vector<8x128xf32>
    %673 = arith.addf %671, %672 : vector<8x128xf32>
    %674 = arith.mulf %670, %670 : vector<8x128xf32>
    %675 = arith.addf %673, %674 : vector<8x128xf32>
    %cst_202 = arith.constant 0.000000e+00 : f32
    %676 = vector.broadcast %cst_202 : f32 to vector<8x128xf32>
    %677 = arith.subf %676, %675 : vector<8x128xf32>
    %678 = math.exp %677 : vector<8x128xf32>
    %679 = arith.subf %667, %18 : vector<8x128xf32>
    %680 = math.absf %679 : vector<8x128xf32>
    %681 = arith.mulf %678, %680 : vector<8x128xf32>
    %682 = arith.addf %663, %681 : vector<8x128xf32>
    %c3_i32_203 = arith.constant 3 : i32
    %683 = arith.addi %1, %c3_i32_203 : i32
    %c0_204 = arith.constant 0 : index
    %c0_205 = arith.constant 0 : index
    %684 = arith.index_cast %683 : i32 to index
    %c0_206 = arith.constant 0 : index
    %685 = vector.load %arg2[%c0_204, %c0_205, %684, %c0_206] : memref<1x4x32x128xf32, #tpu.memory_space<vmem>>, vector<1x1x8x128xf32>
    %686 = vector.shape_cast %685 : vector<1x1x8x128xf32> to vector<8x128xf32>
    %c3_i32_207 = arith.constant 3 : i32
    %687 = arith.addi %1, %c3_i32_207 : i32
    %c0_208 = arith.constant 0 : index
    %c1_209 = arith.constant 1 : index
    %688 = arith.index_cast %687 : i32 to index
    %c0_210 = arith.constant 0 : index
    %689 = vector.load %arg2[%c0_208, %c1_209, %688, %c0_210] : memref<1x4x32x128xf32, #tpu.memory_space<vmem>>, vector<1x1x8x128xf32>
    %690 = vector.shape_cast %689 : vector<1x1x8x128xf32> to vector<8x128xf32>
    %c3_i32_211 = arith.constant 3 : i32
    %691 = arith.addi %1, %c3_i32_211 : i32
    %c0_212 = arith.constant 0 : index
    %c2_213 = arith.constant 2 : index
    %692 = arith.index_cast %691 : i32 to index
    %c0_214 = arith.constant 0 : index
    %693 = vector.load %arg2[%c0_212, %c2_213, %692, %c0_214] : memref<1x4x32x128xf32, #tpu.memory_space<vmem>>, vector<1x1x8x128xf32>
    %694 = vector.shape_cast %693 : vector<1x1x8x128xf32> to vector<8x128xf32>
    %c3_i32_215 = arith.constant 3 : i32
    %695 = arith.addi %1, %c3_i32_215 : i32
    %c0_216 = arith.constant 0 : index
    %c3_217 = arith.constant 3 : index
    %696 = arith.index_cast %695 : i32 to index
    %c0_218 = arith.constant 0 : index
    %697 = vector.load %arg2[%c0_216, %c3_217, %696, %c0_218] : memref<1x4x32x128xf32, #tpu.memory_space<vmem>>, vector<1x1x8x128xf32>
    %698 = vector.shape_cast %697 : vector<1x1x8x128xf32> to vector<8x128xf32>
    %c5_i32_219 = arith.constant 5 : i32
    %699 = tpu.dynamic_rotate %686 by %c5_i32_219 dim 1 : vector<8x128xf32>, i32 -> vector<8x128xf32>
    %c5_i32_220 = arith.constant 5 : i32
    %700 = tpu.dynamic_rotate %690 by %c5_i32_220 dim 1 : vector<8x128xf32>, i32 -> vector<8x128xf32>
    %c5_i32_221 = arith.constant 5 : i32
    %701 = tpu.dynamic_rotate %694 by %c5_i32_221 dim 1 : vector<8x128xf32>, i32 -> vector<8x128xf32>
    %c5_i32_222 = arith.constant 5 : i32
    %702 = tpu.dynamic_rotate %698 by %c5_i32_222 dim 1 : vector<8x128xf32>, i32 -> vector<8x128xf32>
    %703 = arith.subf %699, %6 : vector<8x128xf32>
    %704 = arith.subf %700, %10 : vector<8x128xf32>
    %705 = arith.subf %701, %14 : vector<8x128xf32>
    %706 = arith.mulf %703, %703 : vector<8x128xf32>
    %707 = arith.mulf %704, %704 : vector<8x128xf32>
    %708 = arith.addf %706, %707 : vector<8x128xf32>
    %709 = arith.mulf %705, %705 : vector<8x128xf32>
    %710 = arith.addf %708, %709 : vector<8x128xf32>
    %cst_223 = arith.constant 0.000000e+00 : f32
    %711 = vector.broadcast %cst_223 : f32 to vector<8x128xf32>
    %712 = arith.subf %711, %710 : vector<8x128xf32>
    %713 = math.exp %712 : vector<8x128xf32>
    %714 = arith.subf %702, %18 : vector<8x128xf32>
    %715 = math.absf %714 : vector<8x128xf32>
    %716 = arith.mulf %713, %715 : vector<8x128xf32>
    %717 = arith.addf %682, %716 : vector<8x128xf32>
    %c4_i32_224 = arith.constant 4 : i32
    %718 = tpu.dynamic_rotate %686 by %c4_i32_224 dim 1 : vector<8x128xf32>, i32 -> vector<8x128xf32>
    %c4_i32_225 = arith.constant 4 : i32
    %719 = tpu.dynamic_rotate %690 by %c4_i32_225 dim 1 : vector<8x128xf32>, i32 -> vector<8x128xf32>
    %c4_i32_226 = arith.constant 4 : i32
    %720 = tpu.dynamic_rotate %694 by %c4_i32_226 dim 1 : vector<8x128xf32>, i32 -> vector<8x128xf32>
    %c4_i32_227 = arith.constant 4 : i32
    %721 = tpu.dynamic_rotate %698 by %c4_i32_227 dim 1 : vector<8x128xf32>, i32 -> vector<8x128xf32>
    %722 = arith.subf %718, %6 : vector<8x128xf32>
    %723 = arith.subf %719, %10 : vector<8x128xf32>
    %724 = arith.subf %720, %14 : vector<8x128xf32>
    %725 = arith.mulf %722, %722 : vector<8x128xf32>
    %726 = arith.mulf %723, %723 : vector<8x128xf32>
    %727 = arith.addf %725, %726 : vector<8x128xf32>
    %728 = arith.mulf %724, %724 : vector<8x128xf32>
    %729 = arith.addf %727, %728 : vector<8x128xf32>
    %cst_228 = arith.constant 0.000000e+00 : f32
    %730 = vector.broadcast %cst_228 : f32 to vector<8x128xf32>
    %731 = arith.subf %730, %729 : vector<8x128xf32>
    %732 = math.exp %731 : vector<8x128xf32>
    %733 = arith.subf %721, %18 : vector<8x128xf32>
    %734 = math.absf %733 : vector<8x128xf32>
    %735 = arith.mulf %732, %734 : vector<8x128xf32>
    %736 = arith.addf %717, %735 : vector<8x128xf32>
    %c3_i32_229 = arith.constant 3 : i32
    %737 = tpu.dynamic_rotate %686 by %c3_i32_229 dim 1 : vector<8x128xf32>, i32 -> vector<8x128xf32>
    %c3_i32_230 = arith.constant 3 : i32
    %738 = tpu.dynamic_rotate %690 by %c3_i32_230 dim 1 : vector<8x128xf32>, i32 -> vector<8x128xf32>
    %c3_i32_231 = arith.constant 3 : i32
    %739 = tpu.dynamic_rotate %694 by %c3_i32_231 dim 1 : vector<8x128xf32>, i32 -> vector<8x128xf32>
    %c3_i32_232 = arith.constant 3 : i32
    %740 = tpu.dynamic_rotate %698 by %c3_i32_232 dim 1 : vector<8x128xf32>, i32 -> vector<8x128xf32>
    %741 = arith.subf %737, %6 : vector<8x128xf32>
    %742 = arith.subf %738, %10 : vector<8x128xf32>
    %743 = arith.subf %739, %14 : vector<8x128xf32>
    %744 = arith.mulf %741, %741 : vector<8x128xf32>
    %745 = arith.mulf %742, %742 : vector<8x128xf32>
    %746 = arith.addf %744, %745 : vector<8x128xf32>
    %747 = arith.mulf %743, %743 : vector<8x128xf32>
    %748 = arith.addf %746, %747 : vector<8x128xf32>
    %cst_233 = arith.constant 0.000000e+00 : f32
    %749 = vector.broadcast %cst_233 : f32 to vector<8x128xf32>
    %750 = arith.subf %749, %748 : vector<8x128xf32>
    %751 = math.exp %750 : vector<8x128xf32>
    %752 = arith.subf %740, %18 : vector<8x128xf32>
    %753 = math.absf %752 : vector<8x128xf32>
    %754 = arith.mulf %751, %753 : vector<8x128xf32>
    %755 = arith.addf %736, %754 : vector<8x128xf32>
    %c2_i32_234 = arith.constant 2 : i32
    %756 = tpu.dynamic_rotate %686 by %c2_i32_234 dim 1 : vector<8x128xf32>, i32 -> vector<8x128xf32>
    %c2_i32_235 = arith.constant 2 : i32
    %757 = tpu.dynamic_rotate %690 by %c2_i32_235 dim 1 : vector<8x128xf32>, i32 -> vector<8x128xf32>
    %c2_i32_236 = arith.constant 2 : i32
    %758 = tpu.dynamic_rotate %694 by %c2_i32_236 dim 1 : vector<8x128xf32>, i32 -> vector<8x128xf32>
    %c2_i32_237 = arith.constant 2 : i32
    %759 = tpu.dynamic_rotate %698 by %c2_i32_237 dim 1 : vector<8x128xf32>, i32 -> vector<8x128xf32>
    %760 = arith.subf %756, %6 : vector<8x128xf32>
    %761 = arith.subf %757, %10 : vector<8x128xf32>
    %762 = arith.subf %758, %14 : vector<8x128xf32>
    %763 = arith.mulf %760, %760 : vector<8x128xf32>
    %764 = arith.mulf %761, %761 : vector<8x128xf32>
    %765 = arith.addf %763, %764 : vector<8x128xf32>
    %766 = arith.mulf %762, %762 : vector<8x128xf32>
    %767 = arith.addf %765, %766 : vector<8x128xf32>
    %cst_238 = arith.constant 0.000000e+00 : f32
    %768 = vector.broadcast %cst_238 : f32 to vector<8x128xf32>
    %769 = arith.subf %768, %767 : vector<8x128xf32>
    %770 = math.exp %769 : vector<8x128xf32>
    %771 = arith.subf %759, %18 : vector<8x128xf32>
    %772 = math.absf %771 : vector<8x128xf32>
    %773 = arith.mulf %770, %772 : vector<8x128xf32>
    %774 = arith.addf %755, %773 : vector<8x128xf32>
    %c1_i32_239 = arith.constant 1 : i32
    %775 = tpu.dynamic_rotate %686 by %c1_i32_239 dim 1 : vector<8x128xf32>, i32 -> vector<8x128xf32>
    %c1_i32_240 = arith.constant 1 : i32
    %776 = tpu.dynamic_rotate %690 by %c1_i32_240 dim 1 : vector<8x128xf32>, i32 -> vector<8x128xf32>
    %c1_i32_241 = arith.constant 1 : i32
    %777 = tpu.dynamic_rotate %694 by %c1_i32_241 dim 1 : vector<8x128xf32>, i32 -> vector<8x128xf32>
    %c1_i32_242 = arith.constant 1 : i32
    %778 = tpu.dynamic_rotate %698 by %c1_i32_242 dim 1 : vector<8x128xf32>, i32 -> vector<8x128xf32>
    %779 = arith.subf %775, %6 : vector<8x128xf32>
    %780 = arith.subf %776, %10 : vector<8x128xf32>
    %781 = arith.subf %777, %14 : vector<8x128xf32>
    %782 = arith.mulf %779, %779 : vector<8x128xf32>
    %783 = arith.mulf %780, %780 : vector<8x128xf32>
    %784 = arith.addf %782, %783 : vector<8x128xf32>
    %785 = arith.mulf %781, %781 : vector<8x128xf32>
    %786 = arith.addf %784, %785 : vector<8x128xf32>
    %cst_243 = arith.constant 0.000000e+00 : f32
    %787 = vector.broadcast %cst_243 : f32 to vector<8x128xf32>
    %788 = arith.subf %787, %786 : vector<8x128xf32>
    %789 = math.exp %788 : vector<8x128xf32>
    %790 = arith.subf %778, %18 : vector<8x128xf32>
    %791 = math.absf %790 : vector<8x128xf32>
    %792 = arith.mulf %789, %791 : vector<8x128xf32>
    %793 = arith.addf %774, %792 : vector<8x128xf32>
    %794 = arith.subf %686, %6 : vector<8x128xf32>
    %795 = arith.subf %690, %10 : vector<8x128xf32>
    %796 = arith.subf %694, %14 : vector<8x128xf32>
    %797 = arith.mulf %794, %794 : vector<8x128xf32>
    %798 = arith.mulf %795, %795 : vector<8x128xf32>
    %799 = arith.addf %797, %798 : vector<8x128xf32>
    %800 = arith.mulf %796, %796 : vector<8x128xf32>
    %801 = arith.addf %799, %800 : vector<8x128xf32>
    %cst_244 = arith.constant 0.000000e+00 : f32
    %802 = vector.broadcast %cst_244 : f32 to vector<8x128xf32>
    %803 = arith.subf %802, %801 : vector<8x128xf32>
    %804 = math.exp %803 : vector<8x128xf32>
    %805 = arith.subf %698, %18 : vector<8x128xf32>
    %806 = math.absf %805 : vector<8x128xf32>
    %807 = arith.mulf %804, %806 : vector<8x128xf32>
    %808 = arith.addf %793, %807 : vector<8x128xf32>
    %c127_i32_245 = arith.constant 127 : i32
    %809 = tpu.dynamic_rotate %686 by %c127_i32_245 dim 1 : vector<8x128xf32>, i32 -> vector<8x128xf32>
    %c127_i32_246 = arith.constant 127 : i32
    %810 = tpu.dynamic_rotate %690 by %c127_i32_246 dim 1 : vector<8x128xf32>, i32 -> vector<8x128xf32>
    %c127_i32_247 = arith.constant 127 : i32
    %811 = tpu.dynamic_rotate %694 by %c127_i32_247 dim 1 : vector<8x128xf32>, i32 -> vector<8x128xf32>
    %c127_i32_248 = arith.constant 127 : i32
    %812 = tpu.dynamic_rotate %698 by %c127_i32_248 dim 1 : vector<8x128xf32>, i32 -> vector<8x128xf32>
    %813 = arith.subf %809, %6 : vector<8x128xf32>
    %814 = arith.subf %810, %10 : vector<8x128xf32>
    %815 = arith.subf %811, %14 : vector<8x128xf32>
    %816 = arith.mulf %813, %813 : vector<8x128xf32>
    %817 = arith.mulf %814, %814 : vector<8x128xf32>
    %818 = arith.addf %816, %817 : vector<8x128xf32>
    %819 = arith.mulf %815, %815 : vector<8x128xf32>
    %820 = arith.addf %818, %819 : vector<8x128xf32>
    %cst_249 = arith.constant 0.000000e+00 : f32
    %821 = vector.broadcast %cst_249 : f32 to vector<8x128xf32>
    %822 = arith.subf %821, %820 : vector<8x128xf32>
    %823 = math.exp %822 : vector<8x128xf32>
    %824 = arith.subf %812, %18 : vector<8x128xf32>
    %825 = math.absf %824 : vector<8x128xf32>
    %826 = arith.mulf %823, %825 : vector<8x128xf32>
    %827 = arith.addf %808, %826 : vector<8x128xf32>
    %c126_i32_250 = arith.constant 126 : i32
    %828 = tpu.dynamic_rotate %686 by %c126_i32_250 dim 1 : vector<8x128xf32>, i32 -> vector<8x128xf32>
    %c126_i32_251 = arith.constant 126 : i32
    %829 = tpu.dynamic_rotate %690 by %c126_i32_251 dim 1 : vector<8x128xf32>, i32 -> vector<8x128xf32>
    %c126_i32_252 = arith.constant 126 : i32
    %830 = tpu.dynamic_rotate %694 by %c126_i32_252 dim 1 : vector<8x128xf32>, i32 -> vector<8x128xf32>
    %c126_i32_253 = arith.constant 126 : i32
    %831 = tpu.dynamic_rotate %698 by %c126_i32_253 dim 1 : vector<8x128xf32>, i32 -> vector<8x128xf32>
    %832 = arith.subf %828, %6 : vector<8x128xf32>
    %833 = arith.subf %829, %10 : vector<8x128xf32>
    %834 = arith.subf %830, %14 : vector<8x128xf32>
    %835 = arith.mulf %832, %832 : vector<8x128xf32>
    %836 = arith.mulf %833, %833 : vector<8x128xf32>
    %837 = arith.addf %835, %836 : vector<8x128xf32>
    %838 = arith.mulf %834, %834 : vector<8x128xf32>
    %839 = arith.addf %837, %838 : vector<8x128xf32>
    %cst_254 = arith.constant 0.000000e+00 : f32
    %840 = vector.broadcast %cst_254 : f32 to vector<8x128xf32>
    %841 = arith.subf %840, %839 : vector<8x128xf32>
    %842 = math.exp %841 : vector<8x128xf32>
    %843 = arith.subf %831, %18 : vector<8x128xf32>
    %844 = math.absf %843 : vector<8x128xf32>
    %845 = arith.mulf %842, %844 : vector<8x128xf32>
    %846 = arith.addf %827, %845 : vector<8x128xf32>
    %c125_i32_255 = arith.constant 125 : i32
    %847 = tpu.dynamic_rotate %686 by %c125_i32_255 dim 1 : vector<8x128xf32>, i32 -> vector<8x128xf32>
    %c125_i32_256 = arith.constant 125 : i32
    %848 = tpu.dynamic_rotate %690 by %c125_i32_256 dim 1 : vector<8x128xf32>, i32 -> vector<8x128xf32>
    %c125_i32_257 = arith.constant 125 : i32
    %849 = tpu.dynamic_rotate %694 by %c125_i32_257 dim 1 : vector<8x128xf32>, i32 -> vector<8x128xf32>
    %c125_i32_258 = arith.constant 125 : i32
    %850 = tpu.dynamic_rotate %698 by %c125_i32_258 dim 1 : vector<8x128xf32>, i32 -> vector<8x128xf32>
    %851 = arith.subf %847, %6 : vector<8x128xf32>
    %852 = arith.subf %848, %10 : vector<8x128xf32>
    %853 = arith.subf %849, %14 : vector<8x128xf32>
    %854 = arith.mulf %851, %851 : vector<8x128xf32>
    %855 = arith.mulf %852, %852 : vector<8x128xf32>
    %856 = arith.addf %854, %855 : vector<8x128xf32>
    %857 = arith.mulf %853, %853 : vector<8x128xf32>
    %858 = arith.addf %856, %857 : vector<8x128xf32>
    %cst_259 = arith.constant 0.000000e+00 : f32
    %859 = vector.broadcast %cst_259 : f32 to vector<8x128xf32>
    %860 = arith.subf %859, %858 : vector<8x128xf32>
    %861 = math.exp %860 : vector<8x128xf32>
    %862 = arith.subf %850, %18 : vector<8x128xf32>
    %863 = math.absf %862 : vector<8x128xf32>
    %864 = arith.mulf %861, %863 : vector<8x128xf32>
    %865 = arith.addf %846, %864 : vector<8x128xf32>
    %c124_i32_260 = arith.constant 124 : i32
    %866 = tpu.dynamic_rotate %686 by %c124_i32_260 dim 1 : vector<8x128xf32>, i32 -> vector<8x128xf32>
    %c124_i32_261 = arith.constant 124 : i32
    %867 = tpu.dynamic_rotate %690 by %c124_i32_261 dim 1 : vector<8x128xf32>, i32 -> vector<8x128xf32>
    %c124_i32_262 = arith.constant 124 : i32
    %868 = tpu.dynamic_rotate %694 by %c124_i32_262 dim 1 : vector<8x128xf32>, i32 -> vector<8x128xf32>
    %c124_i32_263 = arith.constant 124 : i32
    %869 = tpu.dynamic_rotate %698 by %c124_i32_263 dim 1 : vector<8x128xf32>, i32 -> vector<8x128xf32>
    %870 = arith.subf %866, %6 : vector<8x128xf32>
    %871 = arith.subf %867, %10 : vector<8x128xf32>
    %872 = arith.subf %868, %14 : vector<8x128xf32>
    %873 = arith.mulf %870, %870 : vector<8x128xf32>
    %874 = arith.mulf %871, %871 : vector<8x128xf32>
    %875 = arith.addf %873, %874 : vector<8x128xf32>
    %876 = arith.mulf %872, %872 : vector<8x128xf32>
    %877 = arith.addf %875, %876 : vector<8x128xf32>
    %cst_264 = arith.constant 0.000000e+00 : f32
    %878 = vector.broadcast %cst_264 : f32 to vector<8x128xf32>
    %879 = arith.subf %878, %877 : vector<8x128xf32>
    %880 = math.exp %879 : vector<8x128xf32>
    %881 = arith.subf %869, %18 : vector<8x128xf32>
    %882 = math.absf %881 : vector<8x128xf32>
    %883 = arith.mulf %880, %882 : vector<8x128xf32>
    %884 = arith.addf %865, %883 : vector<8x128xf32>
    %c123_i32_265 = arith.constant 123 : i32
    %885 = tpu.dynamic_rotate %686 by %c123_i32_265 dim 1 : vector<8x128xf32>, i32 -> vector<8x128xf32>
    %c123_i32_266 = arith.constant 123 : i32
    %886 = tpu.dynamic_rotate %690 by %c123_i32_266 dim 1 : vector<8x128xf32>, i32 -> vector<8x128xf32>
    %c123_i32_267 = arith.constant 123 : i32
    %887 = tpu.dynamic_rotate %694 by %c123_i32_267 dim 1 : vector<8x128xf32>, i32 -> vector<8x128xf32>
    %c123_i32_268 = arith.constant 123 : i32
    %888 = tpu.dynamic_rotate %698 by %c123_i32_268 dim 1 : vector<8x128xf32>, i32 -> vector<8x128xf32>
    %889 = arith.subf %885, %6 : vector<8x128xf32>
    %890 = arith.subf %886, %10 : vector<8x128xf32>
    %891 = arith.subf %887, %14 : vector<8x128xf32>
    %892 = arith.mulf %889, %889 : vector<8x128xf32>
    %893 = arith.mulf %890, %890 : vector<8x128xf32>
    %894 = arith.addf %892, %893 : vector<8x128xf32>
    %895 = arith.mulf %891, %891 : vector<8x128xf32>
    %896 = arith.addf %894, %895 : vector<8x128xf32>
    %cst_269 = arith.constant 0.000000e+00 : f32
    %897 = vector.broadcast %cst_269 : f32 to vector<8x128xf32>
    %898 = arith.subf %897, %896 : vector<8x128xf32>
    %899 = math.exp %898 : vector<8x128xf32>
    %900 = arith.subf %888, %18 : vector<8x128xf32>
    %901 = math.absf %900 : vector<8x128xf32>
    %902 = arith.mulf %899, %901 : vector<8x128xf32>
    %903 = arith.addf %884, %902 : vector<8x128xf32>
    %c4_i32_270 = arith.constant 4 : i32
    %904 = arith.addi %1, %c4_i32_270 : i32
    %c0_271 = arith.constant 0 : index
    %c0_272 = arith.constant 0 : index
    %905 = arith.index_cast %904 : i32 to index
    %c0_273 = arith.constant 0 : index
    %906 = vector.load %arg2[%c0_271, %c0_272, %905, %c0_273] : memref<1x4x32x128xf32, #tpu.memory_space<vmem>>, vector<1x1x8x128xf32>
    %907 = vector.shape_cast %906 : vector<1x1x8x128xf32> to vector<8x128xf32>
    %c4_i32_274 = arith.constant 4 : i32
    %908 = arith.addi %1, %c4_i32_274 : i32
    %c0_275 = arith.constant 0 : index
    %c1_276 = arith.constant 1 : index
    %909 = arith.index_cast %908 : i32 to index
    %c0_277 = arith.constant 0 : index
    %910 = vector.load %arg2[%c0_275, %c1_276, %909, %c0_277] : memref<1x4x32x128xf32, #tpu.memory_space<vmem>>, vector<1x1x8x128xf32>
    %911 = vector.shape_cast %910 : vector<1x1x8x128xf32> to vector<8x128xf32>
    %c4_i32_278 = arith.constant 4 : i32
    %912 = arith.addi %1, %c4_i32_278 : i32
    %c0_279 = arith.constant 0 : index
    %c2_280 = arith.constant 2 : index
    %913 = arith.index_cast %912 : i32 to index
    %c0_281 = arith.constant 0 : index
    %914 = vector.load %arg2[%c0_279, %c2_280, %913, %c0_281] : memref<1x4x32x128xf32, #tpu.memory_space<vmem>>, vector<1x1x8x128xf32>
    %915 = vector.shape_cast %914 : vector<1x1x8x128xf32> to vector<8x128xf32>
    %c4_i32_282 = arith.constant 4 : i32
    %916 = arith.addi %1, %c4_i32_282 : i32
    %c0_283 = arith.constant 0 : index
    %c3_284 = arith.constant 3 : index
    %917 = arith.index_cast %916 : i32 to index
    %c0_285 = arith.constant 0 : index
    %918 = vector.load %arg2[%c0_283, %c3_284, %917, %c0_285] : memref<1x4x32x128xf32, #tpu.memory_space<vmem>>, vector<1x1x8x128xf32>
    %919 = vector.shape_cast %918 : vector<1x1x8x128xf32> to vector<8x128xf32>
    %c5_i32_286 = arith.constant 5 : i32
    %920 = tpu.dynamic_rotate %907 by %c5_i32_286 dim 1 : vector<8x128xf32>, i32 -> vector<8x128xf32>
    %c5_i32_287 = arith.constant 5 : i32
    %921 = tpu.dynamic_rotate %911 by %c5_i32_287 dim 1 : vector<8x128xf32>, i32 -> vector<8x128xf32>
    %c5_i32_288 = arith.constant 5 : i32
    %922 = tpu.dynamic_rotate %915 by %c5_i32_288 dim 1 : vector<8x128xf32>, i32 -> vector<8x128xf32>
    %c5_i32_289 = arith.constant 5 : i32
    %923 = tpu.dynamic_rotate %919 by %c5_i32_289 dim 1 : vector<8x128xf32>, i32 -> vector<8x128xf32>
    %924 = arith.subf %920, %6 : vector<8x128xf32>
    %925 = arith.subf %921, %10 : vector<8x128xf32>
    %926 = arith.subf %922, %14 : vector<8x128xf32>
    %927 = arith.mulf %924, %924 : vector<8x128xf32>
    %928 = arith.mulf %925, %925 : vector<8x128xf32>
    %929 = arith.addf %927, %928 : vector<8x128xf32>
    %930 = arith.mulf %926, %926 : vector<8x128xf32>
    %931 = arith.addf %929, %930 : vector<8x128xf32>
    %cst_290 = arith.constant 0.000000e+00 : f32
    %932 = vector.broadcast %cst_290 : f32 to vector<8x128xf32>
    %933 = arith.subf %932, %931 : vector<8x128xf32>
    %934 = math.exp %933 : vector<8x128xf32>
    %935 = arith.subf %923, %18 : vector<8x128xf32>
    %936 = math.absf %935 : vector<8x128xf32>
    %937 = arith.mulf %934, %936 : vector<8x128xf32>
    %938 = arith.addf %903, %937 : vector<8x128xf32>
    %c4_i32_291 = arith.constant 4 : i32
    %939 = tpu.dynamic_rotate %907 by %c4_i32_291 dim 1 : vector<8x128xf32>, i32 -> vector<8x128xf32>
    %c4_i32_292 = arith.constant 4 : i32
    %940 = tpu.dynamic_rotate %911 by %c4_i32_292 dim 1 : vector<8x128xf32>, i32 -> vector<8x128xf32>
    %c4_i32_293 = arith.constant 4 : i32
    %941 = tpu.dynamic_rotate %915 by %c4_i32_293 dim 1 : vector<8x128xf32>, i32 -> vector<8x128xf32>
    %c4_i32_294 = arith.constant 4 : i32
    %942 = tpu.dynamic_rotate %919 by %c4_i32_294 dim 1 : vector<8x128xf32>, i32 -> vector<8x128xf32>
    %943 = arith.subf %939, %6 : vector<8x128xf32>
    %944 = arith.subf %940, %10 : vector<8x128xf32>
    %945 = arith.subf %941, %14 : vector<8x128xf32>
    %946 = arith.mulf %943, %943 : vector<8x128xf32>
    %947 = arith.mulf %944, %944 : vector<8x128xf32>
    %948 = arith.addf %946, %947 : vector<8x128xf32>
    %949 = arith.mulf %945, %945 : vector<8x128xf32>
    %950 = arith.addf %948, %949 : vector<8x128xf32>
    %cst_295 = arith.constant 0.000000e+00 : f32
    %951 = vector.broadcast %cst_295 : f32 to vector<8x128xf32>
    %952 = arith.subf %951, %950 : vector<8x128xf32>
    %953 = math.exp %952 : vector<8x128xf32>
    %954 = arith.subf %942, %18 : vector<8x128xf32>
    %955 = math.absf %954 : vector<8x128xf32>
    %956 = arith.mulf %953, %955 : vector<8x128xf32>
    %957 = arith.addf %938, %956 : vector<8x128xf32>
    %c3_i32_296 = arith.constant 3 : i32
    %958 = tpu.dynamic_rotate %907 by %c3_i32_296 dim 1 : vector<8x128xf32>, i32 -> vector<8x128xf32>
    %c3_i32_297 = arith.constant 3 : i32
    %959 = tpu.dynamic_rotate %911 by %c3_i32_297 dim 1 : vector<8x128xf32>, i32 -> vector<8x128xf32>
    %c3_i32_298 = arith.constant 3 : i32
    %960 = tpu.dynamic_rotate %915 by %c3_i32_298 dim 1 : vector<8x128xf32>, i32 -> vector<8x128xf32>
    %c3_i32_299 = arith.constant 3 : i32
    %961 = tpu.dynamic_rotate %919 by %c3_i32_299 dim 1 : vector<8x128xf32>, i32 -> vector<8x128xf32>
    %962 = arith.subf %958, %6 : vector<8x128xf32>
    %963 = arith.subf %959, %10 : vector<8x128xf32>
    %964 = arith.subf %960, %14 : vector<8x128xf32>
    %965 = arith.mulf %962, %962 : vector<8x128xf32>
    %966 = arith.mulf %963, %963 : vector<8x128xf32>
    %967 = arith.addf %965, %966 : vector<8x128xf32>
    %968 = arith.mulf %964, %964 : vector<8x128xf32>
    %969 = arith.addf %967, %968 : vector<8x128xf32>
    %cst_300 = arith.constant 0.000000e+00 : f32
    %970 = vector.broadcast %cst_300 : f32 to vector<8x128xf32>
    %971 = arith.subf %970, %969 : vector<8x128xf32>
    %972 = math.exp %971 : vector<8x128xf32>
    %973 = arith.subf %961, %18 : vector<8x128xf32>
    %974 = math.absf %973 : vector<8x128xf32>
    %975 = arith.mulf %972, %974 : vector<8x128xf32>
    %976 = arith.addf %957, %975 : vector<8x128xf32>
    %c2_i32_301 = arith.constant 2 : i32
    %977 = tpu.dynamic_rotate %907 by %c2_i32_301 dim 1 : vector<8x128xf32>, i32 -> vector<8x128xf32>
    %c2_i32_302 = arith.constant 2 : i32
    %978 = tpu.dynamic_rotate %911 by %c2_i32_302 dim 1 : vector<8x128xf32>, i32 -> vector<8x128xf32>
    %c2_i32_303 = arith.constant 2 : i32
    %979 = tpu.dynamic_rotate %915 by %c2_i32_303 dim 1 : vector<8x128xf32>, i32 -> vector<8x128xf32>
    %c2_i32_304 = arith.constant 2 : i32
    %980 = tpu.dynamic_rotate %919 by %c2_i32_304 dim 1 : vector<8x128xf32>, i32 -> vector<8x128xf32>
    %981 = arith.subf %977, %6 : vector<8x128xf32>
    %982 = arith.subf %978, %10 : vector<8x128xf32>
    %983 = arith.subf %979, %14 : vector<8x128xf32>
    %984 = arith.mulf %981, %981 : vector<8x128xf32>
    %985 = arith.mulf %982, %982 : vector<8x128xf32>
    %986 = arith.addf %984, %985 : vector<8x128xf32>
    %987 = arith.mulf %983, %983 : vector<8x128xf32>
    %988 = arith.addf %986, %987 : vector<8x128xf32>
    %cst_305 = arith.constant 0.000000e+00 : f32
    %989 = vector.broadcast %cst_305 : f32 to vector<8x128xf32>
    %990 = arith.subf %989, %988 : vector<8x128xf32>
    %991 = math.exp %990 : vector<8x128xf32>
    %992 = arith.subf %980, %18 : vector<8x128xf32>
    %993 = math.absf %992 : vector<8x128xf32>
    %994 = arith.mulf %991, %993 : vector<8x128xf32>
    %995 = arith.addf %976, %994 : vector<8x128xf32>
    %c1_i32_306 = arith.constant 1 : i32
    %996 = tpu.dynamic_rotate %907 by %c1_i32_306 dim 1 : vector<8x128xf32>, i32 -> vector<8x128xf32>
    %c1_i32_307 = arith.constant 1 : i32
    %997 = tpu.dynamic_rotate %911 by %c1_i32_307 dim 1 : vector<8x128xf32>, i32 -> vector<8x128xf32>
    %c1_i32_308 = arith.constant 1 : i32
    %998 = tpu.dynamic_rotate %915 by %c1_i32_308 dim 1 : vector<8x128xf32>, i32 -> vector<8x128xf32>
    %c1_i32_309 = arith.constant 1 : i32
    %999 = tpu.dynamic_rotate %919 by %c1_i32_309 dim 1 : vector<8x128xf32>, i32 -> vector<8x128xf32>
    %1000 = arith.subf %996, %6 : vector<8x128xf32>
    %1001 = arith.subf %997, %10 : vector<8x128xf32>
    %1002 = arith.subf %998, %14 : vector<8x128xf32>
    %1003 = arith.mulf %1000, %1000 : vector<8x128xf32>
    %1004 = arith.mulf %1001, %1001 : vector<8x128xf32>
    %1005 = arith.addf %1003, %1004 : vector<8x128xf32>
    %1006 = arith.mulf %1002, %1002 : vector<8x128xf32>
    %1007 = arith.addf %1005, %1006 : vector<8x128xf32>
    %cst_310 = arith.constant 0.000000e+00 : f32
    %1008 = vector.broadcast %cst_310 : f32 to vector<8x128xf32>
    %1009 = arith.subf %1008, %1007 : vector<8x128xf32>
    %1010 = math.exp %1009 : vector<8x128xf32>
    %1011 = arith.subf %999, %18 : vector<8x128xf32>
    %1012 = math.absf %1011 : vector<8x128xf32>
    %1013 = arith.mulf %1010, %1012 : vector<8x128xf32>
    %1014 = arith.addf %995, %1013 : vector<8x128xf32>
    %1015 = arith.subf %907, %6 : vector<8x128xf32>
    %1016 = arith.subf %911, %10 : vector<8x128xf32>
    %1017 = arith.subf %915, %14 : vector<8x128xf32>
    %1018 = arith.mulf %1015, %1015 : vector<8x128xf32>
    %1019 = arith.mulf %1016, %1016 : vector<8x128xf32>
    %1020 = arith.addf %1018, %1019 : vector<8x128xf32>
    %1021 = arith.mulf %1017, %1017 : vector<8x128xf32>
    %1022 = arith.addf %1020, %1021 : vector<8x128xf32>
    %cst_311 = arith.constant 0.000000e+00 : f32
    %1023 = vector.broadcast %cst_311 : f32 to vector<8x128xf32>
    %1024 = arith.subf %1023, %1022 : vector<8x128xf32>
    %1025 = math.exp %1024 : vector<8x128xf32>
    %1026 = arith.subf %919, %18 : vector<8x128xf32>
    %1027 = math.absf %1026 : vector<8x128xf32>
    %1028 = arith.mulf %1025, %1027 : vector<8x128xf32>
    %1029 = arith.addf %1014, %1028 : vector<8x128xf32>
    %c127_i32_312 = arith.constant 127 : i32
    %1030 = tpu.dynamic_rotate %907 by %c127_i32_312 dim 1 : vector<8x128xf32>, i32 -> vector<8x128xf32>
    %c127_i32_313 = arith.constant 127 : i32
    %1031 = tpu.dynamic_rotate %911 by %c127_i32_313 dim 1 : vector<8x128xf32>, i32 -> vector<8x128xf32>
    %c127_i32_314 = arith.constant 127 : i32
    %1032 = tpu.dynamic_rotate %915 by %c127_i32_314 dim 1 : vector<8x128xf32>, i32 -> vector<8x128xf32>
    %c127_i32_315 = arith.constant 127 : i32
    %1033 = tpu.dynamic_rotate %919 by %c127_i32_315 dim 1 : vector<8x128xf32>, i32 -> vector<8x128xf32>
    %1034 = arith.subf %1030, %6 : vector<8x128xf32>
    %1035 = arith.subf %1031, %10 : vector<8x128xf32>
    %1036 = arith.subf %1032, %14 : vector<8x128xf32>
    %1037 = arith.mulf %1034, %1034 : vector<8x128xf32>
    %1038 = arith.mulf %1035, %1035 : vector<8x128xf32>
    %1039 = arith.addf %1037, %1038 : vector<8x128xf32>
    %1040 = arith.mulf %1036, %1036 : vector<8x128xf32>
    %1041 = arith.addf %1039, %1040 : vector<8x128xf32>
    %cst_316 = arith.constant 0.000000e+00 : f32
    %1042 = vector.broadcast %cst_316 : f32 to vector<8x128xf32>
    %1043 = arith.subf %1042, %1041 : vector<8x128xf32>
    %1044 = math.exp %1043 : vector<8x128xf32>
    %1045 = arith.subf %1033, %18 : vector<8x128xf32>
    %1046 = math.absf %1045 : vector<8x128xf32>
    %1047 = arith.mulf %1044, %1046 : vector<8x128xf32>
    %1048 = arith.addf %1029, %1047 : vector<8x128xf32>
    %c126_i32_317 = arith.constant 126 : i32
    %1049 = tpu.dynamic_rotate %907 by %c126_i32_317 dim 1 : vector<8x128xf32>, i32 -> vector<8x128xf32>
    %c126_i32_318 = arith.constant 126 : i32
    %1050 = tpu.dynamic_rotate %911 by %c126_i32_318 dim 1 : vector<8x128xf32>, i32 -> vector<8x128xf32>
    %c126_i32_319 = arith.constant 126 : i32
    %1051 = tpu.dynamic_rotate %915 by %c126_i32_319 dim 1 : vector<8x128xf32>, i32 -> vector<8x128xf32>
    %c126_i32_320 = arith.constant 126 : i32
    %1052 = tpu.dynamic_rotate %919 by %c126_i32_320 dim 1 : vector<8x128xf32>, i32 -> vector<8x128xf32>
    %1053 = arith.subf %1049, %6 : vector<8x128xf32>
    %1054 = arith.subf %1050, %10 : vector<8x128xf32>
    %1055 = arith.subf %1051, %14 : vector<8x128xf32>
    %1056 = arith.mulf %1053, %1053 : vector<8x128xf32>
    %1057 = arith.mulf %1054, %1054 : vector<8x128xf32>
    %1058 = arith.addf %1056, %1057 : vector<8x128xf32>
    %1059 = arith.mulf %1055, %1055 : vector<8x128xf32>
    %1060 = arith.addf %1058, %1059 : vector<8x128xf32>
    %cst_321 = arith.constant 0.000000e+00 : f32
    %1061 = vector.broadcast %cst_321 : f32 to vector<8x128xf32>
    %1062 = arith.subf %1061, %1060 : vector<8x128xf32>
    %1063 = math.exp %1062 : vector<8x128xf32>
    %1064 = arith.subf %1052, %18 : vector<8x128xf32>
    %1065 = math.absf %1064 : vector<8x128xf32>
    %1066 = arith.mulf %1063, %1065 : vector<8x128xf32>
    %1067 = arith.addf %1048, %1066 : vector<8x128xf32>
    %c125_i32_322 = arith.constant 125 : i32
    %1068 = tpu.dynamic_rotate %907 by %c125_i32_322 dim 1 : vector<8x128xf32>, i32 -> vector<8x128xf32>
    %c125_i32_323 = arith.constant 125 : i32
    %1069 = tpu.dynamic_rotate %911 by %c125_i32_323 dim 1 : vector<8x128xf32>, i32 -> vector<8x128xf32>
    %c125_i32_324 = arith.constant 125 : i32
    %1070 = tpu.dynamic_rotate %915 by %c125_i32_324 dim 1 : vector<8x128xf32>, i32 -> vector<8x128xf32>
    %c125_i32_325 = arith.constant 125 : i32
    %1071 = tpu.dynamic_rotate %919 by %c125_i32_325 dim 1 : vector<8x128xf32>, i32 -> vector<8x128xf32>
    %1072 = arith.subf %1068, %6 : vector<8x128xf32>
    %1073 = arith.subf %1069, %10 : vector<8x128xf32>
    %1074 = arith.subf %1070, %14 : vector<8x128xf32>
    %1075 = arith.mulf %1072, %1072 : vector<8x128xf32>
    %1076 = arith.mulf %1073, %1073 : vector<8x128xf32>
    %1077 = arith.addf %1075, %1076 : vector<8x128xf32>
    %1078 = arith.mulf %1074, %1074 : vector<8x128xf32>
    %1079 = arith.addf %1077, %1078 : vector<8x128xf32>
    %cst_326 = arith.constant 0.000000e+00 : f32
    %1080 = vector.broadcast %cst_326 : f32 to vector<8x128xf32>
    %1081 = arith.subf %1080, %1079 : vector<8x128xf32>
    %1082 = math.exp %1081 : vector<8x128xf32>
    %1083 = arith.subf %1071, %18 : vector<8x128xf32>
    %1084 = math.absf %1083 : vector<8x128xf32>
    %1085 = arith.mulf %1082, %1084 : vector<8x128xf32>
    %1086 = arith.addf %1067, %1085 : vector<8x128xf32>
    %c124_i32_327 = arith.constant 124 : i32
    %1087 = tpu.dynamic_rotate %907 by %c124_i32_327 dim 1 : vector<8x128xf32>, i32 -> vector<8x128xf32>
    %c124_i32_328 = arith.constant 124 : i32
    %1088 = tpu.dynamic_rotate %911 by %c124_i32_328 dim 1 : vector<8x128xf32>, i32 -> vector<8x128xf32>
    %c124_i32_329 = arith.constant 124 : i32
    %1089 = tpu.dynamic_rotate %915 by %c124_i32_329 dim 1 : vector<8x128xf32>, i32 -> vector<8x128xf32>
    %c124_i32_330 = arith.constant 124 : i32
    %1090 = tpu.dynamic_rotate %919 by %c124_i32_330 dim 1 : vector<8x128xf32>, i32 -> vector<8x128xf32>
    %1091 = arith.subf %1087, %6 : vector<8x128xf32>
    %1092 = arith.subf %1088, %10 : vector<8x128xf32>
    %1093 = arith.subf %1089, %14 : vector<8x128xf32>
    %1094 = arith.mulf %1091, %1091 : vector<8x128xf32>
    %1095 = arith.mulf %1092, %1092 : vector<8x128xf32>
    %1096 = arith.addf %1094, %1095 : vector<8x128xf32>
    %1097 = arith.mulf %1093, %1093 : vector<8x128xf32>
    %1098 = arith.addf %1096, %1097 : vector<8x128xf32>
    %cst_331 = arith.constant 0.000000e+00 : f32
    %1099 = vector.broadcast %cst_331 : f32 to vector<8x128xf32>
    %1100 = arith.subf %1099, %1098 : vector<8x128xf32>
    %1101 = math.exp %1100 : vector<8x128xf32>
    %1102 = arith.subf %1090, %18 : vector<8x128xf32>
    %1103 = math.absf %1102 : vector<8x128xf32>
    %1104 = arith.mulf %1101, %1103 : vector<8x128xf32>
    %1105 = arith.addf %1086, %1104 : vector<8x128xf32>
    %c123_i32_332 = arith.constant 123 : i32
    %1106 = tpu.dynamic_rotate %907 by %c123_i32_332 dim 1 : vector<8x128xf32>, i32 -> vector<8x128xf32>
    %c123_i32_333 = arith.constant 123 : i32
    %1107 = tpu.dynamic_rotate %911 by %c123_i32_333 dim 1 : vector<8x128xf32>, i32 -> vector<8x128xf32>
    %c123_i32_334 = arith.constant 123 : i32
    %1108 = tpu.dynamic_rotate %915 by %c123_i32_334 dim 1 : vector<8x128xf32>, i32 -> vector<8x128xf32>
    %c123_i32_335 = arith.constant 123 : i32
    %1109 = tpu.dynamic_rotate %919 by %c123_i32_335 dim 1 : vector<8x128xf32>, i32 -> vector<8x128xf32>
    %1110 = arith.subf %1106, %6 : vector<8x128xf32>
    %1111 = arith.subf %1107, %10 : vector<8x128xf32>
    %1112 = arith.subf %1108, %14 : vector<8x128xf32>
    %1113 = arith.mulf %1110, %1110 : vector<8x128xf32>
    %1114 = arith.mulf %1111, %1111 : vector<8x128xf32>
    %1115 = arith.addf %1113, %1114 : vector<8x128xf32>
    %1116 = arith.mulf %1112, %1112 : vector<8x128xf32>
    %1117 = arith.addf %1115, %1116 : vector<8x128xf32>
    %cst_336 = arith.constant 0.000000e+00 : f32
    %1118 = vector.broadcast %cst_336 : f32 to vector<8x128xf32>
    %1119 = arith.subf %1118, %1117 : vector<8x128xf32>
    %1120 = math.exp %1119 : vector<8x128xf32>
    %1121 = arith.subf %1109, %18 : vector<8x128xf32>
    %1122 = math.absf %1121 : vector<8x128xf32>
    %1123 = arith.mulf %1120, %1122 : vector<8x128xf32>
    %1124 = arith.addf %1105, %1123 : vector<8x128xf32>
    %c5_i32_337 = arith.constant 5 : i32
    %1125 = arith.addi %1, %c5_i32_337 : i32
    %c0_338 = arith.constant 0 : index
    %c0_339 = arith.constant 0 : index
    %1126 = arith.index_cast %1125 : i32 to index
    %c0_340 = arith.constant 0 : index
    %1127 = vector.load %arg2[%c0_338, %c0_339, %1126, %c0_340] : memref<1x4x32x128xf32, #tpu.memory_space<vmem>>, vector<1x1x8x128xf32>
    %1128 = vector.shape_cast %1127 : vector<1x1x8x128xf32> to vector<8x128xf32>
    %c5_i32_341 = arith.constant 5 : i32
    %1129 = arith.addi %1, %c5_i32_341 : i32
    %c0_342 = arith.constant 0 : index
    %c1_343 = arith.constant 1 : index
    %1130 = arith.index_cast %1129 : i32 to index
    %c0_344 = arith.constant 0 : index
    %1131 = vector.load %arg2[%c0_342, %c1_343, %1130, %c0_344] : memref<1x4x32x128xf32, #tpu.memory_space<vmem>>, vector<1x1x8x128xf32>
    %1132 = vector.shape_cast %1131 : vector<1x1x8x128xf32> to vector<8x128xf32>
    %c5_i32_345 = arith.constant 5 : i32
    %1133 = arith.addi %1, %c5_i32_345 : i32
    %c0_346 = arith.constant 0 : index
    %c2_347 = arith.constant 2 : index
    %1134 = arith.index_cast %1133 : i32 to index
    %c0_348 = arith.constant 0 : index
    %1135 = vector.load %arg2[%c0_346, %c2_347, %1134, %c0_348] : memref<1x4x32x128xf32, #tpu.memory_space<vmem>>, vector<1x1x8x128xf32>
    %1136 = vector.shape_cast %1135 : vector<1x1x8x128xf32> to vector<8x128xf32>
    %c5_i32_349 = arith.constant 5 : i32
    %1137 = arith.addi %1, %c5_i32_349 : i32
    %c0_350 = arith.constant 0 : index
    %c3_351 = arith.constant 3 : index
    %1138 = arith.index_cast %1137 : i32 to index
    %c0_352 = arith.constant 0 : index
    %1139 = vector.load %arg2[%c0_350, %c3_351, %1138, %c0_352] : memref<1x4x32x128xf32, #tpu.memory_space<vmem>>, vector<1x1x8x128xf32>
    %1140 = vector.shape_cast %1139 : vector<1x1x8x128xf32> to vector<8x128xf32>
    %c5_i32_353 = arith.constant 5 : i32
    %1141 = tpu.dynamic_rotate %1128 by %c5_i32_353 dim 1 : vector<8x128xf32>, i32 -> vector<8x128xf32>
    %c5_i32_354 = arith.constant 5 : i32
    %1142 = tpu.dynamic_rotate %1132 by %c5_i32_354 dim 1 : vector<8x128xf32>, i32 -> vector<8x128xf32>
    %c5_i32_355 = arith.constant 5 : i32
    %1143 = tpu.dynamic_rotate %1136 by %c5_i32_355 dim 1 : vector<8x128xf32>, i32 -> vector<8x128xf32>
    %c5_i32_356 = arith.constant 5 : i32
    %1144 = tpu.dynamic_rotate %1140 by %c5_i32_356 dim 1 : vector<8x128xf32>, i32 -> vector<8x128xf32>
    %1145 = arith.subf %1141, %6 : vector<8x128xf32>
    %1146 = arith.subf %1142, %10 : vector<8x128xf32>
    %1147 = arith.subf %1143, %14 : vector<8x128xf32>
    %1148 = arith.mulf %1145, %1145 : vector<8x128xf32>
    %1149 = arith.mulf %1146, %1146 : vector<8x128xf32>
    %1150 = arith.addf %1148, %1149 : vector<8x128xf32>
    %1151 = arith.mulf %1147, %1147 : vector<8x128xf32>
    %1152 = arith.addf %1150, %1151 : vector<8x128xf32>
    %cst_357 = arith.constant 0.000000e+00 : f32
    %1153 = vector.broadcast %cst_357 : f32 to vector<8x128xf32>
    %1154 = arith.subf %1153, %1152 : vector<8x128xf32>
    %1155 = math.exp %1154 : vector<8x128xf32>
    %1156 = arith.subf %1144, %18 : vector<8x128xf32>
    %1157 = math.absf %1156 : vector<8x128xf32>
    %1158 = arith.mulf %1155, %1157 : vector<8x128xf32>
    %1159 = arith.addf %1124, %1158 : vector<8x128xf32>
    %c4_i32_358 = arith.constant 4 : i32
    %1160 = tpu.dynamic_rotate %1128 by %c4_i32_358 dim 1 : vector<8x128xf32>, i32 -> vector<8x128xf32>
    %c4_i32_359 = arith.constant 4 : i32
    %1161 = tpu.dynamic_rotate %1132 by %c4_i32_359 dim 1 : vector<8x128xf32>, i32 -> vector<8x128xf32>
    %c4_i32_360 = arith.constant 4 : i32
    %1162 = tpu.dynamic_rotate %1136 by %c4_i32_360 dim 1 : vector<8x128xf32>, i32 -> vector<8x128xf32>
    %c4_i32_361 = arith.constant 4 : i32
    %1163 = tpu.dynamic_rotate %1140 by %c4_i32_361 dim 1 : vector<8x128xf32>, i32 -> vector<8x128xf32>
    %1164 = arith.subf %1160, %6 : vector<8x128xf32>
    %1165 = arith.subf %1161, %10 : vector<8x128xf32>
    %1166 = arith.subf %1162, %14 : vector<8x128xf32>
    %1167 = arith.mulf %1164, %1164 : vector<8x128xf32>
    %1168 = arith.mulf %1165, %1165 : vector<8x128xf32>
    %1169 = arith.addf %1167, %1168 : vector<8x128xf32>
    %1170 = arith.mulf %1166, %1166 : vector<8x128xf32>
    %1171 = arith.addf %1169, %1170 : vector<8x128xf32>
    %cst_362 = arith.constant 0.000000e+00 : f32
    %1172 = vector.broadcast %cst_362 : f32 to vector<8x128xf32>
    %1173 = arith.subf %1172, %1171 : vector<8x128xf32>
    %1174 = math.exp %1173 : vector<8x128xf32>
    %1175 = arith.subf %1163, %18 : vector<8x128xf32>
    %1176 = math.absf %1175 : vector<8x128xf32>
    %1177 = arith.mulf %1174, %1176 : vector<8x128xf32>
    %1178 = arith.addf %1159, %1177 : vector<8x128xf32>
    %c3_i32_363 = arith.constant 3 : i32
    %1179 = tpu.dynamic_rotate %1128 by %c3_i32_363 dim 1 : vector<8x128xf32>, i32 -> vector<8x128xf32>
    %c3_i32_364 = arith.constant 3 : i32
    %1180 = tpu.dynamic_rotate %1132 by %c3_i32_364 dim 1 : vector<8x128xf32>, i32 -> vector<8x128xf32>
    %c3_i32_365 = arith.constant 3 : i32
    %1181 = tpu.dynamic_rotate %1136 by %c3_i32_365 dim 1 : vector<8x128xf32>, i32 -> vector<8x128xf32>
    %c3_i32_366 = arith.constant 3 : i32
    %1182 = tpu.dynamic_rotate %1140 by %c3_i32_366 dim 1 : vector<8x128xf32>, i32 -> vector<8x128xf32>
    %1183 = arith.subf %1179, %6 : vector<8x128xf32>
    %1184 = arith.subf %1180, %10 : vector<8x128xf32>
    %1185 = arith.subf %1181, %14 : vector<8x128xf32>
    %1186 = arith.mulf %1183, %1183 : vector<8x128xf32>
    %1187 = arith.mulf %1184, %1184 : vector<8x128xf32>
    %1188 = arith.addf %1186, %1187 : vector<8x128xf32>
    %1189 = arith.mulf %1185, %1185 : vector<8x128xf32>
    %1190 = arith.addf %1188, %1189 : vector<8x128xf32>
    %cst_367 = arith.constant 0.000000e+00 : f32
    %1191 = vector.broadcast %cst_367 : f32 to vector<8x128xf32>
    %1192 = arith.subf %1191, %1190 : vector<8x128xf32>
    %1193 = math.exp %1192 : vector<8x128xf32>
    %1194 = arith.subf %1182, %18 : vector<8x128xf32>
    %1195 = math.absf %1194 : vector<8x128xf32>
    %1196 = arith.mulf %1193, %1195 : vector<8x128xf32>
    %1197 = arith.addf %1178, %1196 : vector<8x128xf32>
    %c2_i32_368 = arith.constant 2 : i32
    %1198 = tpu.dynamic_rotate %1128 by %c2_i32_368 dim 1 : vector<8x128xf32>, i32 -> vector<8x128xf32>
    %c2_i32_369 = arith.constant 2 : i32
    %1199 = tpu.dynamic_rotate %1132 by %c2_i32_369 dim 1 : vector<8x128xf32>, i32 -> vector<8x128xf32>
    %c2_i32_370 = arith.constant 2 : i32
    %1200 = tpu.dynamic_rotate %1136 by %c2_i32_370 dim 1 : vector<8x128xf32>, i32 -> vector<8x128xf32>
    %c2_i32_371 = arith.constant 2 : i32
    %1201 = tpu.dynamic_rotate %1140 by %c2_i32_371 dim 1 : vector<8x128xf32>, i32 -> vector<8x128xf32>
    %1202 = arith.subf %1198, %6 : vector<8x128xf32>
    %1203 = arith.subf %1199, %10 : vector<8x128xf32>
    %1204 = arith.subf %1200, %14 : vector<8x128xf32>
    %1205 = arith.mulf %1202, %1202 : vector<8x128xf32>
    %1206 = arith.mulf %1203, %1203 : vector<8x128xf32>
    %1207 = arith.addf %1205, %1206 : vector<8x128xf32>
    %1208 = arith.mulf %1204, %1204 : vector<8x128xf32>
    %1209 = arith.addf %1207, %1208 : vector<8x128xf32>
    %cst_372 = arith.constant 0.000000e+00 : f32
    %1210 = vector.broadcast %cst_372 : f32 to vector<8x128xf32>
    %1211 = arith.subf %1210, %1209 : vector<8x128xf32>
    %1212 = math.exp %1211 : vector<8x128xf32>
    %1213 = arith.subf %1201, %18 : vector<8x128xf32>
    %1214 = math.absf %1213 : vector<8x128xf32>
    %1215 = arith.mulf %1212, %1214 : vector<8x128xf32>
    %1216 = arith.addf %1197, %1215 : vector<8x128xf32>
    %c1_i32_373 = arith.constant 1 : i32
    %1217 = tpu.dynamic_rotate %1128 by %c1_i32_373 dim 1 : vector<8x128xf32>, i32 -> vector<8x128xf32>
    %c1_i32_374 = arith.constant 1 : i32
    %1218 = tpu.dynamic_rotate %1132 by %c1_i32_374 dim 1 : vector<8x128xf32>, i32 -> vector<8x128xf32>
    %c1_i32_375 = arith.constant 1 : i32
    %1219 = tpu.dynamic_rotate %1136 by %c1_i32_375 dim 1 : vector<8x128xf32>, i32 -> vector<8x128xf32>
    %c1_i32_376 = arith.constant 1 : i32
    %1220 = tpu.dynamic_rotate %1140 by %c1_i32_376 dim 1 : vector<8x128xf32>, i32 -> vector<8x128xf32>
    %1221 = arith.subf %1217, %6 : vector<8x128xf32>
    %1222 = arith.subf %1218, %10 : vector<8x128xf32>
    %1223 = arith.subf %1219, %14 : vector<8x128xf32>
    %1224 = arith.mulf %1221, %1221 : vector<8x128xf32>
    %1225 = arith.mulf %1222, %1222 : vector<8x128xf32>
    %1226 = arith.addf %1224, %1225 : vector<8x128xf32>
    %1227 = arith.mulf %1223, %1223 : vector<8x128xf32>
    %1228 = arith.addf %1226, %1227 : vector<8x128xf32>
    %cst_377 = arith.constant 0.000000e+00 : f32
    %1229 = vector.broadcast %cst_377 : f32 to vector<8x128xf32>
    %1230 = arith.subf %1229, %1228 : vector<8x128xf32>
    %1231 = math.exp %1230 : vector<8x128xf32>
    %1232 = arith.subf %1220, %18 : vector<8x128xf32>
    %1233 = math.absf %1232 : vector<8x128xf32>
    %1234 = arith.mulf %1231, %1233 : vector<8x128xf32>
    %1235 = arith.addf %1216, %1234 : vector<8x128xf32>
    %c127_i32_378 = arith.constant 127 : i32
    %1236 = tpu.dynamic_rotate %1128 by %c127_i32_378 dim 1 : vector<8x128xf32>, i32 -> vector<8x128xf32>
    %c127_i32_379 = arith.constant 127 : i32
    %1237 = tpu.dynamic_rotate %1132 by %c127_i32_379 dim 1 : vector<8x128xf32>, i32 -> vector<8x128xf32>
    %c127_i32_380 = arith.constant 127 : i32
    %1238 = tpu.dynamic_rotate %1136 by %c127_i32_380 dim 1 : vector<8x128xf32>, i32 -> vector<8x128xf32>
    %c127_i32_381 = arith.constant 127 : i32
    %1239 = tpu.dynamic_rotate %1140 by %c127_i32_381 dim 1 : vector<8x128xf32>, i32 -> vector<8x128xf32>
    %1240 = arith.subf %1236, %6 : vector<8x128xf32>
    %1241 = arith.subf %1237, %10 : vector<8x128xf32>
    %1242 = arith.subf %1238, %14 : vector<8x128xf32>
    %1243 = arith.mulf %1240, %1240 : vector<8x128xf32>
    %1244 = arith.mulf %1241, %1241 : vector<8x128xf32>
    %1245 = arith.addf %1243, %1244 : vector<8x128xf32>
    %1246 = arith.mulf %1242, %1242 : vector<8x128xf32>
    %1247 = arith.addf %1245, %1246 : vector<8x128xf32>
    %cst_382 = arith.constant 0.000000e+00 : f32
    %1248 = vector.broadcast %cst_382 : f32 to vector<8x128xf32>
    %1249 = arith.subf %1248, %1247 : vector<8x128xf32>
    %1250 = math.exp %1249 : vector<8x128xf32>
    %1251 = arith.subf %1239, %18 : vector<8x128xf32>
    %1252 = math.absf %1251 : vector<8x128xf32>
    %1253 = arith.mulf %1250, %1252 : vector<8x128xf32>
    %1254 = arith.addf %1235, %1253 : vector<8x128xf32>
    %c126_i32_383 = arith.constant 126 : i32
    %1255 = tpu.dynamic_rotate %1128 by %c126_i32_383 dim 1 : vector<8x128xf32>, i32 -> vector<8x128xf32>
    %c126_i32_384 = arith.constant 126 : i32
    %1256 = tpu.dynamic_rotate %1132 by %c126_i32_384 dim 1 : vector<8x128xf32>, i32 -> vector<8x128xf32>
    %c126_i32_385 = arith.constant 126 : i32
    %1257 = tpu.dynamic_rotate %1136 by %c126_i32_385 dim 1 : vector<8x128xf32>, i32 -> vector<8x128xf32>
    %c126_i32_386 = arith.constant 126 : i32
    %1258 = tpu.dynamic_rotate %1140 by %c126_i32_386 dim 1 : vector<8x128xf32>, i32 -> vector<8x128xf32>
    %1259 = arith.subf %1255, %6 : vector<8x128xf32>
    %1260 = arith.subf %1256, %10 : vector<8x128xf32>
    %1261 = arith.subf %1257, %14 : vector<8x128xf32>
    %1262 = arith.mulf %1259, %1259 : vector<8x128xf32>
    %1263 = arith.mulf %1260, %1260 : vector<8x128xf32>
    %1264 = arith.addf %1262, %1263 : vector<8x128xf32>
    %1265 = arith.mulf %1261, %1261 : vector<8x128xf32>
    %1266 = arith.addf %1264, %1265 : vector<8x128xf32>
    %cst_387 = arith.constant 0.000000e+00 : f32
    %1267 = vector.broadcast %cst_387 : f32 to vector<8x128xf32>
    %1268 = arith.subf %1267, %1266 : vector<8x128xf32>
    %1269 = math.exp %1268 : vector<8x128xf32>
    %1270 = arith.subf %1258, %18 : vector<8x128xf32>
    %1271 = math.absf %1270 : vector<8x128xf32>
    %1272 = arith.mulf %1269, %1271 : vector<8x128xf32>
    %1273 = arith.addf %1254, %1272 : vector<8x128xf32>
    %c125_i32_388 = arith.constant 125 : i32
    %1274 = tpu.dynamic_rotate %1128 by %c125_i32_388 dim 1 : vector<8x128xf32>, i32 -> vector<8x128xf32>
    %c125_i32_389 = arith.constant 125 : i32
    %1275 = tpu.dynamic_rotate %1132 by %c125_i32_389 dim 1 : vector<8x128xf32>, i32 -> vector<8x128xf32>
    %c125_i32_390 = arith.constant 125 : i32
    %1276 = tpu.dynamic_rotate %1136 by %c125_i32_390 dim 1 : vector<8x128xf32>, i32 -> vector<8x128xf32>
    %c125_i32_391 = arith.constant 125 : i32
    %1277 = tpu.dynamic_rotate %1140 by %c125_i32_391 dim 1 : vector<8x128xf32>, i32 -> vector<8x128xf32>
    %1278 = arith.subf %1274, %6 : vector<8x128xf32>
    %1279 = arith.subf %1275, %10 : vector<8x128xf32>
    %1280 = arith.subf %1276, %14 : vector<8x128xf32>
    %1281 = arith.mulf %1278, %1278 : vector<8x128xf32>
    %1282 = arith.mulf %1279, %1279 : vector<8x128xf32>
    %1283 = arith.addf %1281, %1282 : vector<8x128xf32>
    %1284 = arith.mulf %1280, %1280 : vector<8x128xf32>
    %1285 = arith.addf %1283, %1284 : vector<8x128xf32>
    %cst_392 = arith.constant 0.000000e+00 : f32
    %1286 = vector.broadcast %cst_392 : f32 to vector<8x128xf32>
    %1287 = arith.subf %1286, %1285 : vector<8x128xf32>
    %1288 = math.exp %1287 : vector<8x128xf32>
    %1289 = arith.subf %1277, %18 : vector<8x128xf32>
    %1290 = math.absf %1289 : vector<8x128xf32>
    %1291 = arith.mulf %1288, %1290 : vector<8x128xf32>
    %1292 = arith.addf %1273, %1291 : vector<8x128xf32>
    %c124_i32_393 = arith.constant 124 : i32
    %1293 = tpu.dynamic_rotate %1128 by %c124_i32_393 dim 1 : vector<8x128xf32>, i32 -> vector<8x128xf32>
    %c124_i32_394 = arith.constant 124 : i32
    %1294 = tpu.dynamic_rotate %1132 by %c124_i32_394 dim 1 : vector<8x128xf32>, i32 -> vector<8x128xf32>
    %c124_i32_395 = arith.constant 124 : i32
    %1295 = tpu.dynamic_rotate %1136 by %c124_i32_395 dim 1 : vector<8x128xf32>, i32 -> vector<8x128xf32>
    %c124_i32_396 = arith.constant 124 : i32
    %1296 = tpu.dynamic_rotate %1140 by %c124_i32_396 dim 1 : vector<8x128xf32>, i32 -> vector<8x128xf32>
    %1297 = arith.subf %1293, %6 : vector<8x128xf32>
    %1298 = arith.subf %1294, %10 : vector<8x128xf32>
    %1299 = arith.subf %1295, %14 : vector<8x128xf32>
    %1300 = arith.mulf %1297, %1297 : vector<8x128xf32>
    %1301 = arith.mulf %1298, %1298 : vector<8x128xf32>
    %1302 = arith.addf %1300, %1301 : vector<8x128xf32>
    %1303 = arith.mulf %1299, %1299 : vector<8x128xf32>
    %1304 = arith.addf %1302, %1303 : vector<8x128xf32>
    %cst_397 = arith.constant 0.000000e+00 : f32
    %1305 = vector.broadcast %cst_397 : f32 to vector<8x128xf32>
    %1306 = arith.subf %1305, %1304 : vector<8x128xf32>
    %1307 = math.exp %1306 : vector<8x128xf32>
    %1308 = arith.subf %1296, %18 : vector<8x128xf32>
    %1309 = math.absf %1308 : vector<8x128xf32>
    %1310 = arith.mulf %1307, %1309 : vector<8x128xf32>
    %1311 = arith.addf %1292, %1310 : vector<8x128xf32>
    %c123_i32_398 = arith.constant 123 : i32
    %1312 = tpu.dynamic_rotate %1128 by %c123_i32_398 dim 1 : vector<8x128xf32>, i32 -> vector<8x128xf32>
    %c123_i32_399 = arith.constant 123 : i32
    %1313 = tpu.dynamic_rotate %1132 by %c123_i32_399 dim 1 : vector<8x128xf32>, i32 -> vector<8x128xf32>
    %c123_i32_400 = arith.constant 123 : i32
    %1314 = tpu.dynamic_rotate %1136 by %c123_i32_400 dim 1 : vector<8x128xf32>, i32 -> vector<8x128xf32>
    %c123_i32_401 = arith.constant 123 : i32
    %1315 = tpu.dynamic_rotate %1140 by %c123_i32_401 dim 1 : vector<8x128xf32>, i32 -> vector<8x128xf32>
    %1316 = arith.subf %1312, %6 : vector<8x128xf32>
    %1317 = arith.subf %1313, %10 : vector<8x128xf32>
    %1318 = arith.subf %1314, %14 : vector<8x128xf32>
    %1319 = arith.mulf %1316, %1316 : vector<8x128xf32>
    %1320 = arith.mulf %1317, %1317 : vector<8x128xf32>
    %1321 = arith.addf %1319, %1320 : vector<8x128xf32>
    %1322 = arith.mulf %1318, %1318 : vector<8x128xf32>
    %1323 = arith.addf %1321, %1322 : vector<8x128xf32>
    %cst_402 = arith.constant 0.000000e+00 : f32
    %1324 = vector.broadcast %cst_402 : f32 to vector<8x128xf32>
    %1325 = arith.subf %1324, %1323 : vector<8x128xf32>
    %1326 = math.exp %1325 : vector<8x128xf32>
    %1327 = arith.subf %1315, %18 : vector<8x128xf32>
    %1328 = math.absf %1327 : vector<8x128xf32>
    %1329 = arith.mulf %1326, %1328 : vector<8x128xf32>
    %1330 = arith.addf %1311, %1329 : vector<8x128xf32>
    %c6_i32 = arith.constant 6 : i32
    %1331 = arith.addi %1, %c6_i32 : i32
    %c0_403 = arith.constant 0 : index
    %c0_404 = arith.constant 0 : index
    %1332 = arith.index_cast %1331 : i32 to index
    %c0_405 = arith.constant 0 : index
    %1333 = vector.load %arg2[%c0_403, %c0_404, %1332, %c0_405] : memref<1x4x32x128xf32, #tpu.memory_space<vmem>>, vector<1x1x8x128xf32>
    %1334 = vector.shape_cast %1333 : vector<1x1x8x128xf32> to vector<8x128xf32>
    %c6_i32_406 = arith.constant 6 : i32
    %1335 = arith.addi %1, %c6_i32_406 : i32
    %c0_407 = arith.constant 0 : index
    %c1_408 = arith.constant 1 : index
    %1336 = arith.index_cast %1335 : i32 to index
    %c0_409 = arith.constant 0 : index
    %1337 = vector.load %arg2[%c0_407, %c1_408, %1336, %c0_409] : memref<1x4x32x128xf32, #tpu.memory_space<vmem>>, vector<1x1x8x128xf32>
    %1338 = vector.shape_cast %1337 : vector<1x1x8x128xf32> to vector<8x128xf32>
    %c6_i32_410 = arith.constant 6 : i32
    %1339 = arith.addi %1, %c6_i32_410 : i32
    %c0_411 = arith.constant 0 : index
    %c2_412 = arith.constant 2 : index
    %1340 = arith.index_cast %1339 : i32 to index
    %c0_413 = arith.constant 0 : index
    %1341 = vector.load %arg2[%c0_411, %c2_412, %1340, %c0_413] : memref<1x4x32x128xf32, #tpu.memory_space<vmem>>, vector<1x1x8x128xf32>
    %1342 = vector.shape_cast %1341 : vector<1x1x8x128xf32> to vector<8x128xf32>
    %c6_i32_414 = arith.constant 6 : i32
    %1343 = arith.addi %1, %c6_i32_414 : i32
    %c0_415 = arith.constant 0 : index
    %c3_416 = arith.constant 3 : index
    %1344 = arith.index_cast %1343 : i32 to index
    %c0_417 = arith.constant 0 : index
    %1345 = vector.load %arg2[%c0_415, %c3_416, %1344, %c0_417] : memref<1x4x32x128xf32, #tpu.memory_space<vmem>>, vector<1x1x8x128xf32>
    %1346 = vector.shape_cast %1345 : vector<1x1x8x128xf32> to vector<8x128xf32>
    %c5_i32_418 = arith.constant 5 : i32
    %1347 = tpu.dynamic_rotate %1334 by %c5_i32_418 dim 1 : vector<8x128xf32>, i32 -> vector<8x128xf32>
    %c5_i32_419 = arith.constant 5 : i32
    %1348 = tpu.dynamic_rotate %1338 by %c5_i32_419 dim 1 : vector<8x128xf32>, i32 -> vector<8x128xf32>
    %c5_i32_420 = arith.constant 5 : i32
    %1349 = tpu.dynamic_rotate %1342 by %c5_i32_420 dim 1 : vector<8x128xf32>, i32 -> vector<8x128xf32>
    %c5_i32_421 = arith.constant 5 : i32
    %1350 = tpu.dynamic_rotate %1346 by %c5_i32_421 dim 1 : vector<8x128xf32>, i32 -> vector<8x128xf32>
    %1351 = arith.subf %1347, %6 : vector<8x128xf32>
    %1352 = arith.subf %1348, %10 : vector<8x128xf32>
    %1353 = arith.subf %1349, %14 : vector<8x128xf32>
    %1354 = arith.mulf %1351, %1351 : vector<8x128xf32>
    %1355 = arith.mulf %1352, %1352 : vector<8x128xf32>
    %1356 = arith.addf %1354, %1355 : vector<8x128xf32>
    %1357 = arith.mulf %1353, %1353 : vector<8x128xf32>
    %1358 = arith.addf %1356, %1357 : vector<8x128xf32>
    %cst_422 = arith.constant 0.000000e+00 : f32
    %1359 = vector.broadcast %cst_422 : f32 to vector<8x128xf32>
    %1360 = arith.subf %1359, %1358 : vector<8x128xf32>
    %1361 = math.exp %1360 : vector<8x128xf32>
    %1362 = arith.subf %1350, %18 : vector<8x128xf32>
    %1363 = math.absf %1362 : vector<8x128xf32>
    %1364 = arith.mulf %1361, %1363 : vector<8x128xf32>
    %1365 = arith.addf %1330, %1364 : vector<8x128xf32>
    %c4_i32_423 = arith.constant 4 : i32
    %1366 = tpu.dynamic_rotate %1334 by %c4_i32_423 dim 1 : vector<8x128xf32>, i32 -> vector<8x128xf32>
    %c4_i32_424 = arith.constant 4 : i32
    %1367 = tpu.dynamic_rotate %1338 by %c4_i32_424 dim 1 : vector<8x128xf32>, i32 -> vector<8x128xf32>
    %c4_i32_425 = arith.constant 4 : i32
    %1368 = tpu.dynamic_rotate %1342 by %c4_i32_425 dim 1 : vector<8x128xf32>, i32 -> vector<8x128xf32>
    %c4_i32_426 = arith.constant 4 : i32
    %1369 = tpu.dynamic_rotate %1346 by %c4_i32_426 dim 1 : vector<8x128xf32>, i32 -> vector<8x128xf32>
    %1370 = arith.subf %1366, %6 : vector<8x128xf32>
    %1371 = arith.subf %1367, %10 : vector<8x128xf32>
    %1372 = arith.subf %1368, %14 : vector<8x128xf32>
    %1373 = arith.mulf %1370, %1370 : vector<8x128xf32>
    %1374 = arith.mulf %1371, %1371 : vector<8x128xf32>
    %1375 = arith.addf %1373, %1374 : vector<8x128xf32>
    %1376 = arith.mulf %1372, %1372 : vector<8x128xf32>
    %1377 = arith.addf %1375, %1376 : vector<8x128xf32>
    %cst_427 = arith.constant 0.000000e+00 : f32
    %1378 = vector.broadcast %cst_427 : f32 to vector<8x128xf32>
    %1379 = arith.subf %1378, %1377 : vector<8x128xf32>
    %1380 = math.exp %1379 : vector<8x128xf32>
    %1381 = arith.subf %1369, %18 : vector<8x128xf32>
    %1382 = math.absf %1381 : vector<8x128xf32>
    %1383 = arith.mulf %1380, %1382 : vector<8x128xf32>
    %1384 = arith.addf %1365, %1383 : vector<8x128xf32>
    %c3_i32_428 = arith.constant 3 : i32
    %1385 = tpu.dynamic_rotate %1334 by %c3_i32_428 dim 1 : vector<8x128xf32>, i32 -> vector<8x128xf32>
    %c3_i32_429 = arith.constant 3 : i32
    %1386 = tpu.dynamic_rotate %1338 by %c3_i32_429 dim 1 : vector<8x128xf32>, i32 -> vector<8x128xf32>
    %c3_i32_430 = arith.constant 3 : i32
    %1387 = tpu.dynamic_rotate %1342 by %c3_i32_430 dim 1 : vector<8x128xf32>, i32 -> vector<8x128xf32>
    %c3_i32_431 = arith.constant 3 : i32
    %1388 = tpu.dynamic_rotate %1346 by %c3_i32_431 dim 1 : vector<8x128xf32>, i32 -> vector<8x128xf32>
    %1389 = arith.subf %1385, %6 : vector<8x128xf32>
    %1390 = arith.subf %1386, %10 : vector<8x128xf32>
    %1391 = arith.subf %1387, %14 : vector<8x128xf32>
    %1392 = arith.mulf %1389, %1389 : vector<8x128xf32>
    %1393 = arith.mulf %1390, %1390 : vector<8x128xf32>
    %1394 = arith.addf %1392, %1393 : vector<8x128xf32>
    %1395 = arith.mulf %1391, %1391 : vector<8x128xf32>
    %1396 = arith.addf %1394, %1395 : vector<8x128xf32>
    %cst_432 = arith.constant 0.000000e+00 : f32
    %1397 = vector.broadcast %cst_432 : f32 to vector<8x128xf32>
    %1398 = arith.subf %1397, %1396 : vector<8x128xf32>
    %1399 = math.exp %1398 : vector<8x128xf32>
    %1400 = arith.subf %1388, %18 : vector<8x128xf32>
    %1401 = math.absf %1400 : vector<8x128xf32>
    %1402 = arith.mulf %1399, %1401 : vector<8x128xf32>
    %1403 = arith.addf %1384, %1402 : vector<8x128xf32>
    %c2_i32_433 = arith.constant 2 : i32
    %1404 = tpu.dynamic_rotate %1334 by %c2_i32_433 dim 1 : vector<8x128xf32>, i32 -> vector<8x128xf32>
    %c2_i32_434 = arith.constant 2 : i32
    %1405 = tpu.dynamic_rotate %1338 by %c2_i32_434 dim 1 : vector<8x128xf32>, i32 -> vector<8x128xf32>
    %c2_i32_435 = arith.constant 2 : i32
    %1406 = tpu.dynamic_rotate %1342 by %c2_i32_435 dim 1 : vector<8x128xf32>, i32 -> vector<8x128xf32>
    %c2_i32_436 = arith.constant 2 : i32
    %1407 = tpu.dynamic_rotate %1346 by %c2_i32_436 dim 1 : vector<8x128xf32>, i32 -> vector<8x128xf32>
    %1408 = arith.subf %1404, %6 : vector<8x128xf32>
    %1409 = arith.subf %1405, %10 : vector<8x128xf32>
    %1410 = arith.subf %1406, %14 : vector<8x128xf32>
    %1411 = arith.mulf %1408, %1408 : vector<8x128xf32>
    %1412 = arith.mulf %1409, %1409 : vector<8x128xf32>
    %1413 = arith.addf %1411, %1412 : vector<8x128xf32>
    %1414 = arith.mulf %1410, %1410 : vector<8x128xf32>
    %1415 = arith.addf %1413, %1414 : vector<8x128xf32>
    %cst_437 = arith.constant 0.000000e+00 : f32
    %1416 = vector.broadcast %cst_437 : f32 to vector<8x128xf32>
    %1417 = arith.subf %1416, %1415 : vector<8x128xf32>
    %1418 = math.exp %1417 : vector<8x128xf32>
    %1419 = arith.subf %1407, %18 : vector<8x128xf32>
    %1420 = math.absf %1419 : vector<8x128xf32>
    %1421 = arith.mulf %1418, %1420 : vector<8x128xf32>
    %1422 = arith.addf %1403, %1421 : vector<8x128xf32>
    %c1_i32_438 = arith.constant 1 : i32
    %1423 = tpu.dynamic_rotate %1334 by %c1_i32_438 dim 1 : vector<8x128xf32>, i32 -> vector<8x128xf32>
    %c1_i32_439 = arith.constant 1 : i32
    %1424 = tpu.dynamic_rotate %1338 by %c1_i32_439 dim 1 : vector<8x128xf32>, i32 -> vector<8x128xf32>
    %c1_i32_440 = arith.constant 1 : i32
    %1425 = tpu.dynamic_rotate %1342 by %c1_i32_440 dim 1 : vector<8x128xf32>, i32 -> vector<8x128xf32>
    %c1_i32_441 = arith.constant 1 : i32
    %1426 = tpu.dynamic_rotate %1346 by %c1_i32_441 dim 1 : vector<8x128xf32>, i32 -> vector<8x128xf32>
    %1427 = arith.subf %1423, %6 : vector<8x128xf32>
    %1428 = arith.subf %1424, %10 : vector<8x128xf32>
    %1429 = arith.subf %1425, %14 : vector<8x128xf32>
    %1430 = arith.mulf %1427, %1427 : vector<8x128xf32>
    %1431 = arith.mulf %1428, %1428 : vector<8x128xf32>
    %1432 = arith.addf %1430, %1431 : vector<8x128xf32>
    %1433 = arith.mulf %1429, %1429 : vector<8x128xf32>
    %1434 = arith.addf %1432, %1433 : vector<8x128xf32>
    %cst_442 = arith.constant 0.000000e+00 : f32
    %1435 = vector.broadcast %cst_442 : f32 to vector<8x128xf32>
    %1436 = arith.subf %1435, %1434 : vector<8x128xf32>
    %1437 = math.exp %1436 : vector<8x128xf32>
    %1438 = arith.subf %1426, %18 : vector<8x128xf32>
    %1439 = math.absf %1438 : vector<8x128xf32>
    %1440 = arith.mulf %1437, %1439 : vector<8x128xf32>
    %1441 = arith.addf %1422, %1440 : vector<8x128xf32>
    %1442 = arith.subf %1334, %6 : vector<8x128xf32>
    %1443 = arith.subf %1338, %10 : vector<8x128xf32>
    %1444 = arith.subf %1342, %14 : vector<8x128xf32>
    %1445 = arith.mulf %1442, %1442 : vector<8x128xf32>
    %1446 = arith.mulf %1443, %1443 : vector<8x128xf32>
    %1447 = arith.addf %1445, %1446 : vector<8x128xf32>
    %1448 = arith.mulf %1444, %1444 : vector<8x128xf32>
    %1449 = arith.addf %1447, %1448 : vector<8x128xf32>
    %cst_443 = arith.constant 0.000000e+00 : f32
    %1450 = vector.broadcast %cst_443 : f32 to vector<8x128xf32>
    %1451 = arith.subf %1450, %1449 : vector<8x128xf32>
    %1452 = math.exp %1451 : vector<8x128xf32>
    %1453 = arith.subf %1346, %18 : vector<8x128xf32>
    %1454 = math.absf %1453 : vector<8x128xf32>
    %1455 = arith.mulf %1452, %1454 : vector<8x128xf32>
    %1456 = arith.addf %1441, %1455 : vector<8x128xf32>
    %c127_i32_444 = arith.constant 127 : i32
    %1457 = tpu.dynamic_rotate %1334 by %c127_i32_444 dim 1 : vector<8x128xf32>, i32 -> vector<8x128xf32>
    %c127_i32_445 = arith.constant 127 : i32
    %1458 = tpu.dynamic_rotate %1338 by %c127_i32_445 dim 1 : vector<8x128xf32>, i32 -> vector<8x128xf32>
    %c127_i32_446 = arith.constant 127 : i32
    %1459 = tpu.dynamic_rotate %1342 by %c127_i32_446 dim 1 : vector<8x128xf32>, i32 -> vector<8x128xf32>
    %c127_i32_447 = arith.constant 127 : i32
    %1460 = tpu.dynamic_rotate %1346 by %c127_i32_447 dim 1 : vector<8x128xf32>, i32 -> vector<8x128xf32>
    %1461 = arith.subf %1457, %6 : vector<8x128xf32>
    %1462 = arith.subf %1458, %10 : vector<8x128xf32>
    %1463 = arith.subf %1459, %14 : vector<8x128xf32>
    %1464 = arith.mulf %1461, %1461 : vector<8x128xf32>
    %1465 = arith.mulf %1462, %1462 : vector<8x128xf32>
    %1466 = arith.addf %1464, %1465 : vector<8x128xf32>
    %1467 = arith.mulf %1463, %1463 : vector<8x128xf32>
    %1468 = arith.addf %1466, %1467 : vector<8x128xf32>
    %cst_448 = arith.constant 0.000000e+00 : f32
    %1469 = vector.broadcast %cst_448 : f32 to vector<8x128xf32>
    %1470 = arith.subf %1469, %1468 : vector<8x128xf32>
    %1471 = math.exp %1470 : vector<8x128xf32>
    %1472 = arith.subf %1460, %18 : vector<8x128xf32>
    %1473 = math.absf %1472 : vector<8x128xf32>
    %1474 = arith.mulf %1471, %1473 : vector<8x128xf32>
    %1475 = arith.addf %1456, %1474 : vector<8x128xf32>
    %c126_i32_449 = arith.constant 126 : i32
    %1476 = tpu.dynamic_rotate %1334 by %c126_i32_449 dim 1 : vector<8x128xf32>, i32 -> vector<8x128xf32>
    %c126_i32_450 = arith.constant 126 : i32
    %1477 = tpu.dynamic_rotate %1338 by %c126_i32_450 dim 1 : vector<8x128xf32>, i32 -> vector<8x128xf32>
    %c126_i32_451 = arith.constant 126 : i32
    %1478 = tpu.dynamic_rotate %1342 by %c126_i32_451 dim 1 : vector<8x128xf32>, i32 -> vector<8x128xf32>
    %c126_i32_452 = arith.constant 126 : i32
    %1479 = tpu.dynamic_rotate %1346 by %c126_i32_452 dim 1 : vector<8x128xf32>, i32 -> vector<8x128xf32>
    %1480 = arith.subf %1476, %6 : vector<8x128xf32>
    %1481 = arith.subf %1477, %10 : vector<8x128xf32>
    %1482 = arith.subf %1478, %14 : vector<8x128xf32>
    %1483 = arith.mulf %1480, %1480 : vector<8x128xf32>
    %1484 = arith.mulf %1481, %1481 : vector<8x128xf32>
    %1485 = arith.addf %1483, %1484 : vector<8x128xf32>
    %1486 = arith.mulf %1482, %1482 : vector<8x128xf32>
    %1487 = arith.addf %1485, %1486 : vector<8x128xf32>
    %cst_453 = arith.constant 0.000000e+00 : f32
    %1488 = vector.broadcast %cst_453 : f32 to vector<8x128xf32>
    %1489 = arith.subf %1488, %1487 : vector<8x128xf32>
    %1490 = math.exp %1489 : vector<8x128xf32>
    %1491 = arith.subf %1479, %18 : vector<8x128xf32>
    %1492 = math.absf %1491 : vector<8x128xf32>
    %1493 = arith.mulf %1490, %1492 : vector<8x128xf32>
    %1494 = arith.addf %1475, %1493 : vector<8x128xf32>
    %c125_i32_454 = arith.constant 125 : i32
    %1495 = tpu.dynamic_rotate %1334 by %c125_i32_454 dim 1 : vector<8x128xf32>, i32 -> vector<8x128xf32>
    %c125_i32_455 = arith.constant 125 : i32
    %1496 = tpu.dynamic_rotate %1338 by %c125_i32_455 dim 1 : vector<8x128xf32>, i32 -> vector<8x128xf32>
    %c125_i32_456 = arith.constant 125 : i32
    %1497 = tpu.dynamic_rotate %1342 by %c125_i32_456 dim 1 : vector<8x128xf32>, i32 -> vector<8x128xf32>
    %c125_i32_457 = arith.constant 125 : i32
    %1498 = tpu.dynamic_rotate %1346 by %c125_i32_457 dim 1 : vector<8x128xf32>, i32 -> vector<8x128xf32>
    %1499 = arith.subf %1495, %6 : vector<8x128xf32>
    %1500 = arith.subf %1496, %10 : vector<8x128xf32>
    %1501 = arith.subf %1497, %14 : vector<8x128xf32>
    %1502 = arith.mulf %1499, %1499 : vector<8x128xf32>
    %1503 = arith.mulf %1500, %1500 : vector<8x128xf32>
    %1504 = arith.addf %1502, %1503 : vector<8x128xf32>
    %1505 = arith.mulf %1501, %1501 : vector<8x128xf32>
    %1506 = arith.addf %1504, %1505 : vector<8x128xf32>
    %cst_458 = arith.constant 0.000000e+00 : f32
    %1507 = vector.broadcast %cst_458 : f32 to vector<8x128xf32>
    %1508 = arith.subf %1507, %1506 : vector<8x128xf32>
    %1509 = math.exp %1508 : vector<8x128xf32>
    %1510 = arith.subf %1498, %18 : vector<8x128xf32>
    %1511 = math.absf %1510 : vector<8x128xf32>
    %1512 = arith.mulf %1509, %1511 : vector<8x128xf32>
    %1513 = arith.addf %1494, %1512 : vector<8x128xf32>
    %c124_i32_459 = arith.constant 124 : i32
    %1514 = tpu.dynamic_rotate %1334 by %c124_i32_459 dim 1 : vector<8x128xf32>, i32 -> vector<8x128xf32>
    %c124_i32_460 = arith.constant 124 : i32
    %1515 = tpu.dynamic_rotate %1338 by %c124_i32_460 dim 1 : vector<8x128xf32>, i32 -> vector<8x128xf32>
    %c124_i32_461 = arith.constant 124 : i32
    %1516 = tpu.dynamic_rotate %1342 by %c124_i32_461 dim 1 : vector<8x128xf32>, i32 -> vector<8x128xf32>
    %c124_i32_462 = arith.constant 124 : i32
    %1517 = tpu.dynamic_rotate %1346 by %c124_i32_462 dim 1 : vector<8x128xf32>, i32 -> vector<8x128xf32>
    %1518 = arith.subf %1514, %6 : vector<8x128xf32>
    %1519 = arith.subf %1515, %10 : vector<8x128xf32>
    %1520 = arith.subf %1516, %14 : vector<8x128xf32>
    %1521 = arith.mulf %1518, %1518 : vector<8x128xf32>
    %1522 = arith.mulf %1519, %1519 : vector<8x128xf32>
    %1523 = arith.addf %1521, %1522 : vector<8x128xf32>
    %1524 = arith.mulf %1520, %1520 : vector<8x128xf32>
    %1525 = arith.addf %1523, %1524 : vector<8x128xf32>
    %cst_463 = arith.constant 0.000000e+00 : f32
    %1526 = vector.broadcast %cst_463 : f32 to vector<8x128xf32>
    %1527 = arith.subf %1526, %1525 : vector<8x128xf32>
    %1528 = math.exp %1527 : vector<8x128xf32>
    %1529 = arith.subf %1517, %18 : vector<8x128xf32>
    %1530 = math.absf %1529 : vector<8x128xf32>
    %1531 = arith.mulf %1528, %1530 : vector<8x128xf32>
    %1532 = arith.addf %1513, %1531 : vector<8x128xf32>
    %c123_i32_464 = arith.constant 123 : i32
    %1533 = tpu.dynamic_rotate %1334 by %c123_i32_464 dim 1 : vector<8x128xf32>, i32 -> vector<8x128xf32>
    %c123_i32_465 = arith.constant 123 : i32
    %1534 = tpu.dynamic_rotate %1338 by %c123_i32_465 dim 1 : vector<8x128xf32>, i32 -> vector<8x128xf32>
    %c123_i32_466 = arith.constant 123 : i32
    %1535 = tpu.dynamic_rotate %1342 by %c123_i32_466 dim 1 : vector<8x128xf32>, i32 -> vector<8x128xf32>
    %c123_i32_467 = arith.constant 123 : i32
    %1536 = tpu.dynamic_rotate %1346 by %c123_i32_467 dim 1 : vector<8x128xf32>, i32 -> vector<8x128xf32>
    %1537 = arith.subf %1533, %6 : vector<8x128xf32>
    %1538 = arith.subf %1534, %10 : vector<8x128xf32>
    %1539 = arith.subf %1535, %14 : vector<8x128xf32>
    %1540 = arith.mulf %1537, %1537 : vector<8x128xf32>
    %1541 = arith.mulf %1538, %1538 : vector<8x128xf32>
    %1542 = arith.addf %1540, %1541 : vector<8x128xf32>
    %1543 = arith.mulf %1539, %1539 : vector<8x128xf32>
    %1544 = arith.addf %1542, %1543 : vector<8x128xf32>
    %cst_468 = arith.constant 0.000000e+00 : f32
    %1545 = vector.broadcast %cst_468 : f32 to vector<8x128xf32>
    %1546 = arith.subf %1545, %1544 : vector<8x128xf32>
    %1547 = math.exp %1546 : vector<8x128xf32>
    %1548 = arith.subf %1536, %18 : vector<8x128xf32>
    %1549 = math.absf %1548 : vector<8x128xf32>
    %1550 = arith.mulf %1547, %1549 : vector<8x128xf32>
    %1551 = arith.addf %1532, %1550 : vector<8x128xf32>
    %c7_i32 = arith.constant 7 : i32
    %1552 = arith.addi %1, %c7_i32 : i32
    %c0_469 = arith.constant 0 : index
    %c0_470 = arith.constant 0 : index
    %1553 = arith.index_cast %1552 : i32 to index
    %c0_471 = arith.constant 0 : index
    %1554 = vector.load %arg2[%c0_469, %c0_470, %1553, %c0_471] : memref<1x4x32x128xf32, #tpu.memory_space<vmem>>, vector<1x1x8x128xf32>
    %1555 = vector.shape_cast %1554 : vector<1x1x8x128xf32> to vector<8x128xf32>
    %c7_i32_472 = arith.constant 7 : i32
    %1556 = arith.addi %1, %c7_i32_472 : i32
    %c0_473 = arith.constant 0 : index
    %c1_474 = arith.constant 1 : index
    %1557 = arith.index_cast %1556 : i32 to index
    %c0_475 = arith.constant 0 : index
    %1558 = vector.load %arg2[%c0_473, %c1_474, %1557, %c0_475] : memref<1x4x32x128xf32, #tpu.memory_space<vmem>>, vector<1x1x8x128xf32>
    %1559 = vector.shape_cast %1558 : vector<1x1x8x128xf32> to vector<8x128xf32>
    %c7_i32_476 = arith.constant 7 : i32
    %1560 = arith.addi %1, %c7_i32_476 : i32
    %c0_477 = arith.constant 0 : index
    %c2_478 = arith.constant 2 : index
    %1561 = arith.index_cast %1560 : i32 to index
    %c0_479 = arith.constant 0 : index
    %1562 = vector.load %arg2[%c0_477, %c2_478, %1561, %c0_479] : memref<1x4x32x128xf32, #tpu.memory_space<vmem>>, vector<1x1x8x128xf32>
    %1563 = vector.shape_cast %1562 : vector<1x1x8x128xf32> to vector<8x128xf32>
    %c7_i32_480 = arith.constant 7 : i32
    %1564 = arith.addi %1, %c7_i32_480 : i32
    %c0_481 = arith.constant 0 : index
    %c3_482 = arith.constant 3 : index
    %1565 = arith.index_cast %1564 : i32 to index
    %c0_483 = arith.constant 0 : index
    %1566 = vector.load %arg2[%c0_481, %c3_482, %1565, %c0_483] : memref<1x4x32x128xf32, #tpu.memory_space<vmem>>, vector<1x1x8x128xf32>
    %1567 = vector.shape_cast %1566 : vector<1x1x8x128xf32> to vector<8x128xf32>
    %c5_i32_484 = arith.constant 5 : i32
    %1568 = tpu.dynamic_rotate %1555 by %c5_i32_484 dim 1 : vector<8x128xf32>, i32 -> vector<8x128xf32>
    %c5_i32_485 = arith.constant 5 : i32
    %1569 = tpu.dynamic_rotate %1559 by %c5_i32_485 dim 1 : vector<8x128xf32>, i32 -> vector<8x128xf32>
    %c5_i32_486 = arith.constant 5 : i32
    %1570 = tpu.dynamic_rotate %1563 by %c5_i32_486 dim 1 : vector<8x128xf32>, i32 -> vector<8x128xf32>
    %c5_i32_487 = arith.constant 5 : i32
    %1571 = tpu.dynamic_rotate %1567 by %c5_i32_487 dim 1 : vector<8x128xf32>, i32 -> vector<8x128xf32>
    %1572 = arith.subf %1568, %6 : vector<8x128xf32>
    %1573 = arith.subf %1569, %10 : vector<8x128xf32>
    %1574 = arith.subf %1570, %14 : vector<8x128xf32>
    %1575 = arith.mulf %1572, %1572 : vector<8x128xf32>
    %1576 = arith.mulf %1573, %1573 : vector<8x128xf32>
    %1577 = arith.addf %1575, %1576 : vector<8x128xf32>
    %1578 = arith.mulf %1574, %1574 : vector<8x128xf32>
    %1579 = arith.addf %1577, %1578 : vector<8x128xf32>
    %cst_488 = arith.constant 0.000000e+00 : f32
    %1580 = vector.broadcast %cst_488 : f32 to vector<8x128xf32>
    %1581 = arith.subf %1580, %1579 : vector<8x128xf32>
    %1582 = math.exp %1581 : vector<8x128xf32>
    %1583 = arith.subf %1571, %18 : vector<8x128xf32>
    %1584 = math.absf %1583 : vector<8x128xf32>
    %1585 = arith.mulf %1582, %1584 : vector<8x128xf32>
    %1586 = arith.addf %1551, %1585 : vector<8x128xf32>
    %c4_i32_489 = arith.constant 4 : i32
    %1587 = tpu.dynamic_rotate %1555 by %c4_i32_489 dim 1 : vector<8x128xf32>, i32 -> vector<8x128xf32>
    %c4_i32_490 = arith.constant 4 : i32
    %1588 = tpu.dynamic_rotate %1559 by %c4_i32_490 dim 1 : vector<8x128xf32>, i32 -> vector<8x128xf32>
    %c4_i32_491 = arith.constant 4 : i32
    %1589 = tpu.dynamic_rotate %1563 by %c4_i32_491 dim 1 : vector<8x128xf32>, i32 -> vector<8x128xf32>
    %c4_i32_492 = arith.constant 4 : i32
    %1590 = tpu.dynamic_rotate %1567 by %c4_i32_492 dim 1 : vector<8x128xf32>, i32 -> vector<8x128xf32>
    %1591 = arith.subf %1587, %6 : vector<8x128xf32>
    %1592 = arith.subf %1588, %10 : vector<8x128xf32>
    %1593 = arith.subf %1589, %14 : vector<8x128xf32>
    %1594 = arith.mulf %1591, %1591 : vector<8x128xf32>
    %1595 = arith.mulf %1592, %1592 : vector<8x128xf32>
    %1596 = arith.addf %1594, %1595 : vector<8x128xf32>
    %1597 = arith.mulf %1593, %1593 : vector<8x128xf32>
    %1598 = arith.addf %1596, %1597 : vector<8x128xf32>
    %cst_493 = arith.constant 0.000000e+00 : f32
    %1599 = vector.broadcast %cst_493 : f32 to vector<8x128xf32>
    %1600 = arith.subf %1599, %1598 : vector<8x128xf32>
    %1601 = math.exp %1600 : vector<8x128xf32>
    %1602 = arith.subf %1590, %18 : vector<8x128xf32>
    %1603 = math.absf %1602 : vector<8x128xf32>
    %1604 = arith.mulf %1601, %1603 : vector<8x128xf32>
    %1605 = arith.addf %1586, %1604 : vector<8x128xf32>
    %c3_i32_494 = arith.constant 3 : i32
    %1606 = tpu.dynamic_rotate %1555 by %c3_i32_494 dim 1 : vector<8x128xf32>, i32 -> vector<8x128xf32>
    %c3_i32_495 = arith.constant 3 : i32
    %1607 = tpu.dynamic_rotate %1559 by %c3_i32_495 dim 1 : vector<8x128xf32>, i32 -> vector<8x128xf32>
    %c3_i32_496 = arith.constant 3 : i32
    %1608 = tpu.dynamic_rotate %1563 by %c3_i32_496 dim 1 : vector<8x128xf32>, i32 -> vector<8x128xf32>
    %c3_i32_497 = arith.constant 3 : i32
    %1609 = tpu.dynamic_rotate %1567 by %c3_i32_497 dim 1 : vector<8x128xf32>, i32 -> vector<8x128xf32>
    %1610 = arith.subf %1606, %6 : vector<8x128xf32>
    %1611 = arith.subf %1607, %10 : vector<8x128xf32>
    %1612 = arith.subf %1608, %14 : vector<8x128xf32>
    %1613 = arith.mulf %1610, %1610 : vector<8x128xf32>
    %1614 = arith.mulf %1611, %1611 : vector<8x128xf32>
    %1615 = arith.addf %1613, %1614 : vector<8x128xf32>
    %1616 = arith.mulf %1612, %1612 : vector<8x128xf32>
    %1617 = arith.addf %1615, %1616 : vector<8x128xf32>
    %cst_498 = arith.constant 0.000000e+00 : f32
    %1618 = vector.broadcast %cst_498 : f32 to vector<8x128xf32>
    %1619 = arith.subf %1618, %1617 : vector<8x128xf32>
    %1620 = math.exp %1619 : vector<8x128xf32>
    %1621 = arith.subf %1609, %18 : vector<8x128xf32>
    %1622 = math.absf %1621 : vector<8x128xf32>
    %1623 = arith.mulf %1620, %1622 : vector<8x128xf32>
    %1624 = arith.addf %1605, %1623 : vector<8x128xf32>
    %c2_i32_499 = arith.constant 2 : i32
    %1625 = tpu.dynamic_rotate %1555 by %c2_i32_499 dim 1 : vector<8x128xf32>, i32 -> vector<8x128xf32>
    %c2_i32_500 = arith.constant 2 : i32
    %1626 = tpu.dynamic_rotate %1559 by %c2_i32_500 dim 1 : vector<8x128xf32>, i32 -> vector<8x128xf32>
    %c2_i32_501 = arith.constant 2 : i32
    %1627 = tpu.dynamic_rotate %1563 by %c2_i32_501 dim 1 : vector<8x128xf32>, i32 -> vector<8x128xf32>
    %c2_i32_502 = arith.constant 2 : i32
    %1628 = tpu.dynamic_rotate %1567 by %c2_i32_502 dim 1 : vector<8x128xf32>, i32 -> vector<8x128xf32>
    %1629 = arith.subf %1625, %6 : vector<8x128xf32>
    %1630 = arith.subf %1626, %10 : vector<8x128xf32>
    %1631 = arith.subf %1627, %14 : vector<8x128xf32>
    %1632 = arith.mulf %1629, %1629 : vector<8x128xf32>
    %1633 = arith.mulf %1630, %1630 : vector<8x128xf32>
    %1634 = arith.addf %1632, %1633 : vector<8x128xf32>
    %1635 = arith.mulf %1631, %1631 : vector<8x128xf32>
    %1636 = arith.addf %1634, %1635 : vector<8x128xf32>
    %cst_503 = arith.constant 0.000000e+00 : f32
    %1637 = vector.broadcast %cst_503 : f32 to vector<8x128xf32>
    %1638 = arith.subf %1637, %1636 : vector<8x128xf32>
    %1639 = math.exp %1638 : vector<8x128xf32>
    %1640 = arith.subf %1628, %18 : vector<8x128xf32>
    %1641 = math.absf %1640 : vector<8x128xf32>
    %1642 = arith.mulf %1639, %1641 : vector<8x128xf32>
    %1643 = arith.addf %1624, %1642 : vector<8x128xf32>
    %c1_i32_504 = arith.constant 1 : i32
    %1644 = tpu.dynamic_rotate %1555 by %c1_i32_504 dim 1 : vector<8x128xf32>, i32 -> vector<8x128xf32>
    %c1_i32_505 = arith.constant 1 : i32
    %1645 = tpu.dynamic_rotate %1559 by %c1_i32_505 dim 1 : vector<8x128xf32>, i32 -> vector<8x128xf32>
    %c1_i32_506 = arith.constant 1 : i32
    %1646 = tpu.dynamic_rotate %1563 by %c1_i32_506 dim 1 : vector<8x128xf32>, i32 -> vector<8x128xf32>
    %c1_i32_507 = arith.constant 1 : i32
    %1647 = tpu.dynamic_rotate %1567 by %c1_i32_507 dim 1 : vector<8x128xf32>, i32 -> vector<8x128xf32>
    %1648 = arith.subf %1644, %6 : vector<8x128xf32>
    %1649 = arith.subf %1645, %10 : vector<8x128xf32>
    %1650 = arith.subf %1646, %14 : vector<8x128xf32>
    %1651 = arith.mulf %1648, %1648 : vector<8x128xf32>
    %1652 = arith.mulf %1649, %1649 : vector<8x128xf32>
    %1653 = arith.addf %1651, %1652 : vector<8x128xf32>
    %1654 = arith.mulf %1650, %1650 : vector<8x128xf32>
    %1655 = arith.addf %1653, %1654 : vector<8x128xf32>
    %cst_508 = arith.constant 0.000000e+00 : f32
    %1656 = vector.broadcast %cst_508 : f32 to vector<8x128xf32>
    %1657 = arith.subf %1656, %1655 : vector<8x128xf32>
    %1658 = math.exp %1657 : vector<8x128xf32>
    %1659 = arith.subf %1647, %18 : vector<8x128xf32>
    %1660 = math.absf %1659 : vector<8x128xf32>
    %1661 = arith.mulf %1658, %1660 : vector<8x128xf32>
    %1662 = arith.addf %1643, %1661 : vector<8x128xf32>
    %1663 = arith.subf %1555, %6 : vector<8x128xf32>
    %1664 = arith.subf %1559, %10 : vector<8x128xf32>
    %1665 = arith.subf %1563, %14 : vector<8x128xf32>
    %1666 = arith.mulf %1663, %1663 : vector<8x128xf32>
    %1667 = arith.mulf %1664, %1664 : vector<8x128xf32>
    %1668 = arith.addf %1666, %1667 : vector<8x128xf32>
    %1669 = arith.mulf %1665, %1665 : vector<8x128xf32>
    %1670 = arith.addf %1668, %1669 : vector<8x128xf32>
    %cst_509 = arith.constant 0.000000e+00 : f32
    %1671 = vector.broadcast %cst_509 : f32 to vector<8x128xf32>
    %1672 = arith.subf %1671, %1670 : vector<8x128xf32>
    %1673 = math.exp %1672 : vector<8x128xf32>
    %1674 = arith.subf %1567, %18 : vector<8x128xf32>
    %1675 = math.absf %1674 : vector<8x128xf32>
    %1676 = arith.mulf %1673, %1675 : vector<8x128xf32>
    %1677 = arith.addf %1662, %1676 : vector<8x128xf32>
    %c127_i32_510 = arith.constant 127 : i32
    %1678 = tpu.dynamic_rotate %1555 by %c127_i32_510 dim 1 : vector<8x128xf32>, i32 -> vector<8x128xf32>
    %c127_i32_511 = arith.constant 127 : i32
    %1679 = tpu.dynamic_rotate %1559 by %c127_i32_511 dim 1 : vector<8x128xf32>, i32 -> vector<8x128xf32>
    %c127_i32_512 = arith.constant 127 : i32
    %1680 = tpu.dynamic_rotate %1563 by %c127_i32_512 dim 1 : vector<8x128xf32>, i32 -> vector<8x128xf32>
    %c127_i32_513 = arith.constant 127 : i32
    %1681 = tpu.dynamic_rotate %1567 by %c127_i32_513 dim 1 : vector<8x128xf32>, i32 -> vector<8x128xf32>
    %1682 = arith.subf %1678, %6 : vector<8x128xf32>
    %1683 = arith.subf %1679, %10 : vector<8x128xf32>
    %1684 = arith.subf %1680, %14 : vector<8x128xf32>
    %1685 = arith.mulf %1682, %1682 : vector<8x128xf32>
    %1686 = arith.mulf %1683, %1683 : vector<8x128xf32>
    %1687 = arith.addf %1685, %1686 : vector<8x128xf32>
    %1688 = arith.mulf %1684, %1684 : vector<8x128xf32>
    %1689 = arith.addf %1687, %1688 : vector<8x128xf32>
    %cst_514 = arith.constant 0.000000e+00 : f32
    %1690 = vector.broadcast %cst_514 : f32 to vector<8x128xf32>
    %1691 = arith.subf %1690, %1689 : vector<8x128xf32>
    %1692 = math.exp %1691 : vector<8x128xf32>
    %1693 = arith.subf %1681, %18 : vector<8x128xf32>
    %1694 = math.absf %1693 : vector<8x128xf32>
    %1695 = arith.mulf %1692, %1694 : vector<8x128xf32>
    %1696 = arith.addf %1677, %1695 : vector<8x128xf32>
    %c126_i32_515 = arith.constant 126 : i32
    %1697 = tpu.dynamic_rotate %1555 by %c126_i32_515 dim 1 : vector<8x128xf32>, i32 -> vector<8x128xf32>
    %c126_i32_516 = arith.constant 126 : i32
    %1698 = tpu.dynamic_rotate %1559 by %c126_i32_516 dim 1 : vector<8x128xf32>, i32 -> vector<8x128xf32>
    %c126_i32_517 = arith.constant 126 : i32
    %1699 = tpu.dynamic_rotate %1563 by %c126_i32_517 dim 1 : vector<8x128xf32>, i32 -> vector<8x128xf32>
    %c126_i32_518 = arith.constant 126 : i32
    %1700 = tpu.dynamic_rotate %1567 by %c126_i32_518 dim 1 : vector<8x128xf32>, i32 -> vector<8x128xf32>
    %1701 = arith.subf %1697, %6 : vector<8x128xf32>
    %1702 = arith.subf %1698, %10 : vector<8x128xf32>
    %1703 = arith.subf %1699, %14 : vector<8x128xf32>
    %1704 = arith.mulf %1701, %1701 : vector<8x128xf32>
    %1705 = arith.mulf %1702, %1702 : vector<8x128xf32>
    %1706 = arith.addf %1704, %1705 : vector<8x128xf32>
    %1707 = arith.mulf %1703, %1703 : vector<8x128xf32>
    %1708 = arith.addf %1706, %1707 : vector<8x128xf32>
    %cst_519 = arith.constant 0.000000e+00 : f32
    %1709 = vector.broadcast %cst_519 : f32 to vector<8x128xf32>
    %1710 = arith.subf %1709, %1708 : vector<8x128xf32>
    %1711 = math.exp %1710 : vector<8x128xf32>
    %1712 = arith.subf %1700, %18 : vector<8x128xf32>
    %1713 = math.absf %1712 : vector<8x128xf32>
    %1714 = arith.mulf %1711, %1713 : vector<8x128xf32>
    %1715 = arith.addf %1696, %1714 : vector<8x128xf32>
    %c125_i32_520 = arith.constant 125 : i32
    %1716 = tpu.dynamic_rotate %1555 by %c125_i32_520 dim 1 : vector<8x128xf32>, i32 -> vector<8x128xf32>
    %c125_i32_521 = arith.constant 125 : i32
    %1717 = tpu.dynamic_rotate %1559 by %c125_i32_521 dim 1 : vector<8x128xf32>, i32 -> vector<8x128xf32>
    %c125_i32_522 = arith.constant 125 : i32
    %1718 = tpu.dynamic_rotate %1563 by %c125_i32_522 dim 1 : vector<8x128xf32>, i32 -> vector<8x128xf32>
    %c125_i32_523 = arith.constant 125 : i32
    %1719 = tpu.dynamic_rotate %1567 by %c125_i32_523 dim 1 : vector<8x128xf32>, i32 -> vector<8x128xf32>
    %1720 = arith.subf %1716, %6 : vector<8x128xf32>
    %1721 = arith.subf %1717, %10 : vector<8x128xf32>
    %1722 = arith.subf %1718, %14 : vector<8x128xf32>
    %1723 = arith.mulf %1720, %1720 : vector<8x128xf32>
    %1724 = arith.mulf %1721, %1721 : vector<8x128xf32>
    %1725 = arith.addf %1723, %1724 : vector<8x128xf32>
    %1726 = arith.mulf %1722, %1722 : vector<8x128xf32>
    %1727 = arith.addf %1725, %1726 : vector<8x128xf32>
    %cst_524 = arith.constant 0.000000e+00 : f32
    %1728 = vector.broadcast %cst_524 : f32 to vector<8x128xf32>
    %1729 = arith.subf %1728, %1727 : vector<8x128xf32>
    %1730 = math.exp %1729 : vector<8x128xf32>
    %1731 = arith.subf %1719, %18 : vector<8x128xf32>
    %1732 = math.absf %1731 : vector<8x128xf32>
    %1733 = arith.mulf %1730, %1732 : vector<8x128xf32>
    %1734 = arith.addf %1715, %1733 : vector<8x128xf32>
    %c124_i32_525 = arith.constant 124 : i32
    %1735 = tpu.dynamic_rotate %1555 by %c124_i32_525 dim 1 : vector<8x128xf32>, i32 -> vector<8x128xf32>
    %c124_i32_526 = arith.constant 124 : i32
    %1736 = tpu.dynamic_rotate %1559 by %c124_i32_526 dim 1 : vector<8x128xf32>, i32 -> vector<8x128xf32>
    %c124_i32_527 = arith.constant 124 : i32
    %1737 = tpu.dynamic_rotate %1563 by %c124_i32_527 dim 1 : vector<8x128xf32>, i32 -> vector<8x128xf32>
    %c124_i32_528 = arith.constant 124 : i32
    %1738 = tpu.dynamic_rotate %1567 by %c124_i32_528 dim 1 : vector<8x128xf32>, i32 -> vector<8x128xf32>
    %1739 = arith.subf %1735, %6 : vector<8x128xf32>
    %1740 = arith.subf %1736, %10 : vector<8x128xf32>
    %1741 = arith.subf %1737, %14 : vector<8x128xf32>
    %1742 = arith.mulf %1739, %1739 : vector<8x128xf32>
    %1743 = arith.mulf %1740, %1740 : vector<8x128xf32>
    %1744 = arith.addf %1742, %1743 : vector<8x128xf32>
    %1745 = arith.mulf %1741, %1741 : vector<8x128xf32>
    %1746 = arith.addf %1744, %1745 : vector<8x128xf32>
    %cst_529 = arith.constant 0.000000e+00 : f32
    %1747 = vector.broadcast %cst_529 : f32 to vector<8x128xf32>
    %1748 = arith.subf %1747, %1746 : vector<8x128xf32>
    %1749 = math.exp %1748 : vector<8x128xf32>
    %1750 = arith.subf %1738, %18 : vector<8x128xf32>
    %1751 = math.absf %1750 : vector<8x128xf32>
    %1752 = arith.mulf %1749, %1751 : vector<8x128xf32>
    %1753 = arith.addf %1734, %1752 : vector<8x128xf32>
    %c123_i32_530 = arith.constant 123 : i32
    %1754 = tpu.dynamic_rotate %1555 by %c123_i32_530 dim 1 : vector<8x128xf32>, i32 -> vector<8x128xf32>
    %c123_i32_531 = arith.constant 123 : i32
    %1755 = tpu.dynamic_rotate %1559 by %c123_i32_531 dim 1 : vector<8x128xf32>, i32 -> vector<8x128xf32>
    %c123_i32_532 = arith.constant 123 : i32
    %1756 = tpu.dynamic_rotate %1563 by %c123_i32_532 dim 1 : vector<8x128xf32>, i32 -> vector<8x128xf32>
    %c123_i32_533 = arith.constant 123 : i32
    %1757 = tpu.dynamic_rotate %1567 by %c123_i32_533 dim 1 : vector<8x128xf32>, i32 -> vector<8x128xf32>
    %1758 = arith.subf %1754, %6 : vector<8x128xf32>
    %1759 = arith.subf %1755, %10 : vector<8x128xf32>
    %1760 = arith.subf %1756, %14 : vector<8x128xf32>
    %1761 = arith.mulf %1758, %1758 : vector<8x128xf32>
    %1762 = arith.mulf %1759, %1759 : vector<8x128xf32>
    %1763 = arith.addf %1761, %1762 : vector<8x128xf32>
    %1764 = arith.mulf %1760, %1760 : vector<8x128xf32>
    %1765 = arith.addf %1763, %1764 : vector<8x128xf32>
    %cst_534 = arith.constant 0.000000e+00 : f32
    %1766 = vector.broadcast %cst_534 : f32 to vector<8x128xf32>
    %1767 = arith.subf %1766, %1765 : vector<8x128xf32>
    %1768 = math.exp %1767 : vector<8x128xf32>
    %1769 = arith.subf %1757, %18 : vector<8x128xf32>
    %1770 = math.absf %1769 : vector<8x128xf32>
    %1771 = arith.mulf %1768, %1770 : vector<8x128xf32>
    %1772 = arith.addf %1753, %1771 : vector<8x128xf32>
    %c8_i32_535 = arith.constant 8 : i32
    %1773 = arith.addi %1, %c8_i32_535 : i32
    %c0_536 = arith.constant 0 : index
    %c0_537 = arith.constant 0 : index
    %1774 = arith.index_cast %1773 : i32 to index
    %c0_538 = arith.constant 0 : index
    %1775 = vector.load %arg2[%c0_536, %c0_537, %1774, %c0_538] : memref<1x4x32x128xf32, #tpu.memory_space<vmem>>, vector<1x1x8x128xf32>
    %1776 = vector.shape_cast %1775 : vector<1x1x8x128xf32> to vector<8x128xf32>
    %c8_i32_539 = arith.constant 8 : i32
    %1777 = arith.addi %1, %c8_i32_539 : i32
    %c0_540 = arith.constant 0 : index
    %c1_541 = arith.constant 1 : index
    %1778 = arith.index_cast %1777 : i32 to index
    %c0_542 = arith.constant 0 : index
    %1779 = vector.load %arg2[%c0_540, %c1_541, %1778, %c0_542] : memref<1x4x32x128xf32, #tpu.memory_space<vmem>>, vector<1x1x8x128xf32>
    %1780 = vector.shape_cast %1779 : vector<1x1x8x128xf32> to vector<8x128xf32>
    %c8_i32_543 = arith.constant 8 : i32
    %1781 = arith.addi %1, %c8_i32_543 : i32
    %c0_544 = arith.constant 0 : index
    %c2_545 = arith.constant 2 : index
    %1782 = arith.index_cast %1781 : i32 to index
    %c0_546 = arith.constant 0 : index
    %1783 = vector.load %arg2[%c0_544, %c2_545, %1782, %c0_546] : memref<1x4x32x128xf32, #tpu.memory_space<vmem>>, vector<1x1x8x128xf32>
    %1784 = vector.shape_cast %1783 : vector<1x1x8x128xf32> to vector<8x128xf32>
    %c8_i32_547 = arith.constant 8 : i32
    %1785 = arith.addi %1, %c8_i32_547 : i32
    %c0_548 = arith.constant 0 : index
    %c3_549 = arith.constant 3 : index
    %1786 = arith.index_cast %1785 : i32 to index
    %c0_550 = arith.constant 0 : index
    %1787 = vector.load %arg2[%c0_548, %c3_549, %1786, %c0_550] : memref<1x4x32x128xf32, #tpu.memory_space<vmem>>, vector<1x1x8x128xf32>
    %1788 = vector.shape_cast %1787 : vector<1x1x8x128xf32> to vector<8x128xf32>
    %c5_i32_551 = arith.constant 5 : i32
    %1789 = tpu.dynamic_rotate %1776 by %c5_i32_551 dim 1 : vector<8x128xf32>, i32 -> vector<8x128xf32>
    %c5_i32_552 = arith.constant 5 : i32
    %1790 = tpu.dynamic_rotate %1780 by %c5_i32_552 dim 1 : vector<8x128xf32>, i32 -> vector<8x128xf32>
    %c5_i32_553 = arith.constant 5 : i32
    %1791 = tpu.dynamic_rotate %1784 by %c5_i32_553 dim 1 : vector<8x128xf32>, i32 -> vector<8x128xf32>
    %c5_i32_554 = arith.constant 5 : i32
    %1792 = tpu.dynamic_rotate %1788 by %c5_i32_554 dim 1 : vector<8x128xf32>, i32 -> vector<8x128xf32>
    %1793 = arith.subf %1789, %6 : vector<8x128xf32>
    %1794 = arith.subf %1790, %10 : vector<8x128xf32>
    %1795 = arith.subf %1791, %14 : vector<8x128xf32>
    %1796 = arith.mulf %1793, %1793 : vector<8x128xf32>
    %1797 = arith.mulf %1794, %1794 : vector<8x128xf32>
    %1798 = arith.addf %1796, %1797 : vector<8x128xf32>
    %1799 = arith.mulf %1795, %1795 : vector<8x128xf32>
    %1800 = arith.addf %1798, %1799 : vector<8x128xf32>
    %cst_555 = arith.constant 0.000000e+00 : f32
    %1801 = vector.broadcast %cst_555 : f32 to vector<8x128xf32>
    %1802 = arith.subf %1801, %1800 : vector<8x128xf32>
    %1803 = math.exp %1802 : vector<8x128xf32>
    %1804 = arith.subf %1792, %18 : vector<8x128xf32>
    %1805 = math.absf %1804 : vector<8x128xf32>
    %1806 = arith.mulf %1803, %1805 : vector<8x128xf32>
    %1807 = arith.addf %1772, %1806 : vector<8x128xf32>
    %c4_i32_556 = arith.constant 4 : i32
    %1808 = tpu.dynamic_rotate %1776 by %c4_i32_556 dim 1 : vector<8x128xf32>, i32 -> vector<8x128xf32>
    %c4_i32_557 = arith.constant 4 : i32
    %1809 = tpu.dynamic_rotate %1780 by %c4_i32_557 dim 1 : vector<8x128xf32>, i32 -> vector<8x128xf32>
    %c4_i32_558 = arith.constant 4 : i32
    %1810 = tpu.dynamic_rotate %1784 by %c4_i32_558 dim 1 : vector<8x128xf32>, i32 -> vector<8x128xf32>
    %c4_i32_559 = arith.constant 4 : i32
    %1811 = tpu.dynamic_rotate %1788 by %c4_i32_559 dim 1 : vector<8x128xf32>, i32 -> vector<8x128xf32>
    %1812 = arith.subf %1808, %6 : vector<8x128xf32>
    %1813 = arith.subf %1809, %10 : vector<8x128xf32>
    %1814 = arith.subf %1810, %14 : vector<8x128xf32>
    %1815 = arith.mulf %1812, %1812 : vector<8x128xf32>
    %1816 = arith.mulf %1813, %1813 : vector<8x128xf32>
    %1817 = arith.addf %1815, %1816 : vector<8x128xf32>
    %1818 = arith.mulf %1814, %1814 : vector<8x128xf32>
    %1819 = arith.addf %1817, %1818 : vector<8x128xf32>
    %cst_560 = arith.constant 0.000000e+00 : f32
    %1820 = vector.broadcast %cst_560 : f32 to vector<8x128xf32>
    %1821 = arith.subf %1820, %1819 : vector<8x128xf32>
    %1822 = math.exp %1821 : vector<8x128xf32>
    %1823 = arith.subf %1811, %18 : vector<8x128xf32>
    %1824 = math.absf %1823 : vector<8x128xf32>
    %1825 = arith.mulf %1822, %1824 : vector<8x128xf32>
    %1826 = arith.addf %1807, %1825 : vector<8x128xf32>
    %c3_i32_561 = arith.constant 3 : i32
    %1827 = tpu.dynamic_rotate %1776 by %c3_i32_561 dim 1 : vector<8x128xf32>, i32 -> vector<8x128xf32>
    %c3_i32_562 = arith.constant 3 : i32
    %1828 = tpu.dynamic_rotate %1780 by %c3_i32_562 dim 1 : vector<8x128xf32>, i32 -> vector<8x128xf32>
    %c3_i32_563 = arith.constant 3 : i32
    %1829 = tpu.dynamic_rotate %1784 by %c3_i32_563 dim 1 : vector<8x128xf32>, i32 -> vector<8x128xf32>
    %c3_i32_564 = arith.constant 3 : i32
    %1830 = tpu.dynamic_rotate %1788 by %c3_i32_564 dim 1 : vector<8x128xf32>, i32 -> vector<8x128xf32>
    %1831 = arith.subf %1827, %6 : vector<8x128xf32>
    %1832 = arith.subf %1828, %10 : vector<8x128xf32>
    %1833 = arith.subf %1829, %14 : vector<8x128xf32>
    %1834 = arith.mulf %1831, %1831 : vector<8x128xf32>
    %1835 = arith.mulf %1832, %1832 : vector<8x128xf32>
    %1836 = arith.addf %1834, %1835 : vector<8x128xf32>
    %1837 = arith.mulf %1833, %1833 : vector<8x128xf32>
    %1838 = arith.addf %1836, %1837 : vector<8x128xf32>
    %cst_565 = arith.constant 0.000000e+00 : f32
    %1839 = vector.broadcast %cst_565 : f32 to vector<8x128xf32>
    %1840 = arith.subf %1839, %1838 : vector<8x128xf32>
    %1841 = math.exp %1840 : vector<8x128xf32>
    %1842 = arith.subf %1830, %18 : vector<8x128xf32>
    %1843 = math.absf %1842 : vector<8x128xf32>
    %1844 = arith.mulf %1841, %1843 : vector<8x128xf32>
    %1845 = arith.addf %1826, %1844 : vector<8x128xf32>
    %c2_i32_566 = arith.constant 2 : i32
    %1846 = tpu.dynamic_rotate %1776 by %c2_i32_566 dim 1 : vector<8x128xf32>, i32 -> vector<8x128xf32>
    %c2_i32_567 = arith.constant 2 : i32
    %1847 = tpu.dynamic_rotate %1780 by %c2_i32_567 dim 1 : vector<8x128xf32>, i32 -> vector<8x128xf32>
    %c2_i32_568 = arith.constant 2 : i32
    %1848 = tpu.dynamic_rotate %1784 by %c2_i32_568 dim 1 : vector<8x128xf32>, i32 -> vector<8x128xf32>
    %c2_i32_569 = arith.constant 2 : i32
    %1849 = tpu.dynamic_rotate %1788 by %c2_i32_569 dim 1 : vector<8x128xf32>, i32 -> vector<8x128xf32>
    %1850 = arith.subf %1846, %6 : vector<8x128xf32>
    %1851 = arith.subf %1847, %10 : vector<8x128xf32>
    %1852 = arith.subf %1848, %14 : vector<8x128xf32>
    %1853 = arith.mulf %1850, %1850 : vector<8x128xf32>
    %1854 = arith.mulf %1851, %1851 : vector<8x128xf32>
    %1855 = arith.addf %1853, %1854 : vector<8x128xf32>
    %1856 = arith.mulf %1852, %1852 : vector<8x128xf32>
    %1857 = arith.addf %1855, %1856 : vector<8x128xf32>
    %cst_570 = arith.constant 0.000000e+00 : f32
    %1858 = vector.broadcast %cst_570 : f32 to vector<8x128xf32>
    %1859 = arith.subf %1858, %1857 : vector<8x128xf32>
    %1860 = math.exp %1859 : vector<8x128xf32>
    %1861 = arith.subf %1849, %18 : vector<8x128xf32>
    %1862 = math.absf %1861 : vector<8x128xf32>
    %1863 = arith.mulf %1860, %1862 : vector<8x128xf32>
    %1864 = arith.addf %1845, %1863 : vector<8x128xf32>
    %c1_i32_571 = arith.constant 1 : i32
    %1865 = tpu.dynamic_rotate %1776 by %c1_i32_571 dim 1 : vector<8x128xf32>, i32 -> vector<8x128xf32>
    %c1_i32_572 = arith.constant 1 : i32
    %1866 = tpu.dynamic_rotate %1780 by %c1_i32_572 dim 1 : vector<8x128xf32>, i32 -> vector<8x128xf32>
    %c1_i32_573 = arith.constant 1 : i32
    %1867 = tpu.dynamic_rotate %1784 by %c1_i32_573 dim 1 : vector<8x128xf32>, i32 -> vector<8x128xf32>
    %c1_i32_574 = arith.constant 1 : i32
    %1868 = tpu.dynamic_rotate %1788 by %c1_i32_574 dim 1 : vector<8x128xf32>, i32 -> vector<8x128xf32>
    %1869 = arith.subf %1865, %6 : vector<8x128xf32>
    %1870 = arith.subf %1866, %10 : vector<8x128xf32>
    %1871 = arith.subf %1867, %14 : vector<8x128xf32>
    %1872 = arith.mulf %1869, %1869 : vector<8x128xf32>
    %1873 = arith.mulf %1870, %1870 : vector<8x128xf32>
    %1874 = arith.addf %1872, %1873 : vector<8x128xf32>
    %1875 = arith.mulf %1871, %1871 : vector<8x128xf32>
    %1876 = arith.addf %1874, %1875 : vector<8x128xf32>
    %cst_575 = arith.constant 0.000000e+00 : f32
    %1877 = vector.broadcast %cst_575 : f32 to vector<8x128xf32>
    %1878 = arith.subf %1877, %1876 : vector<8x128xf32>
    %1879 = math.exp %1878 : vector<8x128xf32>
    %1880 = arith.subf %1868, %18 : vector<8x128xf32>
    %1881 = math.absf %1880 : vector<8x128xf32>
    %1882 = arith.mulf %1879, %1881 : vector<8x128xf32>
    %1883 = arith.addf %1864, %1882 : vector<8x128xf32>
    %1884 = arith.subf %1776, %6 : vector<8x128xf32>
    %1885 = arith.subf %1780, %10 : vector<8x128xf32>
    %1886 = arith.subf %1784, %14 : vector<8x128xf32>
    %1887 = arith.mulf %1884, %1884 : vector<8x128xf32>
    %1888 = arith.mulf %1885, %1885 : vector<8x128xf32>
    %1889 = arith.addf %1887, %1888 : vector<8x128xf32>
    %1890 = arith.mulf %1886, %1886 : vector<8x128xf32>
    %1891 = arith.addf %1889, %1890 : vector<8x128xf32>
    %cst_576 = arith.constant 0.000000e+00 : f32
    %1892 = vector.broadcast %cst_576 : f32 to vector<8x128xf32>
    %1893 = arith.subf %1892, %1891 : vector<8x128xf32>
    %1894 = math.exp %1893 : vector<8x128xf32>
    %1895 = arith.subf %1788, %18 : vector<8x128xf32>
    %1896 = math.absf %1895 : vector<8x128xf32>
    %1897 = arith.mulf %1894, %1896 : vector<8x128xf32>
    %1898 = arith.addf %1883, %1897 : vector<8x128xf32>
    %c127_i32_577 = arith.constant 127 : i32
    %1899 = tpu.dynamic_rotate %1776 by %c127_i32_577 dim 1 : vector<8x128xf32>, i32 -> vector<8x128xf32>
    %c127_i32_578 = arith.constant 127 : i32
    %1900 = tpu.dynamic_rotate %1780 by %c127_i32_578 dim 1 : vector<8x128xf32>, i32 -> vector<8x128xf32>
    %c127_i32_579 = arith.constant 127 : i32
    %1901 = tpu.dynamic_rotate %1784 by %c127_i32_579 dim 1 : vector<8x128xf32>, i32 -> vector<8x128xf32>
    %c127_i32_580 = arith.constant 127 : i32
    %1902 = tpu.dynamic_rotate %1788 by %c127_i32_580 dim 1 : vector<8x128xf32>, i32 -> vector<8x128xf32>
    %1903 = arith.subf %1899, %6 : vector<8x128xf32>
    %1904 = arith.subf %1900, %10 : vector<8x128xf32>
    %1905 = arith.subf %1901, %14 : vector<8x128xf32>
    %1906 = arith.mulf %1903, %1903 : vector<8x128xf32>
    %1907 = arith.mulf %1904, %1904 : vector<8x128xf32>
    %1908 = arith.addf %1906, %1907 : vector<8x128xf32>
    %1909 = arith.mulf %1905, %1905 : vector<8x128xf32>
    %1910 = arith.addf %1908, %1909 : vector<8x128xf32>
    %cst_581 = arith.constant 0.000000e+00 : f32
    %1911 = vector.broadcast %cst_581 : f32 to vector<8x128xf32>
    %1912 = arith.subf %1911, %1910 : vector<8x128xf32>
    %1913 = math.exp %1912 : vector<8x128xf32>
    %1914 = arith.subf %1902, %18 : vector<8x128xf32>
    %1915 = math.absf %1914 : vector<8x128xf32>
    %1916 = arith.mulf %1913, %1915 : vector<8x128xf32>
    %1917 = arith.addf %1898, %1916 : vector<8x128xf32>
    %c126_i32_582 = arith.constant 126 : i32
    %1918 = tpu.dynamic_rotate %1776 by %c126_i32_582 dim 1 : vector<8x128xf32>, i32 -> vector<8x128xf32>
    %c126_i32_583 = arith.constant 126 : i32
    %1919 = tpu.dynamic_rotate %1780 by %c126_i32_583 dim 1 : vector<8x128xf32>, i32 -> vector<8x128xf32>
    %c126_i32_584 = arith.constant 126 : i32
    %1920 = tpu.dynamic_rotate %1784 by %c126_i32_584 dim 1 : vector<8x128xf32>, i32 -> vector<8x128xf32>
    %c126_i32_585 = arith.constant 126 : i32
    %1921 = tpu.dynamic_rotate %1788 by %c126_i32_585 dim 1 : vector<8x128xf32>, i32 -> vector<8x128xf32>
    %1922 = arith.subf %1918, %6 : vector<8x128xf32>
    %1923 = arith.subf %1919, %10 : vector<8x128xf32>
    %1924 = arith.subf %1920, %14 : vector<8x128xf32>
    %1925 = arith.mulf %1922, %1922 : vector<8x128xf32>
    %1926 = arith.mulf %1923, %1923 : vector<8x128xf32>
    %1927 = arith.addf %1925, %1926 : vector<8x128xf32>
    %1928 = arith.mulf %1924, %1924 : vector<8x128xf32>
    %1929 = arith.addf %1927, %1928 : vector<8x128xf32>
    %cst_586 = arith.constant 0.000000e+00 : f32
    %1930 = vector.broadcast %cst_586 : f32 to vector<8x128xf32>
    %1931 = arith.subf %1930, %1929 : vector<8x128xf32>
    %1932 = math.exp %1931 : vector<8x128xf32>
    %1933 = arith.subf %1921, %18 : vector<8x128xf32>
    %1934 = math.absf %1933 : vector<8x128xf32>
    %1935 = arith.mulf %1932, %1934 : vector<8x128xf32>
    %1936 = arith.addf %1917, %1935 : vector<8x128xf32>
    %c125_i32_587 = arith.constant 125 : i32
    %1937 = tpu.dynamic_rotate %1776 by %c125_i32_587 dim 1 : vector<8x128xf32>, i32 -> vector<8x128xf32>
    %c125_i32_588 = arith.constant 125 : i32
    %1938 = tpu.dynamic_rotate %1780 by %c125_i32_588 dim 1 : vector<8x128xf32>, i32 -> vector<8x128xf32>
    %c125_i32_589 = arith.constant 125 : i32
    %1939 = tpu.dynamic_rotate %1784 by %c125_i32_589 dim 1 : vector<8x128xf32>, i32 -> vector<8x128xf32>
    %c125_i32_590 = arith.constant 125 : i32
    %1940 = tpu.dynamic_rotate %1788 by %c125_i32_590 dim 1 : vector<8x128xf32>, i32 -> vector<8x128xf32>
    %1941 = arith.subf %1937, %6 : vector<8x128xf32>
    %1942 = arith.subf %1938, %10 : vector<8x128xf32>
    %1943 = arith.subf %1939, %14 : vector<8x128xf32>
    %1944 = arith.mulf %1941, %1941 : vector<8x128xf32>
    %1945 = arith.mulf %1942, %1942 : vector<8x128xf32>
    %1946 = arith.addf %1944, %1945 : vector<8x128xf32>
    %1947 = arith.mulf %1943, %1943 : vector<8x128xf32>
    %1948 = arith.addf %1946, %1947 : vector<8x128xf32>
    %cst_591 = arith.constant 0.000000e+00 : f32
    %1949 = vector.broadcast %cst_591 : f32 to vector<8x128xf32>
    %1950 = arith.subf %1949, %1948 : vector<8x128xf32>
    %1951 = math.exp %1950 : vector<8x128xf32>
    %1952 = arith.subf %1940, %18 : vector<8x128xf32>
    %1953 = math.absf %1952 : vector<8x128xf32>
    %1954 = arith.mulf %1951, %1953 : vector<8x128xf32>
    %1955 = arith.addf %1936, %1954 : vector<8x128xf32>
    %c124_i32_592 = arith.constant 124 : i32
    %1956 = tpu.dynamic_rotate %1776 by %c124_i32_592 dim 1 : vector<8x128xf32>, i32 -> vector<8x128xf32>
    %c124_i32_593 = arith.constant 124 : i32
    %1957 = tpu.dynamic_rotate %1780 by %c124_i32_593 dim 1 : vector<8x128xf32>, i32 -> vector<8x128xf32>
    %c124_i32_594 = arith.constant 124 : i32
    %1958 = tpu.dynamic_rotate %1784 by %c124_i32_594 dim 1 : vector<8x128xf32>, i32 -> vector<8x128xf32>
    %c124_i32_595 = arith.constant 124 : i32
    %1959 = tpu.dynamic_rotate %1788 by %c124_i32_595 dim 1 : vector<8x128xf32>, i32 -> vector<8x128xf32>
    %1960 = arith.subf %1956, %6 : vector<8x128xf32>
    %1961 = arith.subf %1957, %10 : vector<8x128xf32>
    %1962 = arith.subf %1958, %14 : vector<8x128xf32>
    %1963 = arith.mulf %1960, %1960 : vector<8x128xf32>
    %1964 = arith.mulf %1961, %1961 : vector<8x128xf32>
    %1965 = arith.addf %1963, %1964 : vector<8x128xf32>
    %1966 = arith.mulf %1962, %1962 : vector<8x128xf32>
    %1967 = arith.addf %1965, %1966 : vector<8x128xf32>
    %cst_596 = arith.constant 0.000000e+00 : f32
    %1968 = vector.broadcast %cst_596 : f32 to vector<8x128xf32>
    %1969 = arith.subf %1968, %1967 : vector<8x128xf32>
    %1970 = math.exp %1969 : vector<8x128xf32>
    %1971 = arith.subf %1959, %18 : vector<8x128xf32>
    %1972 = math.absf %1971 : vector<8x128xf32>
    %1973 = arith.mulf %1970, %1972 : vector<8x128xf32>
    %1974 = arith.addf %1955, %1973 : vector<8x128xf32>
    %c123_i32_597 = arith.constant 123 : i32
    %1975 = tpu.dynamic_rotate %1776 by %c123_i32_597 dim 1 : vector<8x128xf32>, i32 -> vector<8x128xf32>
    %c123_i32_598 = arith.constant 123 : i32
    %1976 = tpu.dynamic_rotate %1780 by %c123_i32_598 dim 1 : vector<8x128xf32>, i32 -> vector<8x128xf32>
    %c123_i32_599 = arith.constant 123 : i32
    %1977 = tpu.dynamic_rotate %1784 by %c123_i32_599 dim 1 : vector<8x128xf32>, i32 -> vector<8x128xf32>
    %c123_i32_600 = arith.constant 123 : i32
    %1978 = tpu.dynamic_rotate %1788 by %c123_i32_600 dim 1 : vector<8x128xf32>, i32 -> vector<8x128xf32>
    %1979 = arith.subf %1975, %6 : vector<8x128xf32>
    %1980 = arith.subf %1976, %10 : vector<8x128xf32>
    %1981 = arith.subf %1977, %14 : vector<8x128xf32>
    %1982 = arith.mulf %1979, %1979 : vector<8x128xf32>
    %1983 = arith.mulf %1980, %1980 : vector<8x128xf32>
    %1984 = arith.addf %1982, %1983 : vector<8x128xf32>
    %1985 = arith.mulf %1981, %1981 : vector<8x128xf32>
    %1986 = arith.addf %1984, %1985 : vector<8x128xf32>
    %cst_601 = arith.constant 0.000000e+00 : f32
    %1987 = vector.broadcast %cst_601 : f32 to vector<8x128xf32>
    %1988 = arith.subf %1987, %1986 : vector<8x128xf32>
    %1989 = math.exp %1988 : vector<8x128xf32>
    %1990 = arith.subf %1978, %18 : vector<8x128xf32>
    %1991 = math.absf %1990 : vector<8x128xf32>
    %1992 = arith.mulf %1989, %1991 : vector<8x128xf32>
    %1993 = arith.addf %1974, %1992 : vector<8x128xf32>
    %c9_i32 = arith.constant 9 : i32
    %1994 = arith.addi %1, %c9_i32 : i32
    %c0_602 = arith.constant 0 : index
    %c0_603 = arith.constant 0 : index
    %1995 = arith.index_cast %1994 : i32 to index
    %c0_604 = arith.constant 0 : index
    %1996 = vector.load %arg2[%c0_602, %c0_603, %1995, %c0_604] : memref<1x4x32x128xf32, #tpu.memory_space<vmem>>, vector<1x1x8x128xf32>
    %1997 = vector.shape_cast %1996 : vector<1x1x8x128xf32> to vector<8x128xf32>
    %c9_i32_605 = arith.constant 9 : i32
    %1998 = arith.addi %1, %c9_i32_605 : i32
    %c0_606 = arith.constant 0 : index
    %c1_607 = arith.constant 1 : index
    %1999 = arith.index_cast %1998 : i32 to index
    %c0_608 = arith.constant 0 : index
    %2000 = vector.load %arg2[%c0_606, %c1_607, %1999, %c0_608] : memref<1x4x32x128xf32, #tpu.memory_space<vmem>>, vector<1x1x8x128xf32>
    %2001 = vector.shape_cast %2000 : vector<1x1x8x128xf32> to vector<8x128xf32>
    %c9_i32_609 = arith.constant 9 : i32
    %2002 = arith.addi %1, %c9_i32_609 : i32
    %c0_610 = arith.constant 0 : index
    %c2_611 = arith.constant 2 : index
    %2003 = arith.index_cast %2002 : i32 to index
    %c0_612 = arith.constant 0 : index
    %2004 = vector.load %arg2[%c0_610, %c2_611, %2003, %c0_612] : memref<1x4x32x128xf32, #tpu.memory_space<vmem>>, vector<1x1x8x128xf32>
    %2005 = vector.shape_cast %2004 : vector<1x1x8x128xf32> to vector<8x128xf32>
    %c9_i32_613 = arith.constant 9 : i32
    %2006 = arith.addi %1, %c9_i32_613 : i32
    %c0_614 = arith.constant 0 : index
    %c3_615 = arith.constant 3 : index
    %2007 = arith.index_cast %2006 : i32 to index
    %c0_616 = arith.constant 0 : index
    %2008 = vector.load %arg2[%c0_614, %c3_615, %2007, %c0_616] : memref<1x4x32x128xf32, #tpu.memory_space<vmem>>, vector<1x1x8x128xf32>
    %2009 = vector.shape_cast %2008 : vector<1x1x8x128xf32> to vector<8x128xf32>
    %c5_i32_617 = arith.constant 5 : i32
    %2010 = tpu.dynamic_rotate %1997 by %c5_i32_617 dim 1 : vector<8x128xf32>, i32 -> vector<8x128xf32>
    %c5_i32_618 = arith.constant 5 : i32
    %2011 = tpu.dynamic_rotate %2001 by %c5_i32_618 dim 1 : vector<8x128xf32>, i32 -> vector<8x128xf32>
    %c5_i32_619 = arith.constant 5 : i32
    %2012 = tpu.dynamic_rotate %2005 by %c5_i32_619 dim 1 : vector<8x128xf32>, i32 -> vector<8x128xf32>
    %c5_i32_620 = arith.constant 5 : i32
    %2013 = tpu.dynamic_rotate %2009 by %c5_i32_620 dim 1 : vector<8x128xf32>, i32 -> vector<8x128xf32>
    %2014 = arith.subf %2010, %6 : vector<8x128xf32>
    %2015 = arith.subf %2011, %10 : vector<8x128xf32>
    %2016 = arith.subf %2012, %14 : vector<8x128xf32>
    %2017 = arith.mulf %2014, %2014 : vector<8x128xf32>
    %2018 = arith.mulf %2015, %2015 : vector<8x128xf32>
    %2019 = arith.addf %2017, %2018 : vector<8x128xf32>
    %2020 = arith.mulf %2016, %2016 : vector<8x128xf32>
    %2021 = arith.addf %2019, %2020 : vector<8x128xf32>
    %cst_621 = arith.constant 0.000000e+00 : f32
    %2022 = vector.broadcast %cst_621 : f32 to vector<8x128xf32>
    %2023 = arith.subf %2022, %2021 : vector<8x128xf32>
    %2024 = math.exp %2023 : vector<8x128xf32>
    %2025 = arith.subf %2013, %18 : vector<8x128xf32>
    %2026 = math.absf %2025 : vector<8x128xf32>
    %2027 = arith.mulf %2024, %2026 : vector<8x128xf32>
    %2028 = arith.addf %1993, %2027 : vector<8x128xf32>
    %c4_i32_622 = arith.constant 4 : i32
    %2029 = tpu.dynamic_rotate %1997 by %c4_i32_622 dim 1 : vector<8x128xf32>, i32 -> vector<8x128xf32>
    %c4_i32_623 = arith.constant 4 : i32
    %2030 = tpu.dynamic_rotate %2001 by %c4_i32_623 dim 1 : vector<8x128xf32>, i32 -> vector<8x128xf32>
    %c4_i32_624 = arith.constant 4 : i32
    %2031 = tpu.dynamic_rotate %2005 by %c4_i32_624 dim 1 : vector<8x128xf32>, i32 -> vector<8x128xf32>
    %c4_i32_625 = arith.constant 4 : i32
    %2032 = tpu.dynamic_rotate %2009 by %c4_i32_625 dim 1 : vector<8x128xf32>, i32 -> vector<8x128xf32>
    %2033 = arith.subf %2029, %6 : vector<8x128xf32>
    %2034 = arith.subf %2030, %10 : vector<8x128xf32>
    %2035 = arith.subf %2031, %14 : vector<8x128xf32>
    %2036 = arith.mulf %2033, %2033 : vector<8x128xf32>
    %2037 = arith.mulf %2034, %2034 : vector<8x128xf32>
    %2038 = arith.addf %2036, %2037 : vector<8x128xf32>
    %2039 = arith.mulf %2035, %2035 : vector<8x128xf32>
    %2040 = arith.addf %2038, %2039 : vector<8x128xf32>
    %cst_626 = arith.constant 0.000000e+00 : f32
    %2041 = vector.broadcast %cst_626 : f32 to vector<8x128xf32>
    %2042 = arith.subf %2041, %2040 : vector<8x128xf32>
    %2043 = math.exp %2042 : vector<8x128xf32>
    %2044 = arith.subf %2032, %18 : vector<8x128xf32>
    %2045 = math.absf %2044 : vector<8x128xf32>
    %2046 = arith.mulf %2043, %2045 : vector<8x128xf32>
    %2047 = arith.addf %2028, %2046 : vector<8x128xf32>
    %c3_i32_627 = arith.constant 3 : i32
    %2048 = tpu.dynamic_rotate %1997 by %c3_i32_627 dim 1 : vector<8x128xf32>, i32 -> vector<8x128xf32>
    %c3_i32_628 = arith.constant 3 : i32
    %2049 = tpu.dynamic_rotate %2001 by %c3_i32_628 dim 1 : vector<8x128xf32>, i32 -> vector<8x128xf32>
    %c3_i32_629 = arith.constant 3 : i32
    %2050 = tpu.dynamic_rotate %2005 by %c3_i32_629 dim 1 : vector<8x128xf32>, i32 -> vector<8x128xf32>
    %c3_i32_630 = arith.constant 3 : i32
    %2051 = tpu.dynamic_rotate %2009 by %c3_i32_630 dim 1 : vector<8x128xf32>, i32 -> vector<8x128xf32>
    %2052 = arith.subf %2048, %6 : vector<8x128xf32>
    %2053 = arith.subf %2049, %10 : vector<8x128xf32>
    %2054 = arith.subf %2050, %14 : vector<8x128xf32>
    %2055 = arith.mulf %2052, %2052 : vector<8x128xf32>
    %2056 = arith.mulf %2053, %2053 : vector<8x128xf32>
    %2057 = arith.addf %2055, %2056 : vector<8x128xf32>
    %2058 = arith.mulf %2054, %2054 : vector<8x128xf32>
    %2059 = arith.addf %2057, %2058 : vector<8x128xf32>
    %cst_631 = arith.constant 0.000000e+00 : f32
    %2060 = vector.broadcast %cst_631 : f32 to vector<8x128xf32>
    %2061 = arith.subf %2060, %2059 : vector<8x128xf32>
    %2062 = math.exp %2061 : vector<8x128xf32>
    %2063 = arith.subf %2051, %18 : vector<8x128xf32>
    %2064 = math.absf %2063 : vector<8x128xf32>
    %2065 = arith.mulf %2062, %2064 : vector<8x128xf32>
    %2066 = arith.addf %2047, %2065 : vector<8x128xf32>
    %c2_i32_632 = arith.constant 2 : i32
    %2067 = tpu.dynamic_rotate %1997 by %c2_i32_632 dim 1 : vector<8x128xf32>, i32 -> vector<8x128xf32>
    %c2_i32_633 = arith.constant 2 : i32
    %2068 = tpu.dynamic_rotate %2001 by %c2_i32_633 dim 1 : vector<8x128xf32>, i32 -> vector<8x128xf32>
    %c2_i32_634 = arith.constant 2 : i32
    %2069 = tpu.dynamic_rotate %2005 by %c2_i32_634 dim 1 : vector<8x128xf32>, i32 -> vector<8x128xf32>
    %c2_i32_635 = arith.constant 2 : i32
    %2070 = tpu.dynamic_rotate %2009 by %c2_i32_635 dim 1 : vector<8x128xf32>, i32 -> vector<8x128xf32>
    %2071 = arith.subf %2067, %6 : vector<8x128xf32>
    %2072 = arith.subf %2068, %10 : vector<8x128xf32>
    %2073 = arith.subf %2069, %14 : vector<8x128xf32>
    %2074 = arith.mulf %2071, %2071 : vector<8x128xf32>
    %2075 = arith.mulf %2072, %2072 : vector<8x128xf32>
    %2076 = arith.addf %2074, %2075 : vector<8x128xf32>
    %2077 = arith.mulf %2073, %2073 : vector<8x128xf32>
    %2078 = arith.addf %2076, %2077 : vector<8x128xf32>
    %cst_636 = arith.constant 0.000000e+00 : f32
    %2079 = vector.broadcast %cst_636 : f32 to vector<8x128xf32>
    %2080 = arith.subf %2079, %2078 : vector<8x128xf32>
    %2081 = math.exp %2080 : vector<8x128xf32>
    %2082 = arith.subf %2070, %18 : vector<8x128xf32>
    %2083 = math.absf %2082 : vector<8x128xf32>
    %2084 = arith.mulf %2081, %2083 : vector<8x128xf32>
    %2085 = arith.addf %2066, %2084 : vector<8x128xf32>
    %c1_i32_637 = arith.constant 1 : i32
    %2086 = tpu.dynamic_rotate %1997 by %c1_i32_637 dim 1 : vector<8x128xf32>, i32 -> vector<8x128xf32>
    %c1_i32_638 = arith.constant 1 : i32
    %2087 = tpu.dynamic_rotate %2001 by %c1_i32_638 dim 1 : vector<8x128xf32>, i32 -> vector<8x128xf32>
    %c1_i32_639 = arith.constant 1 : i32
    %2088 = tpu.dynamic_rotate %2005 by %c1_i32_639 dim 1 : vector<8x128xf32>, i32 -> vector<8x128xf32>
    %c1_i32_640 = arith.constant 1 : i32
    %2089 = tpu.dynamic_rotate %2009 by %c1_i32_640 dim 1 : vector<8x128xf32>, i32 -> vector<8x128xf32>
    %2090 = arith.subf %2086, %6 : vector<8x128xf32>
    %2091 = arith.subf %2087, %10 : vector<8x128xf32>
    %2092 = arith.subf %2088, %14 : vector<8x128xf32>
    %2093 = arith.mulf %2090, %2090 : vector<8x128xf32>
    %2094 = arith.mulf %2091, %2091 : vector<8x128xf32>
    %2095 = arith.addf %2093, %2094 : vector<8x128xf32>
    %2096 = arith.mulf %2092, %2092 : vector<8x128xf32>
    %2097 = arith.addf %2095, %2096 : vector<8x128xf32>
    %cst_641 = arith.constant 0.000000e+00 : f32
    %2098 = vector.broadcast %cst_641 : f32 to vector<8x128xf32>
    %2099 = arith.subf %2098, %2097 : vector<8x128xf32>
    %2100 = math.exp %2099 : vector<8x128xf32>
    %2101 = arith.subf %2089, %18 : vector<8x128xf32>
    %2102 = math.absf %2101 : vector<8x128xf32>
    %2103 = arith.mulf %2100, %2102 : vector<8x128xf32>
    %2104 = arith.addf %2085, %2103 : vector<8x128xf32>
    %2105 = arith.subf %1997, %6 : vector<8x128xf32>
    %2106 = arith.subf %2001, %10 : vector<8x128xf32>
    %2107 = arith.subf %2005, %14 : vector<8x128xf32>
    %2108 = arith.mulf %2105, %2105 : vector<8x128xf32>
    %2109 = arith.mulf %2106, %2106 : vector<8x128xf32>
    %2110 = arith.addf %2108, %2109 : vector<8x128xf32>
    %2111 = arith.mulf %2107, %2107 : vector<8x128xf32>
    %2112 = arith.addf %2110, %2111 : vector<8x128xf32>
    %cst_642 = arith.constant 0.000000e+00 : f32
    %2113 = vector.broadcast %cst_642 : f32 to vector<8x128xf32>
    %2114 = arith.subf %2113, %2112 : vector<8x128xf32>
    %2115 = math.exp %2114 : vector<8x128xf32>
    %2116 = arith.subf %2009, %18 : vector<8x128xf32>
    %2117 = math.absf %2116 : vector<8x128xf32>
    %2118 = arith.mulf %2115, %2117 : vector<8x128xf32>
    %2119 = arith.addf %2104, %2118 : vector<8x128xf32>
    %c127_i32_643 = arith.constant 127 : i32
    %2120 = tpu.dynamic_rotate %1997 by %c127_i32_643 dim 1 : vector<8x128xf32>, i32 -> vector<8x128xf32>
    %c127_i32_644 = arith.constant 127 : i32
    %2121 = tpu.dynamic_rotate %2001 by %c127_i32_644 dim 1 : vector<8x128xf32>, i32 -> vector<8x128xf32>
    %c127_i32_645 = arith.constant 127 : i32
    %2122 = tpu.dynamic_rotate %2005 by %c127_i32_645 dim 1 : vector<8x128xf32>, i32 -> vector<8x128xf32>
    %c127_i32_646 = arith.constant 127 : i32
    %2123 = tpu.dynamic_rotate %2009 by %c127_i32_646 dim 1 : vector<8x128xf32>, i32 -> vector<8x128xf32>
    %2124 = arith.subf %2120, %6 : vector<8x128xf32>
    %2125 = arith.subf %2121, %10 : vector<8x128xf32>
    %2126 = arith.subf %2122, %14 : vector<8x128xf32>
    %2127 = arith.mulf %2124, %2124 : vector<8x128xf32>
    %2128 = arith.mulf %2125, %2125 : vector<8x128xf32>
    %2129 = arith.addf %2127, %2128 : vector<8x128xf32>
    %2130 = arith.mulf %2126, %2126 : vector<8x128xf32>
    %2131 = arith.addf %2129, %2130 : vector<8x128xf32>
    %cst_647 = arith.constant 0.000000e+00 : f32
    %2132 = vector.broadcast %cst_647 : f32 to vector<8x128xf32>
    %2133 = arith.subf %2132, %2131 : vector<8x128xf32>
    %2134 = math.exp %2133 : vector<8x128xf32>
    %2135 = arith.subf %2123, %18 : vector<8x128xf32>
    %2136 = math.absf %2135 : vector<8x128xf32>
    %2137 = arith.mulf %2134, %2136 : vector<8x128xf32>
    %2138 = arith.addf %2119, %2137 : vector<8x128xf32>
    %c126_i32_648 = arith.constant 126 : i32
    %2139 = tpu.dynamic_rotate %1997 by %c126_i32_648 dim 1 : vector<8x128xf32>, i32 -> vector<8x128xf32>
    %c126_i32_649 = arith.constant 126 : i32
    %2140 = tpu.dynamic_rotate %2001 by %c126_i32_649 dim 1 : vector<8x128xf32>, i32 -> vector<8x128xf32>
    %c126_i32_650 = arith.constant 126 : i32
    %2141 = tpu.dynamic_rotate %2005 by %c126_i32_650 dim 1 : vector<8x128xf32>, i32 -> vector<8x128xf32>
    %c126_i32_651 = arith.constant 126 : i32
    %2142 = tpu.dynamic_rotate %2009 by %c126_i32_651 dim 1 : vector<8x128xf32>, i32 -> vector<8x128xf32>
    %2143 = arith.subf %2139, %6 : vector<8x128xf32>
    %2144 = arith.subf %2140, %10 : vector<8x128xf32>
    %2145 = arith.subf %2141, %14 : vector<8x128xf32>
    %2146 = arith.mulf %2143, %2143 : vector<8x128xf32>
    %2147 = arith.mulf %2144, %2144 : vector<8x128xf32>
    %2148 = arith.addf %2146, %2147 : vector<8x128xf32>
    %2149 = arith.mulf %2145, %2145 : vector<8x128xf32>
    %2150 = arith.addf %2148, %2149 : vector<8x128xf32>
    %cst_652 = arith.constant 0.000000e+00 : f32
    %2151 = vector.broadcast %cst_652 : f32 to vector<8x128xf32>
    %2152 = arith.subf %2151, %2150 : vector<8x128xf32>
    %2153 = math.exp %2152 : vector<8x128xf32>
    %2154 = arith.subf %2142, %18 : vector<8x128xf32>
    %2155 = math.absf %2154 : vector<8x128xf32>
    %2156 = arith.mulf %2153, %2155 : vector<8x128xf32>
    %2157 = arith.addf %2138, %2156 : vector<8x128xf32>
    %c125_i32_653 = arith.constant 125 : i32
    %2158 = tpu.dynamic_rotate %1997 by %c125_i32_653 dim 1 : vector<8x128xf32>, i32 -> vector<8x128xf32>
    %c125_i32_654 = arith.constant 125 : i32
    %2159 = tpu.dynamic_rotate %2001 by %c125_i32_654 dim 1 : vector<8x128xf32>, i32 -> vector<8x128xf32>
    %c125_i32_655 = arith.constant 125 : i32
    %2160 = tpu.dynamic_rotate %2005 by %c125_i32_655 dim 1 : vector<8x128xf32>, i32 -> vector<8x128xf32>
    %c125_i32_656 = arith.constant 125 : i32
    %2161 = tpu.dynamic_rotate %2009 by %c125_i32_656 dim 1 : vector<8x128xf32>, i32 -> vector<8x128xf32>
    %2162 = arith.subf %2158, %6 : vector<8x128xf32>
    %2163 = arith.subf %2159, %10 : vector<8x128xf32>
    %2164 = arith.subf %2160, %14 : vector<8x128xf32>
    %2165 = arith.mulf %2162, %2162 : vector<8x128xf32>
    %2166 = arith.mulf %2163, %2163 : vector<8x128xf32>
    %2167 = arith.addf %2165, %2166 : vector<8x128xf32>
    %2168 = arith.mulf %2164, %2164 : vector<8x128xf32>
    %2169 = arith.addf %2167, %2168 : vector<8x128xf32>
    %cst_657 = arith.constant 0.000000e+00 : f32
    %2170 = vector.broadcast %cst_657 : f32 to vector<8x128xf32>
    %2171 = arith.subf %2170, %2169 : vector<8x128xf32>
    %2172 = math.exp %2171 : vector<8x128xf32>
    %2173 = arith.subf %2161, %18 : vector<8x128xf32>
    %2174 = math.absf %2173 : vector<8x128xf32>
    %2175 = arith.mulf %2172, %2174 : vector<8x128xf32>
    %2176 = arith.addf %2157, %2175 : vector<8x128xf32>
    %c124_i32_658 = arith.constant 124 : i32
    %2177 = tpu.dynamic_rotate %1997 by %c124_i32_658 dim 1 : vector<8x128xf32>, i32 -> vector<8x128xf32>
    %c124_i32_659 = arith.constant 124 : i32
    %2178 = tpu.dynamic_rotate %2001 by %c124_i32_659 dim 1 : vector<8x128xf32>, i32 -> vector<8x128xf32>
    %c124_i32_660 = arith.constant 124 : i32
    %2179 = tpu.dynamic_rotate %2005 by %c124_i32_660 dim 1 : vector<8x128xf32>, i32 -> vector<8x128xf32>
    %c124_i32_661 = arith.constant 124 : i32
    %2180 = tpu.dynamic_rotate %2009 by %c124_i32_661 dim 1 : vector<8x128xf32>, i32 -> vector<8x128xf32>
    %2181 = arith.subf %2177, %6 : vector<8x128xf32>
    %2182 = arith.subf %2178, %10 : vector<8x128xf32>
    %2183 = arith.subf %2179, %14 : vector<8x128xf32>
    %2184 = arith.mulf %2181, %2181 : vector<8x128xf32>
    %2185 = arith.mulf %2182, %2182 : vector<8x128xf32>
    %2186 = arith.addf %2184, %2185 : vector<8x128xf32>
    %2187 = arith.mulf %2183, %2183 : vector<8x128xf32>
    %2188 = arith.addf %2186, %2187 : vector<8x128xf32>
    %cst_662 = arith.constant 0.000000e+00 : f32
    %2189 = vector.broadcast %cst_662 : f32 to vector<8x128xf32>
    %2190 = arith.subf %2189, %2188 : vector<8x128xf32>
    %2191 = math.exp %2190 : vector<8x128xf32>
    %2192 = arith.subf %2180, %18 : vector<8x128xf32>
    %2193 = math.absf %2192 : vector<8x128xf32>
    %2194 = arith.mulf %2191, %2193 : vector<8x128xf32>
    %2195 = arith.addf %2176, %2194 : vector<8x128xf32>
    %c123_i32_663 = arith.constant 123 : i32
    %2196 = tpu.dynamic_rotate %1997 by %c123_i32_663 dim 1 : vector<8x128xf32>, i32 -> vector<8x128xf32>
    %c123_i32_664 = arith.constant 123 : i32
    %2197 = tpu.dynamic_rotate %2001 by %c123_i32_664 dim 1 : vector<8x128xf32>, i32 -> vector<8x128xf32>
    %c123_i32_665 = arith.constant 123 : i32
    %2198 = tpu.dynamic_rotate %2005 by %c123_i32_665 dim 1 : vector<8x128xf32>, i32 -> vector<8x128xf32>
    %c123_i32_666 = arith.constant 123 : i32
    %2199 = tpu.dynamic_rotate %2009 by %c123_i32_666 dim 1 : vector<8x128xf32>, i32 -> vector<8x128xf32>
    %2200 = arith.subf %2196, %6 : vector<8x128xf32>
    %2201 = arith.subf %2197, %10 : vector<8x128xf32>
    %2202 = arith.subf %2198, %14 : vector<8x128xf32>
    %2203 = arith.mulf %2200, %2200 : vector<8x128xf32>
    %2204 = arith.mulf %2201, %2201 : vector<8x128xf32>
    %2205 = arith.addf %2203, %2204 : vector<8x128xf32>
    %2206 = arith.mulf %2202, %2202 : vector<8x128xf32>
    %2207 = arith.addf %2205, %2206 : vector<8x128xf32>
    %cst_667 = arith.constant 0.000000e+00 : f32
    %2208 = vector.broadcast %cst_667 : f32 to vector<8x128xf32>
    %2209 = arith.subf %2208, %2207 : vector<8x128xf32>
    %2210 = math.exp %2209 : vector<8x128xf32>
    %2211 = arith.subf %2199, %18 : vector<8x128xf32>
    %2212 = math.absf %2211 : vector<8x128xf32>
    %2213 = arith.mulf %2210, %2212 : vector<8x128xf32>
    %2214 = arith.addf %2195, %2213 : vector<8x128xf32>
    %c10_i32 = arith.constant 10 : i32
    %2215 = arith.addi %1, %c10_i32 : i32
    %c0_668 = arith.constant 0 : index
    %c0_669 = arith.constant 0 : index
    %2216 = arith.index_cast %2215 : i32 to index
    %c0_670 = arith.constant 0 : index
    %2217 = vector.load %arg2[%c0_668, %c0_669, %2216, %c0_670] : memref<1x4x32x128xf32, #tpu.memory_space<vmem>>, vector<1x1x8x128xf32>
    %2218 = vector.shape_cast %2217 : vector<1x1x8x128xf32> to vector<8x128xf32>
    %c10_i32_671 = arith.constant 10 : i32
    %2219 = arith.addi %1, %c10_i32_671 : i32
    %c0_672 = arith.constant 0 : index
    %c1_673 = arith.constant 1 : index
    %2220 = arith.index_cast %2219 : i32 to index
    %c0_674 = arith.constant 0 : index
    %2221 = vector.load %arg2[%c0_672, %c1_673, %2220, %c0_674] : memref<1x4x32x128xf32, #tpu.memory_space<vmem>>, vector<1x1x8x128xf32>
    %2222 = vector.shape_cast %2221 : vector<1x1x8x128xf32> to vector<8x128xf32>
    %c10_i32_675 = arith.constant 10 : i32
    %2223 = arith.addi %1, %c10_i32_675 : i32
    %c0_676 = arith.constant 0 : index
    %c2_677 = arith.constant 2 : index
    %2224 = arith.index_cast %2223 : i32 to index
    %c0_678 = arith.constant 0 : index
    %2225 = vector.load %arg2[%c0_676, %c2_677, %2224, %c0_678] : memref<1x4x32x128xf32, #tpu.memory_space<vmem>>, vector<1x1x8x128xf32>
    %2226 = vector.shape_cast %2225 : vector<1x1x8x128xf32> to vector<8x128xf32>
    %c10_i32_679 = arith.constant 10 : i32
    %2227 = arith.addi %1, %c10_i32_679 : i32
    %c0_680 = arith.constant 0 : index
    %c3_681 = arith.constant 3 : index
    %2228 = arith.index_cast %2227 : i32 to index
    %c0_682 = arith.constant 0 : index
    %2229 = vector.load %arg2[%c0_680, %c3_681, %2228, %c0_682] : memref<1x4x32x128xf32, #tpu.memory_space<vmem>>, vector<1x1x8x128xf32>
    %2230 = vector.shape_cast %2229 : vector<1x1x8x128xf32> to vector<8x128xf32>
    %c5_i32_683 = arith.constant 5 : i32
    %2231 = tpu.dynamic_rotate %2218 by %c5_i32_683 dim 1 : vector<8x128xf32>, i32 -> vector<8x128xf32>
    %c5_i32_684 = arith.constant 5 : i32
    %2232 = tpu.dynamic_rotate %2222 by %c5_i32_684 dim 1 : vector<8x128xf32>, i32 -> vector<8x128xf32>
    %c5_i32_685 = arith.constant 5 : i32
    %2233 = tpu.dynamic_rotate %2226 by %c5_i32_685 dim 1 : vector<8x128xf32>, i32 -> vector<8x128xf32>
    %c5_i32_686 = arith.constant 5 : i32
    %2234 = tpu.dynamic_rotate %2230 by %c5_i32_686 dim 1 : vector<8x128xf32>, i32 -> vector<8x128xf32>
    %2235 = arith.subf %2231, %6 : vector<8x128xf32>
    %2236 = arith.subf %2232, %10 : vector<8x128xf32>
    %2237 = arith.subf %2233, %14 : vector<8x128xf32>
    %2238 = arith.mulf %2235, %2235 : vector<8x128xf32>
    %2239 = arith.mulf %2236, %2236 : vector<8x128xf32>
    %2240 = arith.addf %2238, %2239 : vector<8x128xf32>
    %2241 = arith.mulf %2237, %2237 : vector<8x128xf32>
    %2242 = arith.addf %2240, %2241 : vector<8x128xf32>
    %cst_687 = arith.constant 0.000000e+00 : f32
    %2243 = vector.broadcast %cst_687 : f32 to vector<8x128xf32>
    %2244 = arith.subf %2243, %2242 : vector<8x128xf32>
    %2245 = math.exp %2244 : vector<8x128xf32>
    %2246 = arith.subf %2234, %18 : vector<8x128xf32>
    %2247 = math.absf %2246 : vector<8x128xf32>
    %2248 = arith.mulf %2245, %2247 : vector<8x128xf32>
    %2249 = arith.addf %2214, %2248 : vector<8x128xf32>
    %c4_i32_688 = arith.constant 4 : i32
    %2250 = tpu.dynamic_rotate %2218 by %c4_i32_688 dim 1 : vector<8x128xf32>, i32 -> vector<8x128xf32>
    %c4_i32_689 = arith.constant 4 : i32
    %2251 = tpu.dynamic_rotate %2222 by %c4_i32_689 dim 1 : vector<8x128xf32>, i32 -> vector<8x128xf32>
    %c4_i32_690 = arith.constant 4 : i32
    %2252 = tpu.dynamic_rotate %2226 by %c4_i32_690 dim 1 : vector<8x128xf32>, i32 -> vector<8x128xf32>
    %c4_i32_691 = arith.constant 4 : i32
    %2253 = tpu.dynamic_rotate %2230 by %c4_i32_691 dim 1 : vector<8x128xf32>, i32 -> vector<8x128xf32>
    %2254 = arith.subf %2250, %6 : vector<8x128xf32>
    %2255 = arith.subf %2251, %10 : vector<8x128xf32>
    %2256 = arith.subf %2252, %14 : vector<8x128xf32>
    %2257 = arith.mulf %2254, %2254 : vector<8x128xf32>
    %2258 = arith.mulf %2255, %2255 : vector<8x128xf32>
    %2259 = arith.addf %2257, %2258 : vector<8x128xf32>
    %2260 = arith.mulf %2256, %2256 : vector<8x128xf32>
    %2261 = arith.addf %2259, %2260 : vector<8x128xf32>
    %cst_692 = arith.constant 0.000000e+00 : f32
    %2262 = vector.broadcast %cst_692 : f32 to vector<8x128xf32>
    %2263 = arith.subf %2262, %2261 : vector<8x128xf32>
    %2264 = math.exp %2263 : vector<8x128xf32>
    %2265 = arith.subf %2253, %18 : vector<8x128xf32>
    %2266 = math.absf %2265 : vector<8x128xf32>
    %2267 = arith.mulf %2264, %2266 : vector<8x128xf32>
    %2268 = arith.addf %2249, %2267 : vector<8x128xf32>
    %c3_i32_693 = arith.constant 3 : i32
    %2269 = tpu.dynamic_rotate %2218 by %c3_i32_693 dim 1 : vector<8x128xf32>, i32 -> vector<8x128xf32>
    %c3_i32_694 = arith.constant 3 : i32
    %2270 = tpu.dynamic_rotate %2222 by %c3_i32_694 dim 1 : vector<8x128xf32>, i32 -> vector<8x128xf32>
    %c3_i32_695 = arith.constant 3 : i32
    %2271 = tpu.dynamic_rotate %2226 by %c3_i32_695 dim 1 : vector<8x128xf32>, i32 -> vector<8x128xf32>
    %c3_i32_696 = arith.constant 3 : i32
    %2272 = tpu.dynamic_rotate %2230 by %c3_i32_696 dim 1 : vector<8x128xf32>, i32 -> vector<8x128xf32>
    %2273 = arith.subf %2269, %6 : vector<8x128xf32>
    %2274 = arith.subf %2270, %10 : vector<8x128xf32>
    %2275 = arith.subf %2271, %14 : vector<8x128xf32>
    %2276 = arith.mulf %2273, %2273 : vector<8x128xf32>
    %2277 = arith.mulf %2274, %2274 : vector<8x128xf32>
    %2278 = arith.addf %2276, %2277 : vector<8x128xf32>
    %2279 = arith.mulf %2275, %2275 : vector<8x128xf32>
    %2280 = arith.addf %2278, %2279 : vector<8x128xf32>
    %cst_697 = arith.constant 0.000000e+00 : f32
    %2281 = vector.broadcast %cst_697 : f32 to vector<8x128xf32>
    %2282 = arith.subf %2281, %2280 : vector<8x128xf32>
    %2283 = math.exp %2282 : vector<8x128xf32>
    %2284 = arith.subf %2272, %18 : vector<8x128xf32>
    %2285 = math.absf %2284 : vector<8x128xf32>
    %2286 = arith.mulf %2283, %2285 : vector<8x128xf32>
    %2287 = arith.addf %2268, %2286 : vector<8x128xf32>
    %c2_i32_698 = arith.constant 2 : i32
    %2288 = tpu.dynamic_rotate %2218 by %c2_i32_698 dim 1 : vector<8x128xf32>, i32 -> vector<8x128xf32>
    %c2_i32_699 = arith.constant 2 : i32
    %2289 = tpu.dynamic_rotate %2222 by %c2_i32_699 dim 1 : vector<8x128xf32>, i32 -> vector<8x128xf32>
    %c2_i32_700 = arith.constant 2 : i32
    %2290 = tpu.dynamic_rotate %2226 by %c2_i32_700 dim 1 : vector<8x128xf32>, i32 -> vector<8x128xf32>
    %c2_i32_701 = arith.constant 2 : i32
    %2291 = tpu.dynamic_rotate %2230 by %c2_i32_701 dim 1 : vector<8x128xf32>, i32 -> vector<8x128xf32>
    %2292 = arith.subf %2288, %6 : vector<8x128xf32>
    %2293 = arith.subf %2289, %10 : vector<8x128xf32>
    %2294 = arith.subf %2290, %14 : vector<8x128xf32>
    %2295 = arith.mulf %2292, %2292 : vector<8x128xf32>
    %2296 = arith.mulf %2293, %2293 : vector<8x128xf32>
    %2297 = arith.addf %2295, %2296 : vector<8x128xf32>
    %2298 = arith.mulf %2294, %2294 : vector<8x128xf32>
    %2299 = arith.addf %2297, %2298 : vector<8x128xf32>
    %cst_702 = arith.constant 0.000000e+00 : f32
    %2300 = vector.broadcast %cst_702 : f32 to vector<8x128xf32>
    %2301 = arith.subf %2300, %2299 : vector<8x128xf32>
    %2302 = math.exp %2301 : vector<8x128xf32>
    %2303 = arith.subf %2291, %18 : vector<8x128xf32>
    %2304 = math.absf %2303 : vector<8x128xf32>
    %2305 = arith.mulf %2302, %2304 : vector<8x128xf32>
    %2306 = arith.addf %2287, %2305 : vector<8x128xf32>
    %c1_i32_703 = arith.constant 1 : i32
    %2307 = tpu.dynamic_rotate %2218 by %c1_i32_703 dim 1 : vector<8x128xf32>, i32 -> vector<8x128xf32>
    %c1_i32_704 = arith.constant 1 : i32
    %2308 = tpu.dynamic_rotate %2222 by %c1_i32_704 dim 1 : vector<8x128xf32>, i32 -> vector<8x128xf32>
    %c1_i32_705 = arith.constant 1 : i32
    %2309 = tpu.dynamic_rotate %2226 by %c1_i32_705 dim 1 : vector<8x128xf32>, i32 -> vector<8x128xf32>
    %c1_i32_706 = arith.constant 1 : i32
    %2310 = tpu.dynamic_rotate %2230 by %c1_i32_706 dim 1 : vector<8x128xf32>, i32 -> vector<8x128xf32>
    %2311 = arith.subf %2307, %6 : vector<8x128xf32>
    %2312 = arith.subf %2308, %10 : vector<8x128xf32>
    %2313 = arith.subf %2309, %14 : vector<8x128xf32>
    %2314 = arith.mulf %2311, %2311 : vector<8x128xf32>
    %2315 = arith.mulf %2312, %2312 : vector<8x128xf32>
    %2316 = arith.addf %2314, %2315 : vector<8x128xf32>
    %2317 = arith.mulf %2313, %2313 : vector<8x128xf32>
    %2318 = arith.addf %2316, %2317 : vector<8x128xf32>
    %cst_707 = arith.constant 0.000000e+00 : f32
    %2319 = vector.broadcast %cst_707 : f32 to vector<8x128xf32>
    %2320 = arith.subf %2319, %2318 : vector<8x128xf32>
    %2321 = math.exp %2320 : vector<8x128xf32>
    %2322 = arith.subf %2310, %18 : vector<8x128xf32>
    %2323 = math.absf %2322 : vector<8x128xf32>
    %2324 = arith.mulf %2321, %2323 : vector<8x128xf32>
    %2325 = arith.addf %2306, %2324 : vector<8x128xf32>
    %2326 = arith.subf %2218, %6 : vector<8x128xf32>
    %2327 = arith.subf %2222, %10 : vector<8x128xf32>
    %2328 = arith.subf %2226, %14 : vector<8x128xf32>
    %2329 = arith.mulf %2326, %2326 : vector<8x128xf32>
    %2330 = arith.mulf %2327, %2327 : vector<8x128xf32>
    %2331 = arith.addf %2329, %2330 : vector<8x128xf32>
    %2332 = arith.mulf %2328, %2328 : vector<8x128xf32>
    %2333 = arith.addf %2331, %2332 : vector<8x128xf32>
    %cst_708 = arith.constant 0.000000e+00 : f32
    %2334 = vector.broadcast %cst_708 : f32 to vector<8x128xf32>
    %2335 = arith.subf %2334, %2333 : vector<8x128xf32>
    %2336 = math.exp %2335 : vector<8x128xf32>
    %2337 = arith.subf %2230, %18 : vector<8x128xf32>
    %2338 = math.absf %2337 : vector<8x128xf32>
    %2339 = arith.mulf %2336, %2338 : vector<8x128xf32>
    %2340 = arith.addf %2325, %2339 : vector<8x128xf32>
    %c127_i32_709 = arith.constant 127 : i32
    %2341 = tpu.dynamic_rotate %2218 by %c127_i32_709 dim 1 : vector<8x128xf32>, i32 -> vector<8x128xf32>
    %c127_i32_710 = arith.constant 127 : i32
    %2342 = tpu.dynamic_rotate %2222 by %c127_i32_710 dim 1 : vector<8x128xf32>, i32 -> vector<8x128xf32>
    %c127_i32_711 = arith.constant 127 : i32
    %2343 = tpu.dynamic_rotate %2226 by %c127_i32_711 dim 1 : vector<8x128xf32>, i32 -> vector<8x128xf32>
    %c127_i32_712 = arith.constant 127 : i32
    %2344 = tpu.dynamic_rotate %2230 by %c127_i32_712 dim 1 : vector<8x128xf32>, i32 -> vector<8x128xf32>
    %2345 = arith.subf %2341, %6 : vector<8x128xf32>
    %2346 = arith.subf %2342, %10 : vector<8x128xf32>
    %2347 = arith.subf %2343, %14 : vector<8x128xf32>
    %2348 = arith.mulf %2345, %2345 : vector<8x128xf32>
    %2349 = arith.mulf %2346, %2346 : vector<8x128xf32>
    %2350 = arith.addf %2348, %2349 : vector<8x128xf32>
    %2351 = arith.mulf %2347, %2347 : vector<8x128xf32>
    %2352 = arith.addf %2350, %2351 : vector<8x128xf32>
    %cst_713 = arith.constant 0.000000e+00 : f32
    %2353 = vector.broadcast %cst_713 : f32 to vector<8x128xf32>
    %2354 = arith.subf %2353, %2352 : vector<8x128xf32>
    %2355 = math.exp %2354 : vector<8x128xf32>
    %2356 = arith.subf %2344, %18 : vector<8x128xf32>
    %2357 = math.absf %2356 : vector<8x128xf32>
    %2358 = arith.mulf %2355, %2357 : vector<8x128xf32>
    %2359 = arith.addf %2340, %2358 : vector<8x128xf32>
    %c126_i32_714 = arith.constant 126 : i32
    %2360 = tpu.dynamic_rotate %2218 by %c126_i32_714 dim 1 : vector<8x128xf32>, i32 -> vector<8x128xf32>
    %c126_i32_715 = arith.constant 126 : i32
    %2361 = tpu.dynamic_rotate %2222 by %c126_i32_715 dim 1 : vector<8x128xf32>, i32 -> vector<8x128xf32>
    %c126_i32_716 = arith.constant 126 : i32
    %2362 = tpu.dynamic_rotate %2226 by %c126_i32_716 dim 1 : vector<8x128xf32>, i32 -> vector<8x128xf32>
    %c126_i32_717 = arith.constant 126 : i32
    %2363 = tpu.dynamic_rotate %2230 by %c126_i32_717 dim 1 : vector<8x128xf32>, i32 -> vector<8x128xf32>
    %2364 = arith.subf %2360, %6 : vector<8x128xf32>
    %2365 = arith.subf %2361, %10 : vector<8x128xf32>
    %2366 = arith.subf %2362, %14 : vector<8x128xf32>
    %2367 = arith.mulf %2364, %2364 : vector<8x128xf32>
    %2368 = arith.mulf %2365, %2365 : vector<8x128xf32>
    %2369 = arith.addf %2367, %2368 : vector<8x128xf32>
    %2370 = arith.mulf %2366, %2366 : vector<8x128xf32>
    %2371 = arith.addf %2369, %2370 : vector<8x128xf32>
    %cst_718 = arith.constant 0.000000e+00 : f32
    %2372 = vector.broadcast %cst_718 : f32 to vector<8x128xf32>
    %2373 = arith.subf %2372, %2371 : vector<8x128xf32>
    %2374 = math.exp %2373 : vector<8x128xf32>
    %2375 = arith.subf %2363, %18 : vector<8x128xf32>
    %2376 = math.absf %2375 : vector<8x128xf32>
    %2377 = arith.mulf %2374, %2376 : vector<8x128xf32>
    %2378 = arith.addf %2359, %2377 : vector<8x128xf32>
    %c125_i32_719 = arith.constant 125 : i32
    %2379 = tpu.dynamic_rotate %2218 by %c125_i32_719 dim 1 : vector<8x128xf32>, i32 -> vector<8x128xf32>
    %c125_i32_720 = arith.constant 125 : i32
    %2380 = tpu.dynamic_rotate %2222 by %c125_i32_720 dim 1 : vector<8x128xf32>, i32 -> vector<8x128xf32>
    %c125_i32_721 = arith.constant 125 : i32
    %2381 = tpu.dynamic_rotate %2226 by %c125_i32_721 dim 1 : vector<8x128xf32>, i32 -> vector<8x128xf32>
    %c125_i32_722 = arith.constant 125 : i32
    %2382 = tpu.dynamic_rotate %2230 by %c125_i32_722 dim 1 : vector<8x128xf32>, i32 -> vector<8x128xf32>
    %2383 = arith.subf %2379, %6 : vector<8x128xf32>
    %2384 = arith.subf %2380, %10 : vector<8x128xf32>
    %2385 = arith.subf %2381, %14 : vector<8x128xf32>
    %2386 = arith.mulf %2383, %2383 : vector<8x128xf32>
    %2387 = arith.mulf %2384, %2384 : vector<8x128xf32>
    %2388 = arith.addf %2386, %2387 : vector<8x128xf32>
    %2389 = arith.mulf %2385, %2385 : vector<8x128xf32>
    %2390 = arith.addf %2388, %2389 : vector<8x128xf32>
    %cst_723 = arith.constant 0.000000e+00 : f32
    %2391 = vector.broadcast %cst_723 : f32 to vector<8x128xf32>
    %2392 = arith.subf %2391, %2390 : vector<8x128xf32>
    %2393 = math.exp %2392 : vector<8x128xf32>
    %2394 = arith.subf %2382, %18 : vector<8x128xf32>
    %2395 = math.absf %2394 : vector<8x128xf32>
    %2396 = arith.mulf %2393, %2395 : vector<8x128xf32>
    %2397 = arith.addf %2378, %2396 : vector<8x128xf32>
    %c124_i32_724 = arith.constant 124 : i32
    %2398 = tpu.dynamic_rotate %2218 by %c124_i32_724 dim 1 : vector<8x128xf32>, i32 -> vector<8x128xf32>
    %c124_i32_725 = arith.constant 124 : i32
    %2399 = tpu.dynamic_rotate %2222 by %c124_i32_725 dim 1 : vector<8x128xf32>, i32 -> vector<8x128xf32>
    %c124_i32_726 = arith.constant 124 : i32
    %2400 = tpu.dynamic_rotate %2226 by %c124_i32_726 dim 1 : vector<8x128xf32>, i32 -> vector<8x128xf32>
    %c124_i32_727 = arith.constant 124 : i32
    %2401 = tpu.dynamic_rotate %2230 by %c124_i32_727 dim 1 : vector<8x128xf32>, i32 -> vector<8x128xf32>
    %2402 = arith.subf %2398, %6 : vector<8x128xf32>
    %2403 = arith.subf %2399, %10 : vector<8x128xf32>
    %2404 = arith.subf %2400, %14 : vector<8x128xf32>
    %2405 = arith.mulf %2402, %2402 : vector<8x128xf32>
    %2406 = arith.mulf %2403, %2403 : vector<8x128xf32>
    %2407 = arith.addf %2405, %2406 : vector<8x128xf32>
    %2408 = arith.mulf %2404, %2404 : vector<8x128xf32>
    %2409 = arith.addf %2407, %2408 : vector<8x128xf32>
    %cst_728 = arith.constant 0.000000e+00 : f32
    %2410 = vector.broadcast %cst_728 : f32 to vector<8x128xf32>
    %2411 = arith.subf %2410, %2409 : vector<8x128xf32>
    %2412 = math.exp %2411 : vector<8x128xf32>
    %2413 = arith.subf %2401, %18 : vector<8x128xf32>
    %2414 = math.absf %2413 : vector<8x128xf32>
    %2415 = arith.mulf %2412, %2414 : vector<8x128xf32>
    %2416 = arith.addf %2397, %2415 : vector<8x128xf32>
    %c123_i32_729 = arith.constant 123 : i32
    %2417 = tpu.dynamic_rotate %2218 by %c123_i32_729 dim 1 : vector<8x128xf32>, i32 -> vector<8x128xf32>
    %c123_i32_730 = arith.constant 123 : i32
    %2418 = tpu.dynamic_rotate %2222 by %c123_i32_730 dim 1 : vector<8x128xf32>, i32 -> vector<8x128xf32>
    %c123_i32_731 = arith.constant 123 : i32
    %2419 = tpu.dynamic_rotate %2226 by %c123_i32_731 dim 1 : vector<8x128xf32>, i32 -> vector<8x128xf32>
    %c123_i32_732 = arith.constant 123 : i32
    %2420 = tpu.dynamic_rotate %2230 by %c123_i32_732 dim 1 : vector<8x128xf32>, i32 -> vector<8x128xf32>
    %2421 = arith.subf %2417, %6 : vector<8x128xf32>
    %2422 = arith.subf %2418, %10 : vector<8x128xf32>
    %2423 = arith.subf %2419, %14 : vector<8x128xf32>
    %2424 = arith.mulf %2421, %2421 : vector<8x128xf32>
    %2425 = arith.mulf %2422, %2422 : vector<8x128xf32>
    %2426 = arith.addf %2424, %2425 : vector<8x128xf32>
    %2427 = arith.mulf %2423, %2423 : vector<8x128xf32>
    %2428 = arith.addf %2426, %2427 : vector<8x128xf32>
    %cst_733 = arith.constant 0.000000e+00 : f32
    %2429 = vector.broadcast %cst_733 : f32 to vector<8x128xf32>
    %2430 = arith.subf %2429, %2428 : vector<8x128xf32>
    %2431 = math.exp %2430 : vector<8x128xf32>
    %2432 = arith.subf %2420, %18 : vector<8x128xf32>
    %2433 = math.absf %2432 : vector<8x128xf32>
    %2434 = arith.mulf %2431, %2433 : vector<8x128xf32>
    %2435 = arith.addf %2416, %2434 : vector<8x128xf32>
    %c3_i32_734 = arith.constant 3 : i32
    %2436 = arith.addi %1, %c3_i32_734 : i32
    %c0_735 = arith.constant 0 : index
    %c3_736 = arith.constant 3 : index
    %2437 = arith.index_cast %2436 : i32 to index
    %c0_737 = arith.constant 0 : index
    %2438 = vector.load %arg2[%c0_735, %c3_736, %2437, %c0_737] : memref<1x4x32x128xf32, #tpu.memory_space<vmem>>, vector<1x1x12x128xf32>
    %2439 = vector.shape_cast %2438 : vector<1x1x12x128xf32> to vector<12x128xf32>
    %cst_738 = arith.constant 5.000000e-01 : f32
    %2440 = vector.broadcast %cst_738 : f32 to vector<12x128xf32>
    %2441 = arith.cmpf ogt, %2439, %2440 : vector<12x128xf32>
    %2442 = arith.extui %2441 : vector<12x128xi1> to vector<12x128xi32>
    %2443 = arith.sitofp %2442 : vector<12x128xi32> to vector<12x128xf32>
    %2444 = tpu.iota {dimensions = array<i32: 0>} : vector<12x128xi32>
    %2445 = tpu.iota {dimensions = array<i32: 1>} : vector<12x128xi32>
    %2446 = vector.broadcast %2 : i32 to vector<12x128xi32>
    %2447 = arith.addi %2446, %2444 : vector<12x128xi32>
    %c2_i32_739 = arith.constant 2 : i32
    %2448 = vector.broadcast %c2_i32_739 : i32 to vector<12x128xi32>
    %2449 = arith.subi %2447, %2448 : vector<12x128xi32>
    %c5_i32_740 = arith.constant 5 : i32
    %2450 = vector.broadcast %c5_i32_740 : i32 to vector<12x128xi32>
    %2451 = arith.subi %2445, %2450 : vector<12x128xi32>
    %c0_i32_741 = arith.constant 0 : i32
    %2452 = vector.broadcast %c0_i32_741 : i32 to vector<12x128xi32>
    %2453 = arith.cmpi sge, %2449, %2452 : vector<12x128xi32>
    %c16_i32 = arith.constant 16 : i32
    %2454 = vector.broadcast %c16_i32 : i32 to vector<12x128xi32>
    %2455 = arith.cmpi slt, %2449, %2454 : vector<12x128xi32>
    %2456 = arith.andi %2453, %2455 : vector<12x128xi1>
    %c0_i32_742 = arith.constant 0 : i32
    %2457 = vector.broadcast %c0_i32_742 : i32 to vector<12x128xi32>
    %2458 = arith.cmpi sge, %2451, %2457 : vector<12x128xi32>
    %2459 = arith.andi %2456, %2458 : vector<12x128xi1>
    %c16_i32_743 = arith.constant 16 : i32
    %2460 = vector.broadcast %c16_i32_743 : i32 to vector<12x128xi32>
    %2461 = arith.cmpi slt, %2451, %2460 : vector<12x128xi32>
    %2462 = arith.andi %2459, %2461 : vector<12x128xi1>
    %cst_744 = arith.constant 1.000000e+00 : f32
    %2463 = vector.broadcast %cst_744 : f32 to vector<12x128xf32>
    %2464 = arith.select %2462, %2443, %2463 : vector<12x128xi1>, vector<12x128xf32>
    %2465 = vector.extract_strided_slice %2443 {offsets = [0, 0], sizes = [8, 128], strides = [1, 1]} : vector<12x128xf32> to vector<8x128xf32>
    %2466 = vector.extract_strided_slice %2464 {offsets = [0, 0], sizes = [8, 128], strides = [1, 1]} : vector<12x128xf32> to vector<8x128xf32>
    %2467 = vector.extract_strided_slice %2443 {offsets = [1, 0], sizes = [8, 128], strides = [1, 1]} : vector<12x128xf32> to vector<8x128xf32>
    %2468 = arith.maximumf %2465, %2467 : vector<8x128xf32>
    %2469 = vector.extract_strided_slice %2464 {offsets = [1, 0], sizes = [8, 128], strides = [1, 1]} : vector<12x128xf32> to vector<8x128xf32>
    %2470 = arith.minimumf %2466, %2469 : vector<8x128xf32>
    %2471 = vector.extract_strided_slice %2443 {offsets = [2, 0], sizes = [8, 128], strides = [1, 1]} : vector<12x128xf32> to vector<8x128xf32>
    %2472 = arith.maximumf %2468, %2471 : vector<8x128xf32>
    %2473 = vector.extract_strided_slice %2464 {offsets = [2, 0], sizes = [8, 128], strides = [1, 1]} : vector<12x128xf32> to vector<8x128xf32>
    %2474 = arith.minimumf %2470, %2473 : vector<8x128xf32>
    %2475 = vector.extract_strided_slice %2443 {offsets = [3, 0], sizes = [8, 128], strides = [1, 1]} : vector<12x128xf32> to vector<8x128xf32>
    %2476 = arith.maximumf %2472, %2475 : vector<8x128xf32>
    %2477 = vector.extract_strided_slice %2464 {offsets = [3, 0], sizes = [8, 128], strides = [1, 1]} : vector<12x128xf32> to vector<8x128xf32>
    %2478 = arith.minimumf %2474, %2477 : vector<8x128xf32>
    %2479 = vector.extract_strided_slice %2443 {offsets = [4, 0], sizes = [8, 128], strides = [1, 1]} : vector<12x128xf32> to vector<8x128xf32>
    %2480 = arith.maximumf %2476, %2479 : vector<8x128xf32>
    %2481 = vector.extract_strided_slice %2464 {offsets = [4, 0], sizes = [8, 128], strides = [1, 1]} : vector<12x128xf32> to vector<8x128xf32>
    %2482 = arith.minimumf %2478, %2481 : vector<8x128xf32>
    %c1_i32_745 = arith.constant 1 : i32
    %2483 = tpu.dynamic_rotate %2480 by %c1_i32_745 dim 1 : vector<8x128xf32>, i32 -> vector<8x128xf32>
    %2484 = arith.maximumf %2480, %2483 : vector<8x128xf32>
    %c127_i32_746 = arith.constant 127 : i32
    %2485 = tpu.dynamic_rotate %2480 by %c127_i32_746 dim 1 : vector<8x128xf32>, i32 -> vector<8x128xf32>
    %2486 = arith.maximumf %2484, %2485 : vector<8x128xf32>
    %c1_i32_747 = arith.constant 1 : i32
    %2487 = tpu.dynamic_rotate %2482 by %c1_i32_747 dim 1 : vector<8x128xf32>, i32 -> vector<8x128xf32>
    %2488 = arith.minimumf %2482, %2487 : vector<8x128xf32>
    %c127_i32_748 = arith.constant 127 : i32
    %2489 = tpu.dynamic_rotate %2482 by %c127_i32_748 dim 1 : vector<8x128xf32>, i32 -> vector<8x128xf32>
    %2490 = arith.minimumf %2488, %2489 : vector<8x128xf32>
    %c2_i32_749 = arith.constant 2 : i32
    %2491 = tpu.dynamic_rotate %2480 by %c2_i32_749 dim 1 : vector<8x128xf32>, i32 -> vector<8x128xf32>
    %2492 = arith.maximumf %2486, %2491 : vector<8x128xf32>
    %c126_i32_750 = arith.constant 126 : i32
    %2493 = tpu.dynamic_rotate %2480 by %c126_i32_750 dim 1 : vector<8x128xf32>, i32 -> vector<8x128xf32>
    %2494 = arith.maximumf %2492, %2493 : vector<8x128xf32>
    %c2_i32_751 = arith.constant 2 : i32
    %2495 = tpu.dynamic_rotate %2482 by %c2_i32_751 dim 1 : vector<8x128xf32>, i32 -> vector<8x128xf32>
    %2496 = arith.minimumf %2490, %2495 : vector<8x128xf32>
    %c126_i32_752 = arith.constant 126 : i32
    %2497 = tpu.dynamic_rotate %2482 by %c126_i32_752 dim 1 : vector<8x128xf32>, i32 -> vector<8x128xf32>
    %2498 = arith.minimumf %2496, %2497 : vector<8x128xf32>
    %2499 = arith.subf %2494, %2498 : vector<8x128xf32>
    %2500 = tpu.iota {dimensions = array<i32: 0>} : vector<8x128xi32>
    %2501 = tpu.iota {dimensions = array<i32: 1>} : vector<8x128xi32>
    %2502 = vector.broadcast %2 : i32 to vector<8x128xi32>
    %2503 = arith.addi %2502, %2500 : vector<8x128xi32>
    %c16_i32_753 = arith.constant 16 : i32
    %2504 = vector.broadcast %c16_i32_753 : i32 to vector<8x128xi32>
    %2505 = arith.cmpi slt, %2503, %2504 : vector<8x128xi32>
    %c5_i32_754 = arith.constant 5 : i32
    %2506 = vector.broadcast %c5_i32_754 : i32 to vector<8x128xi32>
    %2507 = arith.cmpi sge, %2501, %2506 : vector<8x128xi32>
    %2508 = arith.andi %2505, %2507 : vector<8x128xi1>
    %c21_i32 = arith.constant 21 : i32
    %2509 = vector.broadcast %c21_i32 : i32 to vector<8x128xi32>
    %2510 = arith.cmpi slt, %2501, %2509 : vector<8x128xi32>
    %2511 = arith.andi %2508, %2510 : vector<8x128xi1>
    %cst_755 = arith.constant 0.000000e+00 : f32
    %2512 = vector.broadcast %cst_755 : f32 to vector<8x128xf32>
    %2513 = arith.select %2511, %2499, %2512 : vector<8x128xi1>, vector<8x128xf32>
    %2514 = arith.mulf %2435, %2513 : vector<8x128xf32>
    %2515 = vector.shape_cast %2514 : vector<8x128xf32> to vector<1x8x128xf32>
    %cst_756 = arith.constant dense<0.000000e+00> : vector<1xf32>
    %2516 = vector.multi_reduction <add>, %2515, %cst_756 [1, 2] : vector<1x8x128xf32> to vector<1xf32>
    %2517 = vector.shape_cast %2516 : vector<1xf32> to vector<1x1x1xf32>
    %2518 = vector.extract %2517[0, 0, 0] : f32 from vector<1x1x1xf32>
    %2519 = vector.broadcast %2518 : f32 to vector<1x128xf32>
    %c0_757 = arith.constant 0 : index
    %c0_758 = arith.constant 0 : index
    %c0_759 = arith.constant 0 : index
    %c0_760 = arith.constant 0 : index
    %2520 = vector.load %arg3[%c0_757, %c0_758, %c0_759, %c0_760] : memref<1x1x1x128xf32, #tpu.memory_space<vmem>>, vector<1x1x1x128xf32>
    %2521 = vector.shape_cast %2520 : vector<1x1x1x128xf32> to vector<1x128xf32>
    %2522 = vector.shape_cast %2519 : vector<1x128xf32> to vector<1x1x1x128xf32>
    tpu.vector_store %arg3[%c0_757, %c0_758, %c0_759, %c0_760], %2522 {strides = array<i32>} : memref<1x1x1x128xf32, #tpu.memory_space<vmem>>, vector<1x1x1x128xf32>,
    %2523 = vector.shape_cast %2513 : vector<8x128xf32> to vector<1x8x128xf32>
    %cst_761 = arith.constant dense<0.000000e+00> : vector<1xf32>
    %2524 = vector.multi_reduction <add>, %2523, %cst_761 [1, 2] : vector<1x8x128xf32> to vector<1xf32>
    %2525 = vector.shape_cast %2524 : vector<1xf32> to vector<1x1x1xf32>
    %2526 = vector.extract %2525[0, 0, 0] : f32 from vector<1x1x1xf32>
    %2527 = vector.broadcast %2526 : f32 to vector<1x128xf32>
    %c0_762 = arith.constant 0 : index
    %c0_763 = arith.constant 0 : index
    %c0_764 = arith.constant 0 : index
    %c0_765 = arith.constant 0 : index
    %2528 = vector.load %arg4[%c0_762, %c0_763, %c0_764, %c0_765] : memref<1x1x1x128xf32, #tpu.memory_space<vmem>>, vector<1x1x1x128xf32>
    %2529 = vector.shape_cast %2528 : vector<1x1x1x128xf32> to vector<1x128xf32>
    %2530 = vector.shape_cast %2527 : vector<1x128xf32> to vector<1x1x1x128xf32>
    tpu.vector_store %arg4[%c0_762, %c0_763, %c0_764, %c0_765], %2530 {strides = array<i32>} : memref<1x1x1x128xf32, #tpu.memory_space<vmem>>, vector<1x1x1x128xf32>,
    return
  }
  func.func @transform_0(%arg0: i32, %arg1: i32) -> (i32, i32, i32, i32) {
    %c0_i32 = arith.constant 0 : i32
    %c0_i32_0 = arith.constant 0 : i32
    %c0_i32_1 = arith.constant 0 : i32
    %c0_i32_2 = arith.constant 0 : i32
    return %arg0, %c0_i32, %c0_i32_0, %c0_i32_1 : i32, i32, i32, i32
  }
  func.func @transform_1(%arg0: i32, %arg1: i32) -> (i32, i32, i32, i32) {
    %c0_i32 = arith.constant 0 : i32
    %c0_i32_0 = arith.constant 0 : i32
    %c0_i32_1 = arith.constant 0 : i32
    return %arg0, %arg1, %c0_i32, %c0_i32_0 : i32, i32, i32, i32
  }
  func.func @transform_2(%arg0: i32, %arg1: i32) -> (i32, i32, i32, i32) {
    %c0_i32 = arith.constant 0 : i32
    %c0_i32_0 = arith.constant 0 : i32
    %c0_i32_1 = arith.constant 0 : i32
    return %arg0, %arg1, %c0_i32, %c0_i32_0 : i32, i32, i32, i32
  }
}

</mosaic_0001>

<bundles_post_ra>
// kernel: btm_loss.1
= control target key start
LH: loop header
LB: loop body
LE: loop exit
PB: predicated region body
PF: predicated region fallthrough
CT: control target
= control target key end

     0   :  { %s3906_s9 = smov 0   ;;  %s3908_s10 = smov 0   ;;  %s6910_s0 = inlined_call_operand.vmem [shape: f32[2,4,32,128], index: 0, kind: input, shape index: {}]   ;;  %s6911_s1 = inlined_call_operand.vmem [shape: f32[2,2,1,128], index: 1, kind: output, shape index: {0}]   ;;  %s6912_s2 = inlined_call_operand.vmem [shape: f32[2,2,1,128], index: 2, kind: output, shape index: {1}]  }
   0x1   :  { %s3910_s11 = smov 0   ;;  %s3912_s12 = smov 0  }
   0x2   :  { %s3914_s13 = smov 0  }
   0x3 LB: > { %s22_s14 = sadd.s32 1, %s3870_s11  ;;  %s25_s15 = sadd.s32 1, %s3874_s12  ;;  %s3878_s13 = sphi %s3914_s13, %s13_s13   ;;  %s3874_s12 = sphi %s3912_s12, %s7380_s12   ;;  %s3870_s11 = sphi %s3910_s11, %s7379_s11   ;;  %s3866_s10 = sphi %s3908_s10, %s7378_s10   ;;  %s3862_s9 = sphi %s3906_s9, %s7377_s9  }
   0x4   : > { %p23_p0 = scmp.ge.s32.totalorder %s22_s14, 2  ;;  %p3377_p1 = scmp.ge.s32.totalorder %s3878_s13, 1 }
   0x5   : > { %p131_p2 = scmp.lt.s32.totalorder %s3878_s13, 5 }
   0x6   : > { %s7382_s14 = smov (%p23_p0, %s22_s14), 0  ;;  %s7384_s15 = smov (!%p23_p0, %s25_s15), %s3874_s12 }
   0x7   : > { %p132_p3 = pnand %p3377_p1, %p131_p2  ;;  %p27_p4 = scmp.ge.s32.totalorder %s7384_s15, 2 }
   0x9   : > { %s7386_s15 = smov (%p27_p4, %s7384_s15), 0  ;;  %135 = sbr.rel (%p132_p3) target bundleno = 1235 (0x4d3), region = 24 }
   0xe   : > { %p162_p5 = scmp.lt.s32.totalorder %s3866_s10, 1  ;;  %s3382_s16 = sshll.u32 %s3862_s9, 3  ;;  %vm3027_vm14 = vcmask 1046528   ;;  %vm3040_vm15 = vcmask 1045504  }
   0xf   : > { %s3880_s22 = smov 5   ;;  %s3881_s23 = smov 4  }
  0x10   : > { %s7388_s10 = smov (!%p162_p5, %s3866_s10), 1  ;;  %s3882_s24 = smov 3  }
  0x11   : > { %s3477_s17 = sshll.u32 %s7388_s10, 7  ;;  %s3883_s25 = smov 2  }
  0x12   : > { %s166_s20 = scalar_lea.vmem %s6910_s0, %s3477_s17  ;;  %s3884_s26 = smov 1  }
  0x13   : > { %s3947_s21 = scalar_lea.vmem %s166_s20, %s3382_s16  ;;  %s3885_s27 = smov 127  }
  0x14   : > { %v3950_v0 = vld [vmem:[%s3947_s21 + $0x40] sm:$0xff]  ;;  %s3886_s28 = smov 126   ;;  %s3887_s29 = smov 125  }
  0x15   : > { %v3953_v1 = vld [vmem:[%s3947_s21] sm:$0xff]  ;;  %209 = vrot.lane.b32.xlu1 %v3950_v0, %s3880_s22  ;;  %s3888_s30 = smov 124   ;;  %s3889_s3 = smov 123  }
  0x16   : > { %205 = vrot.lane.b32.xlu0 %v3953_v1, %s3880_s22  ;;  %v3396_v2 = vld [vmem:[%s3947_s21 + $0x60] sm:$0xff]  ;;  %p169_p6 = scmp.lt.s32.totalorder %s3862_s9, 1  ;;  %s3380_s4 = sshll.u32 %s7388_s10, 1 }
  0x17   : > { %v3961_v3 = vld [vmem:[%s3947_s21 + $0x20] sm:$0xff] }
  0x18   : > { %v4030_v4 = vld [vmem:[%s3947_s21 + $0x21] sm:$0xff]  ;;  %s7390_s9 = smov (!%p169_p6, %s3862_s9), 1 }
  0x19   : > { %211 = vrot.lane.b32.xlu1 %v3396_v2, %s3880_s22  ;;  %v4033_v5 = vld [vmem:[%s3947_s21 + $0x1] sm:$0xff]  ;;  %s172_s5 = sadd.s32 %s3380_s4, %s7390_s9 }
  0x1a   : > { %207 = vrot.lane.b32.xlu0 %v3961_v3, %s3880_s22  ;;  %v3404_v6 = vld [vmem:[%s3947_s21 + $0x61] sm:$0xff]  ;;  %s173_s8 = scalar_lea.vmem %s6911_s1, %s172_s5  ;;  %s180_s19 = scalar_lea.vmem %s6912_s2, %s172_s5 }
  0x1b   : > { %v4041_v7 = vld [vmem:[%s3947_s21 + $0x41] sm:$0xff] }
  0x1c   : > { %v4154_v30 = vld [vmem:[%s3947_s21 + $0x22] sm:$0xff] }
  0x1d   : > { %230 = vrot.lane.b32.xlu1 %v3961_v3, %s3881_s23  ;;  %v4157_v31 = vld [vmem:[%s3947_s21 + $0x2] sm:$0xff] }
  0x1e   : > { %228 = vrot.lane.b32.xlu0 %v3953_v1, %s3881_s23  ;;  %v4168_v34 = vld [vmem:[%s3947_s21 + $0x62] sm:$0xff] }
  0x1f   : > { %v4171_v35 = vld [vmem:[%s3947_s21 + $0x42] sm:$0xff] }
  0x21   : > { %234 = vrot.lane.b32.xlu1 %v3396_v2, %s3881_s23 }
  0x22   : > { %232 = vrot.lane.b32.xlu0 %v3950_v0, %s3881_s23 }
  0x25   : > { %253 = vrot.lane.b32.xlu1 %v3961_v3, %s3882_s24 }
  0x26   : > { %251 = vrot.lane.b32.xlu0 %v3953_v1, %s3882_s24 }
  0x29   : > { %257 = vrot.lane.b32.xlu1 %v3396_v2, %s3882_s24 }
  0x2a   : > { %255 = vrot.lane.b32.xlu0 %v3950_v0, %s3882_s24 }
  0x2d   : > { %276 = vrot.lane.b32.xlu1 %v3961_v3, %s3883_s25 }
  0x2e   : > { %274 = vrot.lane.b32.xlu0 %v3953_v1, %s3883_s25 }
  0x31   : > { %280 = vrot.lane.b32.xlu1 %v3396_v2, %s3883_s25 }
  0x32   : > { %278 = vrot.lane.b32.xlu0 %v3950_v0, %s3883_s25 }
  0x35   : > { %299 = vrot.lane.b32.xlu1 %v3961_v3, %s3884_s26 }
  0x36   : > { %297 = vrot.lane.b32.xlu0 %v3953_v1, %s3884_s26 }
  0x39   : > { %303 = vrot.lane.b32.xlu1 %v3396_v2, %s3884_s26 }
  0x3a   : > { %301 = vrot.lane.b32.xlu0 %v3950_v0, %s3884_s26 }
  0x3d   : > { %337 = vrot.lane.b32.xlu1 %v3961_v3, %s3885_s27 }
  0x3e   : > { %335 = vrot.lane.b32.xlu0 %v3953_v1, %s3885_s27 }
  0x41   : > { %341 = vrot.lane.b32.xlu1 %v3396_v2, %s3885_s27 }
  0x42   : > { %339 = vrot.lane.b32.xlu0 %v3950_v0, %s3885_s27 }
  0x45   : > { %360 = vrot.lane.b32.xlu1 %v3961_v3, %s3886_s28 }
  0x46   : > { %358 = vrot.lane.b32.xlu0 %v3953_v1, %s3886_s28 }
  0x49   : > { %364 = vrot.lane.b32.xlu1 %v3396_v2, %s3886_s28 }
  0x4a   : > { %362 = vrot.lane.b32.xlu0 %v3950_v0, %s3886_s28 }
  0x4d   : > { %383 = vrot.lane.b32.xlu1 %v3961_v3, %s3887_s29 }
  0x4e   : > { %381 = vrot.lane.b32.xlu0 %v3953_v1, %s3887_s29 }
  0x51   : > { %387 = vrot.lane.b32.xlu1 %v3396_v2, %s3887_s29 }
  0x52   : > { %385 = vrot.lane.b32.xlu0 %v3950_v0, %s3887_s29 }
  0x55   : > { %406 = vrot.lane.b32.xlu1 %v3961_v3, %s3888_s30 }
  0x56   : > { %404 = vrot.lane.b32.xlu0 %v3953_v1, %s3888_s30 }
  0x59   : > { %410 = vrot.lane.b32.xlu1 %v3396_v2, %s3888_s30 }
  0x5a   : > { %408 = vrot.lane.b32.xlu0 %v3950_v0, %s3888_s30 }
  0x5d   : > { %429 = vrot.lane.b32.xlu1 %v3961_v3, %s3889_s3 }
  0x5e   : > { %427 = vrot.lane.b32.xlu0 %v3953_v1, %s3889_s3 }
  0x61   : > { %433 = vrot.lane.b32.xlu1 %v3396_v2, %s3889_s3 }
  0x62   : > { %431 = vrot.lane.b32.xlu0 %v3950_v0, %s3889_s3 }
  0x65   : > { %464 = vrot.lane.b32.xlu1 %v4030_v4, %s3880_s22 }
  0x66   : > { %462 = vrot.lane.b32.xlu0 %v4033_v5, %s3880_s22 }
  0x69   : > { %468 = vrot.lane.b32.xlu1 %v3404_v6, %s3880_s22 }
  0x6a   : > { %466 = vrot.lane.b32.xlu0 %v4041_v7, %s3880_s22 }
  0x6d   : > { %487 = vrot.lane.b32.xlu1 %v4030_v4, %s3881_s23 }
  0x6e   : > { %485 = vrot.lane.b32.xlu0 %v4033_v5, %s3881_s23 }
  0x71   : > { %491 = vrot.lane.b32.xlu1 %v3404_v6, %s3881_s23 }
  0x72   : > { %489 = vrot.lane.b32.xlu0 %v4041_v7, %s3881_s23 }
  0x75   : > { %510 = vrot.lane.b32.xlu1 %v4030_v4, %s3882_s24 }
  0x76   : > { %508 = vrot.lane.b32.xlu0 %v4033_v5, %s3882_s24 }
  0x79   : > { %514 = vrot.lane.b32.xlu1 %v3404_v6, %s3882_s24 }
  0x7a   : > { %512 = vrot.lane.b32.xlu0 %v4041_v7, %s3882_s24 }
  0x7d   : > { %533 = vrot.lane.b32.xlu1 %v4030_v4, %s3883_s25 }
  0x7e   : > { %531 = vrot.lane.b32.xlu0 %v4033_v5, %s3883_s25 }
  0x81   : > { %537 = vrot.lane.b32.xlu1 %v3404_v6, %s3883_s25 }
  0x82   : > { %535 = vrot.lane.b32.xlu0 %v4041_v7, %s3883_s25 }
  0x85   : > { %556 = vrot.lane.b32.xlu1 %v4030_v4, %s3884_s26 }
  0x86   : > { %554 = vrot.lane.b32.xlu0 %v4033_v5, %s3884_s26 }
  0x87   : > { %v4071_v8 = vpop.permute.xlu1 %209 }
  0x88   : > { %v4073_v9 = vpop.permute.xlu0 %205 }
  0x89   : > { %560 = vrot.lane.b32.xlu1 %v3404_v6, %s3884_s26 }
  0x8a   : > { %558 = vrot.lane.b32.xlu0 %v4041_v7, %s3884_s26 }
  0x8b   : > { %v4078_v10 = vpop.permute.xlu1 %211 }
  0x8c   : > { %v4080_v11 = vpop.permute.xlu0 %207 }
  0x8d   : > { %594 = vrot.lane.b32.xlu1 %v4030_v4, %s3885_s27 }
  0x8e   : > { %592 = vrot.lane.b32.xlu0 %v4033_v5, %s3885_s27 }
  0x8f   : > { %v4086_v12 = vpop.permute.xlu1 %230 }
  0x90   : > { %v4088_v13 = vpop.permute.xlu0 %228 }
  0x91   : > { %598 = vrot.lane.b32.xlu1 %v3404_v6, %s3885_s27 }
  0x92   : > { %596 = vrot.lane.b32.xlu0 %v4041_v7, %s3885_s27 }
  0x93   : > { %v4093_v14 = vpop.permute.xlu1 %234 }
  0x94   : > { %v4095_v15 = vpop.permute.xlu0 %232 }
  0x95   : > { %617 = vrot.lane.b32.xlu1 %v4030_v4, %s3886_s28 }
  0x96   : > { %615 = vrot.lane.b32.xlu0 %v4033_v5, %s3886_s28 }
  0x97   : > { %v4101_v16 = vpop.permute.xlu1 %253 }
  0x98   : > { %v4103_v17 = vpop.permute.xlu0 %251 }
  0x99   : > { %621 = vrot.lane.b32.xlu1 %v3404_v6, %s3886_s28 }
  0x9a   : > { %619 = vrot.lane.b32.xlu0 %v4041_v7, %s3886_s28 }
  0x9b   : > { %v4108_v18 = vpop.permute.xlu1 %257 }
  0x9c   : > { %v4110_v19 = vpop.permute.xlu0 %255 }
  0x9d   : > { %640 = vrot.lane.b32.xlu1 %v4030_v4, %s3887_s29 }
  0x9e   : > { %638 = vrot.lane.b32.xlu0 %v4033_v5, %s3887_s29 }
  0x9f   : > { %v4116_v20 = vpop.permute.xlu1 %276 }
  0xa0   : > { %v4118_v21 = vpop.permute.xlu0 %274 }
  0xa1   : > { %644 = vrot.lane.b32.xlu1 %v3404_v6, %s3887_s29 }
  0xa2   : > { %642 = vrot.lane.b32.xlu0 %v4041_v7, %s3887_s29 }
  0xa3   : > { %v4123_v22 = vpop.permute.xlu1 %280 }
  0xa4   : > { %v4125_v23 = vpop.permute.xlu0 %278 }
  0xa5   : > { %663 = vrot.lane.b32.xlu1 %v4030_v4, %s3888_s30 }
  0xa6   : > { %661 = vrot.lane.b32.xlu0 %v4033_v5, %s3888_s30 }
  0xa7   : > { %v4131_v24 = vpop.permute.xlu1 %299 }
  0xa8   : > { %v4133_v25 = vpop.permute.xlu0 %297 }
  0xa9   : > { %667 = vrot.lane.b32.xlu1 %v3404_v6, %s3888_s30 }
  0xaa   : > { %665 = vrot.lane.b32.xlu0 %v4041_v7, %s3888_s30 }
  0xab   : > { %v4138_v26 = vpop.permute.xlu1 %303 }
  0xac   : > { %6915 = vst [vmem:[#allocation2_spill] sm:$0xff] %v4138_v26  ;;  %v4140_v27 = vpop.permute.xlu0 %301 }
  0xad   : > { %686 = vrot.lane.b32.xlu1 %v4030_v4, %s3889_s3 }
  0xae   : > { %684 = vrot.lane.b32.xlu0 %v4033_v5, %s3889_s3 }
  0xaf   : > { %v4146_v28 = vpop.permute.xlu1 %337 }
  0xb0   : > { %v4148_v29 = vpop.permute.xlu0 %335 }
  0xb1   : > { %690 = vrot.lane.b32.xlu1 %v3404_v6, %s3889_s3 }
  0xb2   : > { %688 = vrot.lane.b32.xlu0 %v4041_v7, %s3889_s3 }
  0xb3   : > { %v4159_v32 = vpop.permute.xlu1 %341 }
  0xb4   : > { %6916 = vst [vmem:[#allocation3_spill] sm:$0xff] %v4159_v32  ;;  %v4161_v33 = vpop.permute.xlu0 %339  ;;  %v4326_v32 = vld [vmem:[%s3947_s21 + $0x23] sm:$0xff] }
  0xb5   : > { %721 = vrot.lane.b32.xlu1 %v4154_v30, %s3880_s22 }
  0xb6   : > { %719 = vrot.lane.b32.xlu0 %v4157_v31, %s3880_s22 }
  0xb7   : > { %v4173_v36 = vpop.permute.xlu1 %360 }
  0xb8   : > { %v4175_v37 = vpop.permute.xlu0 %358 }
  0xb9   : > { %725 = vrot.lane.b32.xlu1 %v4168_v34, %s3880_s22 }
  0xba   : > { %723 = vrot.lane.b32.xlu0 %v4171_v35, %s3880_s22 }
  0xbb   : > { %v4181_v38 = vpop.permute.xlu1 %364 }
  0xbc   : > { %6917 = vst [vmem:[#allocation4_spill] sm:$0xff] %v4181_v38  ;;  %v4183_v39 = vpop.permute.xlu0 %362 }
  0xbd   : > { %744 = vrot.lane.b32.xlu1 %v4154_v30, %s3881_s23 }
  0xbe   : > { %742 = vrot.lane.b32.xlu0 %v4157_v31, %s3881_s23 }
  0xbf   : > { %v4189_v40 = vpop.permute.xlu1 %383 }
  0xc0   : > { %v4191_v41 = vpop.permute.xlu0 %381 }
  0xc1   : > { %748 = vrot.lane.b32.xlu1 %v4168_v34, %s3881_s23 }
  0xc2   : > { %746 = vrot.lane.b32.xlu0 %v4171_v35, %s3881_s23 }
  0xc3   : > { %v4197_v42 = vpop.permute.xlu1 %387 }
  0xc4   : > { %6918 = vst [vmem:[#allocation5_spill] sm:$0xff] %v4197_v42  ;;  %v4199_v43 = vpop.permute.xlu0 %385 }
  0xc5   : > { %767 = vrot.lane.b32.xlu1 %v4154_v30, %s3882_s24 }
  0xc6   : > { %765 = vrot.lane.b32.xlu0 %v4157_v31, %s3882_s24 }
  0xc7   : > { %v4205_v44 = vpop.permute.xlu1 %406 }
  0xc8   : > { %v4207_v45 = vpop.permute.xlu0 %404 }
  0xc9   : > { %771 = vrot.lane.b32.xlu1 %v4168_v34, %s3882_s24 }
  0xca   : > { %769 = vrot.lane.b32.xlu0 %v4171_v35, %s3882_s24 }
  0xcb   : > { %v4213_v46 = vpop.permute.xlu1 %410 }
  0xcc   : > { %6919 = vst [vmem:[#allocation6_spill] sm:$0xff] %v4213_v46  ;;  %v4215_v47 = vpop.permute.xlu0 %408 }
  0xcd   : > { %790 = vrot.lane.b32.xlu1 %v4154_v30, %s3883_s25 }
  0xce   : > { %788 = vrot.lane.b32.xlu0 %v4157_v31, %s3883_s25 }
  0xcf   : > { %v4221_v48 = vpop.permute.xlu1 %429 }
  0xd0   : > { %v4223_v49 = vpop.permute.xlu0 %427 }
  0xd1   : > { %794 = vrot.lane.b32.xlu1 %v4168_v34, %s3883_s25 }
  0xd2   : > { %792 = vrot.lane.b32.xlu0 %v4171_v35, %s3883_s25 }
  0xd3   : > { %v4229_v50 = vpop.permute.xlu1 %433 }
  0xd4   : > { %6920 = vst [vmem:[#allocation7_spill] sm:$0xff] %v4229_v50  ;;  %v4231_v51 = vpop.permute.xlu0 %431 }
  0xd5   : > { %813 = vrot.lane.b32.xlu1 %v4154_v30, %s3884_s26 }
  0xd6   : > { %811 = vrot.lane.b32.xlu0 %v4157_v31, %s3884_s26 }
  0xd7   : > { %v4237_v52 = vpop.permute.xlu1 %464 }
  0xd8   : > { %v4239_v53 = vpop.permute.xlu0 %462 }
  0xd9   : > { %817 = vrot.lane.b32.xlu1 %v4168_v34, %s3884_s26 }
  0xda   : > { %815 = vrot.lane.b32.xlu0 %v4171_v35, %s3884_s26 }
  0xdb   : > { %v4245_v54 = vpop.permute.xlu1 %468 }
  0xdc   : > { %6921 = vst [vmem:[#allocation8_spill] sm:$0xff] %v4245_v54  ;;  %v4247_v55 = vpop.permute.xlu0 %466 }
  0xdd   : > { %851 = vrot.lane.b32.xlu1 %v4154_v30, %s3885_s27 }
  0xde   : > { %849 = vrot.lane.b32.xlu0 %v4157_v31, %s3885_s27 }
  0xdf   : > { %v4253_v56 = vpop.permute.xlu1 %487 }
  0xe0   : > { %v4255_v57 = vpop.permute.xlu0 %485 }
  0xe1   : > { %855 = vrot.lane.b32.xlu1 %v4168_v34, %s3885_s27 }
  0xe2   : > { %853 = vrot.lane.b32.xlu0 %v4171_v35, %s3885_s27 }
  0xe3   : > { %v4261_v58 = vpop.permute.xlu1 %491 }
  0xe4   : > { %6922 = vst [vmem:[#allocation9_spill] sm:$0xff] %v4261_v58  ;;  %v4263_v59 = vpop.permute.xlu0 %489 }
  0xe5   : > { %874 = vrot.lane.b32.xlu1 %v4154_v30, %s3886_s28 }
  0xe6   : > { %872 = vrot.lane.b32.xlu0 %v4157_v31, %s3886_s28 }
  0xe7   : > { %v4269_v60 = vpop.permute.xlu1 %510 }
  0xe8   : > { %v4271_v61 = vpop.permute.xlu0 %508 }
  0xe9   : > { %878 = vrot.lane.b32.xlu1 %v4168_v34, %s3886_s28 }
  0xea   : > { %876 = vrot.lane.b32.xlu0 %v4171_v35, %s3886_s28 }
  0xeb   : > { %v4277_v62 = vpop.permute.xlu1 %514 }
  0xec   : > { %6923 = vst [vmem:[#allocation10_spill] sm:$0xff] %v4277_v62  ;;  %v4279_v63 = vpop.permute.xlu0 %512 }
  0xed   : > { %897 = vrot.lane.b32.xlu1 %v4154_v30, %s3887_s29 }
  0xee   : > { %895 = vrot.lane.b32.xlu0 %v4157_v31, %s3887_s29 }
  0xef   : > { %v4285_v2 = vpop.permute.xlu1 %533 }
  0xf0   : > { %v4287_v6 = vpop.permute.xlu0 %531 }
  0xf1   : > { %901 = vrot.lane.b32.xlu1 %v4168_v34, %s3887_s29 }
  0xf2   : > { %899 = vrot.lane.b32.xlu0 %v4171_v35, %s3887_s29 }
  0xf3   : > { %v4293_v58 = vpop.permute.xlu1 %537 }
  0xf4   : > { %6924 = vst [vmem:[#allocation11_spill] sm:$0xff] %v4293_v58  ;;  %v4295_v62 = vpop.permute.xlu0 %535 }
  0xf5   : > { %6925 = vst [vmem:[#allocation12_spill] sm:$0xff] %v4295_v62  ;;  %920 = vrot.lane.b32.xlu1 %v4154_v30, %s3888_s30 }
  0xf6   : > { %918 = vrot.lane.b32.xlu0 %v4157_v31, %s3888_s30 }
  0xf7   : > { %v4301_v54 = vpop.permute.xlu1 %556 }
  0xf8   : > { %6926 = vst [vmem:[#allocation13_spill] sm:$0xff] %v4301_v54  ;;  %v4303_v50 = vpop.permute.xlu0 %554 }
  0xf9   : > { %6927 = vst [vmem:[#allocation14_spill] sm:$0xff] %v4303_v50  ;;  %924 = vrot.lane.b32.xlu1 %v4168_v34, %s3888_s30 }
  0xfa   : > { %922 = vrot.lane.b32.xlu0 %v4171_v35, %s3888_s30 }
  0xfb   : > { %v4309_v58 = vpop.permute.xlu1 %560 }
  0xfc   : > { %6928 = vst [vmem:[#allocation15_spill] sm:$0xff] %v4309_v58  ;;  %v4311_v46 = vpop.permute.xlu0 %558  ;;  %v4329_v58 = vld [vmem:[%s3947_s21 + $0x3] sm:$0xff] }
  0xfd   : > { %6929 = vst [vmem:[#allocation16_spill] sm:$0xff] %v4311_v46  ;;  %943 = vrot.lane.b32.xlu1 %v4154_v30, %s3889_s3 }
  0xfe   : > { %941 = vrot.lane.b32.xlu0 %v4157_v31, %s3889_s3  ;;  %v4340_v31 = vld [vmem:[%s3947_s21 + $0x63] sm:$0xff] }
  0xff   : > { %v4317_v42 = vpop.permute.xlu1 %594 }
 0x100   : > { %6930 = vst [vmem:[#allocation17_spill] sm:$0xff] %v4317_v42  ;;  %v4319_v38 = vpop.permute.xlu0 %592 }
 0x101   : > { %6931 = vst [vmem:[#allocation18_spill] sm:$0xff] %v4319_v38  ;;  %947 = vrot.lane.b32.xlu1 %v4168_v34, %s3889_s3  ;;  %v4343_v34 = vld [vmem:[%s3947_s21 + $0x43] sm:$0xff] }
 0x102   : > { %945 = vrot.lane.b32.xlu0 %v4171_v35, %s3889_s3 }
 0x103   : > { %v4331_v46 = vpop.permute.xlu1 %598 }
 0x104   : > { %6932 = vst [vmem:[#allocation19_spill] sm:$0xff] %v4331_v46  ;;  %v4333_v30 = vpop.permute.xlu0 %596 }
 0x105   : > { %6933 = vst [vmem:[#allocation20_spill] sm:$0xff] %v4333_v30  ;;  %978 = vrot.lane.b32.xlu1 %v4326_v32, %s3880_s22 }
 0x106   : > { %976 = vrot.lane.b32.xlu0 %v4329_v58, %s3880_s22 }
 0x107   : > { %v4345_v38 = vpop.permute.xlu1 %617 }
 0x108   : > { %6934 = vst [vmem:[#allocation21_spill] sm:$0xff] %v4345_v38  ;;  %v4347_v35 = vpop.permute.xlu0 %615 }
 0x109   : > { %6935 = vst [vmem:[#allocation22_spill] sm:$0xff] %v4347_v35  ;;  %982 = vrot.lane.b32.xlu1 %v4340_v31, %s3880_s22 }
 0x10a   : > { %980 = vrot.lane.b32.xlu0 %v4343_v34, %s3880_s22 }
 0x10b   : > { %v4353_v46 = vpop.permute.xlu1 %621 }
 0x10c   : > { %6936 = vst [vmem:[#allocation23_spill] sm:$0xff] %v4353_v46  ;;  %v4355_v30 = vpop.permute.xlu0 %619 }
 0x10d   : > { %6937 = vst [vmem:[#allocation24_spill] sm:$0xff] %v4355_v30  ;;  %1001 = vrot.lane.b32.xlu1 %v4326_v32, %s3881_s23 }
 0x10e   : > { %999 = vrot.lane.b32.xlu0 %v4329_v58, %s3881_s23 }
 0x10f   : > { %v4361_v42 = vpop.permute.xlu1 %640 }
 0x110   : > { %6938 = vst [vmem:[#allocation25_spill] sm:$0xff] %v4361_v42  ;;  %v4363_v38 = vpop.permute.xlu0 %638 }
 0x111   : > { %6939 = vst [vmem:[#allocation26_spill] sm:$0xff] %v4363_v38  ;;  %1005 = vrot.lane.b32.xlu1 %v4340_v31, %s3881_s23 }
 0x112   : > { %1003 = vrot.lane.b32.xlu0 %v4343_v34, %s3881_s23 }
 0x113   : > { %v4369_v35 = vpop.permute.xlu1 %644 }
 0x114   : > { %6940 = vst [vmem:[#allocation27_spill] sm:$0xff] %v4369_v35  ;;  %v4371_v46 = vpop.permute.xlu0 %642 }
 0x115   : > { %6941 = vst [vmem:[#allocation28_spill] sm:$0xff] %v4371_v46  ;;  %1024 = vrot.lane.b32.xlu1 %v4326_v32, %s3882_s24 }
 0x116   : > { %1022 = vrot.lane.b32.xlu0 %v4329_v58, %s3882_s24 }
 0x117   : > { %v4377_v30 = vpop.permute.xlu1 %663 }
 0x118   : > { %6942 = vst [vmem:[#allocation29_spill] sm:$0xff] %v4377_v30  ;;  %v4379_v42 = vpop.permute.xlu0 %661 }
 0x119   : > { %6943 = vst [vmem:[#allocation30_spill] sm:$0xff] %v4379_v42  ;;  %1028 = vrot.lane.b32.xlu1 %v4340_v31, %s3882_s24 }
 0x11a   : > { %1026 = vrot.lane.b32.xlu0 %v4343_v34, %s3882_s24 }
 0x11b   : > { %v4385_v38 = vpop.permute.xlu1 %667 }
 0x11c   : > { %6944 = vst [vmem:[#allocation31_spill] sm:$0xff] %v4385_v38  ;;  %v4387_v35 = vpop.permute.xlu0 %665 }
 0x11d   : > { %6945 = vst [vmem:[#allocation32_spill] sm:$0xff] %v4387_v35  ;;  %1047 = vrot.lane.b32.xlu1 %v4326_v32, %s3883_s25 }
 0x11e   : > { %1045 = vrot.lane.b32.xlu0 %v4329_v58, %s3883_s25 }
 0x11f   : > { %v4393_v46 = vpop.permute.xlu1 %686 }
 0x120   : > { %6946 = vst [vmem:[#allocation33_spill] sm:$0xff] %v4393_v46  ;;  %v4395_v30 = vpop.permute.xlu0 %684 }
 0x121   : > { %6947 = vst [vmem:[#allocation34_spill] sm:$0xff] %v4395_v30  ;;  %1051 = vrot.lane.b32.xlu1 %v4340_v31, %s3883_s25 }
 0x122   : > { %1049 = vrot.lane.b32.xlu0 %v4343_v34, %s3883_s25 }
 0x123   : > { %v4401_v42 = vpop.permute.xlu1 %690 }
 0x124   : > { %6948 = vst [vmem:[#allocation35_spill] sm:$0xff] %v4401_v42  ;;  %v4403_v38 = vpop.permute.xlu0 %688 }
 0x125   : > { %6949 = vst [vmem:[#allocation36_spill] sm:$0xff] %v4403_v38  ;;  %1070 = vrot.lane.b32.xlu1 %v4326_v32, %s3884_s26 }
 0x126   : > { %1068 = vrot.lane.b32.xlu0 %v4329_v58, %s3884_s26 }
 0x127   : > { %v4409_v35 = vpop.permute.xlu1 %721 }
 0x128   : > { %6950 = vst [vmem:[#allocation37_spill] sm:$0xff] %v4409_v35  ;;  %v4411_v46 = vpop.permute.xlu0 %719 }
 0x129   : > { %6951 = vst [vmem:[#allocation38_spill] sm:$0xff] %v4411_v46  ;;  %1074 = vrot.lane.b32.xlu1 %v4340_v31, %s3884_s26 }
 0x12a   : > { %1072 = vrot.lane.b32.xlu0 %v4343_v34, %s3884_s26 }
 0x12b   : > { %v4417_v30 = vpop.permute.xlu1 %725 }
 0x12c   : > { %6952 = vst [vmem:[#allocation39_spill] sm:$0xff] %v4417_v30  ;;  %v4419_v42 = vpop.permute.xlu0 %723 }
 0x12d   : > { %6953 = vst [vmem:[#allocation40_spill] sm:$0xff] %v4419_v42  ;;  %1108 = vrot.lane.b32.xlu1 %v4326_v32, %s3885_s27 }
 0x12e   : > { %1106 = vrot.lane.b32.xlu0 %v4329_v58, %s3885_s27 }
 0x12f   : > { %v4425_v38 = vpop.permute.xlu1 %744 }
 0x130   : > { %6954 = vst [vmem:[#allocation41_spill] sm:$0xff] %v4425_v38  ;;  %v4427_v35 = vpop.permute.xlu0 %742 }
 0x131   : > { %6955 = vst [vmem:[#allocation42_spill] sm:$0xff] %v4427_v35  ;;  %1112 = vrot.lane.b32.xlu1 %v4340_v31, %s3885_s27 }
 0x132   : > { %1110 = vrot.lane.b32.xlu0 %v4343_v34, %s3885_s27 }
 0x133   : > { %v4433_v46 = vpop.permute.xlu1 %748 }
 0x134   : > { %6956 = vst [vmem:[#allocation43_spill] sm:$0xff] %v4433_v46  ;;  %v4435_v30 = vpop.permute.xlu0 %746 }
 0x135   : > { %6957 = vst [vmem:[#allocation44_spill] sm:$0xff] %v4435_v30  ;;  %1131 = vrot.lane.b32.xlu1 %v4326_v32, %s3886_s28 }
 0x136   : > { %1129 = vrot.lane.b32.xlu0 %v4329_v58, %s3886_s28 }
 0x137   : > { %v4441_v42 = vpop.permute.xlu1 %767 }
 0x138   : > { %6958 = vst [vmem:[#allocation45_spill] sm:$0xff] %v4441_v42  ;;  %v4443_v38 = vpop.permute.xlu0 %765 }
 0x139   : > { %6959 = vst [vmem:[#allocation46_spill] sm:$0xff] %v4443_v38  ;;  %1135 = vrot.lane.b32.xlu1 %v4340_v31, %s3886_s28 }
 0x13a   : > { %1133 = vrot.lane.b32.xlu0 %v4343_v34, %s3886_s28 }
 0x13b   : > { %v4449_v35 = vpop.permute.xlu1 %771 }
 0x13c   : > { %6960 = vst [vmem:[#allocation47_spill] sm:$0xff] %v4449_v35  ;;  %v4451_v46 = vpop.permute.xlu0 %769 }
 0x13d   : > { %6961 = vst [vmem:[#allocation48_spill] sm:$0xff] %v4451_v46  ;;  %1154 = vrot.lane.b32.xlu1 %v4326_v32, %s3887_s29  ;;  %v4498_v46 = vld [vmem:[%s3947_s21 + $0x24] sm:$0xff] }
 0x13e   : > { %1152 = vrot.lane.b32.xlu0 %v4329_v58, %s3887_s29 }
 0x13f   : > { %v4457_v30 = vpop.permute.xlu1 %790 }
 0x140   : > { %6962 = vst [vmem:[#allocation49_spill] sm:$0xff] %v4457_v30  ;;  %v4459_v42 = vpop.permute.xlu0 %788 }
 0x141   : > { %6963 = vst [vmem:[#allocation50_spill] sm:$0xff] %v4459_v42  ;;  %1158 = vrot.lane.b32.xlu1 %v4340_v31, %s3887_s29 }
 0x142   : > { %1156 = vrot.lane.b32.xlu0 %v4343_v34, %s3887_s29 }
 0x143   : > { %v4465_v38 = vpop.permute.xlu1 %794 }
 0x144   : > { %6964 = vst [vmem:[#allocation51_spill] sm:$0xff] %v4465_v38  ;;  %v4467_v35 = vpop.permute.xlu0 %792 }
 0x145   : > { %6965 = vst [vmem:[#allocation52_spill] sm:$0xff] %v4467_v35  ;;  %1177 = vrot.lane.b32.xlu1 %v4326_v32, %s3888_s30 }
 0x146   : > { %1175 = vrot.lane.b32.xlu0 %v4329_v58, %s3888_s30 }
 0x147   : > { %v4473_v30 = vpop.permute.xlu1 %813 }
 0x148   : > { %6966 = vst [vmem:[#allocation53_spill] sm:$0xff] %v4473_v30  ;;  %v4475_v42 = vpop.permute.xlu0 %811 }
 0x149   : > { %6967 = vst [vmem:[#allocation54_spill] sm:$0xff] %v4475_v42  ;;  %1181 = vrot.lane.b32.xlu1 %v4340_v31, %s3888_s30 }
 0x14a   : > { %1179 = vrot.lane.b32.xlu0 %v4343_v34, %s3888_s30 }
 0x14b   : > { %v4481_v38 = vpop.permute.xlu1 %817 }
 0x14c   : > { %6968 = vst [vmem:[#allocation55_spill] sm:$0xff] %v4481_v38  ;;  %v4483_v35 = vpop.permute.xlu0 %815  ;;  %v4501_v38 = vld [vmem:[%s3947_s21 + $0x4] sm:$0xff] }
 0x14d   : > { %6969 = vst [vmem:[#allocation56_spill] sm:$0xff] %v4483_v35  ;;  %1200 = vrot.lane.b32.xlu1 %v4326_v32, %s3889_s3 }
 0x14e   : > { %1198 = vrot.lane.b32.xlu0 %v4329_v58, %s3889_s3  ;;  %v4512_v58 = vld [vmem:[%s3947_s21 + $0x64] sm:$0xff] }
 0x14f   : > { %v4489_v30 = vpop.permute.xlu1 %851 }
 0x150   : > { %6970 = vst [vmem:[#allocation57_spill] sm:$0xff] %v4489_v30  ;;  %v4491_v42 = vpop.permute.xlu0 %849 }
 0x151   : > { %6971 = vst [vmem:[#allocation58_spill] sm:$0xff] %v4491_v42  ;;  %1204 = vrot.lane.b32.xlu1 %v4340_v31, %s3889_s3  ;;  %v4515_v31 = vld [vmem:[%s3947_s21 + $0x44] sm:$0xff] }
 0x152   : > { %1202 = vrot.lane.b32.xlu0 %v4343_v34, %s3889_s3 }
 0x153   : > { %v4503_v35 = vpop.permute.xlu1 %855 }
 0x154   : > { %6972 = vst [vmem:[#allocation59_spill] sm:$0xff] %v4503_v35  ;;  %v4505_v32 = vpop.permute.xlu0 %853 }
 0x155   : > { %6973 = vst [vmem:[#allocation60_spill] sm:$0xff] %v4505_v32  ;;  %1235 = vrot.lane.b32.xlu1 %v4498_v46, %s3880_s22 }
 0x156   : > { %1233 = vrot.lane.b32.xlu0 %v4501_v38, %s3880_s22 }
 0x157   : > { %v4517_v42 = vpop.permute.xlu1 %874 }
 0x158   : > { %6974 = vst [vmem:[#allocation61_spill] sm:$0xff] %v4517_v42  ;;  %v4519_v34 = vpop.permute.xlu0 %872 }
 0x159   : > { %6975 = vst [vmem:[#allocation62_spill] sm:$0xff] %v4519_v34  ;;  %1239 = vrot.lane.b32.xlu1 %v4512_v58, %s3880_s22 }
 0x15a   : > { %1237 = vrot.lane.b32.xlu0 %v4515_v31, %s3880_s22 }
 0x15b   : > { %v4525_v35 = vpop.permute.xlu1 %878 }
 0x15c   : > { %6976 = vst [vmem:[#allocation63_spill] sm:$0xff] %v4525_v35  ;;  %v4527_v32 = vpop.permute.xlu0 %876 }
 0x15d   : > { %6977 = vst [vmem:[#allocation64_spill] sm:$0xff] %v4527_v32  ;;  %1258 = vrot.lane.b32.xlu1 %v4498_v46, %s3881_s23 }
 0x15e   : > { %1256 = vrot.lane.b32.xlu0 %v4501_v38, %s3881_s23 }
 0x15f   : > { %v4533_v30 = vpop.permute.xlu1 %897 }
 0x160   : > { %6978 = vst [vmem:[#allocation65_spill] sm:$0xff] %v4533_v30  ;;  %v4535_v42 = vpop.permute.xlu0 %895 }
 0x161   : > { %6979 = vst [vmem:[#allocation66_spill] sm:$0xff] %v4535_v42  ;;  %1262 = vrot.lane.b32.xlu1 %v4512_v58, %s3881_s23 }
 0x162   : > { %1260 = vrot.lane.b32.xlu0 %v4515_v31, %s3881_s23 }
 0x163   : > { %v4541_v34 = vpop.permute.xlu1 %901 }
 0x164   : > { %6980 = vst [vmem:[#allocation67_spill] sm:$0xff] %v4541_v34  ;;  %v4543_v35 = vpop.permute.xlu0 %899 }
 0x165   : > { %6981 = vst [vmem:[#allocation68_spill] sm:$0xff] %v4543_v35  ;;  %1281 = vrot.lane.b32.xlu1 %v4498_v46, %s3882_s24 }
 0x166   : > { %1279 = vrot.lane.b32.xlu0 %v4501_v38, %s3882_s24 }
 0x167   : > { %v4549_v32 = vpop.permute.xlu1 %920 }
 0x168   : > { %6982 = vst [vmem:[#allocation69_spill] sm:$0xff] %v4549_v32  ;;  %v4551_v30 = vpop.permute.xlu0 %918 }
 0x169   : > { %6983 = vst [vmem:[#allocation70_spill] sm:$0xff] %v4551_v30  ;;  %1285 = vrot.lane.b32.xlu1 %v4512_v58, %s3882_s24 }
 0x16a   : > { %1283 = vrot.lane.b32.xlu0 %v4515_v31, %s3882_s24 }
 0x16b   : > { %v4557_v42 = vpop.permute.xlu1 %924 }
 0x16c   : > { %6984 = vst [vmem:[#allocation71_spill] sm:$0xff] %v4557_v42  ;;  %v4559_v34 = vpop.permute.xlu0 %922 }
 0x16d   : > { %6985 = vst [vmem:[#allocation72_spill] sm:$0xff] %v4559_v34  ;;  %1304 = vrot.lane.b32.xlu1 %v4498_v46, %s3883_s25 }
 0x16e   : > { %1302 = vrot.lane.b32.xlu0 %v4501_v38, %s3883_s25 }
 0x16f   : > { %v4565_v35 = vpop.permute.xlu1 %943 }
 0x170   : > { %6986 = vst [vmem:[#allocation73_spill] sm:$0xff] %v4565_v35  ;;  %v4567_v32 = vpop.permute.xlu0 %941 }
 0x171   : > { %6987 = vst [vmem:[#allocation74_spill] sm:$0xff] %v4567_v32  ;;  %1308 = vrot.lane.b32.xlu1 %v4512_v58, %s3883_s25 }
 0x172   : > { %1306 = vrot.lane.b32.xlu0 %v4515_v31, %s3883_s25 }
 0x173   : > { %v4573_v30 = vpop.permute.xlu1 %947 }
 0x174   : > { %6988 = vst [vmem:[#allocation75_spill] sm:$0xff] %v4573_v30  ;;  %v4575_v42 = vpop.permute.xlu0 %945 }
 0x175   : > { %6989 = vst [vmem:[#allocation76_spill] sm:$0xff] %v4575_v42  ;;  %1327 = vrot.lane.b32.xlu1 %v4498_v46, %s3884_s26 }
 0x176   : > { %1325 = vrot.lane.b32.xlu0 %v4501_v38, %s3884_s26 }
 0x177   : > { %v4581_v34 = vpop.permute.xlu1 %978 }
 0x178   : > { %6990 = vst [vmem:[#allocation77_spill] sm:$0xff] %v4581_v34  ;;  %v4583_v35 = vpop.permute.xlu0 %976 }
 0x179   : > { %6991 = vst [vmem:[#allocation78_spill] sm:$0xff] %v4583_v35  ;;  %1331 = vrot.lane.b32.xlu1 %v4512_v58, %s3884_s26 }
 0x17a   : > { %1329 = vrot.lane.b32.xlu0 %v4515_v31, %s3884_s26 }
 0x17b   : > { %v4589_v32 = vpop.permute.xlu1 %982 }
 0x17c   : > { %6992 = vst [vmem:[#allocation79_spill] sm:$0xff] %v4589_v32  ;;  %v4591_v30 = vpop.permute.xlu0 %980 }
 0x17d   : > { %6993 = vst [vmem:[#allocation80_spill] sm:$0xff] %v4591_v30  ;;  %1365 = vrot.lane.b32.xlu1 %v4498_v46, %s3885_s27 }
 0x17e   : > { %1363 = vrot.lane.b32.xlu0 %v4501_v38, %s3885_s27 }
 0x17f   : > { %v4597_v42 = vpop.permute.xlu1 %1001 }
 0x180   : > { %6994 = vst [vmem:[#allocation81_spill] sm:$0xff] %v4597_v42  ;;  %v4599_v34 = vpop.permute.xlu0 %999 }
 0x181   : > { %6995 = vst [vmem:[#allocation82_spill] sm:$0xff] %v4599_v34  ;;  %1369 = vrot.lane.b32.xlu1 %v4512_v58, %s3885_s27 }
 0x182   : > { %1367 = vrot.lane.b32.xlu0 %v4515_v31, %s3885_s27 }
 0x183   : > { %v4605_v35 = vpop.permute.xlu1 %1005 }
 0x184   : > { %6996 = vst [vmem:[#allocation83_spill] sm:$0xff] %v4605_v35  ;;  %v4607_v32 = vpop.permute.xlu0 %1003 }
 0x185   : > { %6997 = vst [vmem:[#allocation84_spill] sm:$0xff] %v4607_v32  ;;  %1388 = vrot.lane.b32.xlu1 %v4498_v46, %s3886_s28 }
 0x186   : > { %1386 = vrot.lane.b32.xlu0 %v4501_v38, %s3886_s28 }
 0x187   : > { %v4613_v30 = vpop.permute.xlu1 %1024 }
 0x188   : > { %6998 = vst [vmem:[#allocation85_spill] sm:$0xff] %v4613_v30  ;;  %v4615_v42 = vpop.permute.xlu0 %1022 }
 0x189   : > { %6999 = vst [vmem:[#allocation86_spill] sm:$0xff] %v4615_v42  ;;  %1392 = vrot.lane.b32.xlu1 %v4512_v58, %s3886_s28 }
 0x18a   : > { %1390 = vrot.lane.b32.xlu0 %v4515_v31, %s3886_s28 }
 0x18b   : > { %v4621_v34 = vpop.permute.xlu1 %1028 }
 0x18c   : > { %7000 = vst [vmem:[#allocation87_spill] sm:$0xff] %v4621_v34  ;;  %v4623_v35 = vpop.permute.xlu0 %1026 }
 0x18d   : > { %7001 = vst [vmem:[#allocation88_spill] sm:$0xff] %v4623_v35  ;;  %1411 = vrot.lane.b32.xlu1 %v4498_v46, %s3887_s29  ;;  %v4674_v35 = vld [vmem:[%s3947_s21 + $0x5] sm:$0xff] }
 0x18e   : > { %1409 = vrot.lane.b32.xlu0 %v4501_v38, %s3887_s29 }
 0x18f   : > { %v4629_v32 = vpop.permute.xlu1 %1047 }
 0x190   : > { %7002 = vst [vmem:[#allocation89_spill] sm:$0xff] %v4629_v32  ;;  %v4631_v30 = vpop.permute.xlu0 %1045 }
 0x191   : > { %7003 = vst [vmem:[#allocation90_spill] sm:$0xff] %v4631_v30  ;;  %1415 = vrot.lane.b32.xlu1 %v4512_v58, %s3887_s29 }
 0x192   : > { %1413 = vrot.lane.b32.xlu0 %v4515_v31, %s3887_s29 }
 0x193   : > { %v4637_v42 = vpop.permute.xlu1 %1051 }
 0x194   : > { %7004 = vst [vmem:[#allocation91_spill] sm:$0xff] %v4637_v42  ;;  %v4639_v34 = vpop.permute.xlu0 %1049 }
 0x195   : > { %7005 = vst [vmem:[#allocation92_spill] sm:$0xff] %v4639_v34  ;;  %1434 = vrot.lane.b32.xlu1 %v4498_v46, %s3888_s30 }
 0x196   : > { %1432 = vrot.lane.b32.xlu0 %v4501_v38, %s3888_s30 }
 0x197   : > { %v4645_v32 = vpop.permute.xlu1 %1070 }
 0x198   : > { %7006 = vst [vmem:[#allocation93_spill] sm:$0xff] %v4645_v32  ;;  %v4647_v30 = vpop.permute.xlu0 %1068 }
 0x199   : > { %7007 = vst [vmem:[#allocation94_spill] sm:$0xff] %v4647_v30  ;;  %1438 = vrot.lane.b32.xlu1 %v4512_v58, %s3888_s30 }
 0x19a   : > { %1436 = vrot.lane.b32.xlu0 %v4515_v31, %s3888_s30 }
 0x19b   : > { %v4653_v42 = vpop.permute.xlu1 %1074 }
 0x19c   : > { %7008 = vst [vmem:[#allocation95_spill] sm:$0xff] %v4653_v42  ;;  %v4655_v34 = vpop.permute.xlu0 %1072 }
 0x19d   : > { %7009 = vst [vmem:[#allocation96_spill] sm:$0xff] %v4655_v34  ;;  %1457 = vrot.lane.b32.xlu1 %v4498_v46, %s3889_s3  ;;  %v4677_v46 = vld [vmem:[%s3947_s21 + $0x25] sm:$0xff] }
 0x19e   : > { %1455 = vrot.lane.b32.xlu0 %v4501_v38, %s3889_s3 }
 0x19f   : > { %v4661_v32 = vpop.permute.xlu1 %1108 }
 0x1a0   : > { %7010 = vst [vmem:[#allocation97_spill] sm:$0xff] %v4661_v32  ;;  %v4663_v30 = vpop.permute.xlu0 %1106 }
 0x1a1   : > { %7011 = vst [vmem:[#allocation98_spill] sm:$0xff] %v4663_v30  ;;  %1461 = vrot.lane.b32.xlu1 %v4512_v58, %s3889_s3  ;;  %v4688_v30 = vld [vmem:[%s3947_s21 + $0x45] sm:$0xff] }
 0x1a2   : > { %1459 = vrot.lane.b32.xlu0 %v4515_v31, %s3889_s3  ;;  %v4691_v31 = vld [vmem:[%s3947_s21 + $0x65] sm:$0xff] }
 0x1a3   : > { %v4669_v42 = vpop.permute.xlu1 %1112 }
 0x1a4   : > { %7012 = vst [vmem:[#allocation99_spill] sm:$0xff] %v4669_v42  ;;  %v4671_v34 = vpop.permute.xlu0 %1110 }
 0x1a5   : > { %7013 = vst [vmem:[#allocation100_spill] sm:$0xff] %v4671_v34  ;;  %1480 = vrot.lane.b32.xlu1 %v4677_v46, %s3880_s22 }
 0x1a6   : > { %1478 = vrot.lane.b32.xlu0 %v4674_v35, %s3880_s22 }
 0x1a7   : > { %v4683_v38 = vpop.permute.xlu1 %1131 }
 0x1a8   : > { %7014 = vst [vmem:[#allocation101_spill] sm:$0xff] %v4683_v38  ;;  %v4685_v58 = vpop.permute.xlu0 %1129 }
 0x1a9   : > { %7015 = vst [vmem:[#allocation102_spill] sm:$0xff] %v4685_v58  ;;  %1484 = vrot.lane.b32.xlu1 %v4691_v31, %s3880_s22 }
 0x1aa   : > { %1482 = vrot.lane.b32.xlu0 %v4688_v30, %s3880_s22 }
 0x1ab   : > { %v4697_v42 = vpop.permute.xlu1 %1135 }
 0x1ac   : > { %7016 = vst [vmem:[#allocation103_spill] sm:$0xff] %v4697_v42  ;;  %v4699_v34 = vpop.permute.xlu0 %1133 }
 0x1ad   : > { %7017 = vst [vmem:[#allocation104_spill] sm:$0xff] %v4699_v34  ;;  %1503 = vrot.lane.b32.xlu1 %v4677_v46, %s3881_s23 }
 0x1ae   : > { %1501 = vrot.lane.b32.xlu0 %v4674_v35, %s3881_s23 }
 0x1af   : > { %v4705_v58 = vpop.permute.xlu1 %1154 }
 0x1b0   : > { %7018 = vst [vmem:[#allocation105_spill] sm:$0xff] %v4705_v58  ;;  %v4707_v38 = vpop.permute.xlu0 %1152 }
 0x1b1   : > { %7019 = vst [vmem:[#allocation106_spill] sm:$0xff] %v4707_v38  ;;  %1507 = vrot.lane.b32.xlu1 %v4691_v31, %s3881_s23 }
 0x1b2   : > { %1505 = vrot.lane.b32.xlu0 %v4688_v30, %s3881_s23 }
 0x1b3   : > { %v4713_v32 = vpop.permute.xlu1 %1158 }
 0x1b4   : > { %7020 = vst [vmem:[#allocation107_spill] sm:$0xff] %v4713_v32  ;;  %v4715_v42 = vpop.permute.xlu0 %1156 }
 0x1b5   : > { %7021 = vst [vmem:[#allocation108_spill] sm:$0xff] %v4715_v42  ;;  %1526 = vrot.lane.b32.xlu1 %v4677_v46, %s3882_s24 }
 0x1b6   : > { %1524 = vrot.lane.b32.xlu0 %v4674_v35, %s3882_s24 }
 0x1b7   : > { %v4721_v34 = vpop.permute.xlu1 %1177 }
 0x1b8   : > { %7022 = vst [vmem:[#allocation109_spill] sm:$0xff] %v4721_v34  ;;  %v4723_v58 = vpop.permute.xlu0 %1175 }
 0x1b9   : > { %7023 = vst [vmem:[#allocation110_spill] sm:$0xff] %v4723_v58  ;;  %1530 = vrot.lane.b32.xlu1 %v4691_v31, %s3882_s24 }
 0x1ba   : > { %1528 = vrot.lane.b32.xlu0 %v4688_v30, %s3882_s24 }
 0x1bb   : > { %v4729_v38 = vpop.permute.xlu1 %1181 }
 0x1bc   : > { %7024 = vst [vmem:[#allocation111_spill] sm:$0xff] %v4729_v38  ;;  %v4731_v32 = vpop.permute.xlu0 %1179 }
 0x1bd   : > { %7025 = vst [vmem:[#allocation112_spill] sm:$0xff] %v4731_v32  ;;  %1549 = vrot.lane.b32.xlu1 %v4677_v46, %s3883_s25 }
 0x1be   : > { %1547 = vrot.lane.b32.xlu0 %v4674_v35, %s3883_s25 }
 0x1bf   : > { %v4737_v42 = vpop.permute.xlu1 %1200 }
 0x1c0   : > { %7026 = vst [vmem:[#allocation113_spill] sm:$0xff] %v4737_v42  ;;  %v4739_v34 = vpop.permute.xlu0 %1198 }
 0x1c1   : > { %7027 = vst [vmem:[#allocation114_spill] sm:$0xff] %v4739_v34  ;;  %1553 = vrot.lane.b32.xlu1 %v4691_v31, %s3883_s25 }
 0x1c2   : > { %1551 = vrot.lane.b32.xlu0 %v4688_v30, %s3883_s25 }
 0x1c3   : > { %v4745_v58 = vpop.permute.xlu1 %1204 }
 0x1c4   : > { %7028 = vst [vmem:[#allocation115_spill] sm:$0xff] %v4745_v58  ;;  %v4747_v38 = vpop.permute.xlu0 %1202 }
 0x1c5   : > { %7029 = vst [vmem:[#allocation116_spill] sm:$0xff] %v4747_v38  ;;  %1572 = vrot.lane.b32.xlu1 %v4677_v46, %s3884_s26 }
 0x1c6   : > { %1570 = vrot.lane.b32.xlu0 %v4674_v35, %s3884_s26 }
 0x1c7   : > { %v4753_v32 = vpop.permute.xlu1 %1235 }
 0x1c8   : > { %7030 = vst [vmem:[#allocation117_spill] sm:$0xff] %v4753_v32  ;;  %v4755_v42 = vpop.permute.xlu0 %1233 }
 0x1c9   : > { %7031 = vst [vmem:[#allocation118_spill] sm:$0xff] %v4755_v42  ;;  %1576 = vrot.lane.b32.xlu1 %v4691_v31, %s3884_s26 }
 0x1ca   : > { %1574 = vrot.lane.b32.xlu0 %v4688_v30, %s3884_s26 }
 0x1cb   : > { %v4761_v34 = vpop.permute.xlu1 %1239 }
 0x1cc   : > { %7032 = vst [vmem:[#allocation119_spill] sm:$0xff] %v4761_v34  ;;  %v4763_v58 = vpop.permute.xlu0 %1237 }
 0x1cd   : > { %7033 = vst [vmem:[#allocation120_spill] sm:$0xff] %v4763_v58  ;;  %1595 = vrot.lane.b32.xlu1 %v4677_v46, %s3885_s27  ;;  %v214_v58 = vsub.f32 %v4080_v11, %v4677_v46  ;;  %v215_v11 = vsub.f32 %v4071_v8, %v4688_v30 }
 0x1ce   : > { %1593 = vrot.lane.b32.xlu0 %v4674_v35, %s3885_s27 }
 0x1cf   : > { %v4769_v38 = vpop.permute.xlu1 %1258  ;;  %v217_v50 = vmul.f32 %v214_v58, %v214_v58  ;;  %v321_v58 = vsub.f32 %v3961_v3, %v4677_v46 }
 0x1d0   : > { %7034 = vst [vmem:[#allocation121_spill] sm:$0xff] %v4769_v38  ;;  %v4771_v32 = vpop.permute.xlu0 %1256 }
 0x1d1   : > { %7035 = vst [vmem:[#allocation122_spill] sm:$0xff] %v4771_v32  ;;  %1599 = vrot.lane.b32.xlu1 %v4691_v31, %s3885_s27  ;;  %v213_v32 = vsub.f32 %v4073_v9, %v4674_v35 }
 0x1d2   : > { %1597 = vrot.lane.b32.xlu0 %v4688_v30, %s3885_s27 }
 0x1d3   : > { %v4777_v42 = vpop.permute.xlu1 %1262 }
 0x1d4   : > { %7036 = vst [vmem:[#allocation123_spill] sm:$0xff] %v4777_v42  ;;  %v4779_v34 = vpop.permute.xlu0 %1260  ;;  %v216_v42 = vmul.f32 %v213_v32, %v213_v32 }
 0x1d5   : > { %7037 = vst [vmem:[#allocation124_spill] sm:$0xff] %v4779_v34  ;;  %1618 = vrot.lane.b32.xlu1 %v4677_v46, %s3886_s28 }
 0x1d6   : > { %1616 = vrot.lane.b32.xlu0 %v4674_v35, %s3886_s28  ;;  %v218_v9 = vadd.f32 %v217_v50, %v216_v42  ;;  %v322_v42 = vsub.f32 %v3950_v0, %v4688_v30  ;;  %v237_v0 = vsub.f32 %v4086_v12, %v4677_v46 }
 0x1d7   : > { %v4789_v38 = vpop.permute.xlu1 %1281 }
 0x1d8   : > { %7038 = vst [vmem:[#allocation125_spill] sm:$0xff] %v4789_v38  ;;  %v4791_v26 = vpop.permute.xlu0 %1279  ;;  %v320_v38 = vsub.f32 %v3953_v1, %v4674_v35  ;;  %v324_v1 = vmul.f32 %v321_v58, %v321_v58  ;;  %v326_v62 = vmul.f32 %v322_v42, %v322_v42  ;;  %v578_v58 = vsub.f32 %v4030_v4, %v4677_v46 }
 0x1d9   : > { %7039 = vst [vmem:[#allocation126_spill] sm:$0xff] %v4791_v26  ;;  %1622 = vrot.lane.b32.xlu1 %v4691_v31, %s3886_s28  ;;  %v219_v26 = vmul.f32 %v215_v11, %v215_v11  ;;  %v240_v4 = vmul.f32 %v237_v0, %v237_v0  ;;  %v306_v0 = vsub.f32 %v4131_v24, %v4677_v46 }
 0x1da   : > { %1620 = vrot.lane.b32.xlu0 %v4688_v30, %s3886_s28  ;;  %v323_v50 = vmul.f32 %v320_v38, %v320_v38  ;;  %v236_v38 = vsub.f32 %v4088_v13, %v4674_v35  ;;  %v261_v13 = vsub.f32 %v4110_v19, %v4688_v30 }
 0x1db   : > { %v4799_v34 = vpop.permute.xlu1 %1285 }
 0x1dc   : > { %7040 = vst [vmem:[#allocation127_spill] sm:$0xff] %v4799_v34  ;;  %v4801_v54 = vpop.permute.xlu0 %1283  ;;  %v220_v34 = vadd.f32 %v219_v26, %v218_v9  ;;  %v577_v26 = vsub.f32 %v4033_v5, %v4674_v35  ;;  %v260_v9 = vsub.f32 %v4101_v16, %v4677_v46  ;;  %v259_v5 = vsub.f32 %v4103_v17, %v4674_v35 }
 0x1dd   : > { %7041 = vst [vmem:[#allocation128_spill] sm:$0xff] %v4801_v54  ;;  %1641 = vrot.lane.b32.xlu1 %v4677_v46, %s3887_s29  ;;  %v239_v16 = vmul.f32 %v236_v38, %v236_v38  ;;  %v283_v17 = vsub.f32 %v4116_v20, %v4677_v46  ;;  %v305_v20 = vsub.f32 %v4133_v25, %v4674_v35 }
 0x1de   : > { %1639 = vrot.lane.b32.xlu0 %v4674_v35, %s3887_s29  ;;  %v221_v11 = vsub.f32 0.0, %v220_v34  ;;  %v238_v34 = vsub.f32 %v4095_v15, %v4688_v30  ;;  %v579_v15 = vsub.f32 %v4041_v7, %v4688_v30  ;;  %v263_v19 = vmul.f32 %v260_v9, %v260_v9 }
 0x1df   : > { %v4811_v8 = vpop.permute.xlu1 %1304  ;;  %v265_v38 = vmul.f32 %v261_v13, %v261_v13  ;;  %v286_v9 = vmul.f32 %v283_v17, %v283_v17  ;;  %v224_v17 = vsub.f32 %v4078_v10, %v4691_v31  ;;  %v4906_v10 = vld [vmem:[%s3947_s21 + $0x60] sm:$0xff] }
 0x1e0   : > { %7042 = vst [vmem:[#allocation129_spill] sm:$0xff] %v4811_v8  ;;  %v4813_v32 = vpop.permute.xlu0 %1302  ;;  %v325_v8 = vadd.f32 %v324_v1, %v323_v50  ;;  %v222_v12 = vmul.f32 1.442695, %v221_v11  ;;  %v262_v11 = vmul.f32 %v259_v5, %v259_v5  ;;  %v583_v24 = vmul.f32 %v579_v15, %v579_v15 }
 0x1e1   : > { %7043 = vst [vmem:[#allocation130_spill] sm:$0xff] %v4813_v32  ;;  %1645 = vrot.lane.b32.xlu1 %v4691_v31, %s3887_s29  ;;  %v343_v15 = vsub.f32 %v4148_v29, %v4674_v35 }
 0x1e2   : > { %1643 = vrot.lane.b32.xlu0 %v4688_v30, %s3887_s29  ;;  %v327_v1 = vadd.f32 %v326_v62, %v325_v8  ;;  %v282_v62 = vsub.f32 %v4118_v21, %v4674_v35  ;;  %v242_v8 = vmul.f32 %v238_v34, %v238_v34  ;;  %3553 = vpow2.f32 %v222_v12 }
 0x1e3   : > { %v4821_v3 = vpop.permute.xlu1 %1308  ;;  %v241_v34 = vadd.f32 %v240_v4, %v239_v16  ;;  %v4891_v16 = vld [vmem:[%s3947_s21 + $0x6] sm:$0xff] }
 0x1e4   : > { %7044 = vst [vmem:[#allocation131_spill] sm:$0xff] %v4821_v3  ;;  %v4823_v54 = vpop.permute.xlu0 %1306  ;;  %v580_v3 = vmul.f32 %v577_v26, %v577_v26  ;;  %v328_v21 = vsub.f32 0.0, %v327_v1  ;;  %v285_v5 = vmul.f32 %v282_v62, %v282_v62  ;;  %v247_v62 = vsub.f32 %v4093_v14, %v4691_v31 }
 0x1e5   : > { %7045 = vst [vmem:[#allocation132_spill] sm:$0xff] %v4823_v54  ;;  %1664 = vrot.lane.b32.xlu1 %v4677_v46, %s3888_s30  ;;  %v581_v54 = vmul.f32 %v578_v58, %v578_v58  ;;  %v264_v58 = vadd.f32 %v263_v19, %v262_v11  ;;  %v243_v13 = vadd.f32 %v242_v8, %v241_v34 }
 0x1e6   : > { %1662 = vrot.lane.b32.xlu0 %v4674_v35, %s3888_s30  ;;  %v329_v4 = vmul.f32 1.442695, %v328_v21 }
 0x1e7   : > { %v4843_v42 = vpop.permute.xlu1 %1327  ;;  %v582_v12 = vadd.f32 %v581_v54, %v580_v3  ;;  %v266_v32 = vadd.f32 %v265_v38, %v264_v58  ;;  %v344_v3 = vsub.f32 %v4146_v28, %v4677_v46  ;;  %v244_v28 = vsub.f32 0.0, %v243_v13 }
 0x1e8   : > { %7046 = vst [vmem:[#allocation133_spill] sm:$0xff] %v4843_v42  ;;  %v4845_v50 = vpop.permute.xlu0 %1325  ;;  %v308_v42 = vmul.f32 %v305_v20, %v305_v20  ;;  %v345_v20 = vsub.f32 %v4161_v33, %v4688_v30  ;;  %3555 = vpow2.f32 %v329_v4  ;;  %v4917_v33 = vld [vmem:[%s3947_s21 + $0x66] sm:$0xff] }
 0x1e9   : > { %7047 = vst [vmem:[#allocation134_spill] sm:$0xff] %v4845_v50  ;;  %1668 = vrot.lane.b32.xlu1 %v4691_v31, %s3888_s30  ;;  %v284_v50 = vsub.f32 %v4125_v23, %v4688_v30  ;;  %v307_v23 = vsub.f32 %v4140_v27, %v4688_v30  ;;  %v287_v27 = vadd.f32 %v286_v9, %v285_v5  ;;  %v267_v38 = vsub.f32 0.0, %v266_v32  ;;  %v4920_v32 = vld [vmem:[%s3947_s21 + $0x46] sm:$0xff] }
 0x1ea   : > { %1666 = vrot.lane.b32.xlu0 %v4688_v30, %s3888_s30  ;;  %v4897_v8 = vadd.f32 %v583_v24, %v582_v12  ;;  %v347_v34 = vmul.f32 %v344_v3, %v344_v3  ;;  %v4922_v9 = vand.u32 2147483647, %v247_v62  ;;  %v366_v5 = vsub.f32 %v4175_v37, %v4674_v35 }
 0x1eb   : > { %v4859_v7 = vpop.permute.xlu1 %1331  ;;  %v311_v54 = vmul.f32 %v307_v23, %v307_v23  ;;  %v245_v24 = vmul.f32 1.442695, %v244_v28  ;;  %v349_v4 = vmul.f32 %v345_v20, %v345_v20  ;;  %v268_v3 = vmul.f32 1.442695, %v267_v38 }
 0x1ec   : > { %7048 = vst [vmem:[#allocation135_spill] sm:$0xff] %v4859_v7  ;;  %v4861_v26 = vpop.permute.xlu0 %1329  ;;  %v288_v7 = vmul.f32 %v284_v50, %v284_v50  ;;  %v4888_v50 = vld [vmem:[%s3947_s21 + $0x26] sm:$0xff]  ;;  %v390_v37 = vsub.f32 %v4189_v40, %v4677_v46  ;;  %v413_v40 = vsub.f32 %v4205_v44, %v4677_v46 }
 0x1ed   : > { %7049 = vst [vmem:[#allocation136_spill] sm:$0xff] %v4861_v26  ;;  %1687 = vrot.lane.b32.xlu1 %v4677_v46, %s3889_s3  ;;  %v309_v26 = vmul.f32 %v306_v0, %v306_v0  ;;  %3557 = vpow2.f32 %v245_v24 }
 0x1ee   : > { %1685 = vrot.lane.b32.xlu0 %v4674_v35, %s3889_s3  ;;  %v289_v29 = vadd.f32 %v288_v7, %v287_v27  ;;  %v346_v7 = vmul.f32 %v343_v15, %v343_v15  ;;  %v389_v15 = vsub.f32 %v4191_v41, %v4674_v35  ;;  %v412_v41 = vsub.f32 %v4207_v45, %v4674_v35 }
 0x1ef   : > { %v4875_v25 = vpop.permute.xlu1 %1365  ;;  %v310_v0 = vadd.f32 %v309_v26, %v308_v42  ;;  %v367_v42 = vsub.f32 %v4173_v36, %v4677_v46  ;;  %v225_v26 = vand.u32 2147483647, %v224_v17  ;;  %v368_v36 = vsub.f32 %v4183_v39, %v4688_v30  ;;  %v3554_v27 = vpop.eup %3553 }
 0x1f0   : > { %v4877_v1 = vpop.permute.xlu0 %1363  ;;  %v290_v13 = vsub.f32 0.0, %v289_v29  ;;  %v293_v39 = vsub.f32 %v4123_v22, %v4691_v31  ;;  %v348_v62 = vadd.f32 %v347_v34, %v346_v7  ;;  %v369_v29 = vmul.f32 %v366_v5, %v366_v5  ;;  %v7054_v22 = vld [vmem:[#allocation14_spill] sm:$0xff] }
 0x1f1   : > { %1691 = vrot.lane.b32.xlu1 %v4691_v31, %s3889_s3  ;;  %v312_v21 = vadd.f32 %v311_v54, %v310_v0  ;;  %v270_v54 = vsub.f32 %v4108_v18, %v4691_v31  ;;  %v370_v28 = vmul.f32 %v367_v42, %v367_v42  ;;  %v391_v0 = vsub.f32 %v4199_v43, %v4688_v30 }
 0x1f2   : > { %1689 = vrot.lane.b32.xlu0 %v4688_v30, %s3889_s3  ;;  %v4955_v23 = vmul.f32 %v3554_v27, %v225_v26  ;;  %v291_v14 = vmul.f32 1.442695, %v290_v13  ;;  %v372_v34 = vmul.f32 %v368_v36, %v368_v36  ;;  %v393_v7 = vmul.f32 %v390_v37, %v390_v37 }
 0x1f3   : > { %v4899_v19 = vpop.permute.xlu1 %1369  ;;  %v313_v17 = vsub.f32 0.0, %v312_v21  ;;  %v350_v21 = vadd.f32 %v349_v4, %v348_v62  ;;  %v392_v42 = vmul.f32 %v389_v15, %v389_v15  ;;  %v414_v43 = vsub.f32 %v4215_v47, %v4688_v30 }
 0x1f4   : > { %v4901_v11 = vpop.permute.xlu0 %1367  ;;  %3559 = vpow2.f32 %v268_v3  ;;  %v436_v45 = vsub.f32 %v4221_v48, %v4677_v46  ;;  %v435_v26 = vsub.f32 %v4223_v49, %v4674_v35  ;;  %v371_v5 = vadd.f32 %v370_v28, %v369_v29 }
 0x1f5   : > { %1722 = vrot.lane.b32.xlu1 %v4888_v50, %s3880_s22  ;;  %v314_v44 = vmul.f32 1.442695, %v313_v17  ;;  %v395_v24 = vmul.f32 %v391_v0, %v391_v0  ;;  %v416_v13 = vmul.f32 %v413_v40, %v413_v40  ;;  %v415_v4 = vmul.f32 %v412_v41, %v412_v41 }
 0x1f6   : > { %1720 = vrot.lane.b32.xlu0 %v4891_v16, %s3880_s22  ;;  %3561 = vpow2.f32 %v291_v14  ;;  %v437_v27 = vsub.f32 %v4231_v51, %v4688_v30  ;;  %v471_v3 = vsub.f32 %v4237_v52, %v4677_v46  ;;  %v470_v48 = vsub.f32 %v4239_v53, %v4674_v35  ;;  %v4981_v14 = vpop.eup %3555 }
 0x1f7   : > { %v4927_v58 = vpop.permute.xlu1 %1388  ;;  %v351_v37 = vsub.f32 0.0, %v350_v21  ;;  %v373_v49 = vadd.f32 %v372_v34, %v371_v5  ;;  %v394_v15 = vadd.f32 %v393_v7, %v392_v42  ;;  %v418_v17 = vmul.f32 %v414_v43, %v414_v43 }
 0x1f8   : > { %v4929_v12 = vpop.permute.xlu0 %1386  ;;  %v439_v62 = vmul.f32 %v436_v45, %v436_v45  ;;  %v438_v51 = vmul.f32 %v435_v26, %v435_v26  ;;  %v472_v52 = vsub.f32 %v4247_v55, %v4688_v30  ;;  %v494_v53 = vsub.f32 %v4253_v56, %v4677_v46 }
 0x1f9   : > { %1726 = vrot.lane.b32.xlu1 %v4917_v33, %s3880_s22  ;;  %3563 = vpow2.f32 %v314_v44  ;;  %v396_v28 = vadd.f32 %v395_v24, %v394_v15  ;;  %v417_v29 = vadd.f32 %v416_v13, %v415_v4  ;;  %v493_v0 = vsub.f32 %v4255_v57, %v4674_v35 }
 0x1fa   : > { %1724 = vrot.lane.b32.xlu0 %v4920_v32, %s3880_s22  ;;  %v441_v21 = vmul.f32 %v437_v27, %v437_v27  ;;  %v474_v34 = vmul.f32 %v471_v3, %v471_v3  ;;  %v473_v7 = vmul.f32 %v470_v48, %v470_v48  ;;  %v495_v42 = vsub.f32 %v4263_v59, %v4688_v30 }
 0x1fb   : > { %v4951_v20 = vpop.permute.xlu1 %1392  ;;  %v352_v55 = vmul.f32 1.442695, %v351_v37  ;;  %v374_v43 = vsub.f32 0.0, %v373_v49  ;;  %v517_v56 = vsub.f32 %v4269_v60, %v4677_v46  ;;  %v516_v44 = vsub.f32 %v4271_v61, %v4674_v35 }
 0x1fc   : > { %v4953_v38 = vpop.permute.xlu0 %1390  ;;  %v419_v57 = vadd.f32 %v418_v17, %v417_v29  ;;  %v440_v45 = vadd.f32 %v439_v62, %v438_v51  ;;  %v476_v26 = vmul.f32 %v472_v52, %v472_v52  ;;  %v497_v5 = vmul.f32 %v494_v53, %v494_v53  ;;  %v7051_v17 = vld [vmem:[#allocation12_spill] sm:$0xff] }
 0x1fd   : > { %1745 = vrot.lane.b32.xlu1 %v4888_v50, %s3881_s23  ;;  %v496_v24 = vmul.f32 %v493_v0, %v493_v0  ;;  %v518_v59 = vsub.f32 %v4279_v63, %v4688_v30  ;;  %v540_v60 = vsub.f32 %v4285_v2, %v4677_v46  ;;  %v539_v61 = vsub.f32 %v4287_v6, %v4674_v35  ;;  %v3558_v6 = vpop.eup %3557 }
 0x1fe   : > { %1743 = vrot.lane.b32.xlu0 %v4891_v16, %s3881_s23  ;;  %v397_v27 = vsub.f32 0.0, %v396_v28  ;;  %v442_v3 = vadd.f32 %v441_v21, %v440_v45  ;;  %v475_v48 = vadd.f32 %v474_v34, %v473_v7  ;;  %v499_v37 = vmul.f32 %v495_v42, %v495_v42  ;;  %v7053_v42 = vld [vmem:[#allocation13_spill] sm:$0xff] }
 0x1ff   : > { %v4967_v36 = vpop.permute.xlu1 %1411  ;;  %v271_v49 = vand.u32 2147483647, %v270_v54  ;;  %v520_v15 = vmul.f32 %v517_v56, %v517_v56  ;;  %v519_v63 = vmul.f32 %v516_v44, %v516_v44  ;;  %v541_v2 = vsub.f32 %v7051_v17, %v4688_v30 }
 0x200   : > { %v4969_v47 = vpop.permute.xlu0 %1409  ;;  %v294_v62 = vand.u32 2147483647, %v293_v39  ;;  %v375_v51 = vmul.f32 1.442695, %v374_v43  ;;  %v420_v52 = vsub.f32 0.0, %v419_v57  ;;  %v477_v18 = vadd.f32 %v476_v26, %v475_v48 }
 0x201   : > { %1749 = vrot.lane.b32.xlu1 %v4917_v33, %s3881_s23  ;;  %v3560_v54 = vpop.eup %3559  ;;  %v498_v53 = vadd.f32 %v497_v5, %v496_v24  ;;  %v522_v28 = vmul.f32 %v518_v59, %v518_v59  ;;  %v543_v29 = vmul.f32 %v540_v60, %v540_v60  ;;  %v542_v0 = vmul.f32 %v539_v61, %v539_v61  ;;  %v7055_v5 = vld [vmem:[#allocation2_spill] sm:$0xff]  ;;  %v7056_v59 = vld [vmem:[#allocation16_spill] sm:$0xff] }
 0x202   : > { %1747 = vrot.lane.b32.xlu0 %v4920_v32, %s3881_s23  ;;  %3565 = vpow2.f32 %v352_v55  ;;  %v398_v7 = vmul.f32 1.442695, %v397_v27  ;;  %v563_v56 = vsub.f32 %v7053_v42, %v4677_v46  ;;  %v562_v39 = vsub.f32 %v7054_v22, %v4674_v35 }
 0x203   : > { %v4989_v40 = vpop.permute.xlu1 %1415  ;;  %v3562_v43 = vpop.eup %3561  ;;  %v443_v44 = vsub.f32 0.0, %v442_v3  ;;  %v500_v57 = vadd.f32 %v499_v37, %v498_v53  ;;  %v521_v45 = vadd.f32 %v520_v15, %v519_v63  ;;  %v545_v26 = vmul.f32 %v541_v2, %v541_v2 }
 0x204   : > { %7050 = vst [vmem:[#allocation137_spill] sm:$0xff] %v4989_v40  ;;  %v4991_v41 = vpop.permute.xlu0 %1413  ;;  %v249_v55 = vmul.f32 %v3558_v6, %v4922_v9  ;;  %v316_v24 = vsub.f32 %v7055_v5, %v4691_v31  ;;  %3567 = vpow2.f32 %v375_v51  ;;  %v564_v60 = vsub.f32 %v7056_v59, %v4688_v30  ;;  %v7060_v5 = vld [vmem:[#allocation3_spill] sm:$0xff]  ;;  %v7061_v59 = vld [vmem:[#allocation4_spill] sm:$0xff] }
 0x205   : > { %1768 = vrot.lane.b32.xlu1 %v4888_v50, %s3882_s24  ;;  %v421_v61 = vmul.f32 1.442695, %v420_v52  ;;  %v478_v27 = vsub.f32 0.0, %v477_v18  ;;  %v523_v3 = vadd.f32 %v522_v28, %v521_v45  ;;  %v544_v48 = vadd.f32 %v543_v29, %v542_v0  ;;  %v3794_v45 = vld [vmem:[%s3947_s21 + $0x2] sm:$0xff] }
 0x206   : > { %1766 = vrot.lane.b32.xlu0 %v4891_v16, %s3882_s24  ;;  %v3564_v63 = vpop.eup %3563  ;;  %v272_v17 = vmul.f32 %v3560_v54, %v271_v49  ;;  %3569 = vpow2.f32 %v398_v7  ;;  %v566_v2 = vmul.f32 %v563_v56, %v563_v56  ;;  %v565_v9 = vmul.f32 %v562_v39, %v562_v39 }
 0x207   : > { %v5009_v13 = vpop.permute.xlu1 %1434  ;;  %v7057_v6 = vsub.f32 %v4906_v10, %v4691_v31  ;;  %v444_v53 = vmul.f32 1.442695, %v443_v44  ;;  %v501_v42 = vsub.f32 0.0, %v500_v57  ;;  %v546_v22 = vadd.f32 %v545_v26, %v544_v48  ;;  %v3795_v26 = vld [vmem:[%s3947_s21 + $0x22] sm:$0xff] }
 0x208   : > { %v5011_v4 = vpop.permute.xlu0 %1432  ;;  %v250_v52 = vadd.f32 %v249_v55, %v4955_v23  ;;  %v295_v49 = vmul.f32 %v3562_v43, %v294_v62  ;;  %v317_v18 = vand.u32 2147483647, %v316_v24  ;;  %v568_v54 = vmul.f32 %v564_v60, %v564_v60 }
 0x209   : > { %1772 = vrot.lane.b32.xlu1 %v4917_v33, %s3882_s24  ;;  %v332_v51 = vand.u32 2147483647, %v7057_v6  ;;  %3571 = vpow2.f32 %v421_v61  ;;  %v479_v28 = vmul.f32 1.442695, %v478_v27  ;;  %v524_v10 = vsub.f32 0.0, %v523_v3  ;;  %v7062_v27 = vld [vmem:[#allocation5_spill] sm:$0xff] }
 0x20a   : > { %1770 = vrot.lane.b32.xlu0 %v4920_v32, %s3882_s24  ;;  %v7058_v29 = vsub.f32 0.0, %v4897_v8  ;;  %v273_v39 = vadd.f32 %v272_v17, %v250_v52  ;;  %v318_v44 = vmul.f32 %v3564_v63, %v317_v18  ;;  %v567_v57 = vadd.f32 %v566_v2, %v565_v9 }
 0x20b   : > { %v5025_v21 = vpop.permute.xlu1 %1438  ;;  %v834_v23 = vsub.f32 %v3794_v45, %v4674_v35  ;;  %3573 = vpow2.f32 %v444_v53  ;;  %v502_v62 = vmul.f32 1.442695, %v501_v42  ;;  %v547_v43 = vsub.f32 0.0, %v546_v22 }
 0x20c   : > { %7052 = vst [vmem:[#allocation12_spill] sm:$0xff] %v5025_v21  ;;  %v5027_v34 = vpop.permute.xlu0 %1436  ;;  %v586_v0 = vmul.f32 1.442695, %v7058_v29  ;;  %v835_v55 = vsub.f32 %v3795_v26, %v4677_v46  ;;  %v296_v8 = vadd.f32 %v295_v49, %v273_v39  ;;  %v354_v24 = vsub.f32 %v7060_v5, %v4691_v31  ;;  %v7069_v26 = vld [vmem:[#allocation22_spill] sm:$0xff] }
 0x20d   : > { %1791 = vrot.lane.b32.xlu1 %v4888_v50, %s3883_s25  ;;  %v377_v60 = vsub.f32 %v7061_v59, %v4691_v31  ;;  %v569_v61 = vadd.f32 %v568_v54, %v567_v57  ;;  %v400_v3 = vsub.f32 %v7062_v27, %v4691_v31  ;;  %3575 = vpow2.f32 %v479_v28  ;;  %v3796_v54 = vld [vmem:[%s3947_s21 + $0x42] sm:$0xff]  ;;  %v7071_v59 = vld [vmem:[#allocation20_spill] sm:$0xff] }
 0x20e   : > { %1789 = vrot.lane.b32.xlu0 %v4891_v16, %s3883_s25  ;;  %v525_v48 = vmul.f32 1.442695, %v524_v10  ;;  %v319_v2 = vadd.f32 %v318_v44, %v296_v8  ;;  %v333_v9 = vmul.f32 %v4981_v14, %v332_v51  ;;  %3577 = vpow2.f32 %v586_v0  ;;  %v7064_v51 = vld [vmem:[#allocation17_spill] sm:$0xff]  ;;  %v7065_v0 = vld [vmem:[#allocation18_spill] sm:$0xff] }
 0x20f   : > { %v5042_v37 = vpop.permute.xlu1 %1457  ;;  %v3566_v6 = vpop.eup %3565  ;;  %3579 = vpow2.f32 %v502_v62  ;;  %v548_v53 = vmul.f32 1.442695, %v547_v43  ;;  %v837_v42 = vmul.f32 %v834_v23, %v834_v23  ;;  %v838_v22 = vmul.f32 %v835_v55, %v835_v55  ;;  %v7068_v62 = vld [vmem:[#allocation21_spill] sm:$0xff]  ;;  %v7070_v5 = vld [vmem:[#allocation6_spill] sm:$0xff] }
 0x210   : > { %v5044_v15 = vpop.permute.xlu0 %1455  ;;  %v355_v52 = vand.u32 2147483647, %v354_v24  ;;  %v378_v49 = vand.u32 2147483647, %v377_v60  ;;  %v570_v18 = vsub.f32 0.0, %v569_v61  ;;  %v836_v28 = vsub.f32 %v3796_v54, %v4688_v30 }
 0x211   : > { %1795 = vrot.lane.b32.xlu1 %v4917_v33, %s3883_s25  ;;  %v3568_v10 = vpop.eup %3567  ;;  %v401_v14 = vand.u32 2147483647, %v400_v3  ;;  %3581 = vpow2.f32 %v525_v48  ;;  %v601_v29 = vsub.f32 %v7064_v51, %v4677_v46  ;;  %v600_v39 = vsub.f32 %v7065_v0, %v4674_v35  ;;  %v7072_v48 = vld [vmem:[#allocation24_spill] sm:$0xff] }
 0x212   : > { %1793 = vrot.lane.b32.xlu0 %v4920_v32, %s3883_s25  ;;  %v334_v45 = vadd.f32 %v333_v9, %v319_v2  ;;  %v356_v23 = vmul.f32 %v3566_v6, %v355_v52  ;;  %v624_v43 = vsub.f32 %v7068_v62, %v4677_v46  ;;  %v623_v55 = vsub.f32 %v7069_v26, %v4674_v35  ;;  %v7073_v6 = vld [vmem:[#allocation7_spill] sm:$0xff] }
 0x213   : > { %v5056_v7 = vpop.permute.xlu1 %1461  ;;  %v3570_v8 = vpop.eup %3569  ;;  %v423_v24 = vsub.f32 %v7070_v5, %v4691_v31  ;;  %3583 = vpow2.f32 %v548_v53  ;;  %v602_v60 = vsub.f32 %v7071_v59, %v4688_v30  ;;  %v839_v61 = vadd.f32 %v838_v22, %v837_v42  ;;  %v3797_v59 = vld [vmem:[%s3947_s21 + $0x61] sm:$0xff] }
 0x214   : > { %7059 = vst [vmem:[#allocation13_spill] sm:$0xff] %v5056_v7  ;;  %v5058_v56 = vpop.permute.xlu0 %1459  ;;  %v379_v27 = vmul.f32 %v3568_v10, %v378_v49  ;;  %v571_v3 = vmul.f32 1.442695, %v570_v18  ;;  %v625_v2 = vsub.f32 %v7072_v48, %v4688_v30  ;;  %v840_v9 = vmul.f32 %v836_v28, %v836_v28  ;;  %v7076_v18 = vld [vmem:[#allocation8_spill] sm:$0xff]  ;;  %v7080_v7 = vld [vmem:[#allocation25_spill] sm:$0xff] }
 0x215   : > { %1814 = vrot.lane.b32.xlu1 %v4888_v50, %s3884_s26  ;;  %v446_v53 = vsub.f32 %v7073_v6, %v4691_v31  ;;  %v604_v52 = vmul.f32 %v601_v29, %v601_v29  ;;  %v603_v54 = vmul.f32 %v600_v39, %v600_v39  ;;  %v357_v0 = vadd.f32 %v356_v23, %v334_v45 }
 0x216   : > { %1812 = vrot.lane.b32.xlu0 %v4891_v16, %s3884_s26  ;;  %v3572_v22 = vpop.eup %3571  ;;  %v402_v62 = vmul.f32 %v3570_v8, %v401_v14  ;;  %v627_v26 = vmul.f32 %v624_v43, %v624_v43  ;;  %v626_v49 = vmul.f32 %v623_v55, %v623_v55  ;;  %v424_v10 = vand.u32 2147483647, %v423_v24  ;;  %v7077_v55 = vld [vmem:[#allocation9_spill] sm:$0xff] }
 0x217   : > { %v5074_v63 = vpop.permute.xlu1 %1480  ;;  %v481_v5 = vsub.f32 %v7076_v18, %v4691_v31  ;;  %v588_v28 = vsub.f32 %v3797_v59, %v4691_v31  ;;  %v606_v48 = vmul.f32 %v602_v60, %v602_v60  ;;  %v380_v39 = vadd.f32 %v379_v27, %v357_v0  ;;  %v7081_v27 = vld [vmem:[#allocation26_spill] sm:$0xff]  ;;  %v7083_v0 = vld [vmem:[#allocation11_spill] sm:$0xff] }
 0x218   : > { %v5076_v17 = vpop.permute.xlu0 %1478  ;;  %v3574_v29 = vpop.eup %3573  ;;  %3585 = vpow2.f32 %v571_v3  ;;  %v629_v14 = vmul.f32 %v625_v2, %v625_v2  ;;  %v841_v45 = vadd.f32 %v840_v9, %v839_v61  ;;  %v425_v23 = vmul.f32 %v3572_v22, %v424_v10 }
 0x219   : > { %7063 = vst [vmem:[#allocation14_spill] sm:$0xff] %v5076_v17  ;;  %1818 = vrot.lane.b32.xlu1 %v4917_v33, %s3884_s26  ;;  %v447_v43 = vand.u32 2147483647, %v446_v53  ;;  %v504_v8 = vsub.f32 %v7077_v55, %v4691_v31  ;;  %v605_v24 = vadd.f32 %v604_v52, %v603_v54  ;;  %v403_v59 = vadd.f32 %v402_v62, %v380_v39  ;;  %v7082_v53 = vld [vmem:[#allocation10_spill] sm:$0xff] }
 0x21a   : > { %1816 = vrot.lane.b32.xlu0 %v4920_v32, %s3884_s26  ;;  %v3576_v18 = vpop.eup %3575  ;;  %v647_v21 = vsub.f32 %v7080_v7, %v4677_v46  ;;  %v646_v3 = vsub.f32 %v7081_v27, %v4674_v35  ;;  %v482_v9 = vand.u32 2147483647, %v481_v5  ;;  %v527_v22 = vsub.f32 %v7082_v53, %v4691_v31 }
 0x21b   : > { %v5089_v44 = vpop.permute.xlu1 %1484  ;;  %v3578_v61 = vpop.eup %3577  ;;  %v448_v2 = vmul.f32 %v3574_v29, %v447_v43  ;;  %v607_v52 = vadd.f32 %v606_v48, %v605_v24  ;;  %v550_v7 = vsub.f32 %v7083_v0, %v4691_v31  ;;  %v842_v10 = vsub.f32 0.0, %v841_v45 }
 0x21c   : > { %7066 = vst [vmem:[#allocation2_spill] sm:$0xff] %v5089_v44  ;;  %v5091_v57 = vpop.permute.xlu0 %1482  ;;  %v628_v44 = vadd.f32 %v627_v26, %v626_v49  ;;  %v3580_v54 = vpop.eup %3579  ;;  %v7084_v26 = vld [vmem:[#allocation28_spill] sm:$0xff]  ;;  %v426_v5 = vadd.f32 %v425_v23, %v403_v59  ;;  %v483_v29 = vmul.f32 %v3576_v18, %v482_v9  ;;  %v505_v39 = vand.u32 2147483647, %v504_v8 }
 0x21d   : > { %7067 = vst [vmem:[#allocation16_spill] sm:$0xff] %v5091_v57  ;;  %1852 = vrot.lane.b32.xlu1 %v4888_v50, %s3885_s27  ;;  %v648_v49 = vsub.f32 %v7084_v26, %v4688_v30  ;;  %v589_v24 = vand.u32 2147483647, %v588_v28  ;;  %v650_v27 = vmul.f32 %v647_v21, %v647_v21  ;;  %v649_v53 = vmul.f32 %v646_v3, %v646_v3  ;;  %v7087_v21 = vld [vmem:[#allocation29_spill] sm:$0xff]  ;;  %v7088_v3 = vld [vmem:[#allocation30_spill] sm:$0xff] }
 0x21e   : > { %1850 = vrot.lane.b32.xlu0 %v4891_v16, %s3885_s27  ;;  %v630_v62 = vadd.f32 %v629_v14, %v628_v44  ;;  %v3582_v55 = vpop.eup %3581  ;;  %v506_v40 = vmul.f32 %v3580_v54, %v505_v39  ;;  %v608_v0 = vsub.f32 0.0, %v607_v52  ;;  %v551_v14 = vand.u32 2147483647, %v550_v7  ;;  %v7091_v52 = vld [vmem:[#allocation15_spill] sm:$0xff] }
 0x21f   : > { %v5109_v51 = vpop.permute.xlu1 %1503  ;;  %v652_v23 = vmul.f32 %v648_v49, %v648_v49  ;;  %v843_v8 = vmul.f32 1.442695, %v842_v10  ;;  %v670_v28 = vsub.f32 %v7087_v21, %v4677_v46  ;;  %v573_v54 = vsub.f32 %v7091_v52, %v4691_v31  ;;  %v7097_v21 = vld [vmem:[#allocation19_spill] sm:$0xff] }
 0x220   : > { %7074 = vst [vmem:[#allocation3_spill] sm:$0xff] %v5109_v51  ;;  %v5111_v42 = vpop.permute.xlu0 %1501  ;;  %v3584_v44 = vpop.eup %3583  ;;  %v631_v45 = vsub.f32 0.0, %v630_v62  ;;  %v651_v26 = vadd.f32 %v650_v27, %v649_v53  ;;  %v609_v49 = vmul.f32 1.442695, %v608_v0 }
 0x221   : > { %7075 = vst [vmem:[#allocation4_spill] sm:$0xff] %v5111_v42  ;;  %1856 = vrot.lane.b32.xlu1 %v4917_v33, %s3885_s27  ;;  %v552_v62 = vmul.f32 %v3584_v44, %v551_v14  ;;  %v673_v27 = vmul.f32 %v670_v28, %v670_v28  ;;  %3587 = vpow2.f32 %v843_v8  ;;  %v574_v44 = vand.u32 2147483647, %v573_v54  ;;  %v7095_v14 = vld [vmem:[#allocation33_spill] sm:$0xff]  ;;  %v7098_v28 = vld [vmem:[#allocation23_spill] sm:$0xff] }
 0x222   : > { %1854 = vrot.lane.b32.xlu0 %v4920_v32, %s3885_s27  ;;  %v653_v10 = vadd.f32 %v652_v23, %v651_v26  ;;  %v611_v8 = vsub.f32 %v7097_v21, %v4691_v31  ;;  %3589 = vpow2.f32 %v609_v49  ;;  %v7100_v49 = vld [vmem:[#allocation37_spill] sm:$0xff] }
 0x223   : > { %v5123_v6 = vpop.permute.xlu1 %1507 }
 0x224   : > { %7078 = vst [vmem:[#allocation5_spill] sm:$0xff] %v5123_v6  ;;  %v5125_v60 = vpop.permute.xlu0 %1505  ;;  %v449_v6 = vadd.f32 %v448_v2, %v426_v5  ;;  %v669_v2 = vsub.f32 %v7088_v3, %v4674_v35  ;;  %v7092_v5 = vld [vmem:[#allocation32_spill] sm:$0xff]  ;;  %v634_v3 = vsub.f32 %v7098_v28, %v4691_v31  ;;  %v654_v52 = vsub.f32 0.0, %v653_v10  ;;  %v3800_v10 = vld [vmem:[%s3947_s21 + $0x23] sm:$0xff] }
 0x225   : > { %7079 = vst [vmem:[#allocation17_spill] sm:$0xff] %v5125_v60  ;;  %1875 = vrot.lane.b32.xlu1 %v4888_v50, %s3886_s28  ;;  %v528_v60 = vand.u32 2147483647, %v527_v22  ;;  %v3586_v39 = vpop.eup %3585 }
 0x226   : > { %1873 = vrot.lane.b32.xlu0 %v4891_v16, %s3886_s28  ;;  %v484_v18 = vadd.f32 %v483_v29, %v449_v6  ;;  %v5163_v6 = vmul.f32 %v3578_v61, %v589_v24  ;;  %v671_v29 = vsub.f32 %v7092_v5, %v4688_v30  ;;  %v7096_v61 = vld [vmem:[#allocation34_spill] sm:$0xff]  ;;  %v728_v5 = vsub.f32 %v7100_v49, %v4677_v46 }
 0x227   : > { %v5141_v43 = vpop.permute.xlu1 %1526  ;;  %v529_v59 = vmul.f32 %v3582_v55, %v528_v60  ;;  %v632_v60 = vmul.f32 1.442695, %v631_v45  ;;  %v692_v24 = vsub.f32 %v7096_v61, %v4674_v35  ;;  %v5176_v45 = vld [vmem:[%s3947_s21 + $0x62] sm:$0xff]  ;;  %v5224_v42 = vand.u32 2147483647, %v634_v3 }
 0x228   : > { %7085 = vst [vmem:[#allocation18_spill] sm:$0xff] %v5141_v43  ;;  %v5143_v48 = vpop.permute.xlu0 %1524  ;;  %v507_v7 = vadd.f32 %v506_v40, %v484_v18  ;;  %v672_v40 = vmul.f32 %v669_v2, %v669_v2  ;;  %v693_v18 = vsub.f32 %v7095_v14, %v4677_v46  ;;  %v575_v2 = vmul.f32 %v3586_v39, %v574_v44  ;;  %v3799_v39 = vld [vmem:[%s3947_s21 + $0x3] sm:$0xff] }
 0x229   : > { %7086 = vst [vmem:[#allocation21_spill] sm:$0xff] %v5143_v48  ;;  %1879 = vrot.lane.b32.xlu1 %v4917_v33, %s3886_s28  ;;  %3591 = vpow2.f32 %v632_v60  ;;  %v675_v54 = vmul.f32 %v671_v29, %v671_v29  ;;  %v695_v23 = vmul.f32 %v692_v24, %v692_v24  ;;  %v1091_v60 = vsub.f32 %v3799_v39, %v4674_v35  ;;  %v7107_v24 = vld [vmem:[#allocation27_spill] sm:$0xff] }
 0x22a   : > { %1877 = vrot.lane.b32.xlu0 %v4920_v32, %s3886_s28  ;;  %v530_v55 = vadd.f32 %v529_v59, %v507_v7  ;;  %v674_v26 = vadd.f32 %v673_v27, %v672_v40  ;;  %v7099_v7 = vld [vmem:[#allocation36_spill] sm:$0xff]  ;;  %v696_v28 = vmul.f32 %v693_v18, %v693_v18  ;;  %v1092_v29 = vsub.f32 %v3800_v10, %v4677_v46  ;;  %v3801_v48 = vld [vmem:[%s3947_s21 + $0x43] sm:$0xff] }
 0x22b   : > { %v5153_v9 = vpop.permute.xlu1 %1530  ;;  %v5202_v27 = vand.u32 2147483647, %v611_v8  ;;  %v7104_v40 = vld [vmem:[#allocation40_spill] sm:$0xff]  ;;  %v657_v8 = vsub.f32 %v7107_v24, %v4691_v31  ;;  %v655_v39 = vmul.f32 1.442695, %v654_v52  ;;  %v1093_v43 = vsub.f32 %v3801_v48, %v4688_v30  ;;  %v7111_v48 = vld [vmem:[#allocation45_spill] sm:$0xff] }
 0x22c   : > { %7089 = vst [vmem:[#allocation22_spill] sm:$0xff] %v5153_v9  ;;  %v5155_v22 = vpop.permute.xlu0 %1528  ;;  %v553_v59 = vadd.f32 %v552_v62, %v530_v55  ;;  %v694_v62 = vsub.f32 %v7099_v7, %v4688_v30  ;;  %v7101_v55 = vld [vmem:[#allocation38_spill] sm:$0xff]  ;;  %v729_v44 = vsub.f32 %v7104_v40, %v4688_v30  ;;  %v7105_v7 = vld [vmem:[#allocation41_spill] sm:$0xff]  ;;  %v676_v10 = vadd.f32 %v675_v54, %v674_v26 }
 0x22d   : > { %7090 = vst [vmem:[#allocation6_spill] sm:$0xff] %v5155_v22  ;;  %1898 = vrot.lane.b32.xlu1 %v4888_v50, %s3887_s29  ;;  %v727_v14 = vsub.f32 %v7101_v55, %v4674_v35  ;;  %v751_v49 = vsub.f32 %v7105_v7, %v4677_v46  ;;  %v7106_v55 = vld [vmem:[#allocation42_spill] sm:$0xff]  ;;  %v731_v9 = vmul.f32 %v728_v5, %v728_v5  ;;  %v7108_v7 = vld [vmem:[#allocation44_spill] sm:$0xff]  ;;  %3593 = vpow2.f32 %v655_v39 }
 0x22e   : > { %1896 = vrot.lane.b32.xlu0 %v4891_v16, %s3887_s29  ;;  %v576_v18 = vadd.f32 %v575_v2, %v553_v59  ;;  %v698_v40 = vmul.f32 %v694_v62, %v694_v62  ;;  %v697_v22 = vadd.f32 %v696_v28, %v695_v23  ;;  %v1094_v59 = vmul.f32 %v1091_v60, %v1091_v60  ;;  %v7112_v62 = vld [vmem:[#allocation46_spill] sm:$0xff] }
 0x22f   : > { %v5167_v53 = vpop.permute.xlu1 %1549  ;;  %v1095_v2 = vmul.f32 %v1092_v29, %v1092_v29  ;;  %v733_v52 = vmul.f32 %v729_v44, %v729_v44  ;;  %v754_v54 = vmul.f32 %v751_v49, %v751_v49  ;;  %v774_v3 = vsub.f32 %v7111_v48, %v4677_v46  ;;  %v5241_v44 = vpop.eup %3587  ;;  %v5244_v49 = vld [vmem:[%s3947_s21 + $0x45] sm:$0xff]  ;;  %v7116_v46 = vld [vmem:[#allocation49_spill] sm:$0xff] }
 0x230   : > { %7093 = vst [vmem:[#allocation20_spill] sm:$0xff] %v5167_v53  ;;  %v5169_v0 = vpop.permute.xlu0 %1547  ;;  %v5231_v23 = vadd.f32 %v5163_v6, %v576_v18  ;;  %v773_v5 = vsub.f32 %v7112_v62, %v4674_v35  ;;  %v7115_v6 = vld [vmem:[#allocation48_spill] sm:$0xff]  ;;  %v5249_v24 = vld [vmem:[%s3947_s21 + $0x25] sm:$0xff]  ;;  %v3590_v48 = vpop.eup %3589 }
 0x231   : > { %7094 = vst [vmem:[#allocation24_spill] sm:$0xff] %v5169_v0  ;;  %1902 = vrot.lane.b32.xlu1 %v4917_v33, %s3887_s29  ;;  %v752_v0 = vsub.f32 %v7108_v7, %v4688_v30  ;;  %v677_v30 = vsub.f32 0.0, %v676_v10  ;;  %v775_v18 = vsub.f32 %v7115_v6, %v5244_v49  ;;  %v5254_v39 = vld [vmem:[%s3947_s21 + $0x5] sm:$0xff]  ;;  %v1097_v7 = vmul.f32 %v1093_v43, %v1093_v43 }
 0x232   : > { %1900 = vrot.lane.b32.xlu0 %v4920_v32, %s3887_s29  ;;  %v777_v6 = vmul.f32 %v774_v3, %v774_v3  ;;  %v7120_v43 = vld [vmem:[#allocation54_spill] sm:$0xff] }
 0x233   : > { %v5194_v61 = vpop.permute.xlu1 %1553  ;;  %v756_v28 = vmul.f32 %v752_v0, %v752_v0  ;;  %v1096_v0 = vadd.f32 %v1095_v2, %v1094_v59  ;;  %v678_v62 = vmul.f32 1.442695, %v677_v30  ;;  %v7123_v30 = vld [vmem:[#allocation31_spill] sm:$0xff] }
 0x234   : > { %7102 = vst [vmem:[#allocation7_spill] sm:$0xff] %v5194_v61  ;;  %v5196_v21 = vpop.permute.xlu0 %1551  ;;  %v750_v61 = vsub.f32 %v7106_v55, %v4674_v35  ;;  %v797_v35 = vsub.f32 %v7116_v46, %v5249_v24  ;;  %v776_v46 = vmul.f32 %v773_v5, %v773_v5  ;;  %v779_v5 = vmul.f32 %v775_v18, %v775_v18 }
 0x235   : > { %7103 = vst [vmem:[#allocation8_spill] sm:$0xff] %v5196_v21  ;;  %1921 = vrot.lane.b32.xlu1 %v4888_v50, %s3888_s30  ;;  %v730_v21 = vmul.f32 %v727_v14, %v727_v14  ;;  %v699_v14 = vadd.f32 %v698_v40, %v697_v22  ;;  %3595 = vpow2.f32 %v678_v62 }
 0x236   : > { %1919 = vrot.lane.b32.xlu0 %v4891_v16, %s3888_s30  ;;  %v753_v26 = vmul.f32 %v750_v61, %v750_v61  ;;  %v3592_v59 = vpop.eup %3591 }
 0x237   : > { %v5218_v53 = vpop.permute.xlu1 %1572  ;;  %v732_v61 = vadd.f32 %v731_v9, %v730_v21  ;;  %v7117_v9 = vld [vmem:[#allocation50_spill] sm:$0xff]  ;;  %v5258_v21 = vand.u32 2147483647, %v657_v8  ;;  %v700_v8 = vsub.f32 0.0, %v699_v14  ;;  %v800_v14 = vmul.f32 %v797_v35, %v797_v35 }
 0x238   : > { %7109 = vst [vmem:[#allocation9_spill] sm:$0xff] %v5218_v53  ;;  %v5220_v55 = vpop.permute.xlu0 %1570  ;;  %v796_v22 = vsub.f32 %v7117_v9, %v5254_v39  ;;  %v755_v40 = vadd.f32 %v754_v54, %v753_v26  ;;  %v819_v26 = vsub.f32 %v7120_v43, %v5254_v39  ;;  %v778_v35 = vadd.f32 %v777_v6, %v776_v46 }
 0x239   : > { %7110 = vst [vmem:[#allocation25_spill] sm:$0xff] %v5220_v55  ;;  %1925 = vrot.lane.b32.xlu1 %v4917_v33, %s3888_s30  ;;  %v734_v10 = vadd.f32 %v733_v52, %v732_v61  ;;  %v7119_v52 = vld [vmem:[#allocation53_spill] sm:$0xff] }
 0x23a   : > { %1923 = vrot.lane.b32.xlu0 %v4920_v32, %s3888_s30  ;;  %v757_v2 = vadd.f32 %v756_v28, %v755_v40  ;;  %v820_v54 = vsub.f32 %v7119_v52, %v5249_v24  ;;  %v799_v28 = vmul.f32 %v796_v22, %v796_v22  ;;  %v7124_v52 = vld [vmem:[#allocation56_spill] sm:$0xff]  ;;  %v780_v6 = vadd.f32 %v779_v5, %v778_v35  ;;  %v5316_v5 = vld [vmem:[%s3947_s21 + $0x67] sm:$0xff] }
 0x23b   : > { %v5237_v60 = vpop.permute.xlu1 %1576  ;;  %v735_v40 = vsub.f32 0.0, %v734_v10  ;;  %v821_v43 = vsub.f32 %v7124_v52, %v5244_v49  ;;  %v701_v10 = vmul.f32 1.442695, %v700_v8 }
 0x23c   : > { %7113 = vst [vmem:[#allocation26_spill] sm:$0xff] %v5237_v60  ;;  %v5239_v29 = vpop.permute.xlu0 %1574  ;;  %v7118_v60 = vld [vmem:[#allocation52_spill] sm:$0xff]  ;;  %v801_v46 = vadd.f32 %v800_v14, %v799_v28  ;;  %v5319_v14 = vld [vmem:[%s3947_s21 + $0x47] sm:$0xff] }
 0x23d   : > { %7114 = vst [vmem:[#allocation10_spill] sm:$0xff] %v5239_v29  ;;  %1944 = vrot.lane.b32.xlu1 %v4888_v50, %s3889_s3  ;;  %v798_v9 = vsub.f32 %v7118_v60, %v5244_v49  ;;  %v613_v60 = vmul.f32 %v3590_v48, %v5202_v27  ;;  %v5282_v29 = vadd.f32 %v1097_v7, %v1096_v0  ;;  %v5294_v27 = vld [vmem:[%s3947_s21 + $0x7] sm:$0xff]  ;;  %v758_v48 = vsub.f32 0.0, %v757_v2 }
 0x23e   : > { %1942 = vrot.lane.b32.xlu0 %v4891_v16, %s3889_s3  ;;  %v5275_v16 = vld [vmem:[%s3947_s21 + $0x65] sm:$0xff]  ;;  %v823_v0 = vmul.f32 %v820_v54, %v820_v54  ;;  %v822_v7 = vmul.f32 %v819_v26, %v819_v26  ;;  %3597 = vpow2.f32 %v701_v10 }
 0x23f   : > { %v5270_v50 = vpop.permute.xlu1 %1595  ;;  %v680_v3 = vsub.f32 %v7123_v30, %v5275_v16  ;;  %v7125_v30 = vld [vmem:[#allocation35_spill] sm:$0xff]  ;;  %v802_v22 = vmul.f32 %v798_v9, %v798_v9  ;;  %v736_v9 = vmul.f32 1.442695, %v735_v40  ;;  %v7129_v2 = vld [vmem:[#allocation58_spill] sm:$0xff]  ;;  %v7130_v40 = vld [vmem:[#allocation60_spill] sm:$0xff] }
 0x240   : > { %7121 = vst [vmem:[#allocation11_spill] sm:$0xff] %v5270_v50  ;;  %v5272_v61 = vpop.permute.xlu0 %1593  ;;  %v703_v18 = vsub.f32 %v7125_v30, %v5275_v16  ;;  %v825_v30 = vmul.f32 %v821_v43, %v821_v43  ;;  %v7128_v50 = vld [vmem:[#allocation57_spill] sm:$0xff]  ;;  %v857_v54 = vsub.f32 %v7129_v2, %v5254_v39  ;;  %v824_v28 = vadd.f32 %v823_v0, %v822_v7 }
 0x241   : > { %7122 = vst [vmem:[#allocation28_spill] sm:$0xff] %v5272_v61  ;;  %1948 = vrot.lane.b32.xlu1 %v4917_v33, %s3889_s3  ;;  %v5291_v61 = vld [vmem:[%s3947_s21 + $0x27] sm:$0xff]  ;;  %v5301_v62 = vand.u32 2147483647, %v680_v3  ;;  %v858_v8 = vsub.f32 %v7128_v50, %v5249_v24  ;;  %v803_v26 = vadd.f32 %v802_v22, %v801_v46  ;;  %v759_v50 = vmul.f32 1.442695, %v758_v48 }
 0x242   : > { %1946 = vrot.lane.b32.xlu0 %v4920_v32, %s3889_s3  ;;  %v636_v32 = vmul.f32 %v3592_v59, %v5224_v42  ;;  %v614_v42 = vadd.f32 %v613_v60, %v5231_v23  ;;  %v5312_v59 = vand.u32 2147483647, %v703_v18  ;;  %v859_v43 = vsub.f32 %v7130_v40, %v5244_v49  ;;  %v3594_v23 = vpop.eup %3593  ;;  %v7133_v22 = vld [vmem:[#allocation61_spill] sm:$0xff]  ;;  %v7134_v3 = vld [vmem:[#allocation62_spill] sm:$0xff] }
 0x243   : > { %v5296_v52 = vpop.permute.xlu1 %1599  ;;  %v781_v18 = vsub.f32 0.0, %v780_v6  ;;  %v881_v46 = vsub.f32 %v7133_v22, %v5249_v24  ;;  %3599 = vpow2.f32 %v736_v9  ;;  %v826_v10 = vadd.f32 %v825_v30, %v824_v28  ;;  %v7137_v22 = vld [vmem:[#allocation66_spill] sm:$0xff]  ;;  %v7138_v30 = vld [vmem:[#allocation39_spill] sm:$0xff] }
 0x244   : > { %7126 = vst [vmem:[#allocation29_spill] sm:$0xff] %v5296_v52  ;;  %v5298_v33 = vpop.permute.xlu0 %1597  ;;  %v637_v60 = vadd.f32 %v636_v32, %v614_v42  ;;  %v880_v52 = vsub.f32 %v7134_v3, %v5254_v39  ;;  %v861_v48 = vmul.f32 %v858_v8, %v858_v8  ;;  %v860_v0 = vmul.f32 %v857_v54, %v857_v54  ;;  %v7135_v32 = vld [vmem:[#allocation64_spill] sm:$0xff]  ;;  %v7136_v42 = vld [vmem:[#allocation65_spill] sm:$0xff] }
 0x245   : > { %7127 = vst [vmem:[#allocation30_spill] sm:$0xff] %v5298_v33  ;;  %1979 = vrot.lane.b32.xlu1 %v5291_v61, %s3880_s22  ;;  %v804_v7 = vsub.f32 0.0, %v803_v26  ;;  %v882_v6 = vsub.f32 %v7135_v32, %v5244_v49  ;;  %v904_v40 = vsub.f32 %v7136_v42, %v5249_v24  ;;  %v903_v3 = vsub.f32 %v7137_v22, %v5254_v39  ;;  %v7141_v33 = vld [vmem:[#allocation68_spill] sm:$0xff]  ;;  %v7142_v22 = vld [vmem:[#allocation69_spill] sm:$0xff] }
 0x246   : > { %1977 = vrot.lane.b32.xlu0 %v5294_v27, %s3880_s22  ;;  %v659_v9 = vmul.f32 %v3594_v23, %v5258_v21  ;;  %v738_v8 = vsub.f32 %v7138_v30, %v5275_v16  ;;  %3601 = vpow2.f32 %v759_v50  ;;  %v863_v54 = vmul.f32 %v859_v43, %v859_v43  ;;  %v7143_v23 = vld [vmem:[#allocation70_spill] sm:$0xff] }
 0x247   : > { %v5323_v35 = vpop.permute.xlu1 %1618  ;;  %v782_v26 = vmul.f32 1.442695, %v781_v18  ;;  %v883_v32 = vmul.f32 %v880_v52, %v880_v52  ;;  %v905_v42 = vsub.f32 %v7141_v33, %v5244_v49  ;;  %v827_v55 = vsub.f32 0.0, %v826_v10  ;;  %v7144_v10 = vld [vmem:[#allocation43_spill] sm:$0xff] }
 0x248   : > { %7131 = vst [vmem:[#allocation15_spill] sm:$0xff] %v5323_v35  ;;  %v5325_v2 = vpop.permute.xlu0 %1616  ;;  %v884_v35 = vmul.f32 %v881_v46, %v881_v46  ;;  %v862_v53 = vadd.f32 %v861_v48, %v860_v0  ;;  %v927_v21 = vsub.f32 %v7142_v22, %v5249_v24  ;;  %v926_v30 = vsub.f32 %v7143_v23, %v5254_v39  ;;  %v3596_v46 = vpop.eup %3595  ;;  %v7145_v22 = vld [vmem:[#allocation72_spill] sm:$0xff] }
 0x249   : > { %7132 = vst [vmem:[#allocation32_spill] sm:$0xff] %v5325_v2  ;;  %1983 = vrot.lane.b32.xlu1 %v5316_v5, %s3880_s22  ;;  %v805_v50 = vmul.f32 1.442695, %v804_v7  ;;  %v886_v43 = vmul.f32 %v882_v6, %v882_v6  ;;  %v907_v52 = vmul.f32 %v904_v40, %v904_v40  ;;  %v906_v18 = vmul.f32 %v903_v3, %v903_v3  ;;  %v7148_v7 = vld [vmem:[#allocation73_spill] sm:$0xff]  ;;  %v7149_v40 = vld [vmem:[#allocation74_spill] sm:$0xff] }
 0x24a   : > { %1981 = vrot.lane.b32.xlu0 %v5319_v14, %s3880_s22  ;;  %v660_v33 = vadd.f32 %v659_v9, %v637_v60  ;;  %v761_v48 = vsub.f32 %v7144_v10, %v5275_v16  ;;  %v864_v0 = vadd.f32 %v863_v54, %v862_v53  ;;  %v885_v51 = vadd.f32 %v884_v35, %v883_v32  ;;  %v7150_v54 = vld [vmem:[#allocation76_spill] sm:$0xff] }
 0x24b   : > { %v5344_v28 = vpop.permute.xlu1 %1622  ;;  %v909_v57 = vmul.f32 %v905_v42, %v905_v42  ;;  %v950_v6 = vsub.f32 %v7148_v7, %v5249_v24  ;;  %v949_v3 = vsub.f32 %v7149_v40, %v5254_v39  ;;  %3603 = vpow2.f32 %v782_v26 }
 0x24c   : > { %7139 = vst [vmem:[#allocation33_spill] sm:$0xff] %v5344_v28  ;;  %v5346_v2 = vpop.permute.xlu0 %1620  ;;  %v928_v28 = vsub.f32 %v7145_v22, %v5244_v49  ;;  %v828_v60 = vmul.f32 1.442695, %v827_v55  ;;  %v930_v9 = vmul.f32 %v927_v21, %v927_v21  ;;  %v929_v10 = vmul.f32 %v926_v30, %v926_v30  ;;  %v3598_v30 = vpop.eup %3597 }
 0x24d   : > { %7140 = vst [vmem:[#allocation34_spill] sm:$0xff] %v5346_v2  ;;  %2002 = vrot.lane.b32.xlu1 %v5291_v61, %s3881_s23  ;;  %3605 = vpow2.f32 %v805_v50  ;;  %v887_v53 = vadd.f32 %v886_v43, %v885_v51  ;;  %v908_v35 = vadd.f32 %v907_v52, %v906_v18  ;;  %v951_v32 = vsub.f32 %v7150_v54, %v5244_v49  ;;  %v7153_v50 = vld [vmem:[#allocation77_spill] sm:$0xff]  ;;  %v7154_v52 = vld [vmem:[#allocation78_spill] sm:$0xff] }
 0x24e   : > { %2000 = vrot.lane.b32.xlu0 %v5294_v27, %s3881_s23  ;;  %v682_v42 = vmul.f32 %v3596_v46, %v5301_v62  ;;  %v739_v22 = vand.u32 2147483647, %v738_v8  ;;  %v762_v7 = vand.u32 2147483647, %v761_v48  ;;  %v932_v26 = vmul.f32 %v928_v28, %v928_v28  ;;  %v7156_v48 = vld [vmem:[#allocation82_spill] sm:$0xff] }
 0x24f   : > { %v5362_v23 = vpop.permute.xlu1 %1641  ;;  %v865_v40 = vsub.f32 0.0, %v864_v0  ;;  %v952_v17 = vmul.f32 %v949_v3, %v949_v3  ;;  %3607 = vpow2.f32 %v828_v60  ;;  %v931_v51 = vadd.f32 %v930_v9, %v929_v10  ;;  %v7157_v9 = vld [vmem:[#allocation80_spill] sm:$0xff] }
 0x250   : > { %7146 = vst [vmem:[#allocation19_spill] sm:$0xff] %v5362_v23  ;;  %v5364_v2 = vpop.permute.xlu0 %1639  ;;  %v953_v23 = vmul.f32 %v950_v6, %v950_v6  ;;  %v985_v43 = vsub.f32 %v7153_v50, %v5249_v24  ;;  %v984_v62 = vsub.f32 %v7154_v52, %v5254_v39  ;;  %v3600_v8 = vpop.eup %3599  ;;  %v888_v28 = vsub.f32 0.0, %v887_v53  ;;  %v7159_v53 = vld [vmem:[#allocation47_spill] sm:$0xff] }
 0x251   : > { %7147 = vst [vmem:[#allocation23_spill] sm:$0xff] %v5364_v2  ;;  %2006 = vrot.lane.b32.xlu1 %v5316_v5, %s3881_s23  ;;  %v910_v2 = vadd.f32 %v909_v57, %v908_v35  ;;  %v955_v18 = vmul.f32 %v951_v32, %v951_v32  ;;  %v7155_v57 = vld [vmem:[#allocation81_spill] sm:$0xff]  ;;  %v1007_v0 = vsub.f32 %v7156_v48, %v5254_v39  ;;  %v866_v52 = vmul.f32 1.442695, %v865_v40 }
 0x252   : > { %2004 = vrot.lane.b32.xlu0 %v5319_v14, %s3881_s23  ;;  %v1008_v46 = vsub.f32 %v7155_v57, %v5249_v24  ;;  %v683_v6 = vadd.f32 %v682_v42, %v660_v33  ;;  %v705_v3 = vmul.f32 %v3598_v30, %v5312_v59  ;;  %v933_v60 = vadd.f32 %v932_v26, %v931_v51 }
 0x253   : > { %v5377_v55 = vpop.permute.xlu1 %1645  ;;  %v986_v10 = vsub.f32 %v7157_v9, %v5244_v49  ;;  %v3602_v50 = vpop.eup %3601  ;;  %v784_v32 = vsub.f32 %v7159_v53, %v5275_v16  ;;  %v954_v57 = vadd.f32 %v953_v23, %v952_v17  ;;  %v740_v33 = vmul.f32 %v3600_v8, %v739_v22 }
 0x254   : > { %7151 = vst [vmem:[#allocation36_spill] sm:$0xff] %v5377_v55  ;;  %v5379_v21 = vpop.permute.xlu0 %1643  ;;  %v7160_v55 = vld [vmem:[#allocation84_spill] sm:$0xff]  ;;  %v911_v42 = vsub.f32 0.0, %v910_v2  ;;  %v988_v59 = vmul.f32 %v985_v43, %v985_v43  ;;  %v987_v26 = vmul.f32 %v984_v62, %v984_v62  ;;  %v889_v30 = vmul.f32 1.442695, %v888_v28  ;;  %v7163_v62 = vld [vmem:[#allocation51_spill] sm:$0xff] }
 0x255   : > { %7152 = vst [vmem:[#allocation37_spill] sm:$0xff] %v5379_v21  ;;  %2025 = vrot.lane.b32.xlu1 %v5291_v61, %s3882_s24  ;;  %v1009_v48 = vsub.f32 %v7160_v55, %v5244_v49  ;;  %v956_v51 = vadd.f32 %v955_v18, %v954_v57  ;;  %v1011_v9 = vmul.f32 %v1008_v46, %v1008_v46  ;;  %v934_v40 = vsub.f32 0.0, %v933_v60  ;;  %v7164_v18 = vld [vmem:[#allocation55_spill] sm:$0xff] }
 0x256   : > { %2023 = vrot.lane.b32.xlu0 %v5294_v27, %s3882_s24  ;;  %v1010_v21 = vmul.f32 %v1007_v0, %v1007_v0  ;;  %v706_v53 = vadd.f32 %v705_v3, %v683_v6  ;;  %v990_v17 = vmul.f32 %v986_v10, %v986_v10  ;;  %v7161_v23 = vsub.f32 0.0, %v5282_v29 }
 0x257   : > { %v5396_v35 = vpop.permute.xlu1 %1664  ;;  %v763_v43 = vmul.f32 %v3602_v50, %v762_v7  ;;  %v807_v8 = vsub.f32 %v7163_v62, %v5275_v16  ;;  %3609 = vpow2.f32 %v866_v52  ;;  %v785_v28 = vand.u32 2147483647, %v784_v32  ;;  %v7165_v32 = vld [vmem:[#allocation85_spill] sm:$0xff] }
 0x258   : > { %v5398_v54 = vpop.permute.xlu0 %1662  ;;  %v1100_v55 = vmul.f32 1.442695, %v7161_v23  ;;  %v830_v46 = vsub.f32 %v7164_v18, %v5275_v16  ;;  %v912_v0 = vmul.f32 1.442695, %v911_v42  ;;  %v989_v6 = vadd.f32 %v988_v59, %v987_v26  ;;  %v3604_v29 = vpop.eup %3603  ;;  %v3806_v18 = vld [vmem:[%s3947_s21 + $0x4] sm:$0xff] }
 0x259   : > { %7158 = vst [vmem:[#allocation38_spill] sm:$0xff] %v5398_v54  ;;  %2029 = vrot.lane.b32.xlu1 %v5316_v5, %s3882_s24  ;;  %v1013_v54 = vmul.f32 %v1009_v48, %v1009_v48  ;;  %v741_v3 = vadd.f32 %v740_v33, %v706_v53  ;;  %3611 = vpow2.f32 %v889_v30  ;;  %v957_v7 = vsub.f32 0.0, %v956_v51  ;;  %v7166_v48 = vld [vmem:[#allocation86_spill] sm:$0xff] }
 0x25a   : > { %2027 = vrot.lane.b32.xlu0 %v5319_v14, %s3882_s24  ;;  %v1012_v60 = vadd.f32 %v1011_v9, %v1010_v21  ;;  %v3606_v10 = vpop.eup %3605  ;;  %v935_v50 = vmul.f32 1.442695, %v934_v40  ;;  %v991_v52 = vadd.f32 %v990_v17, %v989_v6  ;;  %v1031_v57 = vsub.f32 %v7165_v32, %v5249_v24  ;;  %v7168_v9 = vld [vmem:[#allocation88_spill] sm:$0xff] }
 0x25b   : > { %v5410_v22 = vpop.permute.xlu1 %1668  ;;  %v1030_v42 = vsub.f32 %v7166_v48, %v5254_v39  ;;  %v764_v23 = vadd.f32 %v763_v43, %v741_v3  ;;  %v808_v33 = vand.u32 2147483647, %v807_v8  ;;  %3613 = vpow2.f32 %v1100_v55 }
 0x25c   : > { %7162 = vst [vmem:[#allocation40_spill] sm:$0xff] %v5410_v22  ;;  %v5412_v2 = vpop.permute.xlu0 %1666  ;;  %v1014_v30 = vadd.f32 %v1013_v54, %v1012_v60  ;;  %v786_v21 = vmul.f32 %v3604_v29, %v785_v28  ;;  %v831_v51 = vand.u32 2147483647, %v830_v46  ;;  %3615 = vpow2.f32 %v912_v0  ;;  %v3608_v40 = vpop.eup %3607  ;;  %v3807_v54 = vld [vmem:[%s3947_s21 + $0x24] sm:$0xff] }
 0x25d   : > { %2048 = vrot.lane.b32.xlu1 %v5291_v61, %s3883_s25  ;;  %v1032_v53 = vsub.f32 %v7168_v9, %v5244_v49  ;;  %v809_v17 = vmul.f32 %v3606_v10, %v808_v33  ;;  %v958_v62 = vmul.f32 1.442695, %v957_v7  ;;  %v1348_v43 = vsub.f32 %v3806_v18, %v5254_v39  ;;  %v7172_v7 = vld [vmem:[#allocation59_spill] sm:$0xff] }
 0x25e   : > { %2046 = vrot.lane.b32.xlu0 %v5294_v27, %s3883_s25  ;;  %v1349_v55 = vsub.f32 %v3807_v54, %v5249_v24  ;;  %3617 = vpow2.f32 %v935_v50  ;;  %v992_v8 = vsub.f32 0.0, %v991_v52  ;;  %v1034_v28 = vmul.f32 %v1031_v57, %v1031_v57  ;;  %v3808_v50 = vld [vmem:[%s3947_s21 + $0x44] sm:$0xff] }
 0x25f   : > { %v5426_v59 = vpop.permute.xlu1 %1687  ;;  %v1033_v46 = vmul.f32 %v1030_v42, %v1030_v42  ;;  %v7171_v29 = vsub.f32 %v5176_v45, %v4691_v31  ;;  %v868_v60 = vsub.f32 %v7172_v7, %v5275_v16  ;;  %v1015_v10 = vsub.f32 0.0, %v1014_v30  ;;  %v3809_v18 = vld [vmem:[%s3947_s21 + $0x63] sm:$0xff] }
 0x260   : > { %v5428_v26 = vpop.permute.xlu0 %1685  ;;  %v787_v32 = vadd.f32 %v786_v21, %v764_v23  ;;  %v832_v48 = vmul.f32 %v3608_v40, %v831_v51  ;;  %v1036_v33 = vmul.f32 %v1032_v53, %v1032_v53  ;;  %3619 = vpow2.f32 %v958_v62 }
 0x261   : > { %7167 = vst [vmem:[#allocation41_spill] sm:$0xff] %v5428_v26  ;;  %2052 = vrot.lane.b32.xlu1 %v5316_v5, %s3883_s25  ;;  %v846_v3 = vand.u32 2147483647, %v7171_v29  ;;  %v1350_v52 = vsub.f32 %v3808_v50, %v5244_v49  ;;  %v1351_v31 = vmul.f32 %v1348_v43, %v1348_v43  ;;  %v1352_v45 = vmul.f32 %v1349_v55, %v1349_v55  ;;  %v7175_v29 = vld [vmem:[#allocation63_spill] sm:$0xff] }
 0x262   : > { %2050 = vrot.lane.b32.xlu0 %v5319_v14, %s3883_s25  ;;  %v810_v57 = vadd.f32 %v809_v17, %v787_v32  ;;  %v993_v42 = vmul.f32 1.442695, %v992_v8  ;;  %v1035_v9 = vadd.f32 %v1034_v28, %v1033_v46  ;;  %v1102_v23 = vsub.f32 %v3809_v18, %v5275_v16  ;;  %v7176_v17 = vld [vmem:[#allocation89_spill] sm:$0xff]  ;;  %v7177_v28 = vld [vmem:[#allocation90_spill] sm:$0xff]  ;;  %v7182_v18 = vld [vmem:[#allocation92_spill] sm:$0xff] }
 0x263   : > { %v5440_v0 = vpop.permute.xlu1 %1691  ;;  %v847_v51 = vmul.f32 %v5241_v44, %v846_v3  ;;  %v1016_v53 = vmul.f32 1.442695, %v1015_v10  ;;  %v869_v54 = vand.u32 2147483647, %v868_v60  ;;  %v891_v43 = vsub.f32 %v7175_v29, %v5275_v16  ;;  %v7178_v60 = vld [vmem:[#allocation67_spill] sm:$0xff] }
 0x264   : > { %7169 = vst [vmem:[#allocation42_spill] sm:$0xff] %v5440_v0  ;;  %v5442_v6 = vpop.permute.xlu0 %1689  ;;  %v3610_v40 = vpop.eup %3609  ;;  %v833_v62 = vadd.f32 %v832_v48, %v810_v57  ;;  %v1037_v55 = vadd.f32 %v1036_v33, %v1035_v9  ;;  %v1054_v8 = vsub.f32 %v7176_v17, %v5249_v24  ;;  %v1053_v44 = vsub.f32 %v7177_v28, %v5254_v39  ;;  %v7181_v57 = vld [vmem:[#allocation71_spill] sm:$0xff]  ;;  %v7183_v17 = vld [vmem:[#allocation93_spill] sm:$0xff] }
 0x265   : > { %7170 = vst [vmem:[#allocation27_spill] sm:$0xff] %v5442_v6  ;;  %2071 = vrot.lane.b32.xlu1 %v5291_v61, %s3884_s26  ;;  %v1353_v46 = vadd.f32 %v1352_v45, %v1351_v31  ;;  %v1354_v3 = vmul.f32 %v1350_v52, %v1350_v52  ;;  %v914_v10 = vsub.f32 %v7178_v60, %v5275_v16  ;;  %3621 = vpow2.f32 %v993_v42  ;;  %v7184_v42 = vld [vmem:[#allocation94_spill] sm:$0xff] }
 0x266   : > { %2069 = vrot.lane.b32.xlu0 %v5294_v27, %s3884_s26  ;;  %v3612_v7 = vpop.eup %3611  ;;  %v1103_v32 = vand.u32 2147483647, %v1102_v23  ;;  %v870_v50 = vmul.f32 %v3610_v40, %v869_v54  ;;  %v937_v9 = vsub.f32 %v7181_v57, %v5275_v16  ;;  %3623 = vpow2.f32 %v1016_v53 }
 0x267   : > { %v5457_v30 = vpop.permute.xlu1 %1722  ;;  %v1055_v29 = vsub.f32 %v7182_v18, %v5244_v49  ;;  %v892_v52 = vand.u32 2147483647, %v891_v43  ;;  %v1038_v45 = vsub.f32 0.0, %v1037_v55  ;;  %v1077_v28 = vsub.f32 %v7183_v17, %v5249_v24  ;;  %v7185_v55 = vld [vmem:[#allocation75_spill] sm:$0xff]  ;;  %v7186_v17 = vld [vmem:[#allocation96_spill] sm:$0xff] }
 0x268   : > { %7173 = vst [vmem:[#allocation44_spill] sm:$0xff] %v5457_v30  ;;  %v5459_v21 = vpop.permute.xlu0 %1720  ;;  %v3614_v31 = vpop.eup %3613  ;;  %v1076_v23 = vsub.f32 %v7184_v42, %v5254_v39  ;;  %v848_v53 = vadd.f32 %v847_v51, %v833_v62  ;;  %v1057_v54 = vmul.f32 %v1054_v8, %v1054_v8  ;;  %v1056_v60 = vmul.f32 %v1053_v44, %v1053_v44 }
 0x269   : > { %7174 = vst [vmem:[#allocation45_spill] sm:$0xff] %v5459_v21  ;;  %2075 = vrot.lane.b32.xlu1 %v5316_v5, %s3884_s26  ;;  %v3616_v40 = vpop.eup %3615  ;;  %v1355_v57 = vadd.f32 %v1354_v3, %v1353_v46  ;;  %v893_v18 = vmul.f32 %v3612_v7, %v892_v52  ;;  %v915_v43 = vand.u32 2147483647, %v914_v10  ;;  %v1078_v0 = vsub.f32 %v7186_v17, %v5244_v49  ;;  %v7189_v7 = vld [vmem:[#allocation97_spill] sm:$0xff] }
 0x26a   : > { %2073 = vrot.lane.b32.xlu0 %v5319_v14, %s3884_s26  ;;  %v871_v21 = vadd.f32 %v870_v50, %v848_v53  ;;  %v938_v30 = vand.u32 2147483647, %v937_v9  ;;  %v1059_v6 = vmul.f32 %v1055_v29, %v1055_v29  ;;  %v5498_v51 = vmul.f32 %v3614_v31, %v1103_v32  ;;  %v7190_v50 = vld [vmem:[#allocation98_spill] sm:$0xff]  ;;  %v7193_v53 = vld [vmem:[#allocation79_spill] sm:$0xff]  ;;  %v7195_v17 = vld [vmem:[#allocation101_spill] sm:$0xff] }
 0x26b   : > { %v5474_v48 = vpop.permute.xlu1 %1726  ;;  %v916_v62 = vmul.f32 %v3616_v40, %v915_v43  ;;  %v1039_v8 = vmul.f32 1.442695, %v1038_v45  ;;  %v1080_v44 = vmul.f32 %v1077_v28, %v1077_v28  ;;  %v1079_v46 = vmul.f32 %v1076_v23, %v1076_v23 }
 0x26c   : > { %7179 = vst [vmem:[#allocation46_spill] sm:$0xff] %v5474_v48  ;;  %v5476_v33 = vpop.permute.xlu0 %1724  ;;  %v960_v48 = vsub.f32 %v7185_v55, %v5275_v16  ;;  %v1058_v3 = vadd.f32 %v1057_v54, %v1056_v60  ;;  %v1115_v10 = vsub.f32 %v7189_v7, %v5249_v24  ;;  %v1114_v9 = vsub.f32 %v7190_v50, %v5254_v39  ;;  %v7194_v60 = vld [vmem:[#allocation100_spill] sm:$0xff] }
 0x26d   : > { %7180 = vst [vmem:[#allocation48_spill] sm:$0xff] %v5476_v33  ;;  %2109 = vrot.lane.b32.xlu1 %v5291_v61, %s3885_s27  ;;  %v3618_v33 = vpop.eup %3617  ;;  %v1356_v29 = vsub.f32 0.0, %v1355_v57  ;;  %v894_v31 = vadd.f32 %v893_v18, %v871_v21  ;;  %v1082_v28 = vmul.f32 %v1078_v0, %v1078_v0  ;;  %v995_v43 = vsub.f32 %v7193_v53, %v5275_v16 }
 0x26e   : > { %2107 = vrot.lane.b32.xlu0 %v5294_v27, %s3885_s27  ;;  %v3620_v32 = vpop.eup %3619  ;;  %v939_v52 = vmul.f32 %v3618_v33, %v938_v30  ;;  %v961_v45 = vand.u32 2147483647, %v960_v48  ;;  %v1060_v54 = vadd.f32 %v1059_v6, %v1058_v3  ;;  %v1116_v55 = vsub.f32 %v7194_v60, %v5244_v49  ;;  %v7196_v30 = vld [vmem:[#allocation102_spill] sm:$0xff]  ;;  %v7197_v6 = vld [vmem:[#allocation83_spill] sm:$0xff] }
 0x26f   : > { %v5494_v42 = vpop.permute.xlu1 %1745  ;;  %v1138_v7 = vsub.f32 %v7195_v17, %v5249_v24  ;;  %v917_v57 = vadd.f32 %v916_v62, %v894_v31  ;;  %3625 = vpow2.f32 %v1039_v8  ;;  %v1081_v21 = vadd.f32 %v1080_v44, %v1079_v46  ;;  %v7198_v62 = vld [vmem:[#allocation104_spill] sm:$0xff]  ;;  %v7201_v17 = vld [vmem:[#allocation87_spill] sm:$0xff] }
 0x270   : > { %7187 = vst [vmem:[#allocation49_spill] sm:$0xff] %v5494_v42  ;;  %v5496_v22 = vpop.permute.xlu0 %1743  ;;  %v1137_v0 = vsub.f32 %v7196_v30, %v5254_v39  ;;  %v962_v48 = vmul.f32 %v3620_v32, %v961_v45  ;;  %v1018_v33 = vsub.f32 %v7197_v6, %v5275_v16  ;;  %v1118_v18 = vmul.f32 %v1115_v10, %v1115_v10  ;;  %v7208_v42 = vld [vmem:[#allocation95_spill] sm:$0xff] }
 0x271   : > { %7188 = vst [vmem:[#allocation50_spill] sm:$0xff] %v5496_v22  ;;  %2113 = vrot.lane.b32.xlu1 %v5316_v5, %s3885_s27  ;;  %v1117_v3 = vmul.f32 %v1114_v9, %v1114_v9  ;;  %v940_v50 = vadd.f32 %v939_v52, %v917_v57  ;;  %v1083_v53 = vadd.f32 %v1082_v28, %v1081_v21  ;;  %v5528_v44 = vmul.f32 1.442695, %v1356_v29  ;;  %v7202_v28 = vld [vmem:[#allocation105_spill] sm:$0xff]  ;;  %v7203_v29 = vld [vmem:[#allocation106_spill] sm:$0xff] }
 0x272   : > { %2111 = vrot.lane.b32.xlu0 %v5319_v14, %s3885_s27  ;;  %v1139_v8 = vsub.f32 %v7198_v62, %v5244_v49  ;;  %v3622_v60 = vpop.eup %3621  ;;  %v1041_v32 = vsub.f32 %v7201_v17, %v5275_v16  ;;  %v1061_v45 = vsub.f32 0.0, %v1060_v54  ;;  %v1120_v30 = vmul.f32 %v1116_v55, %v1116_v55  ;;  %v7204_v54 = vld [vmem:[#allocation91_spill] sm:$0xff] }
 0x273   : > { %v5508_v23 = vpop.permute.xlu1 %1749  ;;  %v1141_v6 = vmul.f32 %v1138_v7, %v1138_v7  ;;  %v3624_v10 = vpop.eup %3623  ;;  %v996_v9 = vand.u32 2147483647, %v995_v43  ;;  %v1140_v52 = vmul.f32 %v1137_v0, %v1137_v0  ;;  %v1161_v57 = vsub.f32 %v7202_v28, %v5249_v24  ;;  %v7205_v28 = vld [vmem:[#allocation108_spill] sm:$0xff] }
 0x274   : > { %7191 = vst [vmem:[#allocation52_spill] sm:$0xff] %v5508_v23  ;;  %v5510_v40 = vpop.permute.xlu0 %1747  ;;  %v1160_v21 = vsub.f32 %v7203_v29, %v5254_v39  ;;  %v963_v62 = vadd.f32 %v962_v48, %v940_v50  ;;  %v1019_v17 = vand.u32 2147483647, %v1018_v33  ;;  %v1064_v55 = vsub.f32 %v7204_v54, %v5275_v16 }
 0x275   : > { %7192 = vst [vmem:[#allocation53_spill] sm:$0xff] %v5510_v40  ;;  %2132 = vrot.lane.b32.xlu1 %v5291_v61, %s3886_s28  ;;  %v1119_v7 = vadd.f32 %v1118_v18, %v1117_v3  ;;  %v997_v43 = vmul.f32 %v3622_v60, %v996_v9  ;;  %v1084_v0 = vsub.f32 0.0, %v1083_v53  ;;  %v1143_v23 = vmul.f32 %v1139_v8, %v1139_v8  ;;  %v7209_v3 = vld [vmem:[#allocation109_spill] sm:$0xff]  ;;  %v7210_v8 = vld [vmem:[#allocation110_spill] sm:$0xff] }
 0x276   : > { %2130 = vrot.lane.b32.xlu0 %v5294_v27, %s3886_s28  ;;  %v1020_v40 = vmul.f32 %v3624_v10, %v1019_v17  ;;  %v1062_v22 = vmul.f32 1.442695, %v1061_v45  ;;  %v1087_v48 = vsub.f32 %v7208_v42, %v5275_v16  ;;  %v1042_v50 = vand.u32 2147483647, %v1041_v32  ;;  %v7211_v45 = vld [vmem:[#allocation113_spill] sm:$0xff]  ;;  %v7212_v32 = vld [vmem:[#allocation114_spill] sm:$0xff] }
 0x277   : > { %v5530_v46 = vpop.permute.xlu1 %1768  ;;  %v1121_v33 = vadd.f32 %v1120_v30, %v1119_v7  ;;  %v1142_v26 = vadd.f32 %v1141_v6, %v1140_v52  ;;  %v1164_v54 = vmul.f32 %v1161_v57, %v1161_v57  ;;  %v1163_v18 = vmul.f32 %v1160_v21, %v1160_v21  ;;  %v7215_v7 = vld [vmem:[#allocation112_spill] sm:$0xff] }
 0x278   : > { %7199 = vst [vmem:[#allocation54_spill] sm:$0xff] %v5530_v46  ;;  %v5532_v31 = vpop.permute.xlu0 %1766  ;;  %v1184_v53 = vsub.f32 %v7209_v3, %v5249_v24  ;;  %v1183_v60 = vsub.f32 %v7210_v8, %v5254_v39  ;;  %v1207_v42 = vsub.f32 %v7211_v45, %v5249_v24  ;;  %v1206_v30 = vsub.f32 %v7212_v32, %v5254_v39  ;;  %v7216_v3 = vld [vmem:[#allocation116_spill] sm:$0xff] }
 0x279   : > { %7200 = vst [vmem:[#allocation31_spill] sm:$0xff] %v5532_v31  ;;  %2136 = vrot.lane.b32.xlu1 %v5316_v5, %s3886_s28  ;;  %v1162_v31 = vsub.f32 %v7205_v28, %v5244_v49  ;;  %v998_v6 = vadd.f32 %v997_v43, %v963_v62  ;;  %v1085_v10 = vmul.f32 1.442695, %v1084_v0  ;;  %v1144_v9 = vadd.f32 %v1143_v23, %v1142_v26  ;;  %v7217_v0 = vld [vmem:[#allocation99_spill] sm:$0xff] }
 0x27a   : > { %2134 = vrot.lane.b32.xlu0 %v5319_v14, %s3886_s28  ;;  %v5570_v17 = vand.u32 2147483647, %v1064_v55  ;;  %3627 = vpow2.f32 %v1062_v22  ;;  %v1185_v28 = vsub.f32 %v7215_v7, %v5244_v49  ;;  %v1208_v8 = vsub.f32 %v7216_v3, %v5244_v49 }
 0x27b   : > { %v5548_v46 = vpop.permute.xlu1 %1772  ;;  %v1166_v52 = vmul.f32 %v1162_v31, %v1162_v31  ;;  %v5576_v45 = vadd.f32 %v1020_v40, %v998_v6  ;;  %v5578_v32 = vand.u32 2147483647, %v1087_v48  ;;  %v1122_v62 = vsub.f32 0.0, %v1121_v33 }
 0x27c   : > { %7206 = vst [vmem:[#allocation56_spill] sm:$0xff] %v5548_v46  ;;  %v5550_v29 = vpop.permute.xlu0 %1770  ;;  %v1165_v26 = vadd.f32 %v1164_v54, %v1163_v18  ;;  %v3626_v23 = vpop.eup %3625  ;;  %v1187_v22 = vmul.f32 %v1184_v53, %v1184_v53  ;;  %v1186_v31 = vmul.f32 %v1183_v60, %v1183_v60  ;;  %v1210_v55 = vmul.f32 %v1207_v42, %v1207_v42  ;;  %v7220_v18 = vld [vmem:[#allocation117_spill] sm:$0xff]  ;;  %v7221_v53 = vld [vmem:[#allocation118_spill] sm:$0xff] }
 0x27d   : > { %7207 = vst [vmem:[#allocation35_spill] sm:$0xff] %v5550_v29  ;;  %2155 = vrot.lane.b32.xlu1 %v5291_v61, %s3887_s29  ;;  %v1209_v43 = vmul.f32 %v1206_v30, %v1206_v30  ;;  %3629 = vpow2.f32 %v1085_v10  ;;  %v1145_v6 = vsub.f32 0.0, %v1144_v9  ;;  %v1189_v54 = vmul.f32 %v1185_v28, %v1185_v28  ;;  %v7222_v10 = vld [vmem:[#allocation121_spill] sm:$0xff]  ;;  %v7223_v9 = vld [vmem:[#allocation122_spill] sm:$0xff] }
 0x27e   : > { %2153 = vrot.lane.b32.xlu0 %v5294_v27, %s3887_s29  ;;  %v1167_v48 = vadd.f32 %v1166_v52, %v1165_v26  ;;  %v1242_v3 = vsub.f32 %v7220_v18, %v5249_v24  ;;  %v1241_v60 = vsub.f32 %v7221_v53, %v5254_v39  ;;  %v5594_v42 = vmul.f32 %v3626_v23, %v1042_v50  ;;  %v7224_v26 = vld [vmem:[#allocation120_spill] sm:$0xff] }
 0x27f   : > { %v5566_v57 = vpop.permute.xlu1 %1791  ;;  %v1123_v30 = vmul.f32 1.442695, %v1122_v62  ;;  %v1265_v40 = vsub.f32 %v7222_v10, %v5249_v24  ;;  %v1264_v52 = vsub.f32 %v7223_v9, %v5254_v39  ;;  %v1188_v28 = vadd.f32 %v1187_v22, %v1186_v31  ;;  %v7225_v50 = vld [vmem:[#allocation124_spill] sm:$0xff]  ;;  %v7226_v10 = vld [vmem:[#allocation125_spill] sm:$0xff]  ;;  %v7227_v9 = vld [vmem:[#allocation126_spill] sm:$0xff] }
 0x280   : > { %7213 = vst [vmem:[#allocation57_spill] sm:$0xff] %v5566_v57  ;;  %v5568_v21 = vpop.permute.xlu0 %1789  ;;  %v1243_v18 = vsub.f32 %v7224_v26, %v5244_v49  ;;  %v1266_v62 = vsub.f32 %v7225_v50, %v5244_v49  ;;  %v1146_v23 = vmul.f32 1.442695, %v1145_v6  ;;  %v1168_v53 = vsub.f32 0.0, %v1167_v48  ;;  %v7230_v6 = vld [vmem:[#allocation128_spill] sm:$0xff] }
 0x281   : > { %7214 = vst [vmem:[#allocation58_spill] sm:$0xff] %v5568_v21  ;;  %2159 = vrot.lane.b32.xlu1 %v5316_v5, %s3887_s29  ;;  %v1212_v5 = vmul.f32 %v1208_v8, %v1208_v8  ;;  %v1211_v8 = vadd.f32 %v1210_v55, %v1209_v43  ;;  %v1287_v46 = vsub.f32 %v7227_v9, %v5254_v39  ;;  %3631 = vpow2.f32 %v1123_v30  ;;  %v7231_v9 = vld [vmem:[#allocation129_spill] sm:$0xff] }
 0x282   : > { %2157 = vrot.lane.b32.xlu0 %v5319_v14, %s3887_s29  ;;  %v1190_v22 = vadd.f32 %v1189_v54, %v1188_v28  ;;  %v1245_v55 = vmul.f32 %v1242_v3, %v1242_v3  ;;  %v1244_v43 = vmul.f32 %v1241_v60, %v1241_v60  ;;  %v1268_v26 = vmul.f32 %v1265_v40, %v1265_v40  ;;  %v7233_v30 = vld [vmem:[#allocation133_spill] sm:$0xff]  ;;  %v7234_v28 = vld [vmem:[#allocation134_spill] sm:$0xff] }
 0x283   : > { %v5586_v7 = vpop.permute.xlu1 %1795  ;;  %v1213_v31 = vadd.f32 %v1212_v5, %v1211_v8  ;;  %v1267_v57 = vmul.f32 %v1264_v52, %v1264_v52  ;;  %v1289_v48 = vsub.f32 %v7230_v6, %v5244_v49  ;;  %v1247_v50 = vmul.f32 %v1243_v18, %v1243_v18  ;;  %v7232_v5 = vld [vmem:[#allocation130_spill] sm:$0xff] }
 0x284   : > { %7218 = vst [vmem:[#allocation60_spill] sm:$0xff] %v5586_v7  ;;  %v5588_v33 = vpop.permute.xlu0 %1793  ;;  %v1288_v7 = vsub.f32 %v7226_v10, %v5249_v24  ;;  %v1270_v10 = vmul.f32 %v1266_v62, %v1266_v62  ;;  %v1311_v54 = vsub.f32 %v7231_v9, %v5249_v24  ;;  %v1310_v3 = vsub.f32 %v7232_v5, %v5254_v39  ;;  %v7236_v9 = vld [vmem:[#allocation132_spill] sm:$0xff] }
 0x285   : > { %7219 = vst [vmem:[#allocation61_spill] sm:$0xff] %v5588_v33  ;;  %2178 = vrot.lane.b32.xlu1 %v5291_v61, %s3888_s30  ;;  %v1290_v40 = vmul.f32 %v1287_v46, %v1287_v46  ;;  %v1334_v52 = vsub.f32 %v7233_v30, %v5249_v24  ;;  %v1333_v8 = vsub.f32 %v7234_v28, %v5254_v39  ;;  %3633 = vpow2.f32 %v1146_v23  ;;  %v7237_v30 = vld [vmem:[#allocation136_spill] sm:$0xff] }
 0x286   : > { %2176 = vrot.lane.b32.xlu0 %v5294_v27, %s3888_s30  ;;  %v1291_v60 = vmul.f32 %v1288_v7, %v1288_v7  ;;  %v1169_v18 = vmul.f32 1.442695, %v1168_v53  ;;  %v1246_v62 = vadd.f32 %v1245_v55, %v1244_v43  ;;  %v1312_v5 = vsub.f32 %v7236_v9, %v5244_v49  ;;  %v5643_v43 = vld [vmem:[%s3947_s21 + $0x28] sm:$0xff] }
 0x287   : > { %v5612_v33 = vpop.permute.xlu1 %1814  ;;  %v3628_v7 = vpop.eup %3627  ;;  %v1191_v46 = vsub.f32 0.0, %v1190_v22  ;;  %v1335_v29 = vsub.f32 %v7237_v30, %v5244_v49  ;;  %v1214_v23 = vsub.f32 0.0, %v1213_v31  ;;  %v1314_v53 = vmul.f32 %v1311_v54, %v1311_v54  ;;  %v5646_v9 = vld [vmem:[%s3947_s21 + $0x8] sm:$0xff] }
 0x288   : > { %7228 = vst [vmem:[#allocation62_spill] sm:$0xff] %v5612_v33  ;;  %v5614_v21 = vpop.permute.xlu0 %1812  ;;  %v1293_v33 = vmul.f32 %v1289_v48, %v1289_v48  ;;  %v1248_v28 = vadd.f32 %v1247_v50, %v1246_v62  ;;  %v1313_v55 = vmul.f32 %v1310_v3, %v1310_v3  ;;  %v1336_v48 = vmul.f32 %v1333_v8, %v1333_v8  ;;  %v7239_v3 = vld [vmem:[#allocation103_spill] sm:$0xff] }
 0x289   : > { %7229 = vst [vmem:[#allocation64_spill] sm:$0xff] %v5614_v21  ;;  %2199 = vrot.lane.b32.xlu1 %v5294_v27, %s3889_s3  ;;  %v1269_v21 = vadd.f32 %v1268_v26, %v1267_v57  ;;  %v1292_v57 = vadd.f32 %v1291_v60, %v1290_v40  ;;  %v1337_v26 = vmul.f32 %v1334_v52, %v1334_v52  ;;  %3635 = vpow2.f32 %v1169_v18  ;;  %v5667_v62 = vld [vmem:[%s3947_s21 + $0x48] sm:$0xff] }
 0x28a   : > { %2180 = vrot.lane.b32.xlu0 %v5319_v14, %s3888_s30  ;;  %v7238_v31 = vsub.f32 %v7217_v0, %v5275_v16  ;;  %v1316_v54 = vmul.f32 %v1312_v5, %v1312_v5  ;;  %v1339_v40 = vmul.f32 %v1335_v29, %v1335_v29  ;;  %v7240_v0 = vld [vmem:[#allocation107_spill] sm:$0xff]  ;;  %v1249_v8 = vsub.f32 0.0, %v1248_v28 }
 0x28b   : > { %v5630_v27 = vpop.permute.xlu1 %1818  ;;  %v1271_v22 = vadd.f32 %v1270_v10, %v1269_v21  ;;  %v1148_v21 = vsub.f32 %v7239_v3, %v5275_v16  ;;  %v1192_v10 = vmul.f32 1.442695, %v1191_v46  ;;  %v1294_v60 = vadd.f32 %v1293_v33, %v1292_v57 }
 0x28c   : > { %7235 = vst [vmem:[#allocation65_spill] sm:$0xff] %v5630_v27  ;;  %v5632_v6 = vpop.permute.xlu0 %1816  ;;  %v1126_v50 = vand.u32 2147483647, %v7238_v31  ;;  %v1171_v52 = vsub.f32 %v7240_v0, %v5275_v16  ;;  %v1315_v18 = vadd.f32 %v1314_v53, %v1313_v55  ;;  %v1215_v33 = vmul.f32 1.442695, %v1214_v23 }
 0x28d   : > { %2203 = vrot.lane.b32.xlu1 %v5319_v14, %s3889_s3  ;;  %v3630_v14 = vpop.eup %3629  ;;  %v1272_v29 = vsub.f32 0.0, %v1271_v22  ;;  %v1149_v28 = vand.u32 2147483647, %v1148_v21  ;;  %3637 = vpow2.f32 %v1192_v10  ;;  %v1295_v53 = vsub.f32 0.0, %v1294_v60 }
 0x28e   : > { %2201 = vrot.lane.b32.xlu0 %v5291_v61, %s3889_s3  ;;  %v1066_v61 = vmul.f32 %v3628_v7, %v5570_v17  ;;  %v1044_v17 = vadd.f32 %v5594_v42, %v5576_v45  ;;  %v1089_v5 = vmul.f32 %v3630_v14, %v5578_v32  ;;  %v1338_v7 = vadd.f32 %v1337_v26, %v1336_v48  ;;  %v3632_v32 = vpop.eup %3631 }
 0x28f   : > { %v5648_v27 = vpop.permute.xlu1 %1852  ;;  %v1317_v3 = vadd.f32 %v1316_v54, %v1315_v18  ;;  %v1372_v45 = vsub.f32 %v4875_v25, %v5249_v24  ;;  %v1371_v42 = vsub.f32 %v4877_v1, %v5254_v39  ;;  %v1250_v23 = vmul.f32 1.442695, %v1249_v8 }
 0x290   : > { %v5650_v30 = vpop.permute.xlu0 %1850  ;;  %v1067_v31 = vadd.f32 %v1066_v61, %v1044_v17  ;;  %v1340_v55 = vadd.f32 %v1339_v40, %v1338_v7  ;;  %v1373_v22 = vsub.f32 %v4901_v11, %v5244_v49  ;;  %v1395_v25 = vsub.f32 %v4927_v58, %v5249_v24 }
 0x291   : > { %2236 = vrot.lane.b32.xlu1 %v5643_v43, %s3880_s22  ;;  %v1394_v1 = vsub.f32 %v4929_v12, %v5254_v39  ;;  %v1172_v48 = vand.u32 2147483647, %v1171_v52  ;;  %3639 = vpow2.f32 %v1215_v33  ;;  %v1273_v14 = vmul.f32 1.442695, %v1272_v29  ;;  %v7241_v33 = vld [vmem:[#allocation111_spill] sm:$0xff] }
 0x292   : > { %2234 = vrot.lane.b32.xlu0 %v5646_v9, %s3880_s22  ;;  %v1090_v26 = vadd.f32 %v1089_v5, %v1067_v31  ;;  %v1318_v21 = vsub.f32 0.0, %v1317_v3  ;;  %v1375_v10 = vmul.f32 %v1372_v45, %v1372_v45  ;;  %v1374_v60 = vmul.f32 %v1371_v42, %v1371_v42  ;;  %v3634_v40 = vpop.eup %3633  ;;  %v5716_v42 = vld [vmem:[%s3947_s21 + $0x25] sm:$0xff] }
 0x293   : > { %v5670_v46 = vpop.permute.xlu1 %1856  ;;  %v1396_v11 = vsub.f32 %v4953_v38, %v5244_v49  ;;  %v1296_v17 = vmul.f32 1.442695, %v1295_v53  ;;  %v1341_v58 = vsub.f32 0.0, %v1340_v55  ;;  %v1418_v12 = vsub.f32 %v4967_v36, %v5249_v24  ;;  %v5721_v55 = vld [vmem:[%s3947_s21 + $0x5] sm:$0xff] }
 0x294   : > { %v5672_v57 = vpop.permute.xlu0 %1854  ;;  %v1417_v0 = vsub.f32 %v4969_v47, %v5254_v39  ;;  %3641 = vpow2.f32 %v1250_v23  ;;  %v1377_v52 = vmul.f32 %v1373_v22, %v1373_v22  ;;  %v1398_v8 = vmul.f32 %v1395_v25, %v1395_v25  ;;  %v7243_v25 = vld [vmem:[#allocation115_spill] sm:$0xff] }
 0x295   : > { %2257 = vrot.lane.b32.xlu1 %v5646_v9, %s3881_s23  ;;  %v1397_v18 = vmul.f32 %v1394_v1, %v1394_v1  ;;  %v1105_v38 = vadd.f32 %v5498_v51, %v1090_v26  ;;  %v1127_v5 = vmul.f32 %v3632_v32, %v1126_v50  ;;  %v1194_v29 = vsub.f32 %v7241_v33, %v5275_v16 }
 0x296   : > { %2238 = vrot.lane.b32.xlu0 %v5667_v62, %s3880_s22  ;;  %v1419_v36 = vsub.f32 %v4991_v41, %v5244_v49  ;;  %3643 = vpow2.f32 %v1273_v14  ;;  %v1319_v39 = vmul.f32 1.442695, %v1318_v21  ;;  %v1376_v7 = vadd.f32 %v1375_v10, %v1374_v60  ;;  %v3636_v3 = vpop.eup %3635 }
 0x297   : > { %v5688_v61 = vpop.permute.xlu1 %1875  ;;  %v1400_v31 = vmul.f32 %v1396_v11, %v1396_v11  ;;  %3645 = vpow2.f32 %v1296_v17  ;;  %v1342_v51 = vmul.f32 1.442695, %v1341_v58  ;;  %v1421_v50 = vmul.f32 %v1418_v12, %v1418_v12  ;;  %v5732_v11 = vld [vmem:[%s3947_s21 + $0x45] sm:$0xff] }
 0x298   : > { %v5690_v54 = vpop.permute.xlu0 %1873  ;;  %v1420_v45 = vmul.f32 %v1417_v0, %v1417_v0  ;;  %v1378_v41 = vadd.f32 %v1377_v52, %v1376_v7  ;;  %v1399_v49 = vadd.f32 %v1398_v8, %v1397_v18  ;;  %v1441_v53 = vsub.f32 %v5009_v13, %v5716_v42  ;;  %v5752_v18 = vld [vmem:[%s3947_s21 + $0x65] sm:$0xff] }
 0x299   : > { %2261 = vrot.lane.b32.xlu1 %v5667_v62, %s3881_s23  ;;  %v1440_v32 = vsub.f32 %v5011_v4, %v5721_v55  ;;  %v1128_v23 = vadd.f32 %v1127_v5, %v1105_v38  ;;  %v1150_v22 = vmul.f32 %v3634_v40, %v1149_v28  ;;  %v1217_v1 = vsub.f32 %v7243_v25, %v5275_v16  ;;  %v7245_v38 = vld [vmem:[#allocation119_spill] sm:$0xff] }
 0x29a   : > { %2259 = vrot.lane.b32.xlu0 %v5643_v43, %s3881_s23  ;;  %v1423_v26 = vmul.f32 %v1419_v36, %v1419_v36  ;;  %v1173_v10 = vmul.f32 %v3636_v3, %v1172_v48  ;;  %3647 = vpow2.f32 %v1319_v39  ;;  %v1401_v60 = vadd.f32 %v1400_v31, %v1399_v49  ;;  %v3638_v28 = vpop.eup %3637  ;;  %v7246_v31 = vld [vmem:[#allocation123_spill] sm:$0xff] }
 0x29b   : > { %v5707_v47 = vpop.permute.xlu1 %1879  ;;  %v1442_v13 = vsub.f32 %v5027_v34, %v5732_v11  ;;  %v1422_v17 = vadd.f32 %v1421_v50, %v1420_v45  ;;  %v1464_v4 = vsub.f32 %v5042_v37, %v5716_v42  ;;  %v1463_v16 = vsub.f32 %v5044_v15, %v5721_v55  ;;  %v7247_v49 = vld [vmem:[#allocation127_spill] sm:$0xff] }
 0x29c   : > { %7242 = vst [vmem:[#allocation66_spill] sm:$0xff] %v5707_v47  ;;  %v5709_v24 = vpop.permute.xlu0 %1877  ;;  %3649 = vpow2.f32 %v1342_v51  ;;  %v1379_v48 = vsub.f32 0.0, %v1378_v41  ;;  %v1444_v40 = vmul.f32 %v1441_v53, %v1441_v53  ;;  %v1443_v58 = vmul.f32 %v1440_v32, %v1440_v32 }
 0x29d   : > { %2282 = vrot.lane.b32.xlu1 %v5643_v43, %s3882_s24  ;;  %v1195_v34 = vand.u32 2147483647, %v1194_v29  ;;  %3651 = vpow2.f32 %v5528_v44  ;;  %v1424_v12 = vadd.f32 %v1423_v26, %v1422_v17  ;;  %v1465_v37 = vsub.f32 %v5058_v56, %v5732_v11 }
 0x29e   : > { %2280 = vrot.lane.b32.xlu0 %v5646_v9, %s3882_s24  ;;  %v3640_v52 = vpop.eup %3639  ;;  %v1151_v8 = vadd.f32 %v1150_v22, %v1128_v23  ;;  %v1252_v5 = vsub.f32 %v7245_v38, %v5752_v18  ;;  %v1402_v33 = vsub.f32 0.0, %v1401_v60  ;;  %v1446_v36 = vmul.f32 %v1442_v13, %v1442_v13 }
 0x29f   : > { %v5727_v14 = vpop.permute.xlu1 %1898  ;;  %v1196_v29 = vmul.f32 %v3638_v28, %v1195_v34  ;;  %v1218_v39 = vand.u32 2147483647, %v1217_v1  ;;  %v1467_v44 = vmul.f32 %v1464_v4, %v1464_v4  ;;  %v1466_v7 = vmul.f32 %v1463_v16, %v1463_v16 }
 0x2a0   : > { %v5729_v21 = vpop.permute.xlu0 %1896  ;;  %v1174_v56 = vadd.f32 %v1173_v10, %v1151_v8  ;;  %v1275_v3 = vsub.f32 %v7246_v31, %v5752_v18  ;;  %v1380_v51 = vmul.f32 1.442695, %v1379_v48  ;;  %v1445_v50 = vadd.f32 %v1444_v40, %v1443_v58  ;;  %v7248_v48 = vld [vmem:[#allocation131_spill] sm:$0xff] }
 0x2a1   : > { %2303 = vrot.lane.b32.xlu1 %v5646_v9, %s3883_s25  ;;  %v3642_v45 = vpop.eup %3641  ;;  %v1219_v41 = vmul.f32 %v3640_v52, %v1218_v39  ;;  %v1298_v53 = vsub.f32 %v7247_v49, %v5752_v18  ;;  %v1425_v32 = vsub.f32 0.0, %v1424_v12  ;;  %v1469_v23 = vmul.f32 %v1465_v37, %v1465_v37 }
 0x2a2   : > { %2284 = vrot.lane.b32.xlu0 %v5667_v62, %s3882_s24  ;;  %v1253_v1 = vand.u32 2147483647, %v1252_v5  ;;  %v1403_v26 = vmul.f32 1.442695, %v1402_v33  ;;  %v1447_v60 = vadd.f32 %v1446_v36, %v1445_v50  ;;  %v1197_v13 = vadd.f32 %v1196_v29, %v1174_v56  ;;  %v7250_v5 = vld [vmem:[#allocation135_spill] sm:$0xff] }
 0x2a3   : > { %v5747_v15 = vpop.permute.xlu1 %1902  ;;  %v3644_v10 = vpop.eup %3643  ;;  %v1468_v17 = vadd.f32 %v1467_v44, %v1466_v7  ;;  %v1276_v28 = vand.u32 2147483647, %v1275_v3  ;;  %v1321_v40 = vsub.f32 %v7248_v48, %v5752_v18  ;;  %3653 = vpow2.f32 %v1380_v51  ;;  %v3814_v56 = vld [vmem:[%s3947_s21 + $0x64] sm:$0xff] }
 0x2a4   : > { %7244 = vst [vmem:[#allocation39_spill] sm:$0xff] %v5747_v15  ;;  %v5749_v0 = vpop.permute.xlu0 %1900  ;;  %v3646_v4 = vpop.eup %3645  ;;  %v1254_v16 = vmul.f32 %v3642_v45, %v1253_v1  ;;  %v1220_v58 = vadd.f32 %v1219_v41, %v1197_v13  ;;  %v1299_v34 = vand.u32 2147483647, %v1298_v53  ;;  %v1426_v12 = vmul.f32 1.442695, %v1425_v32 }
 0x2a5   : > { %2307 = vrot.lane.b32.xlu1 %v5667_v62, %s3883_s25  ;;  %v1470_v37 = vadd.f32 %v1469_v23, %v1468_v17  ;;  %v1277_v38 = vmul.f32 %v3644_v10, %v1276_v28  ;;  %v1344_v33 = vsub.f32 %v7250_v5, %v5752_v18  ;;  %3655 = vpow2.f32 %v1403_v26 }
 0x2a6   : > { %2305 = vrot.lane.b32.xlu0 %v5643_v43, %s3883_s25  ;;  %v1448_v36 = vsub.f32 0.0, %v1447_v60  ;;  %v1255_v39 = vadd.f32 %v1254_v16, %v1220_v58  ;;  %v1300_v44 = vmul.f32 %v3646_v4, %v1299_v34  ;;  %v1322_v7 = vand.u32 2147483647, %v1321_v40  ;;  %v7251_v16 = vld [vmem:[#allocation14_spill] sm:$0xff] }
 0x2a7   : > { %v5764_v22 = vpop.permute.xlu1 %1921  ;;  %v3648_v29 = vpop.eup %3647  ;;  %v1359_v31 = vsub.f32 %v3814_v56, %v5752_v18  ;;  %3657 = vpow2.f32 %v1426_v12  ;;  %v1471_v51 = vsub.f32 0.0, %v1470_v37  ;;  %v1345_v32 = vand.u32 2147483647, %v1344_v33  ;;  %v3815_v34 = vld [vmem:[%s3947_s21 + $0x26] sm:$0xff]  ;;  %v7253_v37 = vld [vmem:[#allocation16_spill] sm:$0xff] }
 0x2a8   : > { %v5766_v25 = vpop.permute.xlu0 %1919  ;;  %v1278_v49 = vadd.f32 %v1277_v38, %v1255_v39  ;;  %v1323_v53 = vmul.f32 %v3648_v29, %v1322_v7  ;;  %v1449_v23 = vmul.f32 1.442695, %v1448_v36  ;;  %v1382_v10 = vsub.f32 %v4899_v19, %v5752_v18  ;;  %v3816_v12 = vld [vmem:[%s3947_s21 + $0x6] sm:$0xff]  ;;  %v7255_v33 = vld [vmem:[#allocation4_spill] sm:$0xff] }
 0x2a9   : > { %2328 = vrot.lane.b32.xlu1 %v5643_v43, %s3884_s26  ;;  %v3650_v3 = vpop.eup %3649  ;;  %v1360_v60 = vand.u32 2147483647, %v1359_v31  ;;  %v1405_v13 = vsub.f32 %v4951_v20, %v5752_v18  ;;  %v1472_v17 = vmul.f32 1.442695, %v1471_v51  ;;  %v1487_v4 = vsub.f32 %v5074_v63, %v5716_v42  ;;  %v7254_v63 = vld [vmem:[#allocation3_spill] sm:$0xff]  ;;  %v7256_v51 = vld [vmem:[#allocation17_spill] sm:$0xff] }
 0x2aa   : > { %2326 = vrot.lane.b32.xlu0 %v5646_v9, %s3884_s26  ;;  %v3652_v41 = vpop.eup %3651  ;;  %v1301_v1 = vadd.f32 %v1300_v44, %v1278_v49  ;;  %v1346_v26 = vmul.f32 %v3650_v3, %v1345_v32  ;;  %v1486_v28 = vsub.f32 %v7251_v16, %v5721_v55  ;;  %3659 = vpow2.f32 %v1449_v23  ;;  %v3817_v44 = vld [vmem:[%s3947_s21 + $0x46] sm:$0xff] }
 0x2ab   : > { %v5774_v52 = vpop.permute.xlu1 %1925  ;;  %v1836_v19 = vsub.f32 %v3815_v34, %v5716_v42  ;;  %v1835_v20 = vsub.f32 %v3816_v12, %v5721_v55  ;;  %v1488_v38 = vsub.f32 %v7253_v37, %v5732_v11  ;;  %v1510_v5 = vsub.f32 %v7254_v63, %v5716_v42  ;;  %v7260_v37 = vld [vmem:[#allocation18_spill] sm:$0xff] }
 0x2ac   : > { %7249 = vst [vmem:[#allocation68_spill] sm:$0xff] %v5774_v52  ;;  %v5776_v8 = vpop.permute.xlu0 %1923  ;;  %v1324_v58 = vadd.f32 %v1323_v53, %v1301_v1  ;;  %v1509_v36 = vsub.f32 %v7255_v33, %v5721_v55  ;;  %v1361_v39 = vmul.f32 %v3652_v41, %v1360_v60  ;;  %v1837_v7 = vsub.f32 %v3817_v44, %v5732_v11  ;;  %v7258_v1 = vld [vmem:[#allocation137_spill] sm:$0xff] }
 0x2ad   : > { %2364 = vrot.lane.b32.xlu1 %v5646_v9, %s3885_s27  ;;  %3661 = vpow2.f32 %v1472_v17  ;;  %v1490_v31 = vmul.f32 %v1487_v4, %v1487_v4  ;;  %v1489_v3 = vmul.f32 %v1486_v28, %v1486_v28  ;;  %v1511_v49 = vsub.f32 %v7256_v51, %v5732_v11  ;;  %v7259_v28 = vld [vmem:[#allocation12_spill] sm:$0xff] }
 0x2ae   : > { %2330 = vrot.lane.b32.xlu0 %v5667_v62, %s3884_s26  ;;  %v1347_v29 = vadd.f32 %v1346_v26, %v1324_v58  ;;  %v1383_v23 = vand.u32 2147483647, %v1382_v10  ;;  %v1428_v16 = vsub.f32 %v7258_v1, %v5752_v18  ;;  %v1839_v26 = vmul.f32 %v1836_v19, %v1836_v19  ;;  %v7261_v19 = vld [vmem:[#allocation21_spill] sm:$0xff] }
 0x2af   : > { %v5786_v50 = vpop.permute.xlu1 %1944  ;;  %v1838_v41 = vmul.f32 %v1835_v20, %v1835_v20  ;;  %v1406_v58 = vand.u32 2147483647, %v1405_v13  ;;  %v1492_v34 = vmul.f32 %v1488_v38, %v1488_v38  ;;  %v1513_v12 = vmul.f32 %v1510_v5, %v1510_v5 }
 0x2b0   : > { %v5788_v45 = vpop.permute.xlu0 %1942  ;;  %v3654_v56 = vpop.eup %3653  ;;  %v1512_v17 = vmul.f32 %v1509_v36, %v1509_v36  ;;  %v1451_v10 = vsub.f32 %v7259_v28, %v5752_v18  ;;  %v1533_v63 = vsub.f32 %v7260_v37, %v5716_v42  ;;  %v1532_v13 = vsub.f32 %v7261_v19, %v5721_v55  ;;  %v7265_v28 = vld [vmem:[#allocation6_spill] sm:$0xff] }
 0x2b1   : > { %2368 = vrot.lane.b32.xlu1 %v5667_v62, %s3885_s27  ;;  %v1384_v4 = vmul.f32 %v3654_v56, %v1383_v23  ;;  %v1362_v20 = vadd.f32 %v1361_v39, %v1347_v29  ;;  %v1491_v38 = vadd.f32 %v1490_v31, %v1489_v3  ;;  %v1515_v5 = vmul.f32 %v1511_v49, %v1511_v49  ;;  %v7264_v23 = vld [vmem:[#allocation13_spill] sm:$0xff]  ;;  %v5849_v29 = vld [vmem:[%s3947_s21 + $0x67] sm:$0xff] }
 0x2b2   : > { %2366 = vrot.lane.b32.xlu0 %v5643_v43, %s3885_s27  ;;  %v3656_v60 = vpop.eup %3655  ;;  %v1841_v33 = vmul.f32 %v1837_v7, %v1837_v7  ;;  %v1474_v1 = vsub.f32 %v7264_v23, %v5752_v18  ;;  %v1534_v37 = vsub.f32 %v7265_v28, %v5732_v11  ;;  %v1429_v52 = vand.u32 2147483647, %v1428_v16  ;;  %v7267_v16 = vld [vmem:[#allocation24_spill] sm:$0xff] }
 0x2b3   : > { %v5802_v48 = vpop.permute.xlu1 %1948  ;;  %v1407_v56 = vmul.f32 %v3656_v60, %v1406_v58  ;;  %v1493_v15 = vadd.f32 %v1492_v34, %v1491_v38  ;;  %v1514_v19 = vadd.f32 %v1513_v12, %v1512_v17  ;;  %v1385_v39 = vadd.f32 %v1384_v4, %v1362_v20  ;;  %v7266_v58 = vld [vmem:[#allocation20_spill] sm:$0xff] }
 0x2b4   : > { %7252 = vst [vmem:[#allocation69_spill] sm:$0xff] %v5802_v48  ;;  %v5804_v40 = vpop.permute.xlu0 %1946  ;;  %v3658_v51 = vpop.eup %3657  ;;  %v1840_v48 = vadd.f32 %v1839_v26, %v1838_v41  ;;  %v1452_v7 = vand.u32 2147483647, %v1451_v10  ;;  %v1536_v31 = vmul.f32 %v1533_v63, %v1533_v63  ;;  %v1535_v3 = vmul.f32 %v1532_v13, %v1532_v13  ;;  %v7271_v13 = vld [vmem:[#allocation9_spill] sm:$0xff] }
 0x2b5   : > { %2389 = vrot.lane.b32.xlu1 %v5643_v43, %s3886_s28  ;;  %v1430_v49 = vmul.f32 %v3658_v51, %v1429_v52  ;;  %v1516_v60 = vadd.f32 %v1515_v5, %v1514_v19  ;;  %v1556_v26 = vsub.f32 %v7266_v58, %v5716_v42  ;;  %v1555_v41 = vsub.f32 %v7267_v16, %v5721_v55  ;;  %v7270_v52 = vld [vmem:[#allocation8_spill] sm:$0xff]  ;;  %v7272_v5 = vld [vmem:[#allocation25_spill] sm:$0xff] }
 0x2b6   : > { %2387 = vrot.lane.b32.xlu0 %v5646_v9, %s3886_s28  ;;  %v1408_v17 = vadd.f32 %v1407_v56, %v1385_v39  ;;  %v1475_v38 = vand.u32 2147483647, %v1474_v1  ;;  %v1538_v23 = vmul.f32 %v1534_v37, %v1534_v37  ;;  %v5863_v28 = vadd.f32 %v1841_v33, %v1840_v48  ;;  %v7273_v48 = vld [vmem:[#allocation2_spill] sm:$0xff]  ;;  %v7275_v37 = vld [vmem:[#allocation28_spill] sm:$0xff] }
 0x2b7   : > { %v5824_v53 = vpop.permute.xlu1 %1979  ;;  %v3660_v4 = vpop.eup %3659  ;;  %v1494_v10 = vsub.f32 0.0, %v1493_v15  ;;  %v1557_v63 = vsub.f32 %v7270_v52, %v5732_v11  ;;  %v1579_v20 = vsub.f32 %v7271_v13, %v5716_v42  ;;  %v1578_v51 = vsub.f32 %v7272_v5, %v5721_v55  ;;  %v7274_v15 = vld [vmem:[#allocation11_spill] sm:$0xff] }
 0x2b8   : > { %v5826_v32 = vpop.permute.xlu0 %1977  ;;  %v1497_v33 = vsub.f32 %v7273_v48, %v5752_v18  ;;  %v1537_v56 = vadd.f32 %v1536_v31, %v1535_v3  ;;  %v1602_v1 = vsub.f32 %v7274_v15, %v5716_v42  ;;  %v1601_v19 = vsub.f32 %v7275_v37, %v5721_v55  ;;  %v7278_v48 = vld [vmem:[#allocation10_spill] sm:$0xff] }
 0x2b9   : > { %7257 = vst [vmem:[#allocation70_spill] sm:$0xff] %v5826_v32  ;;  %2410 = vrot.lane.b32.xlu1 %v5646_v9, %s3887_s29  ;;  %v1431_v39 = vadd.f32 %v1430_v49, %v1408_v17  ;;  %v1517_v58 = vsub.f32 0.0, %v1516_v60  ;;  %v1559_v16 = vmul.f32 %v1556_v26, %v1556_v26  ;;  %v1558_v52 = vmul.f32 %v1555_v41, %v1555_v41  ;;  %v7279_v3 = vld [vmem:[#allocation30_spill] sm:$0xff]  ;;  %v7281_v17 = vld [vmem:[#allocation32_spill] sm:$0xff] }
 0x2ba   : > { %2391 = vrot.lane.b32.xlu0 %v5667_v62, %s3886_s28  ;;  %v1580_v31 = vsub.f32 %v7278_v48, %v5732_v11  ;;  %v1603_v15 = vsub.f32 %v7279_v3, %v5732_v11  ;;  %v1561_v47 = vmul.f32 %v1557_v63, %v1557_v63  ;;  %v1582_v37 = vmul.f32 %v1579_v20, %v1579_v20 }
 0x2bb   : > { %v5840_v36 = vpop.permute.xlu1 %1983  ;;  %v1581_v49 = vmul.f32 %v1578_v51, %v1578_v51  ;;  %v1605_v60 = vmul.f32 %v1602_v1, %v1602_v1  ;;  %v1604_v26 = vmul.f32 %v1601_v19, %v1601_v19  ;;  %v1518_v20 = vmul.f32 1.442695, %v1517_v58 }
 0x2bc   : > { %7262 = vst [vmem:[#allocation43_spill] sm:$0xff] %v5840_v36  ;;  %v5842_v44 = vpop.permute.xlu0 %1981  ;;  %v3662_v36 = vpop.eup %3661  ;;  %v1560_v51 = vadd.f32 %v1559_v16, %v1558_v52  ;;  %v5903_v3 = vand.u32 2147483647, %v1497_v33  ;;  %v1584_v1 = vmul.f32 %v1580_v31, %v1580_v31  ;;  %v1607_v19 = vmul.f32 %v1603_v15, %v1603_v15 }
 0x2bd   : > { %7263 = vst [vmem:[#allocation72_spill] sm:$0xff] %v5842_v44  ;;  %2182 = vrot.lane.b32.xlu1 %v5849_v29, %s3888_s30  ;;  %v1495_v44 = vmul.f32 1.442695, %v1494_v10  ;;  %v7282_v10 = vld [vmem:[#allocation5_spill] sm:$0xff]  ;;  %v1583_v58 = vadd.f32 %v1582_v37, %v1581_v49  ;;  %v1606_v16 = vadd.f32 %v1605_v60, %v1604_v26  ;;  %v7289_v60 = vld [vmem:[#allocation19_spill] sm:$0xff] }
 0x2be   : > { %2412 = vrot.lane.b32.xlu0 %v5643_v43, %s3887_s29  ;;  %v1520_v63 = vsub.f32 %v7282_v10, %v5752_v18  ;;  %v1648_v26 = vsub.f32 %v7289_v60, %v5716_v42  ;;  %v2349_v10 = vsub.f32 %v5646_v9, %v5721_v55  ;;  %v1672_v60 = vsub.f32 %v5412_v2, %v5732_v11 }
 0x2bf   : > { %v5859_v34 = vpop.permute.xlu1 %2002  ;;  %3663 = vpow2.f32 %v1495_v44  ;;  %v7286_v44 = vld [vmem:[#allocation22_spill] sm:$0xff]  ;;  %v1608_v37 = vadd.f32 %v1607_v19, %v1606_v16  ;;  %v5941_v19 = vld [vmem:[%s3947_s21 + $0x9] sm:$0xff] }
 0x2c0   : > { %7268 = vst [vmem:[#allocation73_spill] sm:$0xff] %v5859_v34  ;;  %v5861_v12 = vpop.permute.xlu0 %2000  ;;  %v1539_v34 = vadd.f32 %v1538_v23, %v1537_v56  ;;  %v1624_v23 = vsub.f32 %v7281_v17, %v5721_v55  ;;  %v5912_v17 = vld [vmem:[%s3947_s21 + $0x68] sm:$0xff]  ;;  %v5916_v15 = vand.u32 2147483647, %v1520_v63  ;;  %3665 = vpow2.f32 %v1518_v20 }
 0x2c1   : > { %7269 = vst [vmem:[#allocation74_spill] sm:$0xff] %v5861_v12  ;;  %2433 = vrot.lane.b32.xlu1 %v5646_v9, %s3888_s30  ;;  %v1453_v12 = vmul.f32 %v3660_v4, %v1452_v7  ;;  %v7280_v7 = vld [vmem:[#allocation15_spill] sm:$0xff]  ;;  %v1476_v4 = vmul.f32 %v3662_v36, %v1475_v38  ;;  %v1562_v38 = vadd.f32 %v1561_v47, %v1560_v51  ;;  %v7291_v51 = vld [vmem:[#allocation38_spill] sm:$0xff] }
 0x2c2   : > { %2414 = vrot.lane.b32.xlu0 %v5667_v62, %s3887_s29  ;;  %v1625_v41 = vsub.f32 %v7280_v7, %v5716_v42  ;;  %v7285_v7 = vld [vmem:[#allocation34_spill] sm:$0xff]  ;;  %v1540_v36 = vsub.f32 0.0, %v1539_v34  ;;  %v1627_v33 = vmul.f32 %v1624_v23, %v1624_v23  ;;  %v1671_v20 = vsub.f32 %v5396_v35, %v5716_v42 }
 0x2c3   : > { %v5881_v13 = vpop.permute.xlu1 %2006 }
 0x2c4   : > { %7276 = vst [vmem:[#allocation76_spill] sm:$0xff] %v5881_v13  ;;  %v5883_v5 = vpop.permute.xlu0 %2004  ;;  %v1626_v13 = vsub.f32 %v7285_v7, %v5732_v11  ;;  %v1628_v52 = vmul.f32 %v1625_v41, %v1625_v41  ;;  %v1541_v41 = vmul.f32 1.442695, %v1540_v36  ;;  %v7292_v7 = vld [vmem:[#allocation37_spill] sm:$0xff] }
 0x2c5   : > { %7277 = vst [vmem:[#allocation77_spill] sm:$0xff] %v5883_v5  ;;  %2205 = vrot.lane.b32.xlu1 %v5849_v29, %s3889_s3  ;;  %v1454_v5 = vadd.f32 %v1453_v12, %v1431_v39  ;;  %v1585_v39 = vadd.f32 %v1584_v1, %v1583_v58  ;;  %v1670_v1 = vsub.f32 %v7291_v51, %v5721_v55 }
 0x2c6   : > { %2435 = vrot.lane.b32.xlu0 %v5643_v43, %s3888_s30  ;;  %v1630_v49 = vmul.f32 %v1626_v13, %v1626_v13  ;;  %v1563_v13 = vsub.f32 0.0, %v1562_v38  ;;  %v1629_v63 = vadd.f32 %v1628_v52, %v1627_v33  ;;  %v1649_v36 = vsub.f32 %v7292_v7, %v5732_v11 }
 0x2c7   : > { %v5899_v56 = vpop.permute.xlu1 %2025  ;;  %v5914_v31 = vadd.f32 %v1476_v4, %v1454_v5  ;;  %v7290_v5 = vld [vmem:[#allocation23_spill] sm:$0xff]  ;;  %v2350_v4 = vsub.f32 %v5643_v43, %v5716_v42  ;;  %v2352_v38 = vmul.f32 %v2349_v10, %v2349_v10  ;;  %v1586_v52 = vsub.f32 0.0, %v1585_v39 }
 0x2c8   : > { %7283 = vst [vmem:[#allocation78_spill] sm:$0xff] %v5899_v56  ;;  %v5901_v48 = vpop.permute.xlu0 %2023  ;;  %v1647_v23 = vsub.f32 %v7290_v5, %v5721_v55  ;;  %v1631_v35 = vadd.f32 %v1630_v49, %v1629_v63  ;;  %v1651_v33 = vmul.f32 %v1648_v26, %v1648_v26  ;;  %v1609_v5 = vsub.f32 0.0, %v1608_v37  ;;  %v7295_v49 = vld [vmem:[#allocation41_spill] sm:$0xff]  ;;  %v5962_v10 = vld [vmem:[%s3947_s21 + $0x29] sm:$0xff] }
 0x2c9   : > { %7284 = vst [vmem:[#allocation81_spill] sm:$0xff] %v5901_v48  ;;  %2456 = vrot.lane.b32.xlu1 %v5646_v9, %s3889_s3  ;;  %v2353_v9 = vmul.f32 %v2350_v4, %v2350_v4  ;;  %v1673_v4 = vmul.f32 %v1670_v1, %v1670_v1  ;;  %v1694_v39 = vsub.f32 %v5426_v59, %v5716_v42  ;;  %3667 = vpow2.f32 %v1541_v41  ;;  %v7299_v1 = vld [vmem:[#allocation27_spill] sm:$0xff]  ;;  %v7300_v59 = vld [vmem:[#allocation44_spill] sm:$0xff]  ;;  %v7313_v48 = vld [vmem:[#allocation57_spill] sm:$0xff] }
 0x2ca   : > { %2437 = vrot.lane.b32.xlu0 %v5667_v62, %s3888_s30  ;;  %v1650_v51 = vmul.f32 %v1647_v23, %v1647_v23  ;;  %v1693_v26 = vsub.f32 %v7295_v49, %v5721_v55  ;;  %v1564_v2 = vmul.f32 1.442695, %v1563_v13  ;;  %v1653_v37 = vmul.f32 %v1649_v36, %v1649_v36 }
 0x2cb   : > { %v5920_v34 = vpop.permute.xlu1 %2029  ;;  %v2354_v47 = vadd.f32 %v2353_v9, %v2352_v38  ;;  %v1729_v9 = vsub.f32 %v7300_v59, %v5716_v42  ;;  %v7301_v38 = vld [vmem:[#allocation45_spill] sm:$0xff]  ;;  %v1587_v41 = vmul.f32 1.442695, %v1586_v52  ;;  %v1610_v13 = vmul.f32 1.442695, %v1609_v5  ;;  %v7304_v5 = vld [vmem:[#allocation50_spill] sm:$0xff] }
 0x2cc   : > { %7287 = vst [vmem:[#allocation82_spill] sm:$0xff] %v5920_v34  ;;  %v5922_v12 = vpop.permute.xlu0 %2027  ;;  %v1674_v34 = vmul.f32 %v1671_v20, %v1671_v20  ;;  %v1676_v20 = vmul.f32 %v1672_v60, %v1672_v60  ;;  %v1728_v49 = vsub.f32 %v7301_v38, %v5721_v55  ;;  %v1632_v36 = vsub.f32 0.0, %v1631_v35  ;;  %v7303_v35 = vld [vmem:[#allocation49_spill] sm:$0xff] }
 0x2cd   : > { %7288 = vst [vmem:[#allocation80_spill] sm:$0xff] %v5922_v12  ;;  %2240 = vrot.lane.b32.xlu1 %v5912_v17, %s3880_s22  ;;  %3669 = vpow2.f32 %v1564_v2  ;;  %v7307_v2 = vld [vmem:[#allocation53_spill] sm:$0xff]  ;;  %v1798_v56 = vsub.f32 %v7313_v48, %v5716_v42 }
 0x2ce   : > { %2458 = vrot.lane.b32.xlu0 %v5643_v43, %s3889_s3  ;;  %v2351_v43 = vsub.f32 %v5667_v62, %v5732_v11  ;;  %v1675_v60 = vadd.f32 %v1674_v34, %v1673_v4  ;;  %3671 = vpow2.f32 %v1587_v41 }
 0x2cf   : > { %v5945_v58 = vpop.permute.xlu1 %2048  ;;  %3673 = vpow2.f32 %v1610_v13  ;;  %v7314_v13 = vld [vmem:[#allocation58_spill] sm:$0xff] }
 0x2d0   : > { %7293 = vst [vmem:[#allocation47_spill] sm:$0xff] %v5945_v58  ;;  %v5947_v16 = vpop.permute.xlu0 %2046  ;;  %v2355_v7 = vmul.f32 %v2351_v43, %v2351_v43  ;;  %v1695_v43 = vsub.f32 %v7299_v1, %v5732_v11  ;;  %v1696_v1 = vmul.f32 %v1693_v26, %v1693_v26  ;;  %v1677_v4 = vadd.f32 %v1676_v20, %v1675_v60  ;;  %v7309_v58 = vld [vmem:[#allocation31_spill] sm:$0xff] }
 0x2d1   : > { %7294 = vst [vmem:[#allocation84_spill] sm:$0xff] %v5947_v16  ;;  %2491 = vrot.lane.b32.xlu1 %v5941_v19, %s3880_s22  ;;  %v1652_v16 = vadd.f32 %v1651_v33, %v1650_v51  ;;  %v1752_v33 = vsub.f32 %v7303_v35, %v5716_v42  ;;  %v1751_v51 = vsub.f32 %v7304_v5, %v5721_v55  ;;  %v1633_v20 = vmul.f32 1.442695, %v1632_v36 }
 0x2d2   : > { %2460 = vrot.lane.b32.xlu0 %v5667_v62, %s3889_s3  ;;  %v5968_v62 = vadd.f32 %v2355_v7, %v2354_v47  ;;  %v3664_v47 = vpop.eup %3663  ;;  %v1697_v7 = vmul.f32 %v1694_v39, %v1694_v39  ;;  %v1699_v39 = vmul.f32 %v1695_v43, %v1695_v43  ;;  %v1732_v26 = vmul.f32 %v1729_v9, %v1729_v9 }
 0x2d3   : > { %v5964_v23 = vpop.permute.xlu1 %2052  ;;  %v1654_v52 = vadd.f32 %v1653_v37, %v1652_v16  ;;  %v5993_v34 = vpop.eup %3665  ;;  %v1753_v16 = vsub.f32 %v7307_v2, %v5732_v11  ;;  %v7308_v37 = vld [vmem:[#allocation54_spill] sm:$0xff]  ;;  %v1774_v5 = vsub.f32 %v7309_v58, %v5721_v55  ;;  %v1755_v41 = vmul.f32 %v1752_v33, %v1752_v33  ;;  %v7310_v2 = vld [vmem:[#allocation35_spill] sm:$0xff] }
 0x2d4   : > { %7296 = vst [vmem:[#allocation51_spill] sm:$0xff] %v5964_v23  ;;  %v5966_v63 = vpop.permute.xlu0 %2050  ;;  %7298 = vst [vmem:[#allocation85_spill] sm:$0xff] %v5968_v62  ;;  %v7302_v62 = vld [vmem:[#allocation48_spill] sm:$0xff]  ;;  %v1775_v35 = vsub.f32 %v7308_v37, %v5716_v42  ;;  %v1698_v43 = vadd.f32 %v1697_v7, %v1696_v1  ;;  %v1754_v60 = vmul.f32 %v1751_v51, %v1751_v51  ;;  %v1678_v7 = vsub.f32 0.0, %v1677_v4  ;;  %v7315_v51 = vld [vmem:[#allocation61_spill] sm:$0xff] }
 0x2d5   : > { %7297 = vst [vmem:[#allocation55_spill] sm:$0xff] %v5966_v63  ;;  %2263 = vrot.lane.b32.xlu1 %v5912_v17, %s3881_s23  ;;  %v1730_v59 = vsub.f32 %v7302_v62, %v5732_v11  ;;  %v5983_v23 = vld [vmem:[%s3947_s21 + $0x49] sm:$0xff]  ;;  %v1731_v62 = vmul.f32 %v1728_v49, %v1728_v49  ;;  %v1655_v49 = vsub.f32 0.0, %v1654_v52  ;;  %v1797_v36 = vsub.f32 %v7314_v13, %v5721_v55 }
 0x2d6   : > { %2493 = vrot.lane.b32.xlu0 %v5962_v10, %s3880_s22  ;;  %v1700_v58 = vadd.f32 %v1699_v39, %v1698_v43  ;;  %v1757_v1 = vmul.f32 %v1753_v16, %v1753_v16  ;;  %v1777_v52 = vmul.f32 %v1774_v5, %v1774_v5  ;;  %v1799_v39 = vsub.f32 %v7315_v51, %v5732_v11 }
 0x2d7   : > { %v5989_v38 = vpop.permute.xlu1 %2071  ;;  %v1734_v9 = vmul.f32 %v1730_v59, %v1730_v59  ;;  %v1733_v12 = vadd.f32 %v1732_v26, %v1731_v62  ;;  %v1778_v59 = vmul.f32 %v1775_v35, %v1775_v35  ;;  %v7316_v26 = vld [vmem:[#allocation62_spill] sm:$0xff]  ;;  %v7317_v62 = vld [vmem:[#allocation64_spill] sm:$0xff]  ;;  %v1499_v4 = vmul.f32 %v3664_v47, %v5903_v3 }
 0x2d8   : > { %7305 = vst [vmem:[#allocation86_spill] sm:$0xff] %v5989_v38  ;;  %v5991_v63 = vpop.permute.xlu0 %2069  ;;  %v1821_v48 = vsub.f32 %v7316_v26, %v5716_v42  ;;  %v1820_v43 = vsub.f32 %v7317_v62, %v5721_v55  ;;  %v1656_v16 = vmul.f32 1.442695, %v1655_v49  ;;  %v1756_v35 = vadd.f32 %v1755_v41, %v1754_v60 }
 0x2d9   : > { %7306 = vst [vmem:[#allocation88_spill] sm:$0xff] %v5991_v63  ;;  %2514 = vrot.lane.b32.xlu1 %v5941_v19, %s3881_s23  ;;  %v1776_v63 = vsub.f32 %v7310_v2, %v5732_v11  ;;  %v1735_v33 = vadd.f32 %v1734_v9, %v1733_v12  ;;  %v1701_v12 = vsub.f32 0.0, %v1700_v58  ;;  %v1801_v9 = vmul.f32 %v1798_v56, %v1798_v56 }
 0x2da   : > { %2495 = vrot.lane.b32.xlu0 %v5983_v23, %s3880_s22  ;;  %v1822_v51 = vsub.f32 %v5632_v6, %v5732_v11  ;;  %3675 = vpow2.f32 %v1633_v20  ;;  %v1679_v26 = vmul.f32 1.442695, %v1678_v7  ;;  %v1758_v32 = vadd.f32 %v1757_v1, %v1756_v35  ;;  %v7319_v20 = vld [vmem:[#allocation7_spill] sm:$0xff] }
 0x2db   : > { %v6007_v37 = vpop.permute.xlu1 %2075  ;;  %v1780_v5 = vmul.f32 %v1776_v63, %v1776_v63  ;;  %v1779_v62 = vadd.f32 %v1778_v59, %v1777_v52  ;;  %v1736_v3 = vsub.f32 0.0, %v1735_v33  ;;  %v1803_v63 = vmul.f32 %v1799_v39, %v1799_v39  ;;  %v7321_v39 = vld [vmem:[#allocation26_spill] sm:$0xff] }
 0x2dc   : > { %7311 = vst [vmem:[#allocation59_spill] sm:$0xff] %v6007_v37  ;;  %v6009_v38 = vpop.permute.xlu0 %2073  ;;  %v3668_v37 = vpop.eup %3667  ;;  %v1824_v47 = vmul.f32 %v1821_v48, %v1821_v48  ;;  %v1823_v49 = vmul.f32 %v1820_v43, %v1820_v43  ;;  %v1500_v56 = vadd.f32 %v1499_v4, %v5914_v31  ;;  %v7318_v41 = vsub.f32 %v7286_v44, %v5752_v18  ;;  %v7322_v48 = vld [vmem:[#allocation29_spill] sm:$0xff] }
 0x2dd   : > { %7312 = vst [vmem:[#allocation63_spill] sm:$0xff] %v6009_v38  ;;  %2286 = vrot.lane.b32.xlu1 %v5912_v17, %s3882_s24  ;;  %v1800_v38 = vmul.f32 %v1797_v36, %v1797_v36  ;;  %v1566_v60 = vsub.f32 %v7319_v20, %v5752_v18  ;;  %v1781_v58 = vadd.f32 %v1780_v5, %v1779_v62  ;;  %v3670_v1 = vpop.eup %3669  ;;  %3677 = vpow2.f32 %v1656_v16 }
 0x2de   : > { %2516 = vrot.lane.b32.xlu0 %v5962_v10, %s3881_s23  ;;  %v1544_v6 = vand.u32 2147483647, %v7318_v41  ;;  %v1702_v59 = vmul.f32 1.442695, %v1701_v12  ;;  %v1826_v33 = vmul.f32 %v1822_v51, %v1822_v51  ;;  %v1522_v31 = vmul.f32 %v5993_v34, %v5916_v15  ;;  %v3672_v16 = vpop.eup %3671 }
 0x2df   : > { %v6026_v2 = vpop.permute.xlu1 %2109  ;;  %v1802_v52 = vadd.f32 %v1801_v9, %v1800_v38  ;;  %v1589_v44 = vsub.f32 %v7321_v39, %v5752_v18  ;;  %v1612_v43 = vsub.f32 %v7322_v48, %v5752_v18  ;;  %v1759_v4 = vsub.f32 0.0, %v1758_v32  ;;  %v3674_v12 = vpop.eup %3673 }
 0x2e0   : > { %v6028_v13 = vpop.permute.xlu0 %2107  ;;  %3679 = vpow2.f32 %v1679_v26  ;;  %v1737_v38 = vmul.f32 1.442695, %v1736_v3  ;;  %v1825_v5 = vadd.f32 %v1824_v47, %v1823_v49  ;;  %v1545_v15 = vmul.f32 %v3668_v37, %v1544_v6 }
 0x2e1   : > { %2537 = vrot.lane.b32.xlu1 %v5941_v19, %s3882_s24  ;;  %v1804_v35 = vadd.f32 %v1803_v63, %v1802_v52  ;;  %v1782_v34 = vsub.f32 0.0, %v1781_v58  ;;  %v1859_v9 = vsub.f32 %v5648_v27, %v5716_v42  ;;  %v1858_v32 = vsub.f32 %v5650_v30, %v5721_v55 }
 0x2e2   : > { %2518 = vrot.lane.b32.xlu0 %v5983_v23, %s3881_s23  ;;  %v1567_v41 = vand.u32 2147483647, %v1566_v60  ;;  %3681 = vpow2.f32 %v1702_v59  ;;  %v1827_v20 = vadd.f32 %v1826_v33, %v1825_v5  ;;  %v1843_v26 = vsub.f32 0.0, %v5863_v28 }
 0x2e3   : > { %v6042_v36 = vpop.permute.xlu1 %2113  ;;  %v1523_v3 = vadd.f32 %v1522_v31, %v1500_v56  ;;  %v1590_v63 = vand.u32 2147483647, %v1589_v44  ;;  %v1760_v47 = vmul.f32 1.442695, %v1759_v4  ;;  %v1860_v37 = vsub.f32 %v5672_v57, %v5732_v11  ;;  %v7324_v57 = vld [vmem:[#allocation33_spill] sm:$0xff]  ;;  %v3819_v31 = vld [vmem:[%s3947_s21 + $0x7] sm:$0xff] }
 0x2e4   : > { %7320 = vst [vmem:[#allocation89_spill] sm:$0xff] %v6042_v36  ;;  %v6044_v7 = vpop.permute.xlu0 %2111  ;;  %v1568_v27 = vmul.f32 %v3670_v1, %v1567_v41  ;;  %v1613_v30 = vand.u32 2147483647, %v1612_v43  ;;  %3683 = vpow2.f32 %v1737_v38  ;;  %v1805_v49 = vsub.f32 0.0, %v1804_v35  ;;  %v3820_v44 = vld [vmem:[%s3947_s21 + $0x27] sm:$0xff] }
 0x2e5   : > { %2309 = vrot.lane.b32.xlu1 %v5912_v17, %s3883_s25  ;;  %v1546_v6 = vadd.f32 %v1545_v15, %v1523_v3  ;;  %v1783_v28 = vmul.f32 1.442695, %v1782_v34  ;;  %v1862_v56 = vmul.f32 %v1859_v9, %v1859_v9  ;;  %v1861_v60 = vmul.f32 %v1858_v32, %v1858_v32  ;;  %v7325_v15 = vld [vmem:[#allocation36_spill] sm:$0xff]  ;;  %v3821_v3 = vld [vmem:[%s3947_s21 + $0x47] sm:$0xff] }
 0x2e6   : > { %2539 = vrot.lane.b32.xlu0 %v5962_v10, %s3882_s24  ;;  %v1635_v52 = vsub.f32 %v7324_v57, %v5752_v18  ;;  %v1828_v33 = vsub.f32 0.0, %v1827_v20  ;;  %v2092_v39 = vsub.f32 %v3819_v31, %v5721_v55  ;;  %v2093_v1 = vsub.f32 %v3820_v44, %v5716_v42  ;;  %v7326_v32 = vld [vmem:[#allocation40_spill] sm:$0xff] }
 0x2e7   : > { %v6060_v51 = vpop.permute.xlu1 %2132  ;;  %v1591_v48 = vmul.f32 %v3672_v16, %v1590_v63  ;;  %3685 = vpow2.f32 %v1760_v47  ;;  %v1844_v43 = vmul.f32 1.442695, %v1843_v26  ;;  %v1864_v4 = vmul.f32 %v1860_v37, %v1860_v37  ;;  %v3676_v38 = vpop.eup %3675 }
 0x2e8   : > { %v6062_v62 = vpop.permute.xlu0 %2130  ;;  %v1569_v35 = vadd.f32 %v1568_v27, %v1546_v6  ;;  %v1614_v5 = vmul.f32 %v3674_v12, %v1613_v30  ;;  %v1658_v34 = vsub.f32 %v7325_v15, %v5752_v18  ;;  %v1806_v9 = vmul.f32 1.442695, %v1805_v49 }
 0x2e9   : > { %2560 = vrot.lane.b32.xlu1 %v5941_v19, %s3883_s25  ;;  %v1681_v16 = vsub.f32 %v7326_v32, %v5752_v18  ;;  %3687 = vpow2.f32 %v1783_v28  ;;  %v1863_v41 = vadd.f32 %v1862_v56, %v1861_v60  ;;  %v2094_v63 = vsub.f32 %v3821_v3, %v5732_v11  ;;  %v7327_v60 = vld [vmem:[#allocation42_spill] sm:$0xff]  ;;  %v7330_v3 = vld [vmem:[#allocation52_spill] sm:$0xff] }
 0x2ea   : > { %2541 = vrot.lane.b32.xlu0 %v5983_v23, %s3882_s24  ;;  %v1636_v47 = vand.u32 2147483647, %v1635_v52  ;;  %v1829_v37 = vmul.f32 1.442695, %v1828_v33  ;;  %v2095_v27 = vmul.f32 %v2092_v39, %v2092_v39  ;;  %v2096_v12 = vmul.f32 %v2093_v1, %v2093_v1  ;;  %v3678_v30 = vpop.eup %3677 }
 0x2eb   : > { %v6071_v58 = vpop.permute.xlu1 %2136  ;;  %v1592_v6 = vadd.f32 %v1591_v48, %v1569_v35  ;;  %3689 = vpow2.f32 %v1844_v43  ;;  %v1865_v49 = vadd.f32 %v1864_v4, %v1863_v41  ;;  %v1659_v56 = vand.u32 2147483647, %v1658_v34  ;;  %v7329_v43 = vld [vmem:[#allocation46_spill] sm:$0xff] }
 0x2ec   : > { %7323 = vst [vmem:[#allocation90_spill] sm:$0xff] %v6071_v58  ;;  %v6073_v59 = vpop.permute.xlu0 %2134  ;;  %v1637_v28 = vmul.f32 %v3676_v38, %v1636_v47  ;;  %v1704_v57 = vsub.f32 %v7327_v60, %v5752_v18  ;;  %3691 = vpow2.f32 %v1806_v9  ;;  %v1682_v31 = vand.u32 2147483647, %v1681_v16  ;;  %v3822_v47 = vld [vmem:[%s3947_s21 + $0x66] sm:$0xff] }
 0x2ed   : > { %2332 = vrot.lane.b32.xlu1 %v5912_v17, %s3884_s26  ;;  %v3680_v52 = vpop.eup %3679  ;;  %v1615_v33 = vadd.f32 %v1614_v5, %v1592_v6  ;;  %v2098_v1 = vmul.f32 %v2094_v63, %v2094_v63  ;;  %v1660_v48 = vmul.f32 %v3678_v30, %v1659_v56  ;;  %v1739_v4 = vsub.f32 %v7329_v43, %v5752_v18 }
 0x2ee   : > { %2562 = vrot.lane.b32.xlu0 %v5962_v10, %s3883_s25  ;;  %3693 = vpow2.f32 %v1829_v37  ;;  %v2097_v38 = vadd.f32 %v2096_v12, %v2095_v27  ;;  %v1866_v15 = vsub.f32 0.0, %v1865_v49  ;;  %v1882_v34 = vsub.f32 %v5688_v61, %v5716_v42 }
 0x2ef   : > { %v6089_v20 = vpop.permute.xlu1 %2155  ;;  %v3682_v35 = vpop.eup %3681  ;;  %v1881_v5 = vsub.f32 %v5690_v54, %v5721_v55  ;;  %v1638_v9 = vadd.f32 %v1637_v28, %v1615_v33  ;;  %v1683_v32 = vmul.f32 %v3680_v52, %v1682_v31  ;;  %v1705_v16 = vand.u32 2147483647, %v1704_v57  ;;  %v7331_v28 = vld [vmem:[#allocation56_spill] sm:$0xff] }
 0x2f0   : > { %v6091_v26 = vpop.permute.xlu0 %2153  ;;  %v1762_v63 = vsub.f32 %v7330_v3, %v5752_v18  ;;  %v1846_v37 = vsub.f32 %v3822_v47, %v5752_v18  ;;  %v1883_v61 = vsub.f32 %v5709_v24, %v5732_v11  ;;  %v1740_v6 = vand.u32 2147483647, %v1739_v4 }
 0x2f1   : > { %2583 = vrot.lane.b32.xlu1 %v5941_v19, %s3884_s26  ;;  %v3684_v41 = vpop.eup %3683  ;;  %v1661_v12 = vadd.f32 %v1660_v48, %v1638_v9  ;;  %v1706_v30 = vmul.f32 %v3682_v35, %v1705_v16  ;;  %v2099_v49 = vadd.f32 %v2098_v1, %v2097_v38  ;;  %v1785_v56 = vsub.f32 %v7331_v28, %v5752_v18  ;;  %v7332_v9 = vld [vmem:[#allocation60_spill] sm:$0xff] }
 0x2f2   : > { %2564 = vrot.lane.b32.xlu0 %v5983_v23, %s3883_s25  ;;  %v1867_v60 = vmul.f32 1.442695, %v1866_v15  ;;  %v1885_v57 = vmul.f32 %v1882_v34, %v1882_v34  ;;  %v1884_v52 = vmul.f32 %v1881_v5, %v1881_v5  ;;  %v1741_v31 = vmul.f32 %v3684_v41, %v1740_v6 }
 0x2f3   : > { %v6101_v39 = vpop.permute.xlu1 %2159  ;;  %v1684_v33 = vadd.f32 %v1683_v32, %v1661_v12  ;;  %v1905_v48 = vsub.f32 %v5727_v14, %v5716_v42  ;;  %v1904_v1 = vsub.f32 %v5729_v21, %v5721_v55  ;;  %v1763_v43 = vand.u32 2147483647, %v1762_v63 }
 0x2f4   : > { %7328 = vst [vmem:[#allocation67_spill] sm:$0xff] %v6101_v39  ;;  %v6103_v44 = vpop.permute.xlu0 %2157  ;;  %v3686_v24 = vpop.eup %3685  ;;  %v1847_v4 = vand.u32 2147483647, %v1846_v37  ;;  %v1887_v38 = vmul.f32 %v1883_v61, %v1883_v61  ;;  %v1808_v16 = vsub.f32 %v7332_v9, %v5752_v18  ;;  %v1906_v32 = vsub.f32 %v5749_v0, %v5732_v11  ;;  %v7333_v37 = vld [vmem:[#allocation65_spill] sm:$0xff] }
 0x2f5   : > { %2587 = vrot.lane.b32.xlu1 %v5983_v23, %s3884_s26  ;;  %v1707_v5 = vadd.f32 %v1706_v30, %v1684_v33  ;;  %v2100_v41 = vsub.f32 0.0, %v2099_v49  ;;  %v1764_v14 = vmul.f32 %v3686_v24, %v1763_v43  ;;  %v1786_v3 = vand.u32 2147483647, %v1785_v56 }
 0x2f6   : > { %2585 = vrot.lane.b32.xlu0 %v5962_v10, %s3884_s26  ;;  %v3688_v34 = vpop.eup %3687  ;;  %3695 = vpow2.f32 %v1867_v60  ;;  %v1886_v21 = vadd.f32 %v1885_v57, %v1884_v52  ;;  %v1831_v61 = vsub.f32 %v7333_v37, %v5752_v18  ;;  %v1908_v12 = vmul.f32 %v1905_v48, %v1905_v48 }
 0x2f7   : > { %v6121_v54 = vpop.permute.xlu1 %2178  ;;  %v1742_v47 = vadd.f32 %v1741_v31, %v1707_v5  ;;  %v1907_v30 = vmul.f32 %v1904_v1, %v1904_v1  ;;  %v1787_v0 = vmul.f32 %v3688_v34, %v1786_v3  ;;  %v1928_v28 = vsub.f32 %v5764_v22, %v5716_v42  ;;  %v6175_v3 = vld [vmem:[%s3947_s21 + $0x5] sm:$0xff] }
 0x2f8   : > { %v6123_v27 = vpop.permute.xlu0 %2176  ;;  %v3690_v63 = vpop.eup %3689  ;;  %v1888_v49 = vadd.f32 %v1887_v38, %v1886_v21  ;;  %v1927_v56 = vsub.f32 %v5766_v25, %v5721_v55  ;;  %v1809_v52 = vand.u32 2147483647, %v1808_v16  ;;  %v1910_v24 = vmul.f32 %v1906_v32, %v1906_v32 }
 0x2f9   : > { %2621 = vrot.lane.b32.xlu1 %v5941_v19, %s3885_s27  ;;  %v3692_v6 = vpop.eup %3691  ;;  %v1765_v31 = vadd.f32 %v1764_v14, %v1742_v47  ;;  %v1848_v43 = vmul.f32 %v3690_v63, %v1847_v4  ;;  %v1929_v48 = vsub.f32 %v5776_v8, %v5732_v11  ;;  %v2101_v42 = vmul.f32 1.442695, %v2100_v41  ;;  %v6170_v14 = vld [vmem:[%s3947_s21 + $0x25] sm:$0xff] }
 0x2fa   : > { %2370 = vrot.lane.b32.xlu0 %v5912_v17, %s3885_s27  ;;  %v1810_v55 = vmul.f32 %v3692_v6, %v1809_v52  ;;  %v1832_v22 = vand.u32 2147483647, %v1831_v61  ;;  %v1909_v25 = vadd.f32 %v1908_v12, %v1907_v30  ;;  %v2103_v1 = vsub.f32 %v5849_v29, %v5752_v18  ;;  %v7334_v61 = vld [vmem:[#allocation70_spill] sm:$0xff] }
 0x2fb   : > { %v6135_v35 = vpop.permute.xlu1 %2199  ;;  %v3694_v33 = vpop.eup %3693  ;;  %v1788_v38 = vadd.f32 %v1787_v0, %v1765_v31  ;;  %v1889_v4 = vsub.f32 0.0, %v1888_v49  ;;  %v1931_v34 = vmul.f32 %v1928_v28, %v1928_v28  ;;  %v1930_v5 = vmul.f32 %v1927_v56, %v1927_v56  ;;  %v6200_v31 = vld [vmem:[%s3947_s21 + $0x45] sm:$0xff] }
 0x2fc   : > { %v6137_v15 = vpop.permute.xlu0 %2180  ;;  %v1833_v16 = vmul.f32 %v3694_v33, %v1832_v22  ;;  %v1911_v32 = vadd.f32 %v1910_v24, %v1909_v25  ;;  %v1951_v41 = vsub.f32 %v5786_v50, %v6170_v14  ;;  %v1950_v29 = vsub.f32 %v5788_v45, %v6175_v3  ;;  %v7338_v25 = vld [vmem:[#allocation73_spill] sm:$0xff] }
 0x2fd   : > { %2393 = vrot.lane.b32.xlu1 %v5912_v17, %s3886_s28  ;;  %v1869_v21 = vsub.f32 %v5670_v46, %v5752_v18  ;;  %v1933_v63 = vmul.f32 %v1929_v48, %v1929_v48  ;;  %v1952_v47 = vsub.f32 %v5804_v40, %v5732_v11  ;;  %v1811_v37 = vadd.f32 %v1810_v55, %v1788_v38  ;;  %v7335_v46 = vld [vmem:[#allocation66_spill] sm:$0xff] }
 0x2fe   : > { %2623 = vrot.lane.b32.xlu0 %v5962_v10, %s3885_s27  ;;  %v1986_v50 = vsub.f32 %v5824_v53, %v6170_v14  ;;  %v1985_v45 = vsub.f32 %v7334_v61, %v6175_v3  ;;  %3697 = vpow2.f32 %v2101_v42  ;;  %v1892_v12 = vsub.f32 %v7335_v46, %v5752_v18  ;;  %v7337_v18 = vld [vmem:[#allocation72_spill] sm:$0xff]  ;;  %v7339_v38 = vld [vmem:[#allocation74_spill] sm:$0xff] }
 0x2ff   : > { %v6153_v60 = vpop.permute.xlu1 %2203  ;;  %v1890_v30 = vmul.f32 1.442695, %v1889_v4  ;;  %v1932_v11 = vadd.f32 %v1931_v34, %v1930_v5  ;;  %v6197_v0 = vand.u32 2147483647, %v2103_v1  ;;  %v1834_v49 = vadd.f32 %v1833_v16, %v1811_v37  ;;  %v6213_v34 = vld [vmem:[%s3947_s21 + $0x65] sm:$0xff] }
 0x300   : > { %v6155_v57 = vpop.permute.xlu0 %2201  ;;  %v1912_v28 = vsub.f32 0.0, %v1911_v32  ;;  %v1954_v53 = vmul.f32 %v1951_v41, %v1951_v41  ;;  %v1953_v56 = vmul.f32 %v1950_v29, %v1950_v29  ;;  %v1870_v52 = vand.u32 2147483647, %v1869_v21  ;;  %v7340_v5 = vld [vmem:[#allocation39_spill] sm:$0xff]  ;;  %v7341_v32 = vld [vmem:[#allocation78_spill] sm:$0xff]  ;;  %v7342_v29 = vld [vmem:[#allocation81_spill] sm:$0xff] }
 0x301   : > { %2644 = vrot.lane.b32.xlu1 %v5941_v19, %s3886_s28  ;;  %7336 = vst [vmem:[#allocation71_spill] sm:$0xff] %v6197_v0  ;;  %v1934_v24 = vadd.f32 %v1933_v63, %v1932_v11  ;;  %v1956_v33 = vmul.f32 %v1952_v47, %v1952_v47  ;;  %v1987_v48 = vsub.f32 %v7337_v18, %v6200_v31  ;;  %3699 = vpow2.f32 %v1890_v30 }
 0x302   : > { %2625 = vrot.lane.b32.xlu0 %v5983_v23, %s3885_s27  ;;  %v1989_v55 = vmul.f32 %v1986_v50, %v1986_v50  ;;  %v1988_v22 = vmul.f32 %v1985_v45, %v1985_v45  ;;  %v2009_v1 = vsub.f32 %v7338_v25, %v6170_v14  ;;  %v2008_v4 = vsub.f32 %v7339_v38, %v6175_v3  ;;  %v7343_v45 = vld [vmem:[#allocation77_spill] sm:$0xff]  ;;  %v7344_v25 = vld [vmem:[#allocation80_spill] sm:$0xff] }
 0x303   : > { %v6165_v8 = vpop.permute.xlu1 %2236  ;;  %v3696_v42 = vpop.eup %3695  ;;  %v1915_v16 = vsub.f32 %v7340_v5, %v6213_v34  ;;  %v2032_v41 = vsub.f32 %v7341_v32, %v6170_v14  ;;  %v2031_v21 = vsub.f32 %v7342_v29, %v6175_v3  ;;  %v1849_v37 = vadd.f32 %v1848_v43, %v1834_v49 }
 0x304   : > { %v6167_v9 = vpop.permute.xlu0 %2234  ;;  %v1913_v50 = vmul.f32 1.442695, %v1912_v28  ;;  %v1955_v61 = vadd.f32 %v1954_v53, %v1953_v56  ;;  %v2010_v46 = vsub.f32 %v7343_v45, %v6200_v31  ;;  %v1871_v30 = vmul.f32 %v3696_v42, %v1870_v52  ;;  %v7345_v56 = vld [vmem:[#allocation47_spill] sm:$0xff] }
 0x305   : > { %2416 = vrot.lane.b32.xlu1 %v5912_v17, %s3887_s29  ;;  %v1935_v11 = vsub.f32 0.0, %v1934_v24  ;;  %v1991_v18 = vmul.f32 %v1987_v48, %v1987_v48  ;;  %v2033_v38 = vsub.f32 %v7344_v25, %v6200_v31  ;;  %v1990_v32 = vadd.f32 %v1989_v55, %v1988_v22  ;;  %v7346_v24 = vld [vmem:[#allocation84_spill] sm:$0xff]  ;;  %v7348_v25 = vld [vmem:[#allocation86_spill] sm:$0xff] }
 0x306   : > { %2646 = vrot.lane.b32.xlu0 %v5962_v10, %s3886_s28  ;;  %v1957_v5 = vadd.f32 %v1956_v33, %v1955_v61  ;;  %v2012_v43 = vmul.f32 %v2009_v1, %v2009_v1  ;;  %v2011_v49 = vmul.f32 %v2008_v4, %v2008_v4  ;;  %v2035_v28 = vmul.f32 %v2032_v41, %v2032_v41  ;;  %v7349_v55 = vld [vmem:[#allocation88_spill] sm:$0xff] }
 0x307   : > { %v6193_v40 = vpop.permute.xlu1 %2257  ;;  %v2034_v53 = vmul.f32 %v2031_v21, %v2031_v21  ;;  %v2055_v52 = vsub.f32 %v7345_v56, %v6170_v14  ;;  %v2054_v48 = vsub.f32 %v7346_v24, %v6175_v3  ;;  %3701 = vpow2.f32 %v1913_v50  ;;  %v7350_v21 = vld [vmem:[#allocation55_spill] sm:$0xff]  ;;  %v7351_v50 = vld [vmem:[#allocation68_spill] sm:$0xff] }
 0x308   : > { %v6195_v6 = vpop.permute.xlu0 %2238  ;;  %v2014_v45 = vmul.f32 %v2010_v46, %v2010_v46  ;;  %v2078_v33 = vsub.f32 %v7348_v25, %v6170_v14  ;;  %v2077_v22 = vsub.f32 %v7349_v55, %v6175_v3  ;;  %v1893_v1 = vand.u32 2147483647, %v1892_v12  ;;  %v7352_v25 = vld [vmem:[#allocation63_spill] sm:$0xff] }
 0x309   : > { %2667 = vrot.lane.b32.xlu1 %v5941_v19, %s3887_s29  ;;  %v1992_v4 = vadd.f32 %v1991_v18, %v1990_v32  ;;  %v2037_v41 = vmul.f32 %v2033_v38, %v2033_v38  ;;  %v2056_v61 = vsub.f32 %v7350_v21, %v6200_v31  ;;  %v1938_v46 = vsub.f32 %v7351_v50, %v6213_v34 }
 0x30a   : > { %2648 = vrot.lane.b32.xlu0 %v5983_v23, %s3886_s28  ;;  %v1936_v56 = vmul.f32 1.442695, %v1935_v11  ;;  %v2013_v24 = vadd.f32 %v2012_v43, %v2011_v49  ;;  %v2079_v55 = vsub.f32 %v7352_v25, %v6200_v31  ;;  %v1958_v18 = vsub.f32 0.0, %v1957_v5 }
 0x30b   : > { %v6221_v63 = vpop.permute.xlu1 %2261  ;;  %v6255_v12 = vpop.eup %3697  ;;  %v2036_v38 = vadd.f32 %v2035_v28, %v2034_v53  ;;  %v2058_v32 = vmul.f32 %v2055_v52, %v2055_v52  ;;  %v2057_v21 = vmul.f32 %v2054_v48, %v2054_v48  ;;  %v6261_v58 = vand.u32 2147483647, %v1915_v16 }
 0x30c   : > { %v6223_v47 = vpop.permute.xlu0 %2259  ;;  %v2015_v36 = vadd.f32 %v2014_v45, %v2013_v24  ;;  %v2080_v50 = vmul.f32 %v2077_v22, %v2077_v22  ;;  %v6263_v11 = vadd.f32 %v1871_v30, %v1849_v37  ;;  %v1993_v43 = vsub.f32 0.0, %v1992_v4  ;;  %v7353_v37 = vld [vmem:[#allocation69_spill] sm:$0xff] }
 0x30d   : > { %2439 = vrot.lane.b32.xlu1 %v5912_v17, %s3888_s30  ;;  %v2038_v49 = vadd.f32 %v2037_v41, %v2036_v38  ;;  %v2060_v25 = vmul.f32 %v2056_v61, %v2056_v61  ;;  %v6269_v5 = vand.u32 2147483647, %v1938_v46  ;;  %v2083_v28 = vmul.f32 %v2079_v55, %v2079_v55  ;;  %v6294_v55 = vld [vmem:[%s3947_s21 + $0x69] sm:$0xff] }
 0x30e   : > { %2669 = vrot.lane.b32.xlu0 %v5962_v10, %s3887_s29  ;;  %v2116_v16 = vsub.f32 %v6026_v2, %v6170_v14  ;;  %v2115_v53 = vsub.f32 %v6028_v13, %v6175_v3  ;;  %3703 = vpow2.f32 %v1936_v56  ;;  %v1961_v30 = vsub.f32 %v7353_v37, %v6213_v34 }
 0x30f   : > { %v6237_v42 = vpop.permute.xlu1 %2282  ;;  %v1959_v52 = vmul.f32 1.442695, %v1958_v18  ;;  %v2059_v48 = vadd.f32 %v2058_v32, %v2057_v21  ;;  %v2016_v22 = vsub.f32 0.0, %v2015_v36  ;;  %v2139_v2 = vsub.f32 %v6060_v51, %v6170_v14 }
 0x310   : > { %v6239_v29 = vpop.permute.xlu0 %2280  ;;  %v2138_v13 = vsub.f32 %v6062_v62, %v6175_v3  ;;  %v1994_v41 = vmul.f32 1.442695, %v1993_v43  ;;  %v2039_v61 = vsub.f32 0.0, %v2038_v49  ;;  %v2117_v56 = vsub.f32 %v6044_v7, %v6200_v31 }
 0x311   : > { %7347 = vst [vmem:[#allocation92_spill] sm:$0xff] %v6239_v29  ;;  %2690 = vrot.lane.b32.xlu1 %v5941_v19, %s3888_s30  ;;  %v2081_v29 = vmul.f32 %v2078_v33, %v2078_v33  ;;  %v3700_v33 = vpop.eup %3699  ;;  %v2061_v46 = vadd.f32 %v2060_v25, %v2059_v48  ;;  %v2118_v24 = vmul.f32 %v2115_v53, %v2115_v53  ;;  %3705 = vpow2.f32 %v1959_v52  ;;  %v6315_v53 = vld [vmem:[%s3947_s21 + $0xa] sm:$0xff] }
 0x312   : > { %2671 = vrot.lane.b32.xlu0 %v5983_v23, %s3887_s29  ;;  %v2140_v51 = vsub.f32 %v6073_v59, %v6200_v31  ;;  %v6296_v62 = vmul.f32 %v3700_v33, %v1893_v1  ;;  %v2162_v7 = vsub.f32 %v6089_v20, %v6170_v14  ;;  %v6306_v32 = vand.u32 2147483647, %v1961_v30 }
 0x313   : > { %v6257_v0 = vpop.permute.xlu1 %2303  ;;  %v2082_v4 = vadd.f32 %v2081_v29, %v2080_v50  ;;  %v2119_v29 = vmul.f32 %v2116_v16, %v2116_v16  ;;  %v2017_v21 = vmul.f32 1.442695, %v2016_v22  ;;  %v2142_v59 = vmul.f32 %v2139_v2, %v2139_v2 }
 0x314   : > { %v6259_v39 = vpop.permute.xlu0 %2284  ;;  %v2141_v50 = vmul.f32 %v2138_v13, %v2138_v13  ;;  %v3702_v43 = vpop.eup %3701  ;;  %v2040_v1 = vmul.f32 1.442695, %v2039_v61  ;;  %v2062_v49 = vsub.f32 0.0, %v2061_v46  ;;  %v2121_v25 = vmul.f32 %v2117_v56, %v2117_v56  ;;  %v6337_v46 = vld [vmem:[%s3947_s21 + $0x2a] sm:$0xff] }
 0x315   : > { %2462 = vrot.lane.b32.xlu1 %v5912_v17, %s3889_s3  ;;  %v2084_v36 = vadd.f32 %v2083_v28, %v2082_v4  ;;  %v2163_v20 = vsub.f32 %v6103_v44, %v6200_v31  ;;  %3707 = vpow2.f32 %v1994_v41  ;;  %v2120_v28 = vadd.f32 %v2119_v29, %v2118_v24 }
 0x316   : > { %2692 = vrot.lane.b32.xlu0 %v5962_v10, %s3888_s30  ;;  %v2144_v16 = vmul.f32 %v2140_v51, %v2140_v51  ;;  %v2165_v37 = vmul.f32 %v2162_v7, %v2162_v7  ;;  %v2185_v52 = vsub.f32 %v6121_v54, %v6170_v14  ;;  %v2184_v44 = vsub.f32 %v6123_v27, %v6175_v3  ;;  %v7354_v7 = vld [vmem:[#allocation43_spill] sm:$0xff] }
 0x317   : > { %v6277_v45 = vpop.permute.xlu1 %2307  ;;  %3709 = vpow2.f32 %v2017_v21  ;;  %v2143_v22 = vadd.f32 %v2142_v59, %v2141_v50  ;;  %v2208_v4 = vsub.f32 %v6155_v57, %v6170_v14  ;;  %v2063_v2 = vmul.f32 1.442695, %v2062_v49  ;;  %v7355_v59 = vld [vmem:[#allocation76_spill] sm:$0xff] }
 0x318   : > { %v6279_v17 = vpop.permute.xlu0 %2305  ;;  %3711 = vpow2.f32 %v2040_v1  ;;  %v2122_v13 = vadd.f32 %v2121_v25, %v2120_v28  ;;  %v2167_v41 = vmul.f32 %v2163_v20, %v2163_v20  ;;  %v2186_v61 = vsub.f32 %v6137_v15, %v6200_v31  ;;  %v6362_v25 = vld [vmem:[%s3947_s21 + $0x4a] sm:$0xff] }
 0x319   : > { %2713 = vrot.lane.b32.xlu1 %v5941_v19, %s3889_s3  ;;  %v2161_v19 = vsub.f32 %v6091_v26, %v6175_v3  ;;  %v2085_v26 = vsub.f32 0.0, %v2084_v36  ;;  %v2145_v27 = vadd.f32 %v2144_v16, %v2143_v22  ;;  %v2188_v56 = vmul.f32 %v2185_v52, %v2185_v52 }
 0x31a   : > { %2694 = vrot.lane.b32.xlu0 %v5983_v23, %s3888_s30  ;;  %v2187_v36 = vmul.f32 %v2184_v44, %v2184_v44  ;;  %v2209_v29 = vsub.f32 %v6153_v60, %v6200_v31  ;;  %v2243_v15 = vsub.f32 %v6165_v8, %v6170_v14  ;;  %v2242_v21 = vsub.f32 %v6167_v9, %v6175_v3 }
 0x31b   : > { %v6302_v18 = vpop.permute.xlu1 %2328  ;;  %v2164_v30 = vmul.f32 %v2161_v19, %v2161_v19  ;;  %v2086_v54 = vmul.f32 1.442695, %v2085_v26  ;;  %v2211_v19 = vmul.f32 %v2208_v4, %v2208_v4  ;;  %v2019_v50 = vsub.f32 %v7355_v59, %v6213_v34 }
 0x31c   : > { %v6304_v38 = vpop.permute.xlu0 %2326  ;;  %3713 = vpow2.f32 %v2063_v2  ;;  %v2123_v60 = vsub.f32 0.0, %v2122_v13  ;;  %v2190_v49 = vmul.f32 %v2186_v61, %v2186_v61  ;;  %v2244_v8 = vsub.f32 %v6195_v6, %v6200_v31 }
 0x31d   : > { %2497 = vrot.lane.b32.xlu1 %v6294_v55, %s3880_s22  ;;  %v2166_v57 = vadd.f32 %v2165_v37, %v2164_v30  ;;  %v2266_v9 = vsub.f32 %v6223_v47, %v6170_v14  ;;  %3715 = vpow2.f32 %v2086_v54  ;;  %v2146_v20 = vsub.f32 0.0, %v2145_v27 }
 0x31e   : > { %2715 = vrot.lane.b32.xlu0 %v5962_v10, %s3889_s3  ;;  %v1917_v10 = vmul.f32 %v3702_v43, %v6261_v58  ;;  %v2207_v58 = vsub.f32 %v6135_v35, %v6175_v3  ;;  %v1996_v35 = vsub.f32 %v7354_v7, %v6213_v34  ;;  %v2189_v26 = vadd.f32 %v2188_v56, %v2187_v36 }
 0x31f   : > { %v6321_v48 = vpop.permute.xlu1 %2364  ;;  %v2168_v43 = vadd.f32 %v2167_v41, %v2166_v57  ;;  %v2213_v28 = vmul.f32 %v2209_v29, %v2209_v29  ;;  %v2246_v44 = vmul.f32 %v2243_v15, %v2243_v15  ;;  %v2245_v22 = vmul.f32 %v2242_v21, %v2242_v21  ;;  %v7356_v21 = vld [vmem:[#allocation82_spill] sm:$0xff] }
 0x320   : > { %v6323_v33 = vpop.permute.xlu0 %2330  ;;  %v2210_v1 = vmul.f32 %v2207_v58, %v2207_v58  ;;  %v2265_v6 = vsub.f32 %v6193_v40, %v6175_v3  ;;  %v1895_v47 = vadd.f32 %v6296_v62, %v6263_v11  ;;  %v2124_v2 = vmul.f32 1.442695, %v2123_v60 }
 0x321   : > { %2748 = vrot.lane.b32.xlu1 %v6315_v53, %s3880_s22  ;;  %v2169_v13 = vsub.f32 0.0, %v2168_v43  ;;  %v2191_v41 = vadd.f32 %v2190_v49, %v2189_v26  ;;  %v2248_v54 = vmul.f32 %v2244_v8, %v2244_v8  ;;  %v2267_v27 = vsub.f32 %v6221_v63, %v6200_v31  ;;  %v7357_v49 = vld [vmem:[#allocation51_spill] sm:$0xff]  ;;  %v7358_v26 = vld [vmem:[#allocation85_spill] sm:$0xff] }
 0x322   : > { %2717 = vrot.lane.b32.xlu0 %v5983_v23, %s3889_s3  ;;  %v3704_v23 = vpop.eup %3703  ;;  %v2212_v52 = vadd.f32 %v2211_v19, %v2210_v1  ;;  %v2269_v58 = vmul.f32 %v2266_v9, %v2266_v9  ;;  %v1918_v61 = vadd.f32 %v1917_v10, %v1895_v47  ;;  %v1997_v62 = vand.u32 2147483647, %v1996_v35 }
 0x323   : > { %v6341_v24 = vpop.permute.xlu1 %2368  ;;  %v3706_v30 = vpop.eup %3705  ;;  %v1940_v4 = vmul.f32 %v3704_v23, %v6269_v5  ;;  %v2020_v5 = vand.u32 2147483647, %v2019_v50  ;;  %v2147_v36 = vmul.f32 1.442695, %v2146_v20  ;;  %v2247_v23 = vadd.f32 %v2246_v44, %v2245_v22  ;;  %v7359_v44 = vld [vmem:[#allocation92_spill] sm:$0xff] }
 0x324   : > { %v6343_v51 = vpop.permute.xlu0 %2366  ;;  %v3708_v40 = vpop.eup %3707  ;;  %v1963_v11 = vmul.f32 %v3706_v30, %v6306_v32  ;;  %v2214_v29 = vadd.f32 %v2213_v28, %v2212_v52  ;;  %v2268_v7 = vmul.f32 %v2265_v6, %v2265_v6  ;;  %v2042_v63 = vsub.f32 %v7356_v21, %v6213_v34 }
 0x325   : > { %2520 = vrot.lane.b32.xlu1 %v6294_v55, %s3881_s23  ;;  %v3710_v19 = vpop.eup %3709  ;;  %v1941_v15 = vadd.f32 %v1940_v4, %v1918_v61  ;;  %3717 = vpow2.f32 %v2124_v2  ;;  %v2170_v59 = vmul.f32 1.442695, %v2169_v13  ;;  %v2192_v10 = vsub.f32 0.0, %v2191_v41  ;;  %v7360_v4 = vld [vmem:[#allocation59_spill] sm:$0xff] }
 0x326   : > { %2750 = vrot.lane.b32.xlu0 %v6337_v46, %s3880_s22  ;;  %v3712_v32 = vpop.eup %3711  ;;  %v2249_v35 = vadd.f32 %v2248_v54, %v2247_v23  ;;  %v2271_v50 = vmul.f32 %v2267_v27, %v2267_v27  ;;  %v2270_v60 = vadd.f32 %v2269_v58, %v2268_v7  ;;  %v1998_v1 = vmul.f32 %v3708_v40, %v1997_v62 }
 0x327   : > { %v6364_v16 = vpop.permute.xlu1 %2389  ;;  %v1964_v43 = vadd.f32 %v1963_v11, %v1941_v15  ;;  %v2065_v8 = vsub.f32 %v7357_v49, %v6213_v34  ;;  %v2357_v28 = vsub.f32 0.0, %v7358_v26  ;;  %3719 = vpow2.f32 %v2147_v36 }
 0x328   : > { %v6366_v37 = vpop.permute.xlu0 %2387  ;;  %v2215_v30 = vsub.f32 0.0, %v2214_v29  ;;  %v2289_v52 = vsub.f32 %v6237_v42, %v6170_v14  ;;  %v2288_v22 = vsub.f32 %v7359_v44, %v6175_v3  ;;  %v2021_v6 = vmul.f32 %v3710_v19, %v2020_v5 }
 0x329   : > { %2771 = vrot.lane.b32.xlu1 %v6315_v53, %s3881_s23  ;;  %v2043_v47 = vand.u32 2147483647, %v2042_v63  ;;  %v2088_v2 = vsub.f32 %v7360_v4, %v6213_v34  ;;  %3721 = vpow2.f32 %v2170_v59  ;;  %v3714_v13 = vpop.eup %3713  ;;  %v2193_v41 = vmul.f32 1.442695, %v2192_v10 }
 0x32a   : > { %2752 = vrot.lane.b32.xlu0 %v6362_v25, %s3880_s22  ;;  %v2250_v54 = vsub.f32 0.0, %v2249_v35  ;;  %v2272_v27 = vadd.f32 %v2271_v50, %v2270_v60  ;;  %v2290_v42 = vsub.f32 %v6259_v39, %v6200_v31  ;;  %v1999_v58 = vadd.f32 %v1998_v1, %v1964_v43  ;;  %v3716_v36 = vpop.eup %3715  ;;  %v7361_v35 = vld [vmem:[#allocation89_spill] sm:$0xff] }
 0x32b   : > { %v6380_v57 = vpop.permute.xlu1 %2410  ;;  %v2044_v40 = vmul.f32 %v3712_v32, %v2043_v47  ;;  %v2066_v61 = vand.u32 2147483647, %v2065_v8  ;;  %v2358_v5 = vmul.f32 1.442695, %v2357_v28  ;;  %v2216_v29 = vmul.f32 1.442695, %v2215_v30 }
 0x32c   : > { %v6382_v56 = vpop.permute.xlu0 %2391  ;;  %v2292_v23 = vmul.f32 %v2289_v52, %v2289_v52  ;;  %v2291_v7 = vmul.f32 %v2288_v22, %v2288_v22  ;;  %v3000_v19 = vlaneseq  ;;  %v2022_v15 = vadd.f32 %v2021_v6, %v1999_v58  ;;  %v7362_v8 = vld [vmem:[#allocation90_spill] sm:$0xff] }
 0x32d   : > { %2543 = vrot.lane.b32.xlu1 %v6294_v55, %s3882_s24  ;;  %v2067_v21 = vmul.f32 %v3714_v13, %v2066_v61  ;;  %v2089_v63 = vand.u32 2147483647, %v2088_v2  ;;  %v2312_v59 = vsub.f32 %v6279_v17, %v6170_v14  ;;  %3723 = vpow2.f32 %v2193_v41  ;;  %v7363_v2 = vld [vmem:[#allocation67_spill] sm:$0xff] }
 0x32e   : > { %2773 = vrot.lane.b32.xlu0 %v6337_v46, %s3881_s23  ;;  %v2251_v39 = vmul.f32 1.442695, %v2250_v54  ;;  %v2273_v32 = vsub.f32 0.0, %v2272_v27  ;;  %v2294_v10 = vmul.f32 %v2290_v42, %v2290_v42  ;;  %v2126_v50 = vsub.f32 %v7361_v35, %v6213_v34 }
 0x32f   : > { %v6392_v9 = vpop.permute.xlu1 %2182  ;;  %v2311_v60 = vsub.f32 %v6257_v0, %v6175_v3  ;;  %v2045_v43 = vadd.f32 %v2044_v40, %v2022_v15  ;;  %v2090_v1 = vmul.f32 %v3716_v36, %v2089_v63  ;;  %v2149_v26 = vsub.f32 %v7362_v8, %v6213_v34 }
 0x330   : > { %v6394_v20 = vpop.permute.xlu0 %2412  ;;  %3725 = vpow2.f32 %v2216_v29  ;;  %v2293_v28 = vadd.f32 %v2292_v23, %v2291_v7  ;;  %v3001_v30 = vshrl.u32 %v3000_v19, 7  ;;  %v2313_v52 = vsub.f32 %v6277_v45, %v6200_v31  ;;  %v7364_v45 = vld [vmem:[#allocation71_spill] sm:$0xff] }
 0x331   : > { %2794 = vrot.lane.b32.xlu1 %v6315_v53, %s3882_s24  ;;  %v2315_v44 = vmul.f32 %v2312_v59, %v2312_v59  ;;  %v2068_v22 = vadd.f32 %v2067_v21, %v2045_v43  ;;  %3727 = vpow2.f32 %v2251_v39  ;;  %v2274_v6 = vmul.f32 1.442695, %v2273_v32 }
 0x332   : > { %2775 = vrot.lane.b32.xlu0 %v6362_v25, %s3881_s23  ;;  %v3718_v0 = vpop.eup %3717  ;;  %v2295_v47 = vadd.f32 %v2294_v10, %v2293_v28  ;;  %v3005_v4 = vstv %s3382_s16  ;;  %v2172_v13 = vsub.f32 %v7363_v2, %v6213_v34  ;;  %v2314_v41 = vmul.f32 %v2311_v60, %v2311_v60 }
 0x333   : > { %v6409_v11 = vpop.permute.xlu1 %2433  ;;  %v2091_v54 = vadd.f32 %v2090_v1, %v2068_v22  ;;  %v2105_v27 = vmul.f32 %v6255_v12, %v7364_v45  ;;  %v2127_v40 = vand.u32 2147483647, %v2126_v50  ;;  %v2195_v61 = vsub.f32 %v6392_v9, %v6213_v34 }
 0x334   : > { %v6411_v62 = vpop.permute.xlu0 %2414  ;;  %3729 = vpow2.f32 %v2358_v5  ;;  %v3002_v36 = vadd.s32 8, %v3001_v30  ;;  %v3720_v29 = vpop.eup %3719  ;;  %v2150_v23 = vand.u32 2147483647, %v2149_v26  ;;  %v2317_v7 = vmul.f32 %v2313_v52, %v2313_v52 }
 0x335   : > { %2566 = vrot.lane.b32.xlu1 %v6294_v55, %s3883_s25  ;;  %v2316_v15 = vadd.f32 %v2315_v44, %v2314_v41  ;;  %v6448_v12 = vadd.s32 %v3005_v4, %v3001_v30  ;;  %3731 = vpow2.f32 %v2274_v6  ;;  %v2296_v63 = vsub.f32 0.0, %v2295_v47 }
 0x336   : > { %2796 = vrot.lane.b32.xlu0 %v6337_v46, %s3882_s24  ;;  %v3722_v21 = vpop.eup %3721  ;;  %v2128_v59 = vmul.f32 %v3718_v0, %v2127_v40  ;;  %v2173_v5 = vand.u32 2147483647, %v2172_v13  ;;  %v2335_v39 = vsub.f32 %v6302_v18, %v6170_v14  ;;  %v2334_v32 = vsub.f32 %v6304_v38, %v6175_v3 }
 0x337   : > { %v2206_v17 = vpop.permute.xlu1 %2205  ;;  %v2106_v10 = vadd.f32 %v2105_v27, %v2091_v54  ;;  %v2151_v60 = vmul.f32 %v3720_v29, %v2150_v23  ;;  %v2196_v43 = vand.u32 2147483647, %v2195_v61  ;;  %v2318_v26 = vadd.f32 %v2317_v7, %v2316_v15 }
 0x338   : > { %v6423_v49 = vpop.permute.xlu0 %2435  ;;  %v2218_v9 = vsub.f32 %v2206_v17, %v6213_v34  ;;  %v2336_v17 = vsub.f32 %v6323_v33, %v6200_v31  ;;  %v6465_v18 = vand.u32 127, %v3000_v19  ;;  %v2297_v38 = vmul.f32 1.442695, %v2296_v63 }
 0x339   : > { %2817 = vrot.lane.b32.xlu1 %v6315_v53, %s3883_s25  ;;  %v2129_v30 = vadd.f32 %v2128_v59, %v2106_v10  ;;  %v2174_v52 = vmul.f32 %v3722_v21, %v2173_v5  ;;  %v2338_v0 = vmul.f32 %v2335_v39, %v2335_v39  ;;  %v2337_v6 = vmul.f32 %v2334_v32, %v2334_v32 }
 0x33a   : > { %2798 = vrot.lane.b32.xlu0 %v6362_v25, %s3882_s24  ;;  %v2219_v44 = vand.u32 2147483647, %v2218_v9  ;;  %v3724_v22 = vpop.eup %3723  ;;  %v3007_v13 = vadd.s32 %v3005_v4, %v3002_v36  ;;  %v6468_v27 = vadd.s32 4294967294, %v6448_v12  ;;  %v2319_v19 = vsub.f32 0.0, %v2318_v26 }
 0x33b   : > { %v2457_v42 = vpop.permute.xlu1 %2456  ;;  %v2152_v41 = vadd.f32 %v2151_v60, %v2129_v30  ;;  %v2197_v54 = vmul.f32 %v3724_v22, %v2196_v43  ;;  %v2340_v40 = vmul.f32 %v2336_v17, %v2336_v17  ;;  %3733 = vpow2.f32 %v2297_v38 }
 0x33c   : > { %v6440_v58 = vpop.permute.xlu0 %2437  ;;  %v2464_v28 = vsub.f32 %v2457_v42, %v6175_v3  ;;  %v2339_v15 = vadd.f32 %v2338_v0, %v2337_v6  ;;  %v3473_v5 = vadd.s32 4294967294, %v3007_v13  ;;  %v2320_v60 = vmul.f32 1.442695, %v2319_v19 }
 0x33d   : > { %2589 = vrot.lane.b32.xlu1 %v6294_v55, %s3884_s26  ;;  %v3726_v42 = vpop.eup %3725  ;;  %v2175_v4 = vadd.f32 %v2174_v52, %v2152_v41  ;;  %v2372_v52 = vsub.f32 %v6321_v48, %v6175_v3  ;;  %vm3011_vm0 = vcmp.ge.s32.totalorder %v6468_v27, 0  ;;  %vm3013_vm2 = vcmp.lt.s32.totalorder %v6468_v27, 16 }
 0x33e   : > { %2819 = vrot.lane.b32.xlu0 %v6337_v46, %s3883_s25  ;;  %v2467_v61 = vmul.f32 %v2464_v28, %v2464_v28  ;;  %v2220_v36 = vmul.f32 %v3726_v42, %v2219_v44  ;;  %v3728_v7 = vpop.eup %3727  ;;  %v2341_v43 = vadd.f32 %v2340_v40, %v2339_v15  ;;  %vm3012_vm1 = vcmp.ge.s32.totalorder %v3473_v5, 0  ;;  %v3469_v15 = vld [vmem:[%s3947_s21 + $0x6b] sm:$0xf]  ;;  %vm6524_vm4 = vmand %vm3011_vm0, %vm3013_vm2 }
 0x33f   : > { %v2241_v35 = vpop.permute.xlu1 %2240  ;;  %v2198_v39 = vadd.f32 %v2197_v54, %v2175_v4  ;;  %3735 = vpow2.f32 %v2320_v60  ;;  %v2375_v42 = vmul.f32 %v2372_v52, %v2372_v52  ;;  %v2395_v19 = vsub.f32 %v6366_v37, %v6175_v3 }
 0x340   : > { %v2459_v50 = vpop.permute.xlu0 %2458  ;;  %v2253_v1 = vsub.f32 %v2241_v35, %v6213_v34  ;;  %v2342_v48 = vsub.f32 0.0, %v2341_v43  ;;  %vm3014_vm3 = vcmp.lt.s32.totalorder %v3473_v5, 16  ;;  %vm2995_vm8 = vcmp.gt.f32.partialorder %v3469_v15, 0.5 }
 0x341   : > { %v2465_v8 = vsub.f32 %v2459_v50, %v6170_v14  ;;  %2840 = vrot.lane.b32.xlu1 %v6315_v53, %s3884_s26  ;;  %v6478_v50 = vpop.eup %3729  ;;  %v2221_v26 = vadd.f32 %v2220_v36, %v2198_v39  ;;  %vm6531_vm6 = vmand %vm3012_vm1, %vm3014_vm3  ;;  %v2398_v60 = vmul.f32 %v2395_v19, %v2395_v19  ;;  %vm3051_vm0 = vcmask 1044480  }
 0x342   : > { %2821 = vrot.lane.b32.xlu0 %v6362_v25, %s3883_s25  ;;  %v2254_v45 = vand.u32 2147483647, %v2253_v1  ;;  %v2373_v1 = vsub.f32 %v6343_v51, %v6170_v14  ;;  %v3732_v30 = vpop.eup %3731  ;;  %v6491_v51 = vadd.s32 4294967291, %v6465_v18  ;;  %vm3062_vm1 = vcmask 1043456  }
 0x343   : > { %v2468_v47 = vmul.f32 %v2465_v8, %v2465_v8  ;;  %v2492_v33 = vpop.permute.xlu1 %2491  ;;  %vm3098_vm2 = vcmp.lt.s32.totalorder %v6448_v12, 16  ;;  %vm3099_vm3 = vcmp.ge.s32.totalorder %v6465_v18, 5 }
 0x344   : > { %v2461_v2 = vpop.permute.xlu0 %2460  ;;  %v2499_v23 = vsub.f32 %v2492_v33, %v6175_v3  ;;  %v2255_v32 = vmul.f32 %v3728_v7, %v2254_v45  ;;  %v2376_v13 = vmul.f32 %v2373_v1, %v2373_v1  ;;  %vm3017_vm5 = vcmp.ge.s32.totalorder %v6491_v51, 0  ;;  %v3828_v1 = vld [vmem:[%s3947_s21 + $0x63] sm:$0xff] }
 0x345   : > { %v2466_v29 = vsub.f32 %v2461_v2, %v6200_v31  ;;  %2844 = vrot.lane.b32.xlu1 %v6362_v25, %s3884_s26  ;;  %v2469_v21 = vadd.f32 %v2468_v47, %v2467_v61  ;;  %v2374_v2 = vsub.f32 %v6341_v24, %v6200_v31  ;;  %v2396_v24 = vsub.f32 %v6364_v16, %v6170_v14  ;;  %vm6540_vm9 = vmand %vm6524_vm4, %vm3017_vm5 }
 0x346   : > { %2842 = vrot.lane.b32.xlu0 %v6337_v46, %s3884_s26  ;;  %v2502_v17 = vmul.f32 %v2499_v23, %v2499_v23  ;;  %v2256_v0 = vadd.f32 %v2255_v32, %v2221_v26  ;;  %v3827_v23 = vld [vmem:[%s3947_s21 + $0x68] sm:$0xff]  ;;  %v2397_v16 = vsub.f32 %v6382_v56, %v6200_v31  ;;  %vm2994_vm7 = vcmp.gt.f32.partialorder %v3828_v1, 0.5  ;;  %vm6554_vm11 = vmand %vm6531_vm6, %vm3017_vm5 }
 0x347   : > { %v2470_v63 = vmul.f32 %v2466_v29, %v2466_v29  ;;  %v2264_v59 = vpop.permute.xlu1 %2263  ;;  %v2360_v7 = vsub.f32 %v3827_v23, %v6213_v34  ;;  %vm3020_vm10 = vcmp.lt.s32.totalorder %v6491_v51, 16  ;;  %v2420_v51 = vsub.f32 %v6411_v62, %v6200_v31  ;;  %vm3100_vm4 = vmand %vm3098_vm2, %vm3099_vm3 }
 0x348   : > { %v2494_v9 = vpop.permute.xlu0 %2493  ;;  %v2276_v10 = vsub.f32 %v2264_v59, %v6213_v34  ;;  %v2343_v59 = vmul.f32 1.442695, %v2342_v48  ;;  %vm6569_vm12 = vmand %vm6540_vm9, %vm3020_vm10  ;;  %vm3101_vm5 = vcmp.lt.s32.totalorder %v6465_v18, 21 }
 0x349   : > { %v2500_v35 = vsub.f32 %v2494_v9, %v6170_v14  ;;  %v6482_v8 = vadd.f32 %v2470_v63, %v2469_v21  ;;  %2878 = vrot.lane.b32.xlu1 %v6315_v53, %s3885_s27  ;;  %v2378_v21 = vmul.f32 %v2374_v2, %v2374_v2  ;;  %v2377_v63 = vadd.f32 %v2376_v13, %v2375_v42  ;;  %vm6581_vm13 = vmand %vm6554_vm11, %vm3020_vm10 }
 0x34a   : > { %2627 = vrot.lane.b32.xlu0 %v6294_v55, %s3885_s27  ;;  %v2277_v28 = vand.u32 2147483647, %v2276_v10  ;;  %v3734_v10 = vpop.eup %3733  ;;  %3737 = vpow2.f32 %v2343_v59  ;;  %v3890_v13 = vmov 0.0   ;;  %vm3102_vm6 = vmand %vm3100_vm4, %vm3101_vm5 }
 0x34b   : > { %v2503_v38 = vmul.f32 %v2500_v35, %v2500_v35  ;;  %v2515_v44 = vpop.permute.xlu1 %2514  ;;  %v2399_v35 = vmul.f32 %v2396_v24, %v2396_v24  ;;  %v6560_v48 = vsel %vm2994_vm7, 1.0, %v3890_v13 }
 0x34c   : > { %v2496_v22 = vpop.permute.xlu0 %2495  ;;  %v2278_v6 = vmul.f32 %v3732_v30, %v2277_v28  ;;  %v2522_v54 = vsub.f32 %v2515_v44, %v6175_v3  ;;  %v2379_v28 = vadd.f32 %v2378_v21, %v2377_v63  ;;  %v3028_v37 = vrot.slane %v6560_v48, 1 }
 0x34d   : > { %v2504_v47 = vadd.f32 %v2503_v38, %v2502_v17  ;;  %v2501_v33 = vsub.f32 %v2496_v22, %v6200_v31  ;;  %2650 = vrot.lane.b32.xlu1 %v6294_v55, %s3886_s28  ;;  %v2401_v38 = vmul.f32 %v2397_v16, %v2397_v16 }
 0x34e   : > { %2880 = vrot.lane.b32.xlu0 %v6337_v46, %s3885_s27  ;;  %v2279_v41 = vadd.f32 %v2278_v6, %v2256_v0  ;;  %v2525_v9 = vmul.f32 %v2522_v54, %v2522_v54  ;;  %v2361_v0 = vand.u32 2147483647, %v2360_v7  ;;  %v2400_v6 = vadd.f32 %v2399_v35, %v2398_v60 }
 0x34f   : > { %v2505_v45 = vmul.f32 %v2501_v33, %v2501_v33  ;;  %v2287_v40 = vpop.permute.xlu1 %2286  ;;  %v6563_v54 = vsel %vm2995_vm8, 1.0, %v3890_v13 }
 0x350   : > { %v2517_v61 = vpop.permute.xlu0 %2516  ;;  %v2299_v4 = vsub.f32 %v2287_v40, %v6213_v34  ;;  %v2380_v40 = vsub.f32 0.0, %v2379_v28  ;;  %v6603_v16 = vsel %vm6581_vm13, %v6563_v54, 1.0  ;;  %v3029_v59 = vrot.slane %v6563_v54, 1 }
 0x351   : > { %v6507_v29 = vadd.f32 %v2505_v45, %v2504_v47  ;;  %v2523_v36 = vsub.f32 %v2517_v61, %v6170_v14  ;;  %2901 = vrot.lane.b32.xlu1 %v6315_v53, %s3886_s28  ;;  %v2419_v45 = vsub.f32 %v6394_v20, %v6170_v14  ;;  %v2418_v61 = vsub.f32 %v6380_v57, %v6175_v3  ;;  %v3736_v20 = vpop.eup %3735 }
 0x352   : > { %2882 = vrot.lane.b32.xlu0 %v6362_v25, %s3885_s27  ;;  %v2300_v39 = vand.u32 2147483647, %v2299_v4  ;;  %v2402_v4 = vadd.f32 %v2401_v38, %v2400_v6  ;;  %v6598_v57 = vsel %vm6569_vm12, %v6560_v48, 1.0  ;;  %v2381_v32 = vmul.f32 1.442695, %v2380_v40 }
 0x353   : > { %v2526_v56 = vmul.f32 %v2523_v36, %v2523_v36  ;;  %v2538_v27 = vpop.permute.xlu1 %2537  ;;  %v2422_v62 = vmul.f32 %v2419_v45, %v2419_v45  ;;  %v2362_v60 = vmul.f32 %v6478_v50, %v2361_v0  ;;  %v6617_v38 = vsel %vm3027_vm14, %v3028_v37, %v3029_v59 }
 0x354   : > { %v2519_v43 = vpop.permute.xlu0 %2518  ;;  %v2301_v26 = vmul.f32 %v3734_v10, %v2300_v39  ;;  %v2545_v22 = vsub.f32 %v2538_v27, %v6175_v3  ;;  %v2421_v10 = vmul.f32 %v2418_v61, %v2418_v61  ;;  %v2403_v35 = vsub.f32 0.0, %v2402_v4 }
 0x355   : > { %v2527_v17 = vadd.f32 %v2526_v56, %v2525_v9  ;;  %v2524_v30 = vsub.f32 %v2519_v43, %v6200_v31  ;;  %2673 = vrot.lane.b32.xlu1 %v6294_v55, %s3887_s29  ;;  %v2424_v27 = vmul.f32 %v2420_v51, %v2420_v51  ;;  %v3036_v52 = vrot.slane %v6603_v16, 1 }
 0x356   : > { %2903 = vrot.lane.b32.xlu0 %v6337_v46, %s3886_s28  ;;  %v2302_v44 = vadd.f32 %v2301_v26, %v2279_v41  ;;  %v2548_v23 = vmul.f32 %v2545_v22, %v2545_v22  ;;  %v2423_v22 = vadd.f32 %v2422_v62, %v2421_v10  ;;  %3739 = vpow2.f32 %v2381_v32 }
 0x357   : > { %v2528_v47 = vmul.f32 %v2524_v30, %v2524_v30  ;;  %v2310_v33 = vpop.permute.xlu1 %2309  ;;  %v3035_v30 = vrot.slane %v6598_v57, 1  ;;  %v2404_v0 = vmul.f32 1.442695, %v2403_v35  ;;  %v3738_v41 = vpop.eup %3737  ;;  %v3047_v10 = vrot.slane %v6603_v16, 2 }
 0x358   : > { %v2540_v2 = vpop.permute.xlu0 %2539  ;;  %v2322_v42 = vsub.f32 %v2310_v33, %v6213_v34  ;;  %v2425_v33 = vadd.f32 %v2424_v27, %v2423_v22 }
 0x359   : > { %v2546_v24 = vsub.f32 %v2540_v2, %v6170_v14  ;;  %v6587_v36 = vadd.f32 %v2528_v47, %v2527_v17  ;;  %2924 = vrot.lane.b32.xlu1 %v6315_v53, %s3887_s29  ;;  %v2442_v17 = vsub.f32 %v6423_v49, %v6170_v14  ;;  %v2441_v49 = vsub.f32 %v6409_v11, %v6175_v3 }
 0x35a   : > { %2905 = vrot.lane.b32.xlu0 %v6362_v25, %s3886_s28  ;;  %v2323_v7 = vand.u32 2147483647, %v2322_v42  ;;  %v2443_v47 = vsub.f32 %v6440_v58, %v6200_v31  ;;  %v3041_v11 = vrot.slane %v6560_v48, 2  ;;  %v3042_v58 = vrot.slane %v6563_v54, 2 }
 0x35b   : > { %v2549_v15 = vmul.f32 %v2546_v24, %v2546_v24  ;;  %v2561_v21 = vpop.permute.xlu1 %2560  ;;  %v3037_v40 = vsel %vm3027_vm14, %v3035_v30, %v3036_v52  ;;  %v2444_v61 = vmul.f32 %v2441_v49, %v2441_v49  ;;  %3741 = vpow2.f32 %v2404_v0 }
 0x35c   : > { %v2542_v63 = vpop.permute.xlu0 %2541  ;;  %v2324_v9 = vmul.f32 %v3736_v20, %v2323_v7  ;;  %v2568_v1 = vsub.f32 %v2561_v21, %v6175_v3  ;;  %v3032_v3 = vmax.f32 %v6560_v48, %v6617_v38  ;;  %v2447_v4 = vmul.f32 %v2443_v47, %v2443_v47  ;;  %v6644_v7 = vld [vmem:[%s3947_s21 + $0x5] sm:$0xff] }
 0x35d   : > { %v2550_v39 = vadd.f32 %v2549_v15, %v2548_v23  ;;  %v2547_v56 = vsub.f32 %v2542_v63, %v6200_v31  ;;  %2696 = vrot.lane.b32.xlu1 %v6294_v55, %s3888_s30  ;;  %v2426_v51 = vsub.f32 0.0, %v2425_v33  ;;  %v3043_v62 = vsel %vm3040_vm15, %v3041_v11, %v3042_v58 }
 0x35e   : > { %2926 = vrot.lane.b32.xlu0 %v6337_v46, %s3887_s29  ;;  %v2325_v43 = vadd.f32 %v2324_v9, %v2302_v44  ;;  %v2571_v2 = vmul.f32 %v2568_v1, %v2568_v1  ;;  %v3046_v9 = vrot.slane %v6598_v57, 2  ;;  %v3052_v38 = vrot.slane %v6560_v48, 3 }
 0x35f   : > { %v2551_v26 = vmul.f32 %v2547_v56, %v2547_v56  ;;  %v2333_v5 = vpop.permute.xlu1 %2332  ;;  %v3053_v30 = vrot.slane %v6563_v54, 3  ;;  %v3057_v52 = vrot.slane %v6598_v57, 3  ;;  %v3045_v47 = vmax.f32 %v3032_v3, %v3043_v62 }
 0x360   : > { %v2563_v28 = vpop.permute.xlu0 %2562  ;;  %v2345_v50 = vsub.f32 %v2333_v5, %v6213_v34  ;;  %v6663_v5 = vld [vmem:[%s3947_s21 + $0x6a] sm:$0xff]  ;;  %v3048_v0 = vsel %vm3040_vm15, %v3046_v9, %v3047_v10  ;;  %v2472_v9 = vsub.f32 0.0, %v6482_v8 }
 0x361   : > { %v6621_v6 = vadd.f32 %v2551_v26, %v2550_v39  ;;  %v2569_v44 = vsub.f32 %v2563_v28, %v6170_v14  ;;  %2947 = vrot.lane.b32.xlu1 %v6315_v53, %s3888_s30  ;;  %v2445_v14 = vmul.f32 %v2442_v17, %v2442_v17  ;;  %v6651_v39 = vld [vmem:[%s3947_s21 + $0x25] sm:$0xff] }
 0x362   : > { %2928 = vrot.lane.b32.xlu0 %v6362_v25, %s3887_s29  ;;  %v2346_v13 = vand.u32 2147483647, %v2345_v50  ;;  %v6670_v50 = vld [vmem:[%s3947_s21 + $0x65] sm:$0xff] }
 0x363   : > { %v2572_v34 = vmul.f32 %v2569_v44, %v2569_v44  ;;  %v2584_v45 = vpop.permute.xlu1 %2583  ;;  %v2446_v21 = vadd.f32 %v2445_v14, %v2444_v61  ;;  %v3740_v33 = vpop.eup %3739  ;;  %v3068_v61 = vrot.slane %v6598_v57, 4 }
 0x364   : > { %v2565_v42 = vpop.permute.xlu0 %2564  ;;  %v2347_v24 = vmul.f32 %v3738_v41, %v2346_v13  ;;  %v2591_v15 = vsub.f32 %v2584_v45, %v6644_v7 }
 0x365   : > { %v2573_v19 = vadd.f32 %v2572_v34, %v2571_v2  ;;  %v2570_v20 = vsub.f32 %v2565_v42, %v6200_v31  ;;  %2719 = vrot.lane.b32.xlu1 %v6294_v55, %s3889_s3  ;;  %v2448_v35 = vadd.f32 %v2447_v4, %v2446_v21  ;;  %v3054_v42 = vsel %vm3051_vm0, %v3052_v38, %v3053_v30 }
 0x366   : > { %2949 = vrot.lane.b32.xlu0 %v6337_v46, %s3888_s30  ;;  %v2348_v23 = vadd.f32 %v2347_v24, %v2325_v43  ;;  %v3039_v43 = vmin.f32 %v6598_v57, %v3037_v40  ;;  %v2594_v1 = vmul.f32 %v2591_v15, %v2591_v15  ;;  %v3064_v40 = vrot.slane %v6563_v54, 4 }
 0x367   : > { %v2574_v63 = vmul.f32 %v2570_v20, %v2570_v20  ;;  %v2588_v37 = vpop.permute.xlu1 %2587  ;;  %v2449_v49 = vsub.f32 0.0, %v2448_v35  ;;  %v3069_v4 = vrot.slane %v6603_v16, 4  ;;  %v3056_v62 = vmax.f32 %v3045_v47, %v3054_v42 }
 0x368   : > { %v2586_v59 = vpop.permute.xlu0 %2585  ;;  %v2593_v55 = vsub.f32 %v2588_v37, %v6200_v31  ;;  %v2363_v32 = vadd.f32 %v2362_v60, %v2348_v23  ;;  %v2427_v31 = vmul.f32 1.442695, %v2426_v51  ;;  %v3050_v45 = vmin.f32 %v3039_v43, %v3048_v0  ;;  %v3742_v21 = vpop.eup %3741 }
 0x369   : > { %v2592_v56 = vsub.f32 %v2586_v59, %v6651_v39  ;;  %v6655_v27 = vadd.f32 %v2574_v63, %v2573_v19  ;;  %2970 = vrot.lane.b32.xlu1 %v6315_v53, %s3889_s3  ;;  %v3058_v53 = vrot.slane %v6603_v16, 3  ;;  %v2450_v3 = vmul.f32 1.442695, %v2449_v49 }
 0x36a   : > { %2951 = vrot.lane.b32.xlu0 %v6362_v25, %s3888_s30  ;;  %v2597_v26 = vmul.f32 %v2593_v55, %v2593_v55  ;;  %3743 = vpow2.f32 %v2427_v31  ;;  %v6693_v55 = vld [vmem:[%s3947_s21 + $0x45] sm:$0xff] }
 0x36b   : > { %v2595_v17 = vmul.f32 %v2592_v56, %v2592_v56  ;;  %v2622_v60 = vpop.permute.xlu1 %2621  ;;  %v3059_v11 = vsel %vm3051_vm0, %v3057_v52, %v3058_v53  ;;  %3745 = vpow2.f32 %v2450_v3 }
 0x36c   : > { %v2371_v28 = vpop.permute.xlu0 %2370  ;;  %v2629_v13 = vsub.f32 %v2622_v60, %v6644_v7  ;;  %v3061_v54 = vmin.f32 %v3050_v45, %v3059_v11 }
 0x36d   : > { %v2596_v22 = vadd.f32 %v2595_v17, %v2594_v1  ;;  %v2383_v44 = vsub.f32 %v2371_v28, %v6670_v50  ;;  %2754 = vrot.lane.b32.xlu1 %v6663_v5, %s3880_s22  ;;  %v2473_v1 = vmul.f32 1.442695, %v2472_v9 }
 0x36e   : > { %2972 = vrot.lane.b32.xlu0 %v6337_v46, %s3889_s3  ;;  %v3063_v46 = vrot.slane %v6560_v48, 4  ;;  %v2632_v20 = vmul.f32 %v2629_v13, %v2629_v13 }
 0x36f   : > { %v6678_v2 = vadd.f32 %v2597_v26, %v2596_v22  ;;  %v2384_v34 = vand.u32 2147483647, %v2383_v44  ;;  %v2394_v41 = vpop.permute.xlu1 %2393  ;;  %3747 = vpow2.f32 %v2473_v1 }
 0x370   : > { %v2624_v14 = vpop.permute.xlu0 %2623  ;;  %v2406_v24 = vsub.f32 %v2394_v41, %v6670_v50  ;;  %v3065_v57 = vsel %vm3062_vm1, %v3063_v46, %v3064_v40 }
 0x371   : > { %v2385_v58 = vmul.f32 %v3740_v33, %v2384_v34  ;;  %v2630_v19 = vsub.f32 %v2624_v14, %v6651_v39  ;;  %2777 = vrot.lane.b32.xlu1 %v6663_v5, %s3881_s23  ;;  %v6711_v17 = vmax.f32 %v3056_v62, %v3065_v57  ;;  %v2507_v33 = vsub.f32 0.0, %v6507_v29 }
 0x372   : > { %2974 = vrot.lane.b32.xlu0 %v6362_v25, %s3889_s3  ;;  %v2407_v23 = vand.u32 2147483647, %v2406_v24 }
 0x373   : > { %v2386_v51 = vadd.f32 %v2385_v58, %v2363_v32  ;;  %v2633_v15 = vmul.f32 %v2630_v19, %v2630_v19  ;;  %v2645_v48 = vpop.permute.xlu1 %2644  ;;  %v3070_v32 = vsel %vm3062_vm1, %v3068_v61, %v3069_v4  ;;  %v2508_v24 = vmul.f32 1.442695, %v2507_v33 }
 0x374   : > { %v2626_v63 = vpop.permute.xlu0 %2625  ;;  %v2408_v37 = vmul.f32 %v3742_v21, %v2407_v23  ;;  %v2652_v56 = vsub.f32 %v2645_v48, %v6644_v7  ;;  %v6713_v60 = vmin.f32 %v3061_v54, %v3070_v32 }
 0x375   : > { %v2634_v59 = vadd.f32 %v2633_v15, %v2632_v20  ;;  %v2631_v25 = vsub.f32 %v2626_v63, %v6693_v55  ;;  %2823 = vrot.lane.b32.xlu1 %v6663_v5, %s3883_s25  ;;  %3749 = vpow2.f32 %v2508_v24  ;;  %v2576_v24 = vsub.f32 0.0, %v6655_v27 }
 0x376   : > { %2800 = vrot.lane.b32.xlu0 %v6663_v5, %s3882_s24  ;;  %v2409_v16 = vadd.f32 %v2408_v37, %v2386_v51  ;;  %v2655_v28 = vmul.f32 %v2652_v56, %v2652_v56  ;;  %v3533_v47 = vpack.i.bf16 %v6713_v60, %v6711_v17  ;;  %v2530_v51 = vsub.f32 0.0, %v6587_v36 }
 0x377   : > { %v2635_v8 = vmul.f32 %v2631_v25, %v2631_v25  ;;  %v2417_v10 = vpop.permute.xlu1 %2416  ;;  %v3744_v52 = vpop.eup %3743 }
 0x378   : > { %v2647_v35 = vpop.permute.xlu0 %2646  ;;  %v2429_v43 = vsub.f32 %v2417_v10, %v6670_v50  ;;  %v3746_v3 = vpop.eup %3745  ;;  %v2531_v9 = vmul.f32 1.442695, %v2530_v51 }
 0x379   : > { %v2653_v31 = vsub.f32 %v2647_v35, %v6651_v39  ;;  %v6705_v26 = vadd.f32 %v2635_v8, %v2634_v59  ;;  %2884 = vrot.lane.b32.xlu1 %v6663_v5, %s3885_s27 }
 0x37a   : > { %2846 = vrot.lane.b32.xlu0 %v6663_v5, %s3884_s26  ;;  %v2430_v38 = vand.u32 2147483647, %v2429_v43  ;;  %3751 = vpow2.f32 %v2531_v9  ;;  %v2553_v43 = vsub.f32 0.0, %v6621_v6 }
 0x37b   : > { %v2656_v30 = vmul.f32 %v2653_v31, %v2653_v31  ;;  %v2668_v53 = vpop.permute.xlu1 %2667 }
 0x37c   : > { %v2649_v22 = vpop.permute.xlu0 %2648  ;;  %v2431_v44 = vmul.f32 %v3744_v52, %v2430_v38  ;;  %v2675_v34 = vsub.f32 %v2668_v53, %v6644_v7  ;;  %v3748_v25 = vpop.eup %3747 }
 0x37d   : > { %v2657_v0 = vadd.f32 %v2656_v30, %v2655_v28  ;;  %v2654_v49 = vsub.f32 %v2649_v22, %v6693_v55  ;;  %2930 = vrot.lane.b32.xlu1 %v6663_v5, %s3887_s29 }
 0x37e   : > { %2907 = vrot.lane.b32.xlu0 %v6663_v5, %s3886_s28  ;;  %v2432_v13 = vadd.f32 %v2431_v44, %v2409_v16  ;;  %v2678_v19 = vmul.f32 %v2675_v34, %v2675_v34  ;;  %v2554_v44 = vmul.f32 1.442695, %v2553_v43 }
 0x37f   : > { %v2658_v41 = vmul.f32 %v2654_v49, %v2654_v49  ;;  %v2440_v14 = vpop.permute.xlu1 %2439 }
 0x380   : > { %v2670_v45 = vpop.permute.xlu0 %2669  ;;  %v2452_v11 = vsub.f32 %v2440_v14, %v6670_v50  ;;  %v3833_v14 = vld [vmem:[%s3947_s21 + $0x29] sm:$0xff]  ;;  %3753 = vpow2.f32 %v2554_v44 }
 0x381   : > { %v6724_v42 = vadd.f32 %v2658_v41, %v2657_v0  ;;  %v2676_v58 = vsub.f32 %v2670_v45, %v6651_v39  ;;  %2953 = vrot.lane.b32.xlu1 %v6663_v5, %s3888_s30  ;;  %v2607_v45 = vsub.f32 %v3833_v14, %v6651_v39 }
 0x382   : > { %3534 = vrot.lane.b32.xlu0 %v3533_v47, %s3884_s26  ;;  %v2453_v29 = vand.u32 2147483647, %v2452_v11  ;;  %v3750_v6 = vpop.eup %3749  ;;  %v3834_v11 = vld [vmem:[%s3947_s21 + $0x9] sm:$0xff] }
 0x383   : > { %v2679_v46 = vmul.f32 %v2676_v58, %v2676_v58  ;;  %v2691_v40 = vpop.permute.xlu1 %2690  ;;  %v2606_v58 = vsub.f32 %v3834_v11, %v6644_v7 }
 0x384   : > { %v2672_v61 = vpop.permute.xlu0 %2671  ;;  %v2454_v4 = vmul.f32 %v3746_v3, %v2453_v29  ;;  %v2698_v21 = vsub.f32 %v2691_v40, %v6644_v7  ;;  %v3835_v40 = vld [vmem:[%s3947_s21 + $0x49] sm:$0xff] }
 0x385   : > { %v2680_v20 = vadd.f32 %v2679_v46, %v2678_v19  ;;  %v2677_v23 = vsub.f32 %v2672_v61, %v6693_v55  ;;  %2976 = vrot.lane.b32.xlu1 %v6663_v5, %s3889_s3  ;;  %v2608_v61 = vsub.f32 %v3835_v40, %v6693_v55  ;;  %v3836_v40 = vld [vmem:[%s3947_s21 + $0x69] sm:$0xff] }
 0x386   : > { %3539 = vrot.lane.b32.xlu0 %v3533_v47, %s3885_s27  ;;  %v2455_v15 = vadd.f32 %v2454_v4, %v2432_v13  ;;  %v2701_v54 = vmul.f32 %v2698_v21, %v2698_v21  ;;  %v2610_v4 = vmul.f32 %v2607_v45, %v2607_v45 }
 0x387   : > { %v2681_v48 = vmul.f32 %v2677_v23, %v2677_v23  ;;  %v2463_v63 = vpop.permute.xlu1 %2462  ;;  %v3752_v51 = vpop.eup %3751  ;;  %v2577_v23 = vmul.f32 1.442695, %v2576_v24  ;;  %v2612_v27 = vmul.f32 %v2608_v61, %v2608_v61  ;;  %v2617_v61 = vsub.f32 %v3836_v40, %v6670_v50 }
 0x388   : > { %v2693_v37 = vpop.permute.xlu0 %2692  ;;  %v2475_v59 = vsub.f32 %v2463_v63, %v6670_v50 }
 0x389   : > { %v2699_v62 = vsub.f32 %v2693_v37, %v6651_v39  ;;  %v6739_v36 = vadd.f32 %v2681_v48, %v2680_v20  ;;  %3549 = vrot.lane.b32.xlu1 %v3533_v47, %s3886_s28  ;;  %v2609_v20 = vmul.f32 %v2606_v58, %v2606_v58  ;;  %3755 = vpow2.f32 %v2577_v23 }
 0x38a   : > { %3544 = vrot.lane.b32.xlu0 %v3533_v47, %s3883_s25  ;;  %v2476_v57 = vand.u32 2147483647, %v2475_v59  ;;  %v2599_v59 = vsub.f32 0.0, %v6678_v2  ;;  %v2618_v23 = vand.u32 2147483647, %v2617_v61 }
 0x38b   : > { %v2702_v16 = vmul.f32 %v2699_v62, %v2699_v62  ;;  %v2714_v56 = vpop.permute.xlu1 %2713  ;;  %v2611_v37 = vadd.f32 %v2610_v4, %v2609_v20 }
 0x38c   : > { %v2695_v32 = vpop.permute.xlu0 %2694  ;;  %v2477_v8 = vmul.f32 %v3748_v25, %v2476_v57  ;;  %v2721_v1 = vsub.f32 %v2714_v56, %v6644_v7 }
 0x38d   : > { %v2703_v10 = vadd.f32 %v2702_v16, %v2701_v54  ;;  %v2700_v35 = vsub.f32 %v2695_v32, %v6693_v55  ;;  %v2613_v57 = vadd.f32 %v2612_v27, %v2611_v37  ;;  %v2600_v16 = vmul.f32 1.442695, %v2599_v59  ;;  %v3754_v32 = vpop.eup %3753 }
 0x38e   : > { %v2478_v31 = vadd.f32 %v2477_v8, %v2455_v15  ;;  %v2724_v0 = vmul.f32 %v2721_v1, %v2721_v1 }
 0x38f   : > { %v2704_v28 = vmul.f32 %v2700_v35, %v2700_v35  ;;  %v2498_v38 = vpop.permute.xlu1 %2497  ;;  %v2614_v43 = vsub.f32 0.0, %v2613_v57  ;;  %3757 = vpow2.f32 %v2600_v16 }
 0x390   : > { %v2716_v30 = vpop.permute.xlu0 %2715  ;;  %v2510_v53 = vsub.f32 %v2498_v38, %v6670_v50 }
 0x391   : > { %v6746_v52 = vadd.f32 %v2704_v28, %v2703_v10  ;;  %v2722_v22 = vsub.f32 %v2716_v30, %v6651_v39  ;;  %v2615_v38 = vmul.f32 1.442695, %v2614_v43  ;;  %v2637_v30 = vsub.f32 0.0, %v6705_v26 }
 0x392   : > { %v2511_v49 = vand.u32 2147483647, %v2510_v53 }
 0x393   : > { %v2725_v47 = vmul.f32 %v2722_v22, %v2722_v22  ;;  %v6750_v33 = vpop.permute.xlu1 %2748  ;;  %3759 = vpow2.f32 %v2615_v38  ;;  %v2706_v57 = vsub.f32 0.0, %v6746_v52 }
 0x394   : > { %v6752_v13 = vpop.permute.xlu0 %2717  ;;  %v2512_v34 = vmul.f32 %v3750_v6, %v2511_v49  ;;  %v2660_v6 = vsub.f32 0.0, %v6724_v42  ;;  %v2683_v42 = vsub.f32 0.0, %v6739_v36 }
 0x395   : > { %v6754_v41 = vadd.f32 %v2725_v47, %v2724_v0  ;;  %v2638_v47 = vmul.f32 1.442695, %v2637_v30 }
 0x396   : > { %v2513_v19 = vadd.f32 %v2512_v34, %v2478_v31  ;;  %v3756_v22 = vpop.eup %3755  ;;  %v2661_v26 = vmul.f32 1.442695, %v2660_v6  ;;  %v2684_v27 = vmul.f32 1.442695, %v2683_v42 }
 0x397   : > { %v2521_v29 = vpop.permute.xlu1 %2520  ;;  %3761 = vpow2.f32 %v2638_v47  ;;  %v2756_v47 = vsub.f32 %v6750_v33, %v6644_v7 }
 0x398   : > { %v6761_v46 = vpop.permute.xlu0 %2750  ;;  %v2533_v3 = vsub.f32 %v2521_v29, %v6670_v50  ;;  %3763 = vpow2.f32 %v2661_v26 }
 0x399   : > { %3765 = vpow2.f32 %v2684_v27  ;;  %v2757_v43 = vsub.f32 %v6761_v46, %v6651_v39 }
 0x39a   : > { %v2534_v15 = vand.u32 2147483647, %v2533_v3 }
 0x39b   : > { %v6766_v21 = vpop.permute.xlu1 %2771 }
 0x39c   : > { %v6768_v48 = vpop.permute.xlu0 %2752  ;;  %v2535_v63 = vmul.f32 %v3752_v51, %v2534_v15  ;;  %v3758_v24 = vpop.eup %3757 }
 0x39d   : > { %v2758_v46 = vsub.f32 %v6768_v48, %v6693_v55  ;;  %v2759_v48 = vmul.f32 %v2756_v47, %v2756_v47 }
 0x39e   : > { %v2536_v62 = vadd.f32 %v2535_v63, %v2513_v19  ;;  %v2723_v63 = vsub.f32 %v6752_v13, %v6693_v55 }
 0x39f   : > { %v2544_v9 = vpop.permute.xlu1 %2543 }
 0x3a0   : > { %v6771_v25 = vpop.permute.xlu0 %2773  ;;  %v2556_v54 = vsub.f32 %v2544_v9, %v6670_v50  ;;  %v3760_v15 = vpop.eup %3759  ;;  %v2727_v16 = vmul.f32 %v2723_v63, %v2723_v63 }
 0x3a2   : > { %v2557_v56 = vand.u32 2147483647, %v2556_v54  ;;  %v3837_v54 = vld [vmem:[%s3947_s21 + $0x2a] sm:$0xff]  ;;  %v2728_v6 = vadd.f32 %v2727_v16, %v6754_v41 }
 0x3a3   : > { %v6774_v8 = vpop.permute.xlu1 %2794  ;;  %v2864_v36 = vsub.f32 %v3837_v54, %v6651_v39 }
 0x3a4   : > { %v6776_v10 = vpop.permute.xlu0 %2775  ;;  %v2558_v35 = vmul.f32 %v3754_v32, %v2557_v56  ;;  %v3838_v56 = vld [vmem:[%s3947_s21 + $0xa] sm:$0xff]  ;;  %v3762_v13 = vpop.eup %3761  ;;  %v2802_v54 = vsub.f32 %v6774_v8, %v6644_v7 }
 0x3a5   : > { %v2863_v32 = vsub.f32 %v3838_v56, %v6644_v7  ;;  %v2781_v33 = vsub.f32 %v6776_v10, %v6693_v55 }
 0x3a6   : > { %v2559_v31 = vadd.f32 %v2558_v35, %v2536_v62  ;;  %v2619_v62 = vmul.f32 %v3760_v15, %v2618_v23 }
 0x3a7   : > { %v2567_v1 = vpop.permute.xlu1 %2566  ;;  %v2785_v10 = vmul.f32 %v2781_v33, %v2781_v33 }
 0x3a8   : > { %v6778_v2 = vpop.permute.xlu0 %2796  ;;  %v2579_v28 = vsub.f32 %v2567_v1, %v6670_v50 }
 0x3a9   : > { %v2803_v63 = vsub.f32 %v6778_v2, %v6651_v39 }
 0x3aa   : > { %v2580_v53 = vand.u32 2147483647, %v2579_v28  ;;  %v3839_v28 = vld [vmem:[%s3947_s21 + $0x4a] sm:$0xff] }
 0x3ab   : > { %v6782_v44 = vpop.permute.xlu1 %2817  ;;  %v2865_v38 = vsub.f32 %v3839_v28, %v6693_v55 }
 0x3ac   : > { %v6784_v0 = vpop.permute.xlu0 %2798  ;;  %v2581_v49 = vmul.f32 %v3756_v22, %v2580_v53  ;;  %v2867_v22 = vmul.f32 %v2864_v36, %v2864_v36  ;;  %v2825_v8 = vsub.f32 %v6782_v44, %v6644_v7 }
 0x3ad   : > { %v2869_v42 = vmul.f32 %v2865_v38, %v2865_v38  ;;  %v2804_v36 = vsub.f32 %v6784_v0, %v6693_v55 }
 0x3ae   : > { %v2582_v34 = vadd.f32 %v2581_v49, %v2559_v31  ;;  %v2707_v49 = vmul.f32 1.442695, %v2706_v57 }
 0x3af   : > { %v2590_v14 = vpop.permute.xlu1 %2589 }
 0x3b0   : > { %v6787_v45 = vpop.permute.xlu0 %2819  ;;  %v2602_v11 = vsub.f32 %v2590_v14, %v6670_v50  ;;  %v2780_v14 = vsub.f32 %v6771_v25, %v6651_v39  ;;  %3767 = vpow2.f32 %v2707_v49  ;;  %v2762_v25 = vmul.f32 %v2758_v46, %v2758_v46 }
 0x3b1   : > { %v2826_v56 = vsub.f32 %v6787_v45, %v6651_v39  ;;  %v2805_v45 = vmul.f32 %v2802_v54, %v2802_v54 }
 0x3b2   : > { %v2603_v58 = vand.u32 2147483647, %v2602_v11  ;;  %v2783_v15 = vmul.f32 %v2780_v14, %v2780_v14 }
 0x3b3   : > { %v6790_v19 = vpop.permute.xlu1 %2840  ;;  %v2829_v49 = vmul.f32 %v2826_v56, %v2826_v56 }
 0x3b4   : > { %v6792_v29 = vpop.permute.xlu0 %2821  ;;  %v2604_v3 = vmul.f32 %v3758_v24, %v2603_v58  ;;  %v3764_v58 = vpop.eup %3763  ;;  %v2760_v24 = vmul.f32 %v2757_v43, %v2757_v43  ;;  %v2806_v43 = vmul.f32 %v2803_v63, %v2803_v63  ;;  %v2848_v0 = vsub.f32 %v6790_v19, %v6644_v7 }
 0x3b5   : > { %v3766_v28 = vpop.eup %3765  ;;  %v2827_v38 = vsub.f32 %v6792_v29, %v6693_v55  ;;  %v2828_v19 = vmul.f32 %v2825_v8, %v2825_v8 }
 0x3b6   : > { %v2605_v4 = vadd.f32 %v2604_v3, %v2582_v34  ;;  %v2866_v34 = vmul.f32 %v2863_v32, %v2863_v32  ;;  %v2779_v3 = vsub.f32 %v6766_v21, %v6644_v7  ;;  %v2807_v46 = vadd.f32 %v2806_v43, %v2805_v45 }
 0x3b7   : > { %v6797_v20 = vpop.permute.xlu1 %2844 }
 0x3b8   : > { %v2843_v51 = vpop.permute.xlu0 %2842  ;;  %v2620_v30 = vadd.f32 %v2619_v62, %v2605_v4  ;;  %v2729_v4 = vsub.f32 0.0, %v2728_v6  ;;  %v2868_v23 = vadd.f32 %v2867_v22, %v2866_v34  ;;  %v2782_v21 = vmul.f32 %v2779_v3, %v2779_v3 }
 0x3b9   : > { %v2849_v2 = vsub.f32 %v2843_v51, %v6651_v39  ;;  %v2808_v51 = vmul.f32 %v2804_v36, %v2804_v36  ;;  %v2850_v47 = vsub.f32 %v6797_v20, %v6693_v55 }
 0x3ba   : > { %v2730_v16 = vmul.f32 1.442695, %v2729_v4  ;;  %v2870_v32 = vadd.f32 %v2869_v42, %v2868_v23  ;;  %v2830_v42 = vadd.f32 %v2829_v49, %v2828_v19 }
 0x3bb   : > { %v6801_v37 = vpop.permute.xlu1 %2878  ;;  %v2852_v6 = vmul.f32 %v2849_v2, %v2849_v2  ;;  %v2809_v33 = vadd.f32 %v2808_v51, %v2807_v46  ;;  %v2854_v20 = vmul.f32 %v2850_v47, %v2850_v47 }
 0x3bc   : > { %v2628_v59 = vpop.permute.xlu0 %2627  ;;  %v2871_v34 = vsub.f32 0.0, %v2870_v32  ;;  %3769 = vpow2.f32 %v2730_v16  ;;  %v2886_v4 = vsub.f32 %v6801_v37, %v6644_v7 }
 0x3bd   : > { %v2640_v9 = vsub.f32 %v2628_v59, %v6670_v50  ;;  %v2761_v59 = vadd.f32 %v2760_v24, %v2759_v48  ;;  %v3768_v23 = vpop.eup %3767  ;;  %v2810_v37 = vsub.f32 0.0, %v2809_v33 }
 0x3be   : > { %v2872_v54 = vmul.f32 1.442695, %v2871_v34  ;;  %v2889_v2 = vmul.f32 %v2886_v4, %v2886_v4 }
 0x3bf   : > { %v2641_v35 = vand.u32 2147483647, %v2640_v9  ;;  %v2651_v31 = vpop.permute.xlu1 %2650 }
 0x3c0   : > { %v6811_v1 = vpop.permute.xlu0 %2880  ;;  %v2663_v52 = vsub.f32 %v2651_v31, %v6670_v50 }
 0x3c1   : > { %v2642_v53 = vmul.f32 %v3762_v13, %v2641_v35  ;;  %v2763_v35 = vadd.f32 %v2762_v25, %v2761_v59  ;;  %v2784_v13 = vadd.f32 %v2783_v15, %v2782_v21  ;;  %v2887_v29 = vsub.f32 %v6811_v1, %v6651_v39 }
 0x3c2   : > { %v2664_v26 = vand.u32 2147483647, %v2663_v52 }
 0x3c3   : > { %v2643_v11 = vadd.f32 %v2642_v53, %v2620_v30  ;;  %v6825_v40 = vpop.permute.xlu1 %2901  ;;  %v2786_v52 = vadd.f32 %v2785_v10, %v2784_v13  ;;  %v2764_v44 = vsub.f32 0.0, %v2763_v35  ;;  %v2890_v59 = vmul.f32 %v2887_v29, %v2887_v29 }
 0x3c4   : > { %v2883_v61 = vpop.permute.xlu0 %2882  ;;  %v2665_v41 = vmul.f32 %v3764_v58, %v2664_v26  ;;  %v2831_v26 = vmul.f32 %v2827_v38, %v2827_v38  ;;  %v2909_v36 = vsub.f32 %v6825_v40, %v6644_v7 }
 0x3c5   : > { %v2787_v3 = vsub.f32 0.0, %v2786_v52  ;;  %v2765_v25 = vmul.f32 1.442695, %v2764_v44  ;;  %v2888_v15 = vsub.f32 %v2883_v61, %v6693_v55  ;;  %v2891_v43 = vadd.f32 %v2890_v59, %v2889_v2 }
 0x3c6   : > { %v2666_v27 = vadd.f32 %v2665_v41, %v2643_v11  ;;  %v2851_v11 = vmul.f32 %v2848_v0, %v2848_v0  ;;  %v2832_v1 = vadd.f32 %v2831_v26, %v2830_v42  ;;  %v2912_v0 = vmul.f32 %v2909_v36, %v2909_v36 }
 0x3c7   : > { %v2674_v62 = vpop.permute.xlu1 %2673  ;;  %v2788_v10 = vmul.f32 1.442695, %v2787_v3  ;;  %3771 = vpow2.f32 %v2765_v25  ;;  %v2811_v52 = vmul.f32 1.442695, %v2810_v37 }
 0x3c8   : > { %v2904_v9 = vpop.permute.xlu0 %2903  ;;  %v2686_v57 = vsub.f32 %v2674_v62, %v6670_v50  ;;  %v2853_v48 = vadd.f32 %v2852_v6, %v2851_v11  ;;  %v2833_v13 = vsub.f32 0.0, %v2832_v1 }
 0x3c9   : > { %v2910_v63 = vsub.f32 %v2904_v9, %v6651_v39  ;;  %v2892_v9 = vmul.f32 %v2888_v15, %v2888_v15  ;;  %3773 = vpow2.f32 %v2788_v10 }
 0x3ca   : > { %v2687_v31 = vand.u32 2147483647, %v2686_v57  ;;  %v2855_v56 = vadd.f32 %v2854_v20, %v2853_v48  ;;  %v2834_v44 = vmul.f32 1.442695, %v2833_v13  ;;  %3775 = vpow2.f32 %v2872_v54 }
 0x3cb   : > { %v2925_v30 = vpop.permute.xlu1 %2924  ;;  %v2913_v32 = vmul.f32 %v2910_v63, %v2910_v63  ;;  %v2893_v49 = vadd.f32 %v2892_v9, %v2891_v43  ;;  %3777 = vpow2.f32 %v2811_v52 }
 0x3cc   : > { %v2906_v53 = vpop.permute.xlu0 %2905  ;;  %v2688_v22 = vmul.f32 %v3766_v28, %v2687_v31  ;;  %v2932_v31 = vsub.f32 %v2925_v30, %v6644_v7  ;;  %v2856_v51 = vsub.f32 0.0, %v2855_v56  ;;  %v3770_v30 = vpop.eup %3769  ;;  %3779 = vpow2.f32 %v2834_v44 }
 0x3cd   : > { %v2911_v57 = vsub.f32 %v2906_v53, %v6693_v55  ;;  %v2914_v47 = vadd.f32 %v2913_v32, %v2912_v0 }
 0x3ce   : > { %v2689_v14 = vadd.f32 %v2688_v22, %v2666_v27  ;;  %v2935_v46 = vmul.f32 %v2932_v31, %v2932_v31  ;;  %v2857_v3 = vmul.f32 1.442695, %v2856_v51 }
 0x3cf   : > { %v2697_v58 = vpop.permute.xlu1 %2696  ;;  %v2915_v38 = vmul.f32 %v2911_v57, %v2911_v57 }
 0x3d0   : > { %v2927_v24 = vpop.permute.xlu0 %2926  ;;  %v2709_v41 = vsub.f32 %v2697_v58, %v6670_v50  ;;  %3781 = vpow2.f32 %v2857_v3 }
 0x3d1   : > { %v2933_v61 = vsub.f32 %v2927_v24, %v6651_v39  ;;  %v2916_v26 = vadd.f32 %v2915_v38, %v2914_v47 }
 0x3d2   : > { %v2710_v27 = vand.u32 2147483647, %v2709_v41  ;;  %v2894_v41 = vsub.f32 0.0, %v2893_v49 }
 0x3d3   : > { %v2948_v21 = vpop.permute.xlu1 %2947  ;;  %v2936_v22 = vmul.f32 %v2933_v61, %v2933_v61  ;;  %v2917_v15 = vsub.f32 0.0, %v2916_v26 }
 0x3d4   : > { %v2929_v62 = vpop.permute.xlu0 %2928  ;;  %v2711_v16 = vmul.f32 %v3768_v23, %v2710_v27  ;;  %v2955_v6 = vsub.f32 %v2948_v21, %v6644_v7  ;;  %v2895_v21 = vmul.f32 1.442695, %v2894_v41  ;;  %v3772_v10 = vpop.eup %3771 }
 0x3d5   : > { %v2934_v28 = vsub.f32 %v2929_v62, %v6693_v55  ;;  %v2937_v33 = vadd.f32 %v2936_v22, %v2935_v46  ;;  %v2918_v56 = vmul.f32 1.442695, %v2917_v15 }
 0x3d6   : > { %v2712_v35 = vadd.f32 %v2711_v16, %v2689_v14  ;;  %v2958_v42 = vmul.f32 %v2955_v6, %v2955_v6  ;;  %v3774_v32 = vpop.eup %3773  ;;  %3783 = vpow2.f32 %v2895_v21 }
 0x3d7   : > { %v2720_v8 = vpop.permute.xlu1 %2719  ;;  %v2938_v14 = vmul.f32 %v2934_v28, %v2934_v28  ;;  %v3776_v0 = vpop.eup %3775  ;;  %3785 = vpow2.f32 %v2918_v56 }
 0x3d8   : > { %v2950_v40 = vpop.permute.xlu0 %2949  ;;  %v2732_v53 = vsub.f32 %v2720_v8, %v6670_v50  ;;  %v3778_v52 = vpop.eup %3777 }
 0x3d9   : > { %v2956_v45 = vsub.f32 %v2950_v40, %v6651_v39  ;;  %v2939_v4 = vadd.f32 %v2938_v14, %v2937_v33  ;;  %v2874_v40 = vsub.f32 %v6663_v5, %v6670_v50  ;;  %v3780_v46 = vpop.eup %3779 }
 0x3da   : > { %v2733_v34 = vand.u32 2147483647, %v2732_v53 }
 0x3db   : > { %v2971_v19 = vpop.permute.xlu1 %2970  ;;  %v2959_v58 = vmul.f32 %v2956_v45, %v2956_v45  ;;  %v2940_v36 = vsub.f32 0.0, %v2939_v4 }
 0x3dc   : > { %v2952_v11 = vpop.permute.xlu0 %2951  ;;  %v2734_v29 = vmul.f32 %v3770_v30, %v2733_v34  ;;  %v2978_v59 = vsub.f32 %v2971_v19, %v6644_v7  ;;  %v2875_v30 = vand.u32 2147483647, %v2874_v40 }
 0x3dd   : > { %v2957_v24 = vsub.f32 %v2952_v11, %v6693_v55  ;;  %v2960_v63 = vadd.f32 %v2959_v58, %v2958_v42  ;;  %v2941_v13 = vmul.f32 1.442695, %v2940_v36  ;;  %v3782_v3 = vpop.eup %3781 }
 0x3de   : > { %v2735_v20 = vadd.f32 %v2734_v29, %v2712_v35  ;;  %v2981_v61 = vmul.f32 %v2978_v59, %v2978_v59  ;;  %v2876_v4 = vmul.f32 %v3776_v0, %v2875_v30 }
 0x3df   : > { %v2961_v48 = vmul.f32 %v2957_v24, %v2957_v24  ;;  %v2755_v23 = vpop.permute.xlu1 %2754  ;;  %3787 = vpow2.f32 %v2941_v13 }
 0x3e0   : > { %v2973_v25 = vpop.permute.xlu0 %2972  ;;  %v2767_v27 = vsub.f32 %v2755_v23, %v6670_v50 }
 0x3e1   : > { %v2979_v1 = vsub.f32 %v2973_v25, %v6651_v39  ;;  %v2962_v62 = vadd.f32 %v2961_v48, %v2960_v63 }
 0x3e2   : > { %v2768_v54 = vand.u32 2147483647, %v2767_v27 }
 0x3e3   : > { %v2982_v57 = vmul.f32 %v2979_v1, %v2979_v1  ;;  %v2778_v16 = vpop.permute.xlu1 %2777  ;;  %v2963_v39 = vsub.f32 0.0, %v2962_v62  ;;  %v3784_v63 = vpop.eup %3783 }
 0x3e4   : > { %v2975_v37 = vpop.permute.xlu0 %2974  ;;  %v2790_v2 = vsub.f32 %v2778_v16, %v6670_v50  ;;  %v2769_v35 = vmul.f32 %v3772_v10, %v2768_v54  ;;  %v3786_v54 = vpop.eup %3785 }
 0x3e5   : > { %v2980_v9 = vsub.f32 %v2975_v37, %v6693_v55  ;;  %v2983_v43 = vadd.f32 %v2982_v57, %v2981_v61  ;;  %v2964_v51 = vmul.f32 1.442695, %v2963_v39 }
 0x3e6   : > { %v2791_v7 = vand.u32 2147483647, %v2790_v2  ;;  %v2770_v22 = vadd.f32 %v2769_v35, %v2735_v20 }
 0x3e7   : > { %v2984_v31 = vmul.f32 %v2980_v9, %v2980_v9  ;;  %v2824_v28 = vpop.permute.xlu1 %2823  ;;  %3789 = vpow2.f32 %v2964_v51 }
 0x3e8   : > { %v2801_v8 = vpop.permute.xlu0 %2800  ;;  %v2792_v38 = vmul.f32 %v3774_v32, %v2791_v7  ;;  %v2836_v53 = vsub.f32 %v2824_v28, %v6670_v50 }
 0x3e9   : > { %v2813_v55 = vsub.f32 %v2801_v8, %v6670_v50  ;;  %v2985_v45 = vadd.f32 %v2984_v31, %v2983_v43 }
 0x3ea   : > { %v2837_v49 = vand.u32 2147483647, %v2836_v53  ;;  %v2793_v5 = vadd.f32 %v2792_v38, %v2770_v22 }
 0x3eb   : > { %v2814_v47 = vand.u32 2147483647, %v2813_v55  ;;  %v2986_v6 = vsub.f32 0.0, %v2985_v45  ;;  %v2885_v34 = vpop.permute.xlu1 %2884 }
 0x3ec   : > { %v2847_v44 = vpop.permute.xlu0 %2846  ;;  %v2897_v19 = vsub.f32 %v2885_v34, %v6670_v50  ;;  %v2838_v29 = vmul.f32 %v3780_v46, %v2837_v49  ;;  %v3788_v9 = vpop.eup %3787 }
 0x3ed   : > { %v2815_v14 = vmul.f32 %v3778_v52, %v2814_v47  ;;  %v2859_v11 = vsub.f32 %v2847_v44, %v6670_v50  ;;  %v2987_v26 = vmul.f32 1.442695, %v2986_v6 }
 0x3ee   : > { %v2898_v42 = vand.u32 2147483647, %v2897_v19 }
 0x3ef   : > { %v2816_v58 = vadd.f32 %v2815_v14, %v2793_v5  ;;  %v2860_v24 = vand.u32 2147483647, %v2859_v11  ;;  %3791 = vpow2.f32 %v2987_v26  ;;  %v2931_v33 = vpop.permute.xlu1 %2930 }
 0x3f0   : > { %v2908_v41 = vpop.permute.xlu0 %2907  ;;  %v2943_v23 = vsub.f32 %v2931_v33, %v6670_v50  ;;  %v2899_v21 = vmul.f32 %v3784_v63, %v2898_v42 }
 0x3f1   : > { %v2839_v20 = vadd.f32 %v2838_v29, %v2816_v58  ;;  %v2861_v48 = vmul.f32 %v3782_v3, %v2860_v24  ;;  %v2920_v25 = vsub.f32 %v2908_v41, %v6670_v50 }
 0x3f2   : > { %v2944_v10 = vand.u32 2147483647, %v2943_v23 }
 0x3f3   : > { %v2862_v15 = vadd.f32 %v2861_v48, %v2839_v20  ;;  %v2921_v27 = vand.u32 2147483647, %v2920_v25  ;;  %v2954_v1 = vpop.permute.xlu1 %2953 }
 0x3f4   : > { %v3535_v59 = vpop.permute.xlu0 %3534  ;;  %v2966_v36 = vsub.f32 %v2954_v1, %v6670_v50  ;;  %v2945_v7 = vmul.f32 %v3788_v9, %v2944_v10  ;;  %v3790_v8 = vpop.eup %3789 }
 0x3f5   : > { %v2877_v62 = vadd.f32 %v2876_v4, %v2862_v15  ;;  %v3537_v57 = vunpack.i.h.bf16 %v3535_v59  ;;  %v2922_v37 = vmul.f32 %v3786_v54, %v2921_v27  ;;  %v3536_v56 = vunpack.i.l.bf16 %v3535_v59 }
 0x3f6   : > { %v2967_v13 = vand.u32 2147483647, %v2966_v36 }
 0x3f7   : > { %v2900_v16 = vadd.f32 %v2899_v21, %v2877_v62  ;;  %v2977_v2 = vpop.permute.xlu1 %2976  ;;  %v3081_v43 = vmin.f32 %v6713_v60, %v3537_v57  ;;  %v3075_v28 = vmax.f32 %v6711_v17, %v3536_v56 }
 0x3f8   : > { %v3540_v61 = vpop.permute.xlu0 %3539  ;;  %v2989_v39 = vsub.f32 %v2977_v2, %v6670_v50  ;;  %v2968_v49 = vmul.f32 %v3790_v8, %v2967_v13 }
 0x3f9   : > { %v2923_v32 = vadd.f32 %v2922_v37, %v2900_v16  ;;  %v3542_v35 = vunpack.i.h.bf16 %v3540_v61  ;;  %v3541_v31 = vunpack.i.l.bf16 %v3540_v61 }
 0x3fa   : > { %v2990_v0 = vand.u32 2147483647, %v2989_v39 }
 0x3fb   : > { %v2946_v40 = vadd.f32 %v2945_v7, %v2923_v32  ;;  %v3084_v38 = vmin.f32 %v3081_v43, %v3542_v35  ;;  %v3550_v55 = vpop.permute.xlu1 %3549  ;;  %v3078_v50 = vmax.f32 %v3075_v28, %v3541_v31 }
 0x3fc   : > { %v3545_v53 = vpop.permute.xlu0 %3544  ;;  %v3792_v45 = vpop.eup %3791  ;;  %v3552_v22 = vunpack.i.h.bf16 %v3550_v55  ;;  %v3551_v60 = vunpack.i.l.bf16 %v3550_v55 }
 0x3fd   : > { %v3547_v52 = vunpack.i.h.bf16 %v3545_v53  ;;  %v3546_v51 = vunpack.i.l.bf16 %v3545_v53  ;;  %v2969_v17 = vadd.f32 %v2968_v49, %v2946_v40  ;;  %v2991_v34 = vmul.f32 %v3792_v45, %v2990_v0 }
 0x3ff   : > { %v3087_v47 = vmax.f32 %v3078_v50, %v3546_v51  ;;  %v3093_v6 = vmin.f32 %v3084_v38, %v3547_v52  ;;  %v2992_v5 = vadd.f32 %v2991_v34, %v2969_v17 }
 0x401   : > { %v3090_v30 = vmax.f32 %v3087_v47, %v3551_v60  ;;  %v3096_v44 = vmin.f32 %v3093_v6, %v3552_v22 }
 0x403   : > { %v3097_v46 = vsub.f32 %v3090_v30, %v3096_v44 }
 0x405   : > { %v3103_v14 = vsel %vm3102_vm6, %v3097_v46, 0.0 }
 0x406   : > { %3116 = vadd.xlane.f32.xlu1 %v3103_v14  ;;  %v3104_v19 = vmul.f32 %v3103_v14, %v2992_v5 }
 0x408   : > { %3105 = vadd.xlane.f32.xlu0 %v3104_v19 }
 0x48f   : > { %v3117_v11 = vpop.xlane.xlu1 %3116 }
 0x490   : > { %v3118_v26 = vrot.slane %v3117_v11, 4 }
 0x491   : > { %v3106_v29 = vpop.xlane.xlu0 %3105 }
 0x492   : > { %v3119_v12 = vadd.f32 %v3118_v26, %v3117_v11  ;;  %v3107_v58 = vrot.slane %v3106_v29, 4 }
 0x494   : > { %v3120_v18 = vrot.slane %v3119_v12, 2  ;;  %v3108_v24 = vadd.f32 %v3107_v58, %v3106_v29 }
 0x496   : > { %v3121_v3 = vadd.f32 %v3120_v18, %v3119_v12  ;;  %v3109_v33 = vrot.slane %v3108_v24, 2 }
 0x498   : > { %v3110_v41 = vadd.f32 %v3109_v33, %v3108_v24  ;;  %v3122_v42 = vrot.slane %v3121_v3, 1 }
 0x49a   : > { %v3111_v20 = vrot.slane %v3110_v41, 1  ;;  %v3123_v4 = vadd.f32 %v3122_v42, %v3121_v3 }
 0x49c   : > { %v3112_v48 = vadd.f32 %v3111_v20, %v3110_v41 }
 0x49e   : > { %3478 = vpush %v3112_v48 }
 0x49f   : > { %3480 = vpush %v3123_v4 }
 0x4cf   : > { %s3479_s16 = spop %3478 }
 0x4d0   : > { %v3114_v23 = vstv %s3479_s16  ;;  %s3481_s20 = spop %3480 }
 0x4d1   : > { %3115 = vst [vmem:[%s173_s8] sm:$0x1] %v3114_v23  ;;  %v3125_v25 = vstv %s3481_s20 }
 0x4d2   : > { %3126 = vst [vmem:[%s180_s19] sm:$0x1] %v3125_v25 }
 0x4d3 PF: > { %s13_s13 = sadd.s32 1, %s3878_s13   ;;  %s7377_s9 = smov %s3870_s11 }
 0x4d4   : > { %p10_p7 = scmp.ge.s32.totalorder %s13_s13, 6   ;;  %s7378_s10 = smov %s3874_s12 }
 0x4d5   : > { %s7379_s11 = smov %s7382_s14  ;;  %s7380_s12 = smov %s7386_s15 }
 0x4d6   :  { %12 = sbr.rel (!%p10_p7) target bundleno = 3 (0x3), region = 110 }

</bundles_post_ra>
